<compile_context>
chip_gen: v6e
topology: v6e:2x2x1
jax: 0.10.0
libtpu: 0.0.40
codegen_flags: <defaults>
</compile_context>

<pallas_src>
import functools

import jax
import jax.numpy as jnp
from jax import lax
from jax.experimental import pallas as pl
from jax.experimental.pallas import tpu as pltpu


def _round_up(x, m):
    return ((x + m - 1) // m) * m


# ----------------------------------------------------------------------------
# Fused forward kernel (one pallas_call, no grid — everything fits in VMEM)
# ----------------------------------------------------------------------------
def _make_fused_kernel(L, Te, Td, Bp, Hp):
    G = 4 * Hp

    def kernel(*refs):
        it = iter(refs)
        enc_x_ref = next(it)                                   # (Te, Bp, E)
        dec_x_ref = next(it)                                   # (Td, Bp, E)
        enc_w = [(next(it), next(it), next(it)) for _ in range(L)]
        dec_w = [(next(it), next(it), next(it)) for _ in range(L)]
        w_ctx_ref = next(it)                                   # (Hp, Vp)
        w_dec_ref = next(it)                                   # (Hp, Vp)
        b_out_ref = next(it)                                   # (1, Vp)
        logits_ref = next(it)                                  # (Bp, Td, Vp)  output
        enc_buf = next(it)                                     # (Te, Bp, Hp)  scratch
        dec_buf = next(it)                                     # (Td, Bp, Hp)  scratch
        gates_buf = next(it)                                   # (Tmax, Bp, 4Hp) scratch

        def run_layer(T, x, out_buf, w_ih_ref, w_hh_ref, b_ref, h0, c0):
            # Hoisted input projection: one big MXU matmul for the whole sequence,
            # bias (b_ih + b_hh, fused) folded in once.
            din = x.shape[-1]
            xg = jnp.dot(x.reshape(T * Bp, din), w_ih_ref[...],
                         preferred_element_type=jnp.float32) + b_ref[...]
            gates_buf[0:T] = xg.reshape(T, Bp, G)
            w_hh = w_hh_ref[...]

            def step(t, carry):
                h, c = carry
                g = gates_buf[t] + jnp.dot(h, w_hh,
                                           preferred_element_type=jnp.float32)
                # PyTorch gate order: i, f, g, o — Hp-aligned (full-vreg) slices.
                i = jax.nn.sigmoid(g[:, 0 * Hp:1 * Hp])
                f = jax.nn.sigmoid(g[:, 1 * Hp:2 * Hp])
                gg = jnp.tanh(g[:, 2 * Hp:3 * Hp])
                o = jax.nn.sigmoid(g[:, 3 * Hp:4 * Hp])
                c_new = f * c + i * gg
                h_new = o * jnp.tanh(c_new)
                out_buf[t] = h_new
                return (h_new, c_new)

            return lax.fori_loop(0, T, step, (h0, c0), unroll=True)

        zeros = jnp.zeros((Bp, Hp), jnp.float32)

        # ---- Encoder stack (activations stay in VMEM) ----
        h_fin, c_fin = [], []
        for l in range(L):
            x = enc_x_ref[...] if l == 0 else enc_buf[...]
            hT, cT = run_layer(Te, x, enc_buf, *enc_w[l], zeros, zeros)
            h_fin.append(hT)
            c_fin.append(cT)

        # ---- Decoder stack, initialized from encoder final (h, c) ----
        for l in range(L):
            x = dec_x_ref[...] if l == 0 else dec_buf[...]
            run_layer(Td, x, dec_buf, *dec_w[l], h_fin[l], c_fin[l])

        # ---- Luong dot attention + vocab projection (split weights, no concat) ----
        d = jnp.transpose(dec_buf[...], (1, 0, 2))             # (Bp, Td, Hp)
        e = jnp.transpose(enc_buf[...], (1, 0, 2))             # (Bp, Te, Hp)
        s = jnp.einsum('bth,bsh->bts', d, e, preferred_element_type=jnp.float32)
        s = s - jnp.max(s, axis=-1, keepdims=True)
        p = jnp.exp(s)
        p = p * pl.reciprocal(jnp.sum(p, axis=-1, keepdims=True), approx=True)
        ctx = jnp.einsum('bts,bsh->bth', p, e, preferred_element_type=jnp.float32)
        logits = (jnp.einsum('bth,hv->btv', ctx, w_ctx_ref[...],
                             preferred_element_type=jnp.float32)
                  + jnp.einsum('bth,hv->btv', d, w_dec_ref[...],
                               preferred_element_type=jnp.float32)
                  + b_out_ref[...])
        logits_ref[...] = logits                               # lane-dense (Vp % 128 == 0)

    return kernel


# ----------------------------------------------------------------------------
# Parameter init (same layout as before: (Din,4H)/(H,4H) weights, fused bias)
# ----------------------------------------------------------------------------
def init_params(key, vocab_size, embedding_dim, hidden_size, num_layers):
    def normal(k, shape, scale=0.1):
        return (scale * jax.random.normal(k, shape)).astype(jnp.float32)

    keys = iter(jax.random.split(key, 64))
    params = {
        'enc_emb': normal(next(keys), (vocab_size, embedding_dim)),
        'dec_emb': normal(next(keys), (vocab_size, embedding_dim)),
        'w_out': normal(next(keys), (2 * hidden_size, vocab_size)),
        'b_out': jnp.zeros((1, vocab_size), jnp.float32),
        'enc_lstm': [],
        'dec_lstm': [],
    }
    for which in ('enc_lstm', 'dec_lstm'):
        for layer in range(num_layers):
            din = embedding_dim if layer == 0 else hidden_size
            params[which].append({
                'w_ih': normal(next(keys), (din, 4 * hidden_size)),
                'w_hh': normal(next(keys), (hidden_size, 4 * hidden_size)),
                'b': normal(next(keys), (1, 4 * hidden_size)),
            })
    return params


def _pad_gate_cols(w, H, Hp):
    """(..., 4H) -> (..., 4Hp): zero-pad each of the 4 (i,f,g,o) gate blocks to Hp lanes."""
    blocks = jnp.split(w, 4, axis=-1)
    pad = [(0, 0)] * (w.ndim - 1) + [(0, Hp - H)]
    return jnp.concatenate([jnp.pad(b, pad) for b in blocks], axis=-1)


@functools.partial(jax.jit, static_argnames=('num_layers', 'hidden_size'))
def my_model_forward(params, encoder_inputs, decoder_inputs, *, num_layers, hidden_size):
    """Training-mode forward: returns decoder logits (B, Td, V)."""
    B, Te = encoder_inputs.shape
    _, Td = decoder_inputs.shape
    V, E = params['enc_emb'].shape
    H = hidden_size
    L = num_layers
    Hp = _round_up(H, 128)     # lane-align hidden size
    Vp = _round_up(V, 128)     # lane-dense logits store
    Bp = _round_up(B, 8)       # sublane-align batch

    # Embedding gather directly into time-major layout; pad batch with zero rows.
    enc_x = jnp.take(params['enc_emb'], encoder_inputs.T, axis=0)   # (Te, B, E)
    dec_x = jnp.take(params['dec_emb'], decoder_inputs.T, axis=0)   # (Td, B, E)
    enc_x = jnp.pad(enc_x, ((0, 0), (0, Bp - B), (0, 0)))
    dec_x = jnp.pad(dec_x, ((0, 0), (0, Bp - B), (0, 0)))

    def pad_layer(lp, din, din_p):
        w_ih = _pad_gate_cols(lp['w_ih'], H, Hp)
        w_ih = jnp.pad(w_ih, ((0, din_p - din), (0, 0)))
        w_hh = _pad_gate_cols(lp['w_hh'], H, Hp)
        w_hh = jnp.pad(w_hh, ((0, Hp - H), (0, 0)))
        b = _pad_gate_cols(lp['b'], H, Hp)
        return w_ih, w_hh, b

    flat_args = [enc_x, dec_x]
    for which in ('enc_lstm', 'dec_lstm'):
        for li in range(L):
            din = E if li == 0 else H
            din_p = E if li == 0 else Hp
            flat_args.extend(pad_layer(params[which][li], din, din_p))

    # Split the output projection (rows [0:H] -> context, [H:2H] -> decoder hidden).
    w_ctx = jnp.pad(params['w_out'][:H], ((0, Hp - H), (0, Vp - V)))
    w_dec = jnp.pad(params['w_out'][H:], ((0, Hp - H), (0, Vp - V)))
    b_out = jnp.pad(params['b_out'], ((0, 0), (0, Vp - V)))
    flat_args.extend([w_ctx, w_dec, b_out])

    vmem = pl.BlockSpec(memory_space=pltpu.MemorySpace.VMEM)
    Tmax = max(Te, Td)
    logits_p = pl.pallas_call(
        _make_fused_kernel(L, Te, Td, Bp, Hp),
        out_shape=jax.ShapeDtypeStruct((Bp, Td, Vp), jnp.float32),
        in_specs=[vmem] * len(flat_args),
        out_specs=vmem,
        scratch_shapes=[
            pltpu.VMEM((Te, Bp, Hp), jnp.float32),       # encoder activations / outputs
            pltpu.VMEM((Td, Bp, Hp), jnp.float32),       # decoder activations
            pltpu.VMEM((Tmax, Bp, 4 * Hp), jnp.float32)  # hoisted input-gate buffer
        ],
    )(*flat_args)
    return logits_p[:B, :, :V]


if __name__ == "__main__":
    VOCAB = 64
    EMB = 16
    HIDDEN = 32
    LAYERS = 2
    B, TE, TD = 2, 8, 8

    key = jax.random.PRNGKey(0)
    kp, ke, kd = jax.random.split(key, 3)
    params = init_params(kp, VOCAB, EMB, HIDDEN, LAYERS)

    encoder_inputs = jax.random.randint(ke, (B, TE), 0, VOCAB, dtype=jnp.int32)
    decoder_inputs = jax.random.randint(kd, (B, TD), 0, VOCAB, dtype=jnp.int32)

    logits = my_model_forward(params, encoder_inputs, decoder_inputs,
                              num_layers=LAYERS, hidden_size=HIDDEN)
    logits = jax.block_until_ready(logits)
    assert logits.shape == (B, TD, VOCAB)
    assert bool(jnp.all(jnp.isfinite(logits)))
    print("KERNEL_OK")
</pallas_src>

<mosaic_0001>
module attributes {stable_mosaic.version = 11 : i64} {
  func.func @kernel(%arg0: memref<8x8x16xf32, #tpu.memory_space<vmem>>, %arg1: memref<8x8x16xf32, #tpu.memory_space<vmem>>, %arg2: memref<16x512xf32, #tpu.memory_space<vmem>>, %arg3: memref<128x512xf32, #tpu.memory_space<vmem>>, %arg4: memref<1x512xf32, #tpu.memory_space<vmem>>, %arg5: memref<128x512xf32, #tpu.memory_space<vmem>>, %arg6: memref<128x512xf32, #tpu.memory_space<vmem>>, %arg7: memref<1x512xf32, #tpu.memory_space<vmem>>, %arg8: memref<16x512xf32, #tpu.memory_space<vmem>>, %arg9: memref<128x512xf32, #tpu.memory_space<vmem>>, %arg10: memref<1x512xf32, #tpu.memory_space<vmem>>, %arg11: memref<128x512xf32, #tpu.memory_space<vmem>>, %arg12: memref<128x512xf32, #tpu.memory_space<vmem>>, %arg13: memref<1x512xf32, #tpu.memory_space<vmem>>, %arg14: memref<128x128xf32, #tpu.memory_space<vmem>>, %arg15: memref<128x128xf32, #tpu.memory_space<vmem>>, %arg16: memref<1x128xf32, #tpu.memory_space<vmem>>, %arg17: memref<8x8x128xf32, #tpu.memory_space<vmem>>, %arg18: memref<8x8x128xf32, #tpu.memory_space<vmem>>, %arg19: memref<8x8x128xf32, #tpu.memory_space<vmem>>, %arg20: memref<8x8x512xf32, #tpu.memory_space<vmem>>) attributes {dimension_semantics = [], scalar_prefetch = 0 : i64, scratch_operands = 3 : i64, tpu.core_type = #tpu.core_type<tc>} {
    %cst = arith.constant 0.000000e+00 : f32
    %0 = vector.broadcast %cst : f32 to vector<8x128xf32>
    %c0 = arith.constant 0 : index
    %c0_0 = arith.constant 0 : index
    %c0_1 = arith.constant 0 : index
    %1 = vector.load %arg0[%c0, %c0_0, %c0_1] : memref<8x8x16xf32, #tpu.memory_space<vmem>>, vector<8x8x16xf32>
    %2 = vector.shape_cast %1 : vector<8x8x16xf32> to vector<64x16xf32>
    %c0_2 = arith.constant 0 : index
    %c0_3 = arith.constant 0 : index
    %3 = vector.load %arg2[%c0_2, %c0_3] : memref<16x512xf32, #tpu.memory_space<vmem>>, vector<16x512xf32>
    %cst_4 = arith.constant dense<0.000000e+00> : vector<64x512xf32>
    %4 = tpu.matmul %2, %3, %cst_4 {dimension_numbers = #tpu.dot_dimension_numbers<[1], [0], [0], [1], [0, 0, 1, 1], [], []>} : vector<64x16xf32>, vector<16x512xf32>, vector<64x512xf32> -> vector<64x512xf32>
    %c0_5 = arith.constant 0 : index
    %c0_6 = arith.constant 0 : index
    %5 = vector.load %arg4[%c0_5, %c0_6] : memref<1x512xf32, #tpu.memory_space<vmem>>, vector<1x512xf32>
    %6 = vector.broadcast %5 : vector<1x512xf32> to vector<64x512xf32>
    %7 = arith.addf %4, %6 : vector<64x512xf32>
    %8 = vector.shape_cast %7 : vector<64x512xf32> to vector<8x8x512xf32>
    %c0_7 = arith.constant 0 : index
    %c0_8 = arith.constant 0 : index
    %c0_9 = arith.constant 0 : index
    %9 = vector.load %arg20[%c0_7, %c0_8, %c0_9] : memref<8x8x512xf32, #tpu.memory_space<vmem>>, vector<8x8x512xf32>
    tpu.vector_store %arg20[%c0_7, %c0_8, %c0_9], %8 {strides = array<i32>} : memref<8x8x512xf32, #tpu.memory_space<vmem>>, vector<8x8x512xf32>,
    %c0_10 = arith.constant 0 : index
    %c0_11 = arith.constant 0 : index
    %10 = vector.load %arg3[%c0_10, %c0_11] : memref<128x512xf32, #tpu.memory_space<vmem>>, vector<128x512xf32>
    %c0_i32 = arith.constant 0 : i32
    %11 = arith.index_cast %c0_i32 : i32 to index
    %c0_12 = arith.constant 0 : index
    %c0_13 = arith.constant 0 : index
    %12 = vector.load %arg20[%11, %c0_12, %c0_13] : memref<8x8x512xf32, #tpu.memory_space<vmem>>, vector<1x8x512xf32>
    %13 = vector.shape_cast %12 : vector<1x8x512xf32> to vector<8x512xf32>
    %cst_14 = arith.constant dense<0.000000e+00> : vector<8x512xf32>
    %14 = tpu.matmul %0, %10, %cst_14 {dimension_numbers = #tpu.dot_dimension_numbers<[1], [0], [0], [1], [0, 0, 1, 1], [], []>} : vector<8x128xf32>, vector<128x512xf32>, vector<8x512xf32> -> vector<8x512xf32>
    %15 = arith.addf %13, %14 : vector<8x512xf32>
    %16 = vector.extract_strided_slice %15 {offsets = [0, 0], sizes = [8, 128], strides = [1, 1]} : vector<8x512xf32> to vector<8x128xf32>
    %17 = arith.negf %16 : vector<8x128xf32>
    %18 = math.exp %17 : vector<8x128xf32>
    %cst_15 = arith.constant 1.000000e+00 : f32
    %19 = vector.broadcast %cst_15 : f32 to vector<8x128xf32>
    %20 = arith.addf %19, %18 : vector<8x128xf32>
    %21 = arith.divf %19, %20 : vector<8x128xf32>
    %22 = vector.extract_strided_slice %15 {offsets = [0, 128], sizes = [8, 128], strides = [1, 1]} : vector<8x512xf32> to vector<8x128xf32>
    %23 = arith.negf %22 : vector<8x128xf32>
    %24 = math.exp %23 : vector<8x128xf32>
    %cst_16 = arith.constant 1.000000e+00 : f32
    %25 = vector.broadcast %cst_16 : f32 to vector<8x128xf32>
    %26 = arith.addf %25, %24 : vector<8x128xf32>
    %27 = arith.divf %25, %26 : vector<8x128xf32>
    %28 = vector.extract_strided_slice %15 {offsets = [0, 256], sizes = [8, 128], strides = [1, 1]} : vector<8x512xf32> to vector<8x128xf32>
    %29 = math.tanh %28 : vector<8x128xf32>
    %30 = vector.extract_strided_slice %15 {offsets = [0, 384], sizes = [8, 128], strides = [1, 1]} : vector<8x512xf32> to vector<8x128xf32>
    %31 = arith.negf %30 : vector<8x128xf32>
    %32 = math.exp %31 : vector<8x128xf32>
    %cst_17 = arith.constant 1.000000e+00 : f32
    %33 = vector.broadcast %cst_17 : f32 to vector<8x128xf32>
    %34 = arith.addf %33, %32 : vector<8x128xf32>
    %35 = arith.divf %33, %34 : vector<8x128xf32>
    %36 = arith.mulf %27, %0 : vector<8x128xf32>
    %37 = arith.mulf %21, %29 : vector<8x128xf32>
    %38 = arith.addf %36, %37 : vector<8x128xf32>
    %39 = math.tanh %38 : vector<8x128xf32>
    %40 = arith.mulf %35, %39 : vector<8x128xf32>
    %41 = arith.index_cast %c0_i32 : i32 to index
    %c0_18 = arith.constant 0 : index
    %c0_19 = arith.constant 0 : index
    %42 = vector.load %arg18[%41, %c0_18, %c0_19] : memref<8x8x128xf32, #tpu.memory_space<vmem>>, vector<1x8x128xf32>
    %43 = vector.shape_cast %42 : vector<1x8x128xf32> to vector<8x128xf32>
    %44 = vector.shape_cast %40 : vector<8x128xf32> to vector<1x8x128xf32>
    tpu.vector_store %arg18[%41, %c0_18, %c0_19], %44 {strides = array<i32>} : memref<8x8x128xf32, #tpu.memory_space<vmem>>, vector<1x8x128xf32>,
    %c1_i32 = arith.constant 1 : i32
    %45 = arith.index_cast %c1_i32 : i32 to index
    %c0_20 = arith.constant 0 : index
    %c0_21 = arith.constant 0 : index
    %46 = vector.load %arg20[%45, %c0_20, %c0_21] : memref<8x8x512xf32, #tpu.memory_space<vmem>>, vector<1x8x512xf32>
    %47 = vector.shape_cast %46 : vector<1x8x512xf32> to vector<8x512xf32>
    %cst_22 = arith.constant dense<0.000000e+00> : vector<8x512xf32>
    %48 = tpu.matmul %40, %10, %cst_22 {dimension_numbers = #tpu.dot_dimension_numbers<[1], [0], [0], [1], [0, 0, 1, 1], [], []>} : vector<8x128xf32>, vector<128x512xf32>, vector<8x512xf32> -> vector<8x512xf32>
    %49 = arith.addf %47, %48 : vector<8x512xf32>
    %50 = vector.extract_strided_slice %49 {offsets = [0, 0], sizes = [8, 128], strides = [1, 1]} : vector<8x512xf32> to vector<8x128xf32>
    %51 = arith.negf %50 : vector<8x128xf32>
    %52 = math.exp %51 : vector<8x128xf32>
    %cst_23 = arith.constant 1.000000e+00 : f32
    %53 = vector.broadcast %cst_23 : f32 to vector<8x128xf32>
    %54 = arith.addf %53, %52 : vector<8x128xf32>
    %55 = arith.divf %53, %54 : vector<8x128xf32>
    %56 = vector.extract_strided_slice %49 {offsets = [0, 128], sizes = [8, 128], strides = [1, 1]} : vector<8x512xf32> to vector<8x128xf32>
    %57 = arith.negf %56 : vector<8x128xf32>
    %58 = math.exp %57 : vector<8x128xf32>
    %cst_24 = arith.constant 1.000000e+00 : f32
    %59 = vector.broadcast %cst_24 : f32 to vector<8x128xf32>
    %60 = arith.addf %59, %58 : vector<8x128xf32>
    %61 = arith.divf %59, %60 : vector<8x128xf32>
    %62 = vector.extract_strided_slice %49 {offsets = [0, 256], sizes = [8, 128], strides = [1, 1]} : vector<8x512xf32> to vector<8x128xf32>
    %63 = math.tanh %62 : vector<8x128xf32>
    %64 = vector.extract_strided_slice %49 {offsets = [0, 384], sizes = [8, 128], strides = [1, 1]} : vector<8x512xf32> to vector<8x128xf32>
    %65 = arith.negf %64 : vector<8x128xf32>
    %66 = math.exp %65 : vector<8x128xf32>
    %cst_25 = arith.constant 1.000000e+00 : f32
    %67 = vector.broadcast %cst_25 : f32 to vector<8x128xf32>
    %68 = arith.addf %67, %66 : vector<8x128xf32>
    %69 = arith.divf %67, %68 : vector<8x128xf32>
    %70 = arith.mulf %61, %38 : vector<8x128xf32>
    %71 = arith.mulf %55, %63 : vector<8x128xf32>
    %72 = arith.addf %70, %71 : vector<8x128xf32>
    %73 = math.tanh %72 : vector<8x128xf32>
    %74 = arith.mulf %69, %73 : vector<8x128xf32>
    %75 = arith.index_cast %c1_i32 : i32 to index
    %c0_26 = arith.constant 0 : index
    %c0_27 = arith.constant 0 : index
    %76 = vector.load %arg18[%75, %c0_26, %c0_27] : memref<8x8x128xf32, #tpu.memory_space<vmem>>, vector<1x8x128xf32>
    %77 = vector.shape_cast %76 : vector<1x8x128xf32> to vector<8x128xf32>
    %78 = vector.shape_cast %74 : vector<8x128xf32> to vector<1x8x128xf32>
    tpu.vector_store %arg18[%75, %c0_26, %c0_27], %78 {strides = array<i32>} : memref<8x8x128xf32, #tpu.memory_space<vmem>>, vector<1x8x128xf32>,
    %c2_i32 = arith.constant 2 : i32
    %79 = arith.index_cast %c2_i32 : i32 to index
    %c0_28 = arith.constant 0 : index
    %c0_29 = arith.constant 0 : index
    %80 = vector.load %arg20[%79, %c0_28, %c0_29] : memref<8x8x512xf32, #tpu.memory_space<vmem>>, vector<1x8x512xf32>
    %81 = vector.shape_cast %80 : vector<1x8x512xf32> to vector<8x512xf32>
    %cst_30 = arith.constant dense<0.000000e+00> : vector<8x512xf32>
    %82 = tpu.matmul %74, %10, %cst_30 {dimension_numbers = #tpu.dot_dimension_numbers<[1], [0], [0], [1], [0, 0, 1, 1], [], []>} : vector<8x128xf32>, vector<128x512xf32>, vector<8x512xf32> -> vector<8x512xf32>
    %83 = arith.addf %81, %82 : vector<8x512xf32>
    %84 = vector.extract_strided_slice %83 {offsets = [0, 0], sizes = [8, 128], strides = [1, 1]} : vector<8x512xf32> to vector<8x128xf32>
    %85 = arith.negf %84 : vector<8x128xf32>
    %86 = math.exp %85 : vector<8x128xf32>
    %cst_31 = arith.constant 1.000000e+00 : f32
    %87 = vector.broadcast %cst_31 : f32 to vector<8x128xf32>
    %88 = arith.addf %87, %86 : vector<8x128xf32>
    %89 = arith.divf %87, %88 : vector<8x128xf32>
    %90 = vector.extract_strided_slice %83 {offsets = [0, 128], sizes = [8, 128], strides = [1, 1]} : vector<8x512xf32> to vector<8x128xf32>
    %91 = arith.negf %90 : vector<8x128xf32>
    %92 = math.exp %91 : vector<8x128xf32>
    %cst_32 = arith.constant 1.000000e+00 : f32
    %93 = vector.broadcast %cst_32 : f32 to vector<8x128xf32>
    %94 = arith.addf %93, %92 : vector<8x128xf32>
    %95 = arith.divf %93, %94 : vector<8x128xf32>
    %96 = vector.extract_strided_slice %83 {offsets = [0, 256], sizes = [8, 128], strides = [1, 1]} : vector<8x512xf32> to vector<8x128xf32>
    %97 = math.tanh %96 : vector<8x128xf32>
    %98 = vector.extract_strided_slice %83 {offsets = [0, 384], sizes = [8, 128], strides = [1, 1]} : vector<8x512xf32> to vector<8x128xf32>
    %99 = arith.negf %98 : vector<8x128xf32>
    %100 = math.exp %99 : vector<8x128xf32>
    %cst_33 = arith.constant 1.000000e+00 : f32
    %101 = vector.broadcast %cst_33 : f32 to vector<8x128xf32>
    %102 = arith.addf %101, %100 : vector<8x128xf32>
    %103 = arith.divf %101, %102 : vector<8x128xf32>
    %104 = arith.mulf %95, %72 : vector<8x128xf32>
    %105 = arith.mulf %89, %97 : vector<8x128xf32>
    %106 = arith.addf %104, %105 : vector<8x128xf32>
    %107 = math.tanh %106 : vector<8x128xf32>
    %108 = arith.mulf %103, %107 : vector<8x128xf32>
    %109 = arith.index_cast %c2_i32 : i32 to index
    %c0_34 = arith.constant 0 : index
    %c0_35 = arith.constant 0 : index
    %110 = vector.load %arg18[%109, %c0_34, %c0_35] : memref<8x8x128xf32, #tpu.memory_space<vmem>>, vector<1x8x128xf32>
    %111 = vector.shape_cast %110 : vector<1x8x128xf32> to vector<8x128xf32>
    %112 = vector.shape_cast %108 : vector<8x128xf32> to vector<1x8x128xf32>
    tpu.vector_store %arg18[%109, %c0_34, %c0_35], %112 {strides = array<i32>} : memref<8x8x128xf32, #tpu.memory_space<vmem>>, vector<1x8x128xf32>,
    %c3_i32 = arith.constant 3 : i32
    %113 = arith.index_cast %c3_i32 : i32 to index
    %c0_36 = arith.constant 0 : index
    %c0_37 = arith.constant 0 : index
    %114 = vector.load %arg20[%113, %c0_36, %c0_37] : memref<8x8x512xf32, #tpu.memory_space<vmem>>, vector<1x8x512xf32>
    %115 = vector.shape_cast %114 : vector<1x8x512xf32> to vector<8x512xf32>
    %cst_38 = arith.constant dense<0.000000e+00> : vector<8x512xf32>
    %116 = tpu.matmul %108, %10, %cst_38 {dimension_numbers = #tpu.dot_dimension_numbers<[1], [0], [0], [1], [0, 0, 1, 1], [], []>} : vector<8x128xf32>, vector<128x512xf32>, vector<8x512xf32> -> vector<8x512xf32>
    %117 = arith.addf %115, %116 : vector<8x512xf32>
    %118 = vector.extract_strided_slice %117 {offsets = [0, 0], sizes = [8, 128], strides = [1, 1]} : vector<8x512xf32> to vector<8x128xf32>
    %119 = arith.negf %118 : vector<8x128xf32>
    %120 = math.exp %119 : vector<8x128xf32>
    %cst_39 = arith.constant 1.000000e+00 : f32
    %121 = vector.broadcast %cst_39 : f32 to vector<8x128xf32>
    %122 = arith.addf %121, %120 : vector<8x128xf32>
    %123 = arith.divf %121, %122 : vector<8x128xf32>
    %124 = vector.extract_strided_slice %117 {offsets = [0, 128], sizes = [8, 128], strides = [1, 1]} : vector<8x512xf32> to vector<8x128xf32>
    %125 = arith.negf %124 : vector<8x128xf32>
    %126 = math.exp %125 : vector<8x128xf32>
    %cst_40 = arith.constant 1.000000e+00 : f32
    %127 = vector.broadcast %cst_40 : f32 to vector<8x128xf32>
    %128 = arith.addf %127, %126 : vector<8x128xf32>
    %129 = arith.divf %127, %128 : vector<8x128xf32>
    %130 = vector.extract_strided_slice %117 {offsets = [0, 256], sizes = [8, 128], strides = [1, 1]} : vector<8x512xf32> to vector<8x128xf32>
    %131 = math.tanh %130 : vector<8x128xf32>
    %132 = vector.extract_strided_slice %117 {offsets = [0, 384], sizes = [8, 128], strides = [1, 1]} : vector<8x512xf32> to vector<8x128xf32>
    %133 = arith.negf %132 : vector<8x128xf32>
    %134 = math.exp %133 : vector<8x128xf32>
    %cst_41 = arith.constant 1.000000e+00 : f32
    %135 = vector.broadcast %cst_41 : f32 to vector<8x128xf32>
    %136 = arith.addf %135, %134 : vector<8x128xf32>
    %137 = arith.divf %135, %136 : vector<8x128xf32>
    %138 = arith.mulf %129, %106 : vector<8x128xf32>
    %139 = arith.mulf %123, %131 : vector<8x128xf32>
    %140 = arith.addf %138, %139 : vector<8x128xf32>
    %141 = math.tanh %140 : vector<8x128xf32>
    %142 = arith.mulf %137, %141 : vector<8x128xf32>
    %143 = arith.index_cast %c3_i32 : i32 to index
    %c0_42 = arith.constant 0 : index
    %c0_43 = arith.constant 0 : index
    %144 = vector.load %arg18[%143, %c0_42, %c0_43] : memref<8x8x128xf32, #tpu.memory_space<vmem>>, vector<1x8x128xf32>
    %145 = vector.shape_cast %144 : vector<1x8x128xf32> to vector<8x128xf32>
    %146 = vector.shape_cast %142 : vector<8x128xf32> to vector<1x8x128xf32>
    tpu.vector_store %arg18[%143, %c0_42, %c0_43], %146 {strides = array<i32>} : memref<8x8x128xf32, #tpu.memory_space<vmem>>, vector<1x8x128xf32>,
    %c4_i32 = arith.constant 4 : i32
    %147 = arith.index_cast %c4_i32 : i32 to index
    %c0_44 = arith.constant 0 : index
    %c0_45 = arith.constant 0 : index
    %148 = vector.load %arg20[%147, %c0_44, %c0_45] : memref<8x8x512xf32, #tpu.memory_space<vmem>>, vector<1x8x512xf32>
    %149 = vector.shape_cast %148 : vector<1x8x512xf32> to vector<8x512xf32>
    %cst_46 = arith.constant dense<0.000000e+00> : vector<8x512xf32>
    %150 = tpu.matmul %142, %10, %cst_46 {dimension_numbers = #tpu.dot_dimension_numbers<[1], [0], [0], [1], [0, 0, 1, 1], [], []>} : vector<8x128xf32>, vector<128x512xf32>, vector<8x512xf32> -> vector<8x512xf32>
    %151 = arith.addf %149, %150 : vector<8x512xf32>
    %152 = vector.extract_strided_slice %151 {offsets = [0, 0], sizes = [8, 128], strides = [1, 1]} : vector<8x512xf32> to vector<8x128xf32>
    %153 = arith.negf %152 : vector<8x128xf32>
    %154 = math.exp %153 : vector<8x128xf32>
    %cst_47 = arith.constant 1.000000e+00 : f32
    %155 = vector.broadcast %cst_47 : f32 to vector<8x128xf32>
    %156 = arith.addf %155, %154 : vector<8x128xf32>
    %157 = arith.divf %155, %156 : vector<8x128xf32>
    %158 = vector.extract_strided_slice %151 {offsets = [0, 128], sizes = [8, 128], strides = [1, 1]} : vector<8x512xf32> to vector<8x128xf32>
    %159 = arith.negf %158 : vector<8x128xf32>
    %160 = math.exp %159 : vector<8x128xf32>
    %cst_48 = arith.constant 1.000000e+00 : f32
    %161 = vector.broadcast %cst_48 : f32 to vector<8x128xf32>
    %162 = arith.addf %161, %160 : vector<8x128xf32>
    %163 = arith.divf %161, %162 : vector<8x128xf32>
    %164 = vector.extract_strided_slice %151 {offsets = [0, 256], sizes = [8, 128], strides = [1, 1]} : vector<8x512xf32> to vector<8x128xf32>
    %165 = math.tanh %164 : vector<8x128xf32>
    %166 = vector.extract_strided_slice %151 {offsets = [0, 384], sizes = [8, 128], strides = [1, 1]} : vector<8x512xf32> to vector<8x128xf32>
    %167 = arith.negf %166 : vector<8x128xf32>
    %168 = math.exp %167 : vector<8x128xf32>
    %cst_49 = arith.constant 1.000000e+00 : f32
    %169 = vector.broadcast %cst_49 : f32 to vector<8x128xf32>
    %170 = arith.addf %169, %168 : vector<8x128xf32>
    %171 = arith.divf %169, %170 : vector<8x128xf32>
    %172 = arith.mulf %163, %140 : vector<8x128xf32>
    %173 = arith.mulf %157, %165 : vector<8x128xf32>
    %174 = arith.addf %172, %173 : vector<8x128xf32>
    %175 = math.tanh %174 : vector<8x128xf32>
    %176 = arith.mulf %171, %175 : vector<8x128xf32>
    %177 = arith.index_cast %c4_i32 : i32 to index
    %c0_50 = arith.constant 0 : index
    %c0_51 = arith.constant 0 : index
    %178 = vector.load %arg18[%177, %c0_50, %c0_51] : memref<8x8x128xf32, #tpu.memory_space<vmem>>, vector<1x8x128xf32>
    %179 = vector.shape_cast %178 : vector<1x8x128xf32> to vector<8x128xf32>
    %180 = vector.shape_cast %176 : vector<8x128xf32> to vector<1x8x128xf32>
    tpu.vector_store %arg18[%177, %c0_50, %c0_51], %180 {strides = array<i32>} : memref<8x8x128xf32, #tpu.memory_space<vmem>>, vector<1x8x128xf32>,
    %c5_i32 = arith.constant 5 : i32
    %181 = arith.index_cast %c5_i32 : i32 to index
    %c0_52 = arith.constant 0 : index
    %c0_53 = arith.constant 0 : index
    %182 = vector.load %arg20[%181, %c0_52, %c0_53] : memref<8x8x512xf32, #tpu.memory_space<vmem>>, vector<1x8x512xf32>
    %183 = vector.shape_cast %182 : vector<1x8x512xf32> to vector<8x512xf32>
    %cst_54 = arith.constant dense<0.000000e+00> : vector<8x512xf32>
    %184 = tpu.matmul %176, %10, %cst_54 {dimension_numbers = #tpu.dot_dimension_numbers<[1], [0], [0], [1], [0, 0, 1, 1], [], []>} : vector<8x128xf32>, vector<128x512xf32>, vector<8x512xf32> -> vector<8x512xf32>
    %185 = arith.addf %183, %184 : vector<8x512xf32>
    %186 = vector.extract_strided_slice %185 {offsets = [0, 0], sizes = [8, 128], strides = [1, 1]} : vector<8x512xf32> to vector<8x128xf32>
    %187 = arith.negf %186 : vector<8x128xf32>
    %188 = math.exp %187 : vector<8x128xf32>
    %cst_55 = arith.constant 1.000000e+00 : f32
    %189 = vector.broadcast %cst_55 : f32 to vector<8x128xf32>
    %190 = arith.addf %189, %188 : vector<8x128xf32>
    %191 = arith.divf %189, %190 : vector<8x128xf32>
    %192 = vector.extract_strided_slice %185 {offsets = [0, 128], sizes = [8, 128], strides = [1, 1]} : vector<8x512xf32> to vector<8x128xf32>
    %193 = arith.negf %192 : vector<8x128xf32>
    %194 = math.exp %193 : vector<8x128xf32>
    %cst_56 = arith.constant 1.000000e+00 : f32
    %195 = vector.broadcast %cst_56 : f32 to vector<8x128xf32>
    %196 = arith.addf %195, %194 : vector<8x128xf32>
    %197 = arith.divf %195, %196 : vector<8x128xf32>
    %198 = vector.extract_strided_slice %185 {offsets = [0, 256], sizes = [8, 128], strides = [1, 1]} : vector<8x512xf32> to vector<8x128xf32>
    %199 = math.tanh %198 : vector<8x128xf32>
    %200 = vector.extract_strided_slice %185 {offsets = [0, 384], sizes = [8, 128], strides = [1, 1]} : vector<8x512xf32> to vector<8x128xf32>
    %201 = arith.negf %200 : vector<8x128xf32>
    %202 = math.exp %201 : vector<8x128xf32>
    %cst_57 = arith.constant 1.000000e+00 : f32
    %203 = vector.broadcast %cst_57 : f32 to vector<8x128xf32>
    %204 = arith.addf %203, %202 : vector<8x128xf32>
    %205 = arith.divf %203, %204 : vector<8x128xf32>
    %206 = arith.mulf %197, %174 : vector<8x128xf32>
    %207 = arith.mulf %191, %199 : vector<8x128xf32>
    %208 = arith.addf %206, %207 : vector<8x128xf32>
    %209 = math.tanh %208 : vector<8x128xf32>
    %210 = arith.mulf %205, %209 : vector<8x128xf32>
    %211 = arith.index_cast %c5_i32 : i32 to index
    %c0_58 = arith.constant 0 : index
    %c0_59 = arith.constant 0 : index
    %212 = vector.load %arg18[%211, %c0_58, %c0_59] : memref<8x8x128xf32, #tpu.memory_space<vmem>>, vector<1x8x128xf32>
    %213 = vector.shape_cast %212 : vector<1x8x128xf32> to vector<8x128xf32>
    %214 = vector.shape_cast %210 : vector<8x128xf32> to vector<1x8x128xf32>
    tpu.vector_store %arg18[%211, %c0_58, %c0_59], %214 {strides = array<i32>} : memref<8x8x128xf32, #tpu.memory_space<vmem>>, vector<1x8x128xf32>,
    %c6_i32 = arith.constant 6 : i32
    %215 = arith.index_cast %c6_i32 : i32 to index
    %c0_60 = arith.constant 0 : index
    %c0_61 = arith.constant 0 : index
    %216 = vector.load %arg20[%215, %c0_60, %c0_61] : memref<8x8x512xf32, #tpu.memory_space<vmem>>, vector<1x8x512xf32>
    %217 = vector.shape_cast %216 : vector<1x8x512xf32> to vector<8x512xf32>
    %cst_62 = arith.constant dense<0.000000e+00> : vector<8x512xf32>
    %218 = tpu.matmul %210, %10, %cst_62 {dimension_numbers = #tpu.dot_dimension_numbers<[1], [0], [0], [1], [0, 0, 1, 1], [], []>} : vector<8x128xf32>, vector<128x512xf32>, vector<8x512xf32> -> vector<8x512xf32>
    %219 = arith.addf %217, %218 : vector<8x512xf32>
    %220 = vector.extract_strided_slice %219 {offsets = [0, 0], sizes = [8, 128], strides = [1, 1]} : vector<8x512xf32> to vector<8x128xf32>
    %221 = arith.negf %220 : vector<8x128xf32>
    %222 = math.exp %221 : vector<8x128xf32>
    %cst_63 = arith.constant 1.000000e+00 : f32
    %223 = vector.broadcast %cst_63 : f32 to vector<8x128xf32>
    %224 = arith.addf %223, %222 : vector<8x128xf32>
    %225 = arith.divf %223, %224 : vector<8x128xf32>
    %226 = vector.extract_strided_slice %219 {offsets = [0, 128], sizes = [8, 128], strides = [1, 1]} : vector<8x512xf32> to vector<8x128xf32>
    %227 = arith.negf %226 : vector<8x128xf32>
    %228 = math.exp %227 : vector<8x128xf32>
    %cst_64 = arith.constant 1.000000e+00 : f32
    %229 = vector.broadcast %cst_64 : f32 to vector<8x128xf32>
    %230 = arith.addf %229, %228 : vector<8x128xf32>
    %231 = arith.divf %229, %230 : vector<8x128xf32>
    %232 = vector.extract_strided_slice %219 {offsets = [0, 256], sizes = [8, 128], strides = [1, 1]} : vector<8x512xf32> to vector<8x128xf32>
    %233 = math.tanh %232 : vector<8x128xf32>
    %234 = vector.extract_strided_slice %219 {offsets = [0, 384], sizes = [8, 128], strides = [1, 1]} : vector<8x512xf32> to vector<8x128xf32>
    %235 = arith.negf %234 : vector<8x128xf32>
    %236 = math.exp %235 : vector<8x128xf32>
    %cst_65 = arith.constant 1.000000e+00 : f32
    %237 = vector.broadcast %cst_65 : f32 to vector<8x128xf32>
    %238 = arith.addf %237, %236 : vector<8x128xf32>
    %239 = arith.divf %237, %238 : vector<8x128xf32>
    %240 = arith.mulf %231, %208 : vector<8x128xf32>
    %241 = arith.mulf %225, %233 : vector<8x128xf32>
    %242 = arith.addf %240, %241 : vector<8x128xf32>
    %243 = math.tanh %242 : vector<8x128xf32>
    %244 = arith.mulf %239, %243 : vector<8x128xf32>
    %245 = arith.index_cast %c6_i32 : i32 to index
    %c0_66 = arith.constant 0 : index
    %c0_67 = arith.constant 0 : index
    %246 = vector.load %arg18[%245, %c0_66, %c0_67] : memref<8x8x128xf32, #tpu.memory_space<vmem>>, vector<1x8x128xf32>
    %247 = vector.shape_cast %246 : vector<1x8x128xf32> to vector<8x128xf32>
    %248 = vector.shape_cast %244 : vector<8x128xf32> to vector<1x8x128xf32>
    tpu.vector_store %arg18[%245, %c0_66, %c0_67], %248 {strides = array<i32>} : memref<8x8x128xf32, #tpu.memory_space<vmem>>, vector<1x8x128xf32>,
    %c7_i32 = arith.constant 7 : i32
    %249 = arith.index_cast %c7_i32 : i32 to index
    %c0_68 = arith.constant 0 : index
    %c0_69 = arith.constant 0 : index
    %250 = vector.load %arg20[%249, %c0_68, %c0_69] : memref<8x8x512xf32, #tpu.memory_space<vmem>>, vector<1x8x512xf32>
    %251 = vector.shape_cast %250 : vector<1x8x512xf32> to vector<8x512xf32>
    %cst_70 = arith.constant dense<0.000000e+00> : vector<8x512xf32>
    %252 = tpu.matmul %244, %10, %cst_70 {dimension_numbers = #tpu.dot_dimension_numbers<[1], [0], [0], [1], [0, 0, 1, 1], [], []>} : vector<8x128xf32>, vector<128x512xf32>, vector<8x512xf32> -> vector<8x512xf32>
    %253 = arith.addf %251, %252 : vector<8x512xf32>
    %254 = vector.extract_strided_slice %253 {offsets = [0, 0], sizes = [8, 128], strides = [1, 1]} : vector<8x512xf32> to vector<8x128xf32>
    %255 = arith.negf %254 : vector<8x128xf32>
    %256 = math.exp %255 : vector<8x128xf32>
    %cst_71 = arith.constant 1.000000e+00 : f32
    %257 = vector.broadcast %cst_71 : f32 to vector<8x128xf32>
    %258 = arith.addf %257, %256 : vector<8x128xf32>
    %259 = arith.divf %257, %258 : vector<8x128xf32>
    %260 = vector.extract_strided_slice %253 {offsets = [0, 128], sizes = [8, 128], strides = [1, 1]} : vector<8x512xf32> to vector<8x128xf32>
    %261 = arith.negf %260 : vector<8x128xf32>
    %262 = math.exp %261 : vector<8x128xf32>
    %cst_72 = arith.constant 1.000000e+00 : f32
    %263 = vector.broadcast %cst_72 : f32 to vector<8x128xf32>
    %264 = arith.addf %263, %262 : vector<8x128xf32>
    %265 = arith.divf %263, %264 : vector<8x128xf32>
    %266 = vector.extract_strided_slice %253 {offsets = [0, 256], sizes = [8, 128], strides = [1, 1]} : vector<8x512xf32> to vector<8x128xf32>
    %267 = math.tanh %266 : vector<8x128xf32>
    %268 = vector.extract_strided_slice %253 {offsets = [0, 384], sizes = [8, 128], strides = [1, 1]} : vector<8x512xf32> to vector<8x128xf32>
    %269 = arith.negf %268 : vector<8x128xf32>
    %270 = math.exp %269 : vector<8x128xf32>
    %cst_73 = arith.constant 1.000000e+00 : f32
    %271 = vector.broadcast %cst_73 : f32 to vector<8x128xf32>
    %272 = arith.addf %271, %270 : vector<8x128xf32>
    %273 = arith.divf %271, %272 : vector<8x128xf32>
    %274 = arith.mulf %265, %242 : vector<8x128xf32>
    %275 = arith.mulf %259, %267 : vector<8x128xf32>
    %276 = arith.addf %274, %275 : vector<8x128xf32>
    %277 = math.tanh %276 : vector<8x128xf32>
    %278 = arith.mulf %273, %277 : vector<8x128xf32>
    %279 = arith.index_cast %c7_i32 : i32 to index
    %c0_74 = arith.constant 0 : index
    %c0_75 = arith.constant 0 : index
    %280 = vector.load %arg18[%279, %c0_74, %c0_75] : memref<8x8x128xf32, #tpu.memory_space<vmem>>, vector<1x8x128xf32>
    %281 = vector.shape_cast %280 : vector<1x8x128xf32> to vector<8x128xf32>
    %282 = vector.shape_cast %278 : vector<8x128xf32> to vector<1x8x128xf32>
    tpu.vector_store %arg18[%279, %c0_74, %c0_75], %282 {strides = array<i32>} : memref<8x8x128xf32, #tpu.memory_space<vmem>>, vector<1x8x128xf32>,
    %c8_i32 = arith.constant 8 : i32
    %c0_76 = arith.constant 0 : index
    %c0_77 = arith.constant 0 : index
    %c0_78 = arith.constant 0 : index
    %283 = vector.load %arg18[%c0_76, %c0_77, %c0_78] : memref<8x8x128xf32, #tpu.memory_space<vmem>>, vector<8x8x128xf32>
    %284 = vector.shape_cast %283 : vector<8x8x128xf32> to vector<64x128xf32>
    %c0_79 = arith.constant 0 : index
    %c0_80 = arith.constant 0 : index
    %285 = vector.load %arg5[%c0_79, %c0_80] : memref<128x512xf32, #tpu.memory_space<vmem>>, vector<128x512xf32>
    %cst_81 = arith.constant dense<0.000000e+00> : vector<64x512xf32>
    %286 = tpu.matmul %284, %285, %cst_81 {dimension_numbers = #tpu.dot_dimension_numbers<[1], [0], [0], [1], [0, 0, 1, 1], [], []>} : vector<64x128xf32>, vector<128x512xf32>, vector<64x512xf32> -> vector<64x512xf32>
    %c0_82 = arith.constant 0 : index
    %c0_83 = arith.constant 0 : index
    %287 = vector.load %arg7[%c0_82, %c0_83] : memref<1x512xf32, #tpu.memory_space<vmem>>, vector<1x512xf32>
    %288 = vector.broadcast %287 : vector<1x512xf32> to vector<64x512xf32>
    %289 = arith.addf %286, %288 : vector<64x512xf32>
    %290 = vector.shape_cast %289 : vector<64x512xf32> to vector<8x8x512xf32>
    %c0_84 = arith.constant 0 : index
    %c0_85 = arith.constant 0 : index
    %c0_86 = arith.constant 0 : index
    %291 = vector.load %arg20[%c0_84, %c0_85, %c0_86] : memref<8x8x512xf32, #tpu.memory_space<vmem>>, vector<8x8x512xf32>
    tpu.vector_store %arg20[%c0_84, %c0_85, %c0_86], %290 {strides = array<i32>} : memref<8x8x512xf32, #tpu.memory_space<vmem>>, vector<8x8x512xf32>,
    %c0_87 = arith.constant 0 : index
    %c0_88 = arith.constant 0 : index
    %292 = vector.load %arg6[%c0_87, %c0_88] : memref<128x512xf32, #tpu.memory_space<vmem>>, vector<128x512xf32>
    %c0_i32_89 = arith.constant 0 : i32
    %293 = arith.index_cast %c0_i32_89 : i32 to index
    %c0_90 = arith.constant 0 : index
    %c0_91 = arith.constant 0 : index
    %294 = vector.load %arg20[%293, %c0_90, %c0_91] : memref<8x8x512xf32, #tpu.memory_space<vmem>>, vector<1x8x512xf32>
    %295 = vector.shape_cast %294 : vector<1x8x512xf32> to vector<8x512xf32>
    %cst_92 = arith.constant dense<0.000000e+00> : vector<8x512xf32>
    %296 = tpu.matmul %0, %292, %cst_92 {dimension_numbers = #tpu.dot_dimension_numbers<[1], [0], [0], [1], [0, 0, 1, 1], [], []>} : vector<8x128xf32>, vector<128x512xf32>, vector<8x512xf32> -> vector<8x512xf32>
    %297 = arith.addf %295, %296 : vector<8x512xf32>
    %298 = vector.extract_strided_slice %297 {offsets = [0, 0], sizes = [8, 128], strides = [1, 1]} : vector<8x512xf32> to vector<8x128xf32>
    %299 = arith.negf %298 : vector<8x128xf32>
    %300 = math.exp %299 : vector<8x128xf32>
    %cst_93 = arith.constant 1.000000e+00 : f32
    %301 = vector.broadcast %cst_93 : f32 to vector<8x128xf32>
    %302 = arith.addf %301, %300 : vector<8x128xf32>
    %303 = arith.divf %301, %302 : vector<8x128xf32>
    %304 = vector.extract_strided_slice %297 {offsets = [0, 128], sizes = [8, 128], strides = [1, 1]} : vector<8x512xf32> to vector<8x128xf32>
    %305 = arith.negf %304 : vector<8x128xf32>
    %306 = math.exp %305 : vector<8x128xf32>
    %cst_94 = arith.constant 1.000000e+00 : f32
    %307 = vector.broadcast %cst_94 : f32 to vector<8x128xf32>
    %308 = arith.addf %307, %306 : vector<8x128xf32>
    %309 = arith.divf %307, %308 : vector<8x128xf32>
    %310 = vector.extract_strided_slice %297 {offsets = [0, 256], sizes = [8, 128], strides = [1, 1]} : vector<8x512xf32> to vector<8x128xf32>
    %311 = math.tanh %310 : vector<8x128xf32>
    %312 = vector.extract_strided_slice %297 {offsets = [0, 384], sizes = [8, 128], strides = [1, 1]} : vector<8x512xf32> to vector<8x128xf32>
    %313 = arith.negf %312 : vector<8x128xf32>
    %314 = math.exp %313 : vector<8x128xf32>
    %cst_95 = arith.constant 1.000000e+00 : f32
    %315 = vector.broadcast %cst_95 : f32 to vector<8x128xf32>
    %316 = arith.addf %315, %314 : vector<8x128xf32>
    %317 = arith.divf %315, %316 : vector<8x128xf32>
    %318 = arith.mulf %309, %0 : vector<8x128xf32>
    %319 = arith.mulf %303, %311 : vector<8x128xf32>
    %320 = arith.addf %318, %319 : vector<8x128xf32>
    %321 = math.tanh %320 : vector<8x128xf32>
    %322 = arith.mulf %317, %321 : vector<8x128xf32>
    %323 = arith.index_cast %c0_i32_89 : i32 to index
    %c0_96 = arith.constant 0 : index
    %c0_97 = arith.constant 0 : index
    %324 = vector.load %arg18[%323, %c0_96, %c0_97] : memref<8x8x128xf32, #tpu.memory_space<vmem>>, vector<1x8x128xf32>
    %325 = vector.shape_cast %324 : vector<1x8x128xf32> to vector<8x128xf32>
    %326 = vector.shape_cast %322 : vector<8x128xf32> to vector<1x8x128xf32>
    tpu.vector_store %arg18[%323, %c0_96, %c0_97], %326 {strides = array<i32>} : memref<8x8x128xf32, #tpu.memory_space<vmem>>, vector<1x8x128xf32>,
    %c1_i32_98 = arith.constant 1 : i32
    %327 = arith.index_cast %c1_i32_98 : i32 to index
    %c0_99 = arith.constant 0 : index
    %c0_100 = arith.constant 0 : index
    %328 = vector.load %arg20[%327, %c0_99, %c0_100] : memref<8x8x512xf32, #tpu.memory_space<vmem>>, vector<1x8x512xf32>
    %329 = vector.shape_cast %328 : vector<1x8x512xf32> to vector<8x512xf32>
    %cst_101 = arith.constant dense<0.000000e+00> : vector<8x512xf32>
    %330 = tpu.matmul %322, %292, %cst_101 {dimension_numbers = #tpu.dot_dimension_numbers<[1], [0], [0], [1], [0, 0, 1, 1], [], []>} : vector<8x128xf32>, vector<128x512xf32>, vector<8x512xf32> -> vector<8x512xf32>
    %331 = arith.addf %329, %330 : vector<8x512xf32>
    %332 = vector.extract_strided_slice %331 {offsets = [0, 0], sizes = [8, 128], strides = [1, 1]} : vector<8x512xf32> to vector<8x128xf32>
    %333 = arith.negf %332 : vector<8x128xf32>
    %334 = math.exp %333 : vector<8x128xf32>
    %cst_102 = arith.constant 1.000000e+00 : f32
    %335 = vector.broadcast %cst_102 : f32 to vector<8x128xf32>
    %336 = arith.addf %335, %334 : vector<8x128xf32>
    %337 = arith.divf %335, %336 : vector<8x128xf32>
    %338 = vector.extract_strided_slice %331 {offsets = [0, 128], sizes = [8, 128], strides = [1, 1]} : vector<8x512xf32> to vector<8x128xf32>
    %339 = arith.negf %338 : vector<8x128xf32>
    %340 = math.exp %339 : vector<8x128xf32>
    %cst_103 = arith.constant 1.000000e+00 : f32
    %341 = vector.broadcast %cst_103 : f32 to vector<8x128xf32>
    %342 = arith.addf %341, %340 : vector<8x128xf32>
    %343 = arith.divf %341, %342 : vector<8x128xf32>
    %344 = vector.extract_strided_slice %331 {offsets = [0, 256], sizes = [8, 128], strides = [1, 1]} : vector<8x512xf32> to vector<8x128xf32>
    %345 = math.tanh %344 : vector<8x128xf32>
    %346 = vector.extract_strided_slice %331 {offsets = [0, 384], sizes = [8, 128], strides = [1, 1]} : vector<8x512xf32> to vector<8x128xf32>
    %347 = arith.negf %346 : vector<8x128xf32>
    %348 = math.exp %347 : vector<8x128xf32>
    %cst_104 = arith.constant 1.000000e+00 : f32
    %349 = vector.broadcast %cst_104 : f32 to vector<8x128xf32>
    %350 = arith.addf %349, %348 : vector<8x128xf32>
    %351 = arith.divf %349, %350 : vector<8x128xf32>
    %352 = arith.mulf %343, %320 : vector<8x128xf32>
    %353 = arith.mulf %337, %345 : vector<8x128xf32>
    %354 = arith.addf %352, %353 : vector<8x128xf32>
    %355 = math.tanh %354 : vector<8x128xf32>
    %356 = arith.mulf %351, %355 : vector<8x128xf32>
    %357 = arith.index_cast %c1_i32_98 : i32 to index
    %c0_105 = arith.constant 0 : index
    %c0_106 = arith.constant 0 : index
    %358 = vector.load %arg18[%357, %c0_105, %c0_106] : memref<8x8x128xf32, #tpu.memory_space<vmem>>, vector<1x8x128xf32>
    %359 = vector.shape_cast %358 : vector<1x8x128xf32> to vector<8x128xf32>
    %360 = vector.shape_cast %356 : vector<8x128xf32> to vector<1x8x128xf32>
    tpu.vector_store %arg18[%357, %c0_105, %c0_106], %360 {strides = array<i32>} : memref<8x8x128xf32, #tpu.memory_space<vmem>>, vector<1x8x128xf32>,
    %c2_i32_107 = arith.constant 2 : i32
    %361 = arith.index_cast %c2_i32_107 : i32 to index
    %c0_108 = arith.constant 0 : index
    %c0_109 = arith.constant 0 : index
    %362 = vector.load %arg20[%361, %c0_108, %c0_109] : memref<8x8x512xf32, #tpu.memory_space<vmem>>, vector<1x8x512xf32>
    %363 = vector.shape_cast %362 : vector<1x8x512xf32> to vector<8x512xf32>
    %cst_110 = arith.constant dense<0.000000e+00> : vector<8x512xf32>
    %364 = tpu.matmul %356, %292, %cst_110 {dimension_numbers = #tpu.dot_dimension_numbers<[1], [0], [0], [1], [0, 0, 1, 1], [], []>} : vector<8x128xf32>, vector<128x512xf32>, vector<8x512xf32> -> vector<8x512xf32>
    %365 = arith.addf %363, %364 : vector<8x512xf32>
    %366 = vector.extract_strided_slice %365 {offsets = [0, 0], sizes = [8, 128], strides = [1, 1]} : vector<8x512xf32> to vector<8x128xf32>
    %367 = arith.negf %366 : vector<8x128xf32>
    %368 = math.exp %367 : vector<8x128xf32>
    %cst_111 = arith.constant 1.000000e+00 : f32
    %369 = vector.broadcast %cst_111 : f32 to vector<8x128xf32>
    %370 = arith.addf %369, %368 : vector<8x128xf32>
    %371 = arith.divf %369, %370 : vector<8x128xf32>
    %372 = vector.extract_strided_slice %365 {offsets = [0, 128], sizes = [8, 128], strides = [1, 1]} : vector<8x512xf32> to vector<8x128xf32>
    %373 = arith.negf %372 : vector<8x128xf32>
    %374 = math.exp %373 : vector<8x128xf32>
    %cst_112 = arith.constant 1.000000e+00 : f32
    %375 = vector.broadcast %cst_112 : f32 to vector<8x128xf32>
    %376 = arith.addf %375, %374 : vector<8x128xf32>
    %377 = arith.divf %375, %376 : vector<8x128xf32>
    %378 = vector.extract_strided_slice %365 {offsets = [0, 256], sizes = [8, 128], strides = [1, 1]} : vector<8x512xf32> to vector<8x128xf32>
    %379 = math.tanh %378 : vector<8x128xf32>
    %380 = vector.extract_strided_slice %365 {offsets = [0, 384], sizes = [8, 128], strides = [1, 1]} : vector<8x512xf32> to vector<8x128xf32>
    %381 = arith.negf %380 : vector<8x128xf32>
    %382 = math.exp %381 : vector<8x128xf32>
    %cst_113 = arith.constant 1.000000e+00 : f32
    %383 = vector.broadcast %cst_113 : f32 to vector<8x128xf32>
    %384 = arith.addf %383, %382 : vector<8x128xf32>
    %385 = arith.divf %383, %384 : vector<8x128xf32>
    %386 = arith.mulf %377, %354 : vector<8x128xf32>
    %387 = arith.mulf %371, %379 : vector<8x128xf32>
    %388 = arith.addf %386, %387 : vector<8x128xf32>
    %389 = math.tanh %388 : vector<8x128xf32>
    %390 = arith.mulf %385, %389 : vector<8x128xf32>
    %391 = arith.index_cast %c2_i32_107 : i32 to index
    %c0_114 = arith.constant 0 : index
    %c0_115 = arith.constant 0 : index
    %392 = vector.load %arg18[%391, %c0_114, %c0_115] : memref<8x8x128xf32, #tpu.memory_space<vmem>>, vector<1x8x128xf32>
    %393 = vector.shape_cast %392 : vector<1x8x128xf32> to vector<8x128xf32>
    %394 = vector.shape_cast %390 : vector<8x128xf32> to vector<1x8x128xf32>
    tpu.vector_store %arg18[%391, %c0_114, %c0_115], %394 {strides = array<i32>} : memref<8x8x128xf32, #tpu.memory_space<vmem>>, vector<1x8x128xf32>,
    %c3_i32_116 = arith.constant 3 : i32
    %395 = arith.index_cast %c3_i32_116 : i32 to index
    %c0_117 = arith.constant 0 : index
    %c0_118 = arith.constant 0 : index
    %396 = vector.load %arg20[%395, %c0_117, %c0_118] : memref<8x8x512xf32, #tpu.memory_space<vmem>>, vector<1x8x512xf32>
    %397 = vector.shape_cast %396 : vector<1x8x512xf32> to vector<8x512xf32>
    %cst_119 = arith.constant dense<0.000000e+00> : vector<8x512xf32>
    %398 = tpu.matmul %390, %292, %cst_119 {dimension_numbers = #tpu.dot_dimension_numbers<[1], [0], [0], [1], [0, 0, 1, 1], [], []>} : vector<8x128xf32>, vector<128x512xf32>, vector<8x512xf32> -> vector<8x512xf32>
    %399 = arith.addf %397, %398 : vector<8x512xf32>
    %400 = vector.extract_strided_slice %399 {offsets = [0, 0], sizes = [8, 128], strides = [1, 1]} : vector<8x512xf32> to vector<8x128xf32>
    %401 = arith.negf %400 : vector<8x128xf32>
    %402 = math.exp %401 : vector<8x128xf32>
    %cst_120 = arith.constant 1.000000e+00 : f32
    %403 = vector.broadcast %cst_120 : f32 to vector<8x128xf32>
    %404 = arith.addf %403, %402 : vector<8x128xf32>
    %405 = arith.divf %403, %404 : vector<8x128xf32>
    %406 = vector.extract_strided_slice %399 {offsets = [0, 128], sizes = [8, 128], strides = [1, 1]} : vector<8x512xf32> to vector<8x128xf32>
    %407 = arith.negf %406 : vector<8x128xf32>
    %408 = math.exp %407 : vector<8x128xf32>
    %cst_121 = arith.constant 1.000000e+00 : f32
    %409 = vector.broadcast %cst_121 : f32 to vector<8x128xf32>
    %410 = arith.addf %409, %408 : vector<8x128xf32>
    %411 = arith.divf %409, %410 : vector<8x128xf32>
    %412 = vector.extract_strided_slice %399 {offsets = [0, 256], sizes = [8, 128], strides = [1, 1]} : vector<8x512xf32> to vector<8x128xf32>
    %413 = math.tanh %412 : vector<8x128xf32>
    %414 = vector.extract_strided_slice %399 {offsets = [0, 384], sizes = [8, 128], strides = [1, 1]} : vector<8x512xf32> to vector<8x128xf32>
    %415 = arith.negf %414 : vector<8x128xf32>
    %416 = math.exp %415 : vector<8x128xf32>
    %cst_122 = arith.constant 1.000000e+00 : f32
    %417 = vector.broadcast %cst_122 : f32 to vector<8x128xf32>
    %418 = arith.addf %417, %416 : vector<8x128xf32>
    %419 = arith.divf %417, %418 : vector<8x128xf32>
    %420 = arith.mulf %411, %388 : vector<8x128xf32>
    %421 = arith.mulf %405, %413 : vector<8x128xf32>
    %422 = arith.addf %420, %421 : vector<8x128xf32>
    %423 = math.tanh %422 : vector<8x128xf32>
    %424 = arith.mulf %419, %423 : vector<8x128xf32>
    %425 = arith.index_cast %c3_i32_116 : i32 to index
    %c0_123 = arith.constant 0 : index
    %c0_124 = arith.constant 0 : index
    %426 = vector.load %arg18[%425, %c0_123, %c0_124] : memref<8x8x128xf32, #tpu.memory_space<vmem>>, vector<1x8x128xf32>
    %427 = vector.shape_cast %426 : vector<1x8x128xf32> to vector<8x128xf32>
    %428 = vector.shape_cast %424 : vector<8x128xf32> to vector<1x8x128xf32>
    tpu.vector_store %arg18[%425, %c0_123, %c0_124], %428 {strides = array<i32>} : memref<8x8x128xf32, #tpu.memory_space<vmem>>, vector<1x8x128xf32>,
    %c4_i32_125 = arith.constant 4 : i32
    %429 = arith.index_cast %c4_i32_125 : i32 to index
    %c0_126 = arith.constant 0 : index
    %c0_127 = arith.constant 0 : index
    %430 = vector.load %arg20[%429, %c0_126, %c0_127] : memref<8x8x512xf32, #tpu.memory_space<vmem>>, vector<1x8x512xf32>
    %431 = vector.shape_cast %430 : vector<1x8x512xf32> to vector<8x512xf32>
    %cst_128 = arith.constant dense<0.000000e+00> : vector<8x512xf32>
    %432 = tpu.matmul %424, %292, %cst_128 {dimension_numbers = #tpu.dot_dimension_numbers<[1], [0], [0], [1], [0, 0, 1, 1], [], []>} : vector<8x128xf32>, vector<128x512xf32>, vector<8x512xf32> -> vector<8x512xf32>
    %433 = arith.addf %431, %432 : vector<8x512xf32>
    %434 = vector.extract_strided_slice %433 {offsets = [0, 0], sizes = [8, 128], strides = [1, 1]} : vector<8x512xf32> to vector<8x128xf32>
    %435 = arith.negf %434 : vector<8x128xf32>
    %436 = math.exp %435 : vector<8x128xf32>
    %cst_129 = arith.constant 1.000000e+00 : f32
    %437 = vector.broadcast %cst_129 : f32 to vector<8x128xf32>
    %438 = arith.addf %437, %436 : vector<8x128xf32>
    %439 = arith.divf %437, %438 : vector<8x128xf32>
    %440 = vector.extract_strided_slice %433 {offsets = [0, 128], sizes = [8, 128], strides = [1, 1]} : vector<8x512xf32> to vector<8x128xf32>
    %441 = arith.negf %440 : vector<8x128xf32>
    %442 = math.exp %441 : vector<8x128xf32>
    %cst_130 = arith.constant 1.000000e+00 : f32
    %443 = vector.broadcast %cst_130 : f32 to vector<8x128xf32>
    %444 = arith.addf %443, %442 : vector<8x128xf32>
    %445 = arith.divf %443, %444 : vector<8x128xf32>
    %446 = vector.extract_strided_slice %433 {offsets = [0, 256], sizes = [8, 128], strides = [1, 1]} : vector<8x512xf32> to vector<8x128xf32>
    %447 = math.tanh %446 : vector<8x128xf32>
    %448 = vector.extract_strided_slice %433 {offsets = [0, 384], sizes = [8, 128], strides = [1, 1]} : vector<8x512xf32> to vector<8x128xf32>
    %449 = arith.negf %448 : vector<8x128xf32>
    %450 = math.exp %449 : vector<8x128xf32>
    %cst_131 = arith.constant 1.000000e+00 : f32
    %451 = vector.broadcast %cst_131 : f32 to vector<8x128xf32>
    %452 = arith.addf %451, %450 : vector<8x128xf32>
    %453 = arith.divf %451, %452 : vector<8x128xf32>
    %454 = arith.mulf %445, %422 : vector<8x128xf32>
    %455 = arith.mulf %439, %447 : vector<8x128xf32>
    %456 = arith.addf %454, %455 : vector<8x128xf32>
    %457 = math.tanh %456 : vector<8x128xf32>
    %458 = arith.mulf %453, %457 : vector<8x128xf32>
    %459 = arith.index_cast %c4_i32_125 : i32 to index
    %c0_132 = arith.constant 0 : index
    %c0_133 = arith.constant 0 : index
    %460 = vector.load %arg18[%459, %c0_132, %c0_133] : memref<8x8x128xf32, #tpu.memory_space<vmem>>, vector<1x8x128xf32>
    %461 = vector.shape_cast %460 : vector<1x8x128xf32> to vector<8x128xf32>
    %462 = vector.shape_cast %458 : vector<8x128xf32> to vector<1x8x128xf32>
    tpu.vector_store %arg18[%459, %c0_132, %c0_133], %462 {strides = array<i32>} : memref<8x8x128xf32, #tpu.memory_space<vmem>>, vector<1x8x128xf32>,
    %c5_i32_134 = arith.constant 5 : i32
    %463 = arith.index_cast %c5_i32_134 : i32 to index
    %c0_135 = arith.constant 0 : index
    %c0_136 = arith.constant 0 : index
    %464 = vector.load %arg20[%463, %c0_135, %c0_136] : memref<8x8x512xf32, #tpu.memory_space<vmem>>, vector<1x8x512xf32>
    %465 = vector.shape_cast %464 : vector<1x8x512xf32> to vector<8x512xf32>
    %cst_137 = arith.constant dense<0.000000e+00> : vector<8x512xf32>
    %466 = tpu.matmul %458, %292, %cst_137 {dimension_numbers = #tpu.dot_dimension_numbers<[1], [0], [0], [1], [0, 0, 1, 1], [], []>} : vector<8x128xf32>, vector<128x512xf32>, vector<8x512xf32> -> vector<8x512xf32>
    %467 = arith.addf %465, %466 : vector<8x512xf32>
    %468 = vector.extract_strided_slice %467 {offsets = [0, 0], sizes = [8, 128], strides = [1, 1]} : vector<8x512xf32> to vector<8x128xf32>
    %469 = arith.negf %468 : vector<8x128xf32>
    %470 = math.exp %469 : vector<8x128xf32>
    %cst_138 = arith.constant 1.000000e+00 : f32
    %471 = vector.broadcast %cst_138 : f32 to vector<8x128xf32>
    %472 = arith.addf %471, %470 : vector<8x128xf32>
    %473 = arith.divf %471, %472 : vector<8x128xf32>
    %474 = vector.extract_strided_slice %467 {offsets = [0, 128], sizes = [8, 128], strides = [1, 1]} : vector<8x512xf32> to vector<8x128xf32>
    %475 = arith.negf %474 : vector<8x128xf32>
    %476 = math.exp %475 : vector<8x128xf32>
    %cst_139 = arith.constant 1.000000e+00 : f32
    %477 = vector.broadcast %cst_139 : f32 to vector<8x128xf32>
    %478 = arith.addf %477, %476 : vector<8x128xf32>
    %479 = arith.divf %477, %478 : vector<8x128xf32>
    %480 = vector.extract_strided_slice %467 {offsets = [0, 256], sizes = [8, 128], strides = [1, 1]} : vector<8x512xf32> to vector<8x128xf32>
    %481 = math.tanh %480 : vector<8x128xf32>
    %482 = vector.extract_strided_slice %467 {offsets = [0, 384], sizes = [8, 128], strides = [1, 1]} : vector<8x512xf32> to vector<8x128xf32>
    %483 = arith.negf %482 : vector<8x128xf32>
    %484 = math.exp %483 : vector<8x128xf32>
    %cst_140 = arith.constant 1.000000e+00 : f32
    %485 = vector.broadcast %cst_140 : f32 to vector<8x128xf32>
    %486 = arith.addf %485, %484 : vector<8x128xf32>
    %487 = arith.divf %485, %486 : vector<8x128xf32>
    %488 = arith.mulf %479, %456 : vector<8x128xf32>
    %489 = arith.mulf %473, %481 : vector<8x128xf32>
    %490 = arith.addf %488, %489 : vector<8x128xf32>
    %491 = math.tanh %490 : vector<8x128xf32>
    %492 = arith.mulf %487, %491 : vector<8x128xf32>
    %493 = arith.index_cast %c5_i32_134 : i32 to index
    %c0_141 = arith.constant 0 : index
    %c0_142 = arith.constant 0 : index
    %494 = vector.load %arg18[%493, %c0_141, %c0_142] : memref<8x8x128xf32, #tpu.memory_space<vmem>>, vector<1x8x128xf32>
    %495 = vector.shape_cast %494 : vector<1x8x128xf32> to vector<8x128xf32>
    %496 = vector.shape_cast %492 : vector<8x128xf32> to vector<1x8x128xf32>
    tpu.vector_store %arg18[%493, %c0_141, %c0_142], %496 {strides = array<i32>} : memref<8x8x128xf32, #tpu.memory_space<vmem>>, vector<1x8x128xf32>,
    %c6_i32_143 = arith.constant 6 : i32
    %497 = arith.index_cast %c6_i32_143 : i32 to index
    %c0_144 = arith.constant 0 : index
    %c0_145 = arith.constant 0 : index
    %498 = vector.load %arg20[%497, %c0_144, %c0_145] : memref<8x8x512xf32, #tpu.memory_space<vmem>>, vector<1x8x512xf32>
    %499 = vector.shape_cast %498 : vector<1x8x512xf32> to vector<8x512xf32>
    %cst_146 = arith.constant dense<0.000000e+00> : vector<8x512xf32>
    %500 = tpu.matmul %492, %292, %cst_146 {dimension_numbers = #tpu.dot_dimension_numbers<[1], [0], [0], [1], [0, 0, 1, 1], [], []>} : vector<8x128xf32>, vector<128x512xf32>, vector<8x512xf32> -> vector<8x512xf32>
    %501 = arith.addf %499, %500 : vector<8x512xf32>
    %502 = vector.extract_strided_slice %501 {offsets = [0, 0], sizes = [8, 128], strides = [1, 1]} : vector<8x512xf32> to vector<8x128xf32>
    %503 = arith.negf %502 : vector<8x128xf32>
    %504 = math.exp %503 : vector<8x128xf32>
    %cst_147 = arith.constant 1.000000e+00 : f32
    %505 = vector.broadcast %cst_147 : f32 to vector<8x128xf32>
    %506 = arith.addf %505, %504 : vector<8x128xf32>
    %507 = arith.divf %505, %506 : vector<8x128xf32>
    %508 = vector.extract_strided_slice %501 {offsets = [0, 128], sizes = [8, 128], strides = [1, 1]} : vector<8x512xf32> to vector<8x128xf32>
    %509 = arith.negf %508 : vector<8x128xf32>
    %510 = math.exp %509 : vector<8x128xf32>
    %cst_148 = arith.constant 1.000000e+00 : f32
    %511 = vector.broadcast %cst_148 : f32 to vector<8x128xf32>
    %512 = arith.addf %511, %510 : vector<8x128xf32>
    %513 = arith.divf %511, %512 : vector<8x128xf32>
    %514 = vector.extract_strided_slice %501 {offsets = [0, 256], sizes = [8, 128], strides = [1, 1]} : vector<8x512xf32> to vector<8x128xf32>
    %515 = math.tanh %514 : vector<8x128xf32>
    %516 = vector.extract_strided_slice %501 {offsets = [0, 384], sizes = [8, 128], strides = [1, 1]} : vector<8x512xf32> to vector<8x128xf32>
    %517 = arith.negf %516 : vector<8x128xf32>
    %518 = math.exp %517 : vector<8x128xf32>
    %cst_149 = arith.constant 1.000000e+00 : f32
    %519 = vector.broadcast %cst_149 : f32 to vector<8x128xf32>
    %520 = arith.addf %519, %518 : vector<8x128xf32>
    %521 = arith.divf %519, %520 : vector<8x128xf32>
    %522 = arith.mulf %513, %490 : vector<8x128xf32>
    %523 = arith.mulf %507, %515 : vector<8x128xf32>
    %524 = arith.addf %522, %523 : vector<8x128xf32>
    %525 = math.tanh %524 : vector<8x128xf32>
    %526 = arith.mulf %521, %525 : vector<8x128xf32>
    %527 = arith.index_cast %c6_i32_143 : i32 to index
    %c0_150 = arith.constant 0 : index
    %c0_151 = arith.constant 0 : index
    %528 = vector.load %arg18[%527, %c0_150, %c0_151] : memref<8x8x128xf32, #tpu.memory_space<vmem>>, vector<1x8x128xf32>
    %529 = vector.shape_cast %528 : vector<1x8x128xf32> to vector<8x128xf32>
    %530 = vector.shape_cast %526 : vector<8x128xf32> to vector<1x8x128xf32>
    tpu.vector_store %arg18[%527, %c0_150, %c0_151], %530 {strides = array<i32>} : memref<8x8x128xf32, #tpu.memory_space<vmem>>, vector<1x8x128xf32>,
    %c7_i32_152 = arith.constant 7 : i32
    %531 = arith.index_cast %c7_i32_152 : i32 to index
    %c0_153 = arith.constant 0 : index
    %c0_154 = arith.constant 0 : index
    %532 = vector.load %arg20[%531, %c0_153, %c0_154] : memref<8x8x512xf32, #tpu.memory_space<vmem>>, vector<1x8x512xf32>
    %533 = vector.shape_cast %532 : vector<1x8x512xf32> to vector<8x512xf32>
    %cst_155 = arith.constant dense<0.000000e+00> : vector<8x512xf32>
    %534 = tpu.matmul %526, %292, %cst_155 {dimension_numbers = #tpu.dot_dimension_numbers<[1], [0], [0], [1], [0, 0, 1, 1], [], []>} : vector<8x128xf32>, vector<128x512xf32>, vector<8x512xf32> -> vector<8x512xf32>
    %535 = arith.addf %533, %534 : vector<8x512xf32>
    %536 = vector.extract_strided_slice %535 {offsets = [0, 0], sizes = [8, 128], strides = [1, 1]} : vector<8x512xf32> to vector<8x128xf32>
    %537 = arith.negf %536 : vector<8x128xf32>
    %538 = math.exp %537 : vector<8x128xf32>
    %cst_156 = arith.constant 1.000000e+00 : f32
    %539 = vector.broadcast %cst_156 : f32 to vector<8x128xf32>
    %540 = arith.addf %539, %538 : vector<8x128xf32>
    %541 = arith.divf %539, %540 : vector<8x128xf32>
    %542 = vector.extract_strided_slice %535 {offsets = [0, 128], sizes = [8, 128], strides = [1, 1]} : vector<8x512xf32> to vector<8x128xf32>
    %543 = arith.negf %542 : vector<8x128xf32>
    %544 = math.exp %543 : vector<8x128xf32>
    %cst_157 = arith.constant 1.000000e+00 : f32
    %545 = vector.broadcast %cst_157 : f32 to vector<8x128xf32>
    %546 = arith.addf %545, %544 : vector<8x128xf32>
    %547 = arith.divf %545, %546 : vector<8x128xf32>
    %548 = vector.extract_strided_slice %535 {offsets = [0, 256], sizes = [8, 128], strides = [1, 1]} : vector<8x512xf32> to vector<8x128xf32>
    %549 = math.tanh %548 : vector<8x128xf32>
    %550 = vector.extract_strided_slice %535 {offsets = [0, 384], sizes = [8, 128], strides = [1, 1]} : vector<8x512xf32> to vector<8x128xf32>
    %551 = arith.negf %550 : vector<8x128xf32>
    %552 = math.exp %551 : vector<8x128xf32>
    %cst_158 = arith.constant 1.000000e+00 : f32
    %553 = vector.broadcast %cst_158 : f32 to vector<8x128xf32>
    %554 = arith.addf %553, %552 : vector<8x128xf32>
    %555 = arith.divf %553, %554 : vector<8x128xf32>
    %556 = arith.mulf %547, %524 : vector<8x128xf32>
    %557 = arith.mulf %541, %549 : vector<8x128xf32>
    %558 = arith.addf %556, %557 : vector<8x128xf32>
    %559 = math.tanh %558 : vector<8x128xf32>
    %560 = arith.mulf %555, %559 : vector<8x128xf32>
    %561 = arith.index_cast %c7_i32_152 : i32 to index
    %c0_159 = arith.constant 0 : index
    %c0_160 = arith.constant 0 : index
    %562 = vector.load %arg18[%561, %c0_159, %c0_160] : memref<8x8x128xf32, #tpu.memory_space<vmem>>, vector<1x8x128xf32>
    %563 = vector.shape_cast %562 : vector<1x8x128xf32> to vector<8x128xf32>
    %564 = vector.shape_cast %560 : vector<8x128xf32> to vector<1x8x128xf32>
    tpu.vector_store %arg18[%561, %c0_159, %c0_160], %564 {strides = array<i32>} : memref<8x8x128xf32, #tpu.memory_space<vmem>>, vector<1x8x128xf32>,
    %c8_i32_161 = arith.constant 8 : i32
    %c0_162 = arith.constant 0 : index
    %c0_163 = arith.constant 0 : index
    %c0_164 = arith.constant 0 : index
    %565 = vector.load %arg1[%c0_162, %c0_163, %c0_164] : memref<8x8x16xf32, #tpu.memory_space<vmem>>, vector<8x8x16xf32>
    %566 = vector.shape_cast %565 : vector<8x8x16xf32> to vector<64x16xf32>
    %c0_165 = arith.constant 0 : index
    %c0_166 = arith.constant 0 : index
    %567 = vector.load %arg8[%c0_165, %c0_166] : memref<16x512xf32, #tpu.memory_space<vmem>>, vector<16x512xf32>
    %cst_167 = arith.constant dense<0.000000e+00> : vector<64x512xf32>
    %568 = tpu.matmul %566, %567, %cst_167 {dimension_numbers = #tpu.dot_dimension_numbers<[1], [0], [0], [1], [0, 0, 1, 1], [], []>} : vector<64x16xf32>, vector<16x512xf32>, vector<64x512xf32> -> vector<64x512xf32>
    %c0_168 = arith.constant 0 : index
    %c0_169 = arith.constant 0 : index
    %569 = vector.load %arg10[%c0_168, %c0_169] : memref<1x512xf32, #tpu.memory_space<vmem>>, vector<1x512xf32>
    %570 = vector.broadcast %569 : vector<1x512xf32> to vector<64x512xf32>
    %571 = arith.addf %568, %570 : vector<64x512xf32>
    %572 = vector.shape_cast %571 : vector<64x512xf32> to vector<8x8x512xf32>
    %c0_170 = arith.constant 0 : index
    %c0_171 = arith.constant 0 : index
    %c0_172 = arith.constant 0 : index
    %573 = vector.load %arg20[%c0_170, %c0_171, %c0_172] : memref<8x8x512xf32, #tpu.memory_space<vmem>>, vector<8x8x512xf32>
    tpu.vector_store %arg20[%c0_170, %c0_171, %c0_172], %572 {strides = array<i32>} : memref<8x8x512xf32, #tpu.memory_space<vmem>>, vector<8x8x512xf32>,
    %c0_173 = arith.constant 0 : index
    %c0_174 = arith.constant 0 : index
    %574 = vector.load %arg9[%c0_173, %c0_174] : memref<128x512xf32, #tpu.memory_space<vmem>>, vector<128x512xf32>
    %c0_i32_175 = arith.constant 0 : i32
    %575 = arith.index_cast %c0_i32_175 : i32 to index
    %c0_176 = arith.constant 0 : index
    %c0_177 = arith.constant 0 : index
    %576 = vector.load %arg20[%575, %c0_176, %c0_177] : memref<8x8x512xf32, #tpu.memory_space<vmem>>, vector<1x8x512xf32>
    %577 = vector.shape_cast %576 : vector<1x8x512xf32> to vector<8x512xf32>
    %cst_178 = arith.constant dense<0.000000e+00> : vector<8x512xf32>
    %578 = tpu.matmul %278, %574, %cst_178 {dimension_numbers = #tpu.dot_dimension_numbers<[1], [0], [0], [1], [0, 0, 1, 1], [], []>} : vector<8x128xf32>, vector<128x512xf32>, vector<8x512xf32> -> vector<8x512xf32>
    %579 = arith.addf %577, %578 : vector<8x512xf32>
    %580 = vector.extract_strided_slice %579 {offsets = [0, 0], sizes = [8, 128], strides = [1, 1]} : vector<8x512xf32> to vector<8x128xf32>
    %581 = arith.negf %580 : vector<8x128xf32>
    %582 = math.exp %581 : vector<8x128xf32>
    %cst_179 = arith.constant 1.000000e+00 : f32
    %583 = vector.broadcast %cst_179 : f32 to vector<8x128xf32>
    %584 = arith.addf %583, %582 : vector<8x128xf32>
    %585 = arith.divf %583, %584 : vector<8x128xf32>
    %586 = vector.extract_strided_slice %579 {offsets = [0, 128], sizes = [8, 128], strides = [1, 1]} : vector<8x512xf32> to vector<8x128xf32>
    %587 = arith.negf %586 : vector<8x128xf32>
    %588 = math.exp %587 : vector<8x128xf32>
    %cst_180 = arith.constant 1.000000e+00 : f32
    %589 = vector.broadcast %cst_180 : f32 to vector<8x128xf32>
    %590 = arith.addf %589, %588 : vector<8x128xf32>
    %591 = arith.divf %589, %590 : vector<8x128xf32>
    %592 = vector.extract_strided_slice %579 {offsets = [0, 256], sizes = [8, 128], strides = [1, 1]} : vector<8x512xf32> to vector<8x128xf32>
    %593 = math.tanh %592 : vector<8x128xf32>
    %594 = vector.extract_strided_slice %579 {offsets = [0, 384], sizes = [8, 128], strides = [1, 1]} : vector<8x512xf32> to vector<8x128xf32>
    %595 = arith.negf %594 : vector<8x128xf32>
    %596 = math.exp %595 : vector<8x128xf32>
    %cst_181 = arith.constant 1.000000e+00 : f32
    %597 = vector.broadcast %cst_181 : f32 to vector<8x128xf32>
    %598 = arith.addf %597, %596 : vector<8x128xf32>
    %599 = arith.divf %597, %598 : vector<8x128xf32>
    %600 = arith.mulf %591, %276 : vector<8x128xf32>
    %601 = arith.mulf %585, %593 : vector<8x128xf32>
    %602 = arith.addf %600, %601 : vector<8x128xf32>
    %603 = math.tanh %602 : vector<8x128xf32>
    %604 = arith.mulf %599, %603 : vector<8x128xf32>
    %605 = arith.index_cast %c0_i32_175 : i32 to index
    %c0_182 = arith.constant 0 : index
    %c0_183 = arith.constant 0 : index
    %606 = vector.load %arg19[%605, %c0_182, %c0_183] : memref<8x8x128xf32, #tpu.memory_space<vmem>>, vector<1x8x128xf32>
    %607 = vector.shape_cast %606 : vector<1x8x128xf32> to vector<8x128xf32>
    %608 = vector.shape_cast %604 : vector<8x128xf32> to vector<1x8x128xf32>
    tpu.vector_store %arg19[%605, %c0_182, %c0_183], %608 {strides = array<i32>} : memref<8x8x128xf32, #tpu.memory_space<vmem>>, vector<1x8x128xf32>,
    %c1_i32_184 = arith.constant 1 : i32
    %609 = arith.index_cast %c1_i32_184 : i32 to index
    %c0_185 = arith.constant 0 : index
    %c0_186 = arith.constant 0 : index
    %610 = vector.load %arg20[%609, %c0_185, %c0_186] : memref<8x8x512xf32, #tpu.memory_space<vmem>>, vector<1x8x512xf32>
    %611 = vector.shape_cast %610 : vector<1x8x512xf32> to vector<8x512xf32>
    %cst_187 = arith.constant dense<0.000000e+00> : vector<8x512xf32>
    %612 = tpu.matmul %604, %574, %cst_187 {dimension_numbers = #tpu.dot_dimension_numbers<[1], [0], [0], [1], [0, 0, 1, 1], [], []>} : vector<8x128xf32>, vector<128x512xf32>, vector<8x512xf32> -> vector<8x512xf32>
    %613 = arith.addf %611, %612 : vector<8x512xf32>
    %614 = vector.extract_strided_slice %613 {offsets = [0, 0], sizes = [8, 128], strides = [1, 1]} : vector<8x512xf32> to vector<8x128xf32>
    %615 = arith.negf %614 : vector<8x128xf32>
    %616 = math.exp %615 : vector<8x128xf32>
    %cst_188 = arith.constant 1.000000e+00 : f32
    %617 = vector.broadcast %cst_188 : f32 to vector<8x128xf32>
    %618 = arith.addf %617, %616 : vector<8x128xf32>
    %619 = arith.divf %617, %618 : vector<8x128xf32>
    %620 = vector.extract_strided_slice %613 {offsets = [0, 128], sizes = [8, 128], strides = [1, 1]} : vector<8x512xf32> to vector<8x128xf32>
    %621 = arith.negf %620 : vector<8x128xf32>
    %622 = math.exp %621 : vector<8x128xf32>
    %cst_189 = arith.constant 1.000000e+00 : f32
    %623 = vector.broadcast %cst_189 : f32 to vector<8x128xf32>
    %624 = arith.addf %623, %622 : vector<8x128xf32>
    %625 = arith.divf %623, %624 : vector<8x128xf32>
    %626 = vector.extract_strided_slice %613 {offsets = [0, 256], sizes = [8, 128], strides = [1, 1]} : vector<8x512xf32> to vector<8x128xf32>
    %627 = math.tanh %626 : vector<8x128xf32>
    %628 = vector.extract_strided_slice %613 {offsets = [0, 384], sizes = [8, 128], strides = [1, 1]} : vector<8x512xf32> to vector<8x128xf32>
    %629 = arith.negf %628 : vector<8x128xf32>
    %630 = math.exp %629 : vector<8x128xf32>
    %cst_190 = arith.constant 1.000000e+00 : f32
    %631 = vector.broadcast %cst_190 : f32 to vector<8x128xf32>
    %632 = arith.addf %631, %630 : vector<8x128xf32>
    %633 = arith.divf %631, %632 : vector<8x128xf32>
    %634 = arith.mulf %625, %602 : vector<8x128xf32>
    %635 = arith.mulf %619, %627 : vector<8x128xf32>
    %636 = arith.addf %634, %635 : vector<8x128xf32>
    %637 = math.tanh %636 : vector<8x128xf32>
    %638 = arith.mulf %633, %637 : vector<8x128xf32>
    %639 = arith.index_cast %c1_i32_184 : i32 to index
    %c0_191 = arith.constant 0 : index
    %c0_192 = arith.constant 0 : index
    %640 = vector.load %arg19[%639, %c0_191, %c0_192] : memref<8x8x128xf32, #tpu.memory_space<vmem>>, vector<1x8x128xf32>
    %641 = vector.shape_cast %640 : vector<1x8x128xf32> to vector<8x128xf32>
    %642 = vector.shape_cast %638 : vector<8x128xf32> to vector<1x8x128xf32>
    tpu.vector_store %arg19[%639, %c0_191, %c0_192], %642 {strides = array<i32>} : memref<8x8x128xf32, #tpu.memory_space<vmem>>, vector<1x8x128xf32>,
    %c2_i32_193 = arith.constant 2 : i32
    %643 = arith.index_cast %c2_i32_193 : i32 to index
    %c0_194 = arith.constant 0 : index
    %c0_195 = arith.constant 0 : index
    %644 = vector.load %arg20[%643, %c0_194, %c0_195] : memref<8x8x512xf32, #tpu.memory_space<vmem>>, vector<1x8x512xf32>
    %645 = vector.shape_cast %644 : vector<1x8x512xf32> to vector<8x512xf32>
    %cst_196 = arith.constant dense<0.000000e+00> : vector<8x512xf32>
    %646 = tpu.matmul %638, %574, %cst_196 {dimension_numbers = #tpu.dot_dimension_numbers<[1], [0], [0], [1], [0, 0, 1, 1], [], []>} : vector<8x128xf32>, vector<128x512xf32>, vector<8x512xf32> -> vector<8x512xf32>
    %647 = arith.addf %645, %646 : vector<8x512xf32>
    %648 = vector.extract_strided_slice %647 {offsets = [0, 0], sizes = [8, 128], strides = [1, 1]} : vector<8x512xf32> to vector<8x128xf32>
    %649 = arith.negf %648 : vector<8x128xf32>
    %650 = math.exp %649 : vector<8x128xf32>
    %cst_197 = arith.constant 1.000000e+00 : f32
    %651 = vector.broadcast %cst_197 : f32 to vector<8x128xf32>
    %652 = arith.addf %651, %650 : vector<8x128xf32>
    %653 = arith.divf %651, %652 : vector<8x128xf32>
    %654 = vector.extract_strided_slice %647 {offsets = [0, 128], sizes = [8, 128], strides = [1, 1]} : vector<8x512xf32> to vector<8x128xf32>
    %655 = arith.negf %654 : vector<8x128xf32>
    %656 = math.exp %655 : vector<8x128xf32>
    %cst_198 = arith.constant 1.000000e+00 : f32
    %657 = vector.broadcast %cst_198 : f32 to vector<8x128xf32>
    %658 = arith.addf %657, %656 : vector<8x128xf32>
    %659 = arith.divf %657, %658 : vector<8x128xf32>
    %660 = vector.extract_strided_slice %647 {offsets = [0, 256], sizes = [8, 128], strides = [1, 1]} : vector<8x512xf32> to vector<8x128xf32>
    %661 = math.tanh %660 : vector<8x128xf32>
    %662 = vector.extract_strided_slice %647 {offsets = [0, 384], sizes = [8, 128], strides = [1, 1]} : vector<8x512xf32> to vector<8x128xf32>
    %663 = arith.negf %662 : vector<8x128xf32>
    %664 = math.exp %663 : vector<8x128xf32>
    %cst_199 = arith.constant 1.000000e+00 : f32
    %665 = vector.broadcast %cst_199 : f32 to vector<8x128xf32>
    %666 = arith.addf %665, %664 : vector<8x128xf32>
    %667 = arith.divf %665, %666 : vector<8x128xf32>
    %668 = arith.mulf %659, %636 : vector<8x128xf32>
    %669 = arith.mulf %653, %661 : vector<8x128xf32>
    %670 = arith.addf %668, %669 : vector<8x128xf32>
    %671 = math.tanh %670 : vector<8x128xf32>
    %672 = arith.mulf %667, %671 : vector<8x128xf32>
    %673 = arith.index_cast %c2_i32_193 : i32 to index
    %c0_200 = arith.constant 0 : index
    %c0_201 = arith.constant 0 : index
    %674 = vector.load %arg19[%673, %c0_200, %c0_201] : memref<8x8x128xf32, #tpu.memory_space<vmem>>, vector<1x8x128xf32>
    %675 = vector.shape_cast %674 : vector<1x8x128xf32> to vector<8x128xf32>
    %676 = vector.shape_cast %672 : vector<8x128xf32> to vector<1x8x128xf32>
    tpu.vector_store %arg19[%673, %c0_200, %c0_201], %676 {strides = array<i32>} : memref<8x8x128xf32, #tpu.memory_space<vmem>>, vector<1x8x128xf32>,
    %c3_i32_202 = arith.constant 3 : i32
    %677 = arith.index_cast %c3_i32_202 : i32 to index
    %c0_203 = arith.constant 0 : index
    %c0_204 = arith.constant 0 : index
    %678 = vector.load %arg20[%677, %c0_203, %c0_204] : memref<8x8x512xf32, #tpu.memory_space<vmem>>, vector<1x8x512xf32>
    %679 = vector.shape_cast %678 : vector<1x8x512xf32> to vector<8x512xf32>
    %cst_205 = arith.constant dense<0.000000e+00> : vector<8x512xf32>
    %680 = tpu.matmul %672, %574, %cst_205 {dimension_numbers = #tpu.dot_dimension_numbers<[1], [0], [0], [1], [0, 0, 1, 1], [], []>} : vector<8x128xf32>, vector<128x512xf32>, vector<8x512xf32> -> vector<8x512xf32>
    %681 = arith.addf %679, %680 : vector<8x512xf32>
    %682 = vector.extract_strided_slice %681 {offsets = [0, 0], sizes = [8, 128], strides = [1, 1]} : vector<8x512xf32> to vector<8x128xf32>
    %683 = arith.negf %682 : vector<8x128xf32>
    %684 = math.exp %683 : vector<8x128xf32>
    %cst_206 = arith.constant 1.000000e+00 : f32
    %685 = vector.broadcast %cst_206 : f32 to vector<8x128xf32>
    %686 = arith.addf %685, %684 : vector<8x128xf32>
    %687 = arith.divf %685, %686 : vector<8x128xf32>
    %688 = vector.extract_strided_slice %681 {offsets = [0, 128], sizes = [8, 128], strides = [1, 1]} : vector<8x512xf32> to vector<8x128xf32>
    %689 = arith.negf %688 : vector<8x128xf32>
    %690 = math.exp %689 : vector<8x128xf32>
    %cst_207 = arith.constant 1.000000e+00 : f32
    %691 = vector.broadcast %cst_207 : f32 to vector<8x128xf32>
    %692 = arith.addf %691, %690 : vector<8x128xf32>
    %693 = arith.divf %691, %692 : vector<8x128xf32>
    %694 = vector.extract_strided_slice %681 {offsets = [0, 256], sizes = [8, 128], strides = [1, 1]} : vector<8x512xf32> to vector<8x128xf32>
    %695 = math.tanh %694 : vector<8x128xf32>
    %696 = vector.extract_strided_slice %681 {offsets = [0, 384], sizes = [8, 128], strides = [1, 1]} : vector<8x512xf32> to vector<8x128xf32>
    %697 = arith.negf %696 : vector<8x128xf32>
    %698 = math.exp %697 : vector<8x128xf32>
    %cst_208 = arith.constant 1.000000e+00 : f32
    %699 = vector.broadcast %cst_208 : f32 to vector<8x128xf32>
    %700 = arith.addf %699, %698 : vector<8x128xf32>
    %701 = arith.divf %699, %700 : vector<8x128xf32>
    %702 = arith.mulf %693, %670 : vector<8x128xf32>
    %703 = arith.mulf %687, %695 : vector<8x128xf32>
    %704 = arith.addf %702, %703 : vector<8x128xf32>
    %705 = math.tanh %704 : vector<8x128xf32>
    %706 = arith.mulf %701, %705 : vector<8x128xf32>
    %707 = arith.index_cast %c3_i32_202 : i32 to index
    %c0_209 = arith.constant 0 : index
    %c0_210 = arith.constant 0 : index
    %708 = vector.load %arg19[%707, %c0_209, %c0_210] : memref<8x8x128xf32, #tpu.memory_space<vmem>>, vector<1x8x128xf32>
    %709 = vector.shape_cast %708 : vector<1x8x128xf32> to vector<8x128xf32>
    %710 = vector.shape_cast %706 : vector<8x128xf32> to vector<1x8x128xf32>
    tpu.vector_store %arg19[%707, %c0_209, %c0_210], %710 {strides = array<i32>} : memref<8x8x128xf32, #tpu.memory_space<vmem>>, vector<1x8x128xf32>,
    %c4_i32_211 = arith.constant 4 : i32
    %711 = arith.index_cast %c4_i32_211 : i32 to index
    %c0_212 = arith.constant 0 : index
    %c0_213 = arith.constant 0 : index
    %712 = vector.load %arg20[%711, %c0_212, %c0_213] : memref<8x8x512xf32, #tpu.memory_space<vmem>>, vector<1x8x512xf32>
    %713 = vector.shape_cast %712 : vector<1x8x512xf32> to vector<8x512xf32>
    %cst_214 = arith.constant dense<0.000000e+00> : vector<8x512xf32>
    %714 = tpu.matmul %706, %574, %cst_214 {dimension_numbers = #tpu.dot_dimension_numbers<[1], [0], [0], [1], [0, 0, 1, 1], [], []>} : vector<8x128xf32>, vector<128x512xf32>, vector<8x512xf32> -> vector<8x512xf32>
    %715 = arith.addf %713, %714 : vector<8x512xf32>
    %716 = vector.extract_strided_slice %715 {offsets = [0, 0], sizes = [8, 128], strides = [1, 1]} : vector<8x512xf32> to vector<8x128xf32>
    %717 = arith.negf %716 : vector<8x128xf32>
    %718 = math.exp %717 : vector<8x128xf32>
    %cst_215 = arith.constant 1.000000e+00 : f32
    %719 = vector.broadcast %cst_215 : f32 to vector<8x128xf32>
    %720 = arith.addf %719, %718 : vector<8x128xf32>
    %721 = arith.divf %719, %720 : vector<8x128xf32>
    %722 = vector.extract_strided_slice %715 {offsets = [0, 128], sizes = [8, 128], strides = [1, 1]} : vector<8x512xf32> to vector<8x128xf32>
    %723 = arith.negf %722 : vector<8x128xf32>
    %724 = math.exp %723 : vector<8x128xf32>
    %cst_216 = arith.constant 1.000000e+00 : f32
    %725 = vector.broadcast %cst_216 : f32 to vector<8x128xf32>
    %726 = arith.addf %725, %724 : vector<8x128xf32>
    %727 = arith.divf %725, %726 : vector<8x128xf32>
    %728 = vector.extract_strided_slice %715 {offsets = [0, 256], sizes = [8, 128], strides = [1, 1]} : vector<8x512xf32> to vector<8x128xf32>
    %729 = math.tanh %728 : vector<8x128xf32>
    %730 = vector.extract_strided_slice %715 {offsets = [0, 384], sizes = [8, 128], strides = [1, 1]} : vector<8x512xf32> to vector<8x128xf32>
    %731 = arith.negf %730 : vector<8x128xf32>
    %732 = math.exp %731 : vector<8x128xf32>
    %cst_217 = arith.constant 1.000000e+00 : f32
    %733 = vector.broadcast %cst_217 : f32 to vector<8x128xf32>
    %734 = arith.addf %733, %732 : vector<8x128xf32>
    %735 = arith.divf %733, %734 : vector<8x128xf32>
    %736 = arith.mulf %727, %704 : vector<8x128xf32>
    %737 = arith.mulf %721, %729 : vector<8x128xf32>
    %738 = arith.addf %736, %737 : vector<8x128xf32>
    %739 = math.tanh %738 : vector<8x128xf32>
    %740 = arith.mulf %735, %739 : vector<8x128xf32>
    %741 = arith.index_cast %c4_i32_211 : i32 to index
    %c0_218 = arith.constant 0 : index
    %c0_219 = arith.constant 0 : index
    %742 = vector.load %arg19[%741, %c0_218, %c0_219] : memref<8x8x128xf32, #tpu.memory_space<vmem>>, vector<1x8x128xf32>
    %743 = vector.shape_cast %742 : vector<1x8x128xf32> to vector<8x128xf32>
    %744 = vector.shape_cast %740 : vector<8x128xf32> to vector<1x8x128xf32>
    tpu.vector_store %arg19[%741, %c0_218, %c0_219], %744 {strides = array<i32>} : memref<8x8x128xf32, #tpu.memory_space<vmem>>, vector<1x8x128xf32>,
    %c5_i32_220 = arith.constant 5 : i32
    %745 = arith.index_cast %c5_i32_220 : i32 to index
    %c0_221 = arith.constant 0 : index
    %c0_222 = arith.constant 0 : index
    %746 = vector.load %arg20[%745, %c0_221, %c0_222] : memref<8x8x512xf32, #tpu.memory_space<vmem>>, vector<1x8x512xf32>
    %747 = vector.shape_cast %746 : vector<1x8x512xf32> to vector<8x512xf32>
    %cst_223 = arith.constant dense<0.000000e+00> : vector<8x512xf32>
    %748 = tpu.matmul %740, %574, %cst_223 {dimension_numbers = #tpu.dot_dimension_numbers<[1], [0], [0], [1], [0, 0, 1, 1], [], []>} : vector<8x128xf32>, vector<128x512xf32>, vector<8x512xf32> -> vector<8x512xf32>
    %749 = arith.addf %747, %748 : vector<8x512xf32>
    %750 = vector.extract_strided_slice %749 {offsets = [0, 0], sizes = [8, 128], strides = [1, 1]} : vector<8x512xf32> to vector<8x128xf32>
    %751 = arith.negf %750 : vector<8x128xf32>
    %752 = math.exp %751 : vector<8x128xf32>
    %cst_224 = arith.constant 1.000000e+00 : f32
    %753 = vector.broadcast %cst_224 : f32 to vector<8x128xf32>
    %754 = arith.addf %753, %752 : vector<8x128xf32>
    %755 = arith.divf %753, %754 : vector<8x128xf32>
    %756 = vector.extract_strided_slice %749 {offsets = [0, 128], sizes = [8, 128], strides = [1, 1]} : vector<8x512xf32> to vector<8x128xf32>
    %757 = arith.negf %756 : vector<8x128xf32>
    %758 = math.exp %757 : vector<8x128xf32>
    %cst_225 = arith.constant 1.000000e+00 : f32
    %759 = vector.broadcast %cst_225 : f32 to vector<8x128xf32>
    %760 = arith.addf %759, %758 : vector<8x128xf32>
    %761 = arith.divf %759, %760 : vector<8x128xf32>
    %762 = vector.extract_strided_slice %749 {offsets = [0, 256], sizes = [8, 128], strides = [1, 1]} : vector<8x512xf32> to vector<8x128xf32>
    %763 = math.tanh %762 : vector<8x128xf32>
    %764 = vector.extract_strided_slice %749 {offsets = [0, 384], sizes = [8, 128], strides = [1, 1]} : vector<8x512xf32> to vector<8x128xf32>
    %765 = arith.negf %764 : vector<8x128xf32>
    %766 = math.exp %765 : vector<8x128xf32>
    %cst_226 = arith.constant 1.000000e+00 : f32
    %767 = vector.broadcast %cst_226 : f32 to vector<8x128xf32>
    %768 = arith.addf %767, %766 : vector<8x128xf32>
    %769 = arith.divf %767, %768 : vector<8x128xf32>
    %770 = arith.mulf %761, %738 : vector<8x128xf32>
    %771 = arith.mulf %755, %763 : vector<8x128xf32>
    %772 = arith.addf %770, %771 : vector<8x128xf32>
    %773 = math.tanh %772 : vector<8x128xf32>
    %774 = arith.mulf %769, %773 : vector<8x128xf32>
    %775 = arith.index_cast %c5_i32_220 : i32 to index
    %c0_227 = arith.constant 0 : index
    %c0_228 = arith.constant 0 : index
    %776 = vector.load %arg19[%775, %c0_227, %c0_228] : memref<8x8x128xf32, #tpu.memory_space<vmem>>, vector<1x8x128xf32>
    %777 = vector.shape_cast %776 : vector<1x8x128xf32> to vector<8x128xf32>
    %778 = vector.shape_cast %774 : vector<8x128xf32> to vector<1x8x128xf32>
    tpu.vector_store %arg19[%775, %c0_227, %c0_228], %778 {strides = array<i32>} : memref<8x8x128xf32, #tpu.memory_space<vmem>>, vector<1x8x128xf32>,
    %c6_i32_229 = arith.constant 6 : i32
    %779 = arith.index_cast %c6_i32_229 : i32 to index
    %c0_230 = arith.constant 0 : index
    %c0_231 = arith.constant 0 : index
    %780 = vector.load %arg20[%779, %c0_230, %c0_231] : memref<8x8x512xf32, #tpu.memory_space<vmem>>, vector<1x8x512xf32>
    %781 = vector.shape_cast %780 : vector<1x8x512xf32> to vector<8x512xf32>
    %cst_232 = arith.constant dense<0.000000e+00> : vector<8x512xf32>
    %782 = tpu.matmul %774, %574, %cst_232 {dimension_numbers = #tpu.dot_dimension_numbers<[1], [0], [0], [1], [0, 0, 1, 1], [], []>} : vector<8x128xf32>, vector<128x512xf32>, vector<8x512xf32> -> vector<8x512xf32>
    %783 = arith.addf %781, %782 : vector<8x512xf32>
    %784 = vector.extract_strided_slice %783 {offsets = [0, 0], sizes = [8, 128], strides = [1, 1]} : vector<8x512xf32> to vector<8x128xf32>
    %785 = arith.negf %784 : vector<8x128xf32>
    %786 = math.exp %785 : vector<8x128xf32>
    %cst_233 = arith.constant 1.000000e+00 : f32
    %787 = vector.broadcast %cst_233 : f32 to vector<8x128xf32>
    %788 = arith.addf %787, %786 : vector<8x128xf32>
    %789 = arith.divf %787, %788 : vector<8x128xf32>
    %790 = vector.extract_strided_slice %783 {offsets = [0, 128], sizes = [8, 128], strides = [1, 1]} : vector<8x512xf32> to vector<8x128xf32>
    %791 = arith.negf %790 : vector<8x128xf32>
    %792 = math.exp %791 : vector<8x128xf32>
    %cst_234 = arith.constant 1.000000e+00 : f32
    %793 = vector.broadcast %cst_234 : f32 to vector<8x128xf32>
    %794 = arith.addf %793, %792 : vector<8x128xf32>
    %795 = arith.divf %793, %794 : vector<8x128xf32>
    %796 = vector.extract_strided_slice %783 {offsets = [0, 256], sizes = [8, 128], strides = [1, 1]} : vector<8x512xf32> to vector<8x128xf32>
    %797 = math.tanh %796 : vector<8x128xf32>
    %798 = vector.extract_strided_slice %783 {offsets = [0, 384], sizes = [8, 128], strides = [1, 1]} : vector<8x512xf32> to vector<8x128xf32>
    %799 = arith.negf %798 : vector<8x128xf32>
    %800 = math.exp %799 : vector<8x128xf32>
    %cst_235 = arith.constant 1.000000e+00 : f32
    %801 = vector.broadcast %cst_235 : f32 to vector<8x128xf32>
    %802 = arith.addf %801, %800 : vector<8x128xf32>
    %803 = arith.divf %801, %802 : vector<8x128xf32>
    %804 = arith.mulf %795, %772 : vector<8x128xf32>
    %805 = arith.mulf %789, %797 : vector<8x128xf32>
    %806 = arith.addf %804, %805 : vector<8x128xf32>
    %807 = math.tanh %806 : vector<8x128xf32>
    %808 = arith.mulf %803, %807 : vector<8x128xf32>
    %809 = arith.index_cast %c6_i32_229 : i32 to index
    %c0_236 = arith.constant 0 : index
    %c0_237 = arith.constant 0 : index
    %810 = vector.load %arg19[%809, %c0_236, %c0_237] : memref<8x8x128xf32, #tpu.memory_space<vmem>>, vector<1x8x128xf32>
    %811 = vector.shape_cast %810 : vector<1x8x128xf32> to vector<8x128xf32>
    %812 = vector.shape_cast %808 : vector<8x128xf32> to vector<1x8x128xf32>
    tpu.vector_store %arg19[%809, %c0_236, %c0_237], %812 {strides = array<i32>} : memref<8x8x128xf32, #tpu.memory_space<vmem>>, vector<1x8x128xf32>,
    %c7_i32_238 = arith.constant 7 : i32
    %813 = arith.index_cast %c7_i32_238 : i32 to index
    %c0_239 = arith.constant 0 : index
    %c0_240 = arith.constant 0 : index
    %814 = vector.load %arg20[%813, %c0_239, %c0_240] : memref<8x8x512xf32, #tpu.memory_space<vmem>>, vector<1x8x512xf32>
    %815 = vector.shape_cast %814 : vector<1x8x512xf32> to vector<8x512xf32>
    %cst_241 = arith.constant dense<0.000000e+00> : vector<8x512xf32>
    %816 = tpu.matmul %808, %574, %cst_241 {dimension_numbers = #tpu.dot_dimension_numbers<[1], [0], [0], [1], [0, 0, 1, 1], [], []>} : vector<8x128xf32>, vector<128x512xf32>, vector<8x512xf32> -> vector<8x512xf32>
    %817 = arith.addf %815, %816 : vector<8x512xf32>
    %818 = vector.extract_strided_slice %817 {offsets = [0, 0], sizes = [8, 128], strides = [1, 1]} : vector<8x512xf32> to vector<8x128xf32>
    %819 = arith.negf %818 : vector<8x128xf32>
    %820 = math.exp %819 : vector<8x128xf32>
    %cst_242 = arith.constant 1.000000e+00 : f32
    %821 = vector.broadcast %cst_242 : f32 to vector<8x128xf32>
    %822 = arith.addf %821, %820 : vector<8x128xf32>
    %823 = arith.divf %821, %822 : vector<8x128xf32>
    %824 = vector.extract_strided_slice %817 {offsets = [0, 128], sizes = [8, 128], strides = [1, 1]} : vector<8x512xf32> to vector<8x128xf32>
    %825 = arith.negf %824 : vector<8x128xf32>
    %826 = math.exp %825 : vector<8x128xf32>
    %cst_243 = arith.constant 1.000000e+00 : f32
    %827 = vector.broadcast %cst_243 : f32 to vector<8x128xf32>
    %828 = arith.addf %827, %826 : vector<8x128xf32>
    %829 = arith.divf %827, %828 : vector<8x128xf32>
    %830 = vector.extract_strided_slice %817 {offsets = [0, 256], sizes = [8, 128], strides = [1, 1]} : vector<8x512xf32> to vector<8x128xf32>
    %831 = math.tanh %830 : vector<8x128xf32>
    %832 = vector.extract_strided_slice %817 {offsets = [0, 384], sizes = [8, 128], strides = [1, 1]} : vector<8x512xf32> to vector<8x128xf32>
    %833 = arith.negf %832 : vector<8x128xf32>
    %834 = math.exp %833 : vector<8x128xf32>
    %cst_244 = arith.constant 1.000000e+00 : f32
    %835 = vector.broadcast %cst_244 : f32 to vector<8x128xf32>
    %836 = arith.addf %835, %834 : vector<8x128xf32>
    %837 = arith.divf %835, %836 : vector<8x128xf32>
    %838 = arith.mulf %829, %806 : vector<8x128xf32>
    %839 = arith.mulf %823, %831 : vector<8x128xf32>
    %840 = arith.addf %838, %839 : vector<8x128xf32>
    %841 = math.tanh %840 : vector<8x128xf32>
    %842 = arith.mulf %837, %841 : vector<8x128xf32>
    %843 = arith.index_cast %c7_i32_238 : i32 to index
    %c0_245 = arith.constant 0 : index
    %c0_246 = arith.constant 0 : index
    %844 = vector.load %arg19[%843, %c0_245, %c0_246] : memref<8x8x128xf32, #tpu.memory_space<vmem>>, vector<1x8x128xf32>
    %845 = vector.shape_cast %844 : vector<1x8x128xf32> to vector<8x128xf32>
    %846 = vector.shape_cast %842 : vector<8x128xf32> to vector<1x8x128xf32>
    tpu.vector_store %arg19[%843, %c0_245, %c0_246], %846 {strides = array<i32>} : memref<8x8x128xf32, #tpu.memory_space<vmem>>, vector<1x8x128xf32>,
    %c8_i32_247 = arith.constant 8 : i32
    %c0_248 = arith.constant 0 : index
    %c0_249 = arith.constant 0 : index
    %c0_250 = arith.constant 0 : index
    %847 = vector.load %arg19[%c0_248, %c0_249, %c0_250] : memref<8x8x128xf32, #tpu.memory_space<vmem>>, vector<8x8x128xf32>
    %848 = vector.shape_cast %847 : vector<8x8x128xf32> to vector<64x128xf32>
    %c0_251 = arith.constant 0 : index
    %c0_252 = arith.constant 0 : index
    %849 = vector.load %arg11[%c0_251, %c0_252] : memref<128x512xf32, #tpu.memory_space<vmem>>, vector<128x512xf32>
    %cst_253 = arith.constant dense<0.000000e+00> : vector<64x512xf32>
    %850 = tpu.matmul %848, %849, %cst_253 {dimension_numbers = #tpu.dot_dimension_numbers<[1], [0], [0], [1], [0, 0, 1, 1], [], []>} : vector<64x128xf32>, vector<128x512xf32>, vector<64x512xf32> -> vector<64x512xf32>
    %c0_254 = arith.constant 0 : index
    %c0_255 = arith.constant 0 : index
    %851 = vector.load %arg13[%c0_254, %c0_255] : memref<1x512xf32, #tpu.memory_space<vmem>>, vector<1x512xf32>
    %852 = vector.broadcast %851 : vector<1x512xf32> to vector<64x512xf32>
    %853 = arith.addf %850, %852 : vector<64x512xf32>
    %854 = vector.shape_cast %853 : vector<64x512xf32> to vector<8x8x512xf32>
    %c0_256 = arith.constant 0 : index
    %c0_257 = arith.constant 0 : index
    %c0_258 = arith.constant 0 : index
    %855 = vector.load %arg20[%c0_256, %c0_257, %c0_258] : memref<8x8x512xf32, #tpu.memory_space<vmem>>, vector<8x8x512xf32>
    tpu.vector_store %arg20[%c0_256, %c0_257, %c0_258], %854 {strides = array<i32>} : memref<8x8x512xf32, #tpu.memory_space<vmem>>, vector<8x8x512xf32>,
    %c0_259 = arith.constant 0 : index
    %c0_260 = arith.constant 0 : index
    %856 = vector.load %arg12[%c0_259, %c0_260] : memref<128x512xf32, #tpu.memory_space<vmem>>, vector<128x512xf32>
    %c0_i32_261 = arith.constant 0 : i32
    %857 = arith.index_cast %c0_i32_261 : i32 to index
    %c0_262 = arith.constant 0 : index
    %c0_263 = arith.constant 0 : index
    %858 = vector.load %arg20[%857, %c0_262, %c0_263] : memref<8x8x512xf32, #tpu.memory_space<vmem>>, vector<1x8x512xf32>
    %859 = vector.shape_cast %858 : vector<1x8x512xf32> to vector<8x512xf32>
    %cst_264 = arith.constant dense<0.000000e+00> : vector<8x512xf32>
    %860 = tpu.matmul %560, %856, %cst_264 {dimension_numbers = #tpu.dot_dimension_numbers<[1], [0], [0], [1], [0, 0, 1, 1], [], []>} : vector<8x128xf32>, vector<128x512xf32>, vector<8x512xf32> -> vector<8x512xf32>
    %861 = arith.addf %859, %860 : vector<8x512xf32>
    %862 = vector.extract_strided_slice %861 {offsets = [0, 0], sizes = [8, 128], strides = [1, 1]} : vector<8x512xf32> to vector<8x128xf32>
    %863 = arith.negf %862 : vector<8x128xf32>
    %864 = math.exp %863 : vector<8x128xf32>
    %cst_265 = arith.constant 1.000000e+00 : f32
    %865 = vector.broadcast %cst_265 : f32 to vector<8x128xf32>
    %866 = arith.addf %865, %864 : vector<8x128xf32>
    %867 = arith.divf %865, %866 : vector<8x128xf32>
    %868 = vector.extract_strided_slice %861 {offsets = [0, 128], sizes = [8, 128], strides = [1, 1]} : vector<8x512xf32> to vector<8x128xf32>
    %869 = arith.negf %868 : vector<8x128xf32>
    %870 = math.exp %869 : vector<8x128xf32>
    %cst_266 = arith.constant 1.000000e+00 : f32
    %871 = vector.broadcast %cst_266 : f32 to vector<8x128xf32>
    %872 = arith.addf %871, %870 : vector<8x128xf32>
    %873 = arith.divf %871, %872 : vector<8x128xf32>
    %874 = vector.extract_strided_slice %861 {offsets = [0, 256], sizes = [8, 128], strides = [1, 1]} : vector<8x512xf32> to vector<8x128xf32>
    %875 = math.tanh %874 : vector<8x128xf32>
    %876 = vector.extract_strided_slice %861 {offsets = [0, 384], sizes = [8, 128], strides = [1, 1]} : vector<8x512xf32> to vector<8x128xf32>
    %877 = arith.negf %876 : vector<8x128xf32>
    %878 = math.exp %877 : vector<8x128xf32>
    %cst_267 = arith.constant 1.000000e+00 : f32
    %879 = vector.broadcast %cst_267 : f32 to vector<8x128xf32>
    %880 = arith.addf %879, %878 : vector<8x128xf32>
    %881 = arith.divf %879, %880 : vector<8x128xf32>
    %882 = arith.mulf %873, %558 : vector<8x128xf32>
    %883 = arith.mulf %867, %875 : vector<8x128xf32>
    %884 = arith.addf %882, %883 : vector<8x128xf32>
    %885 = math.tanh %884 : vector<8x128xf32>
    %886 = arith.mulf %881, %885 : vector<8x128xf32>
    %887 = arith.index_cast %c0_i32_261 : i32 to index
    %c0_268 = arith.constant 0 : index
    %c0_269 = arith.constant 0 : index
    %888 = vector.load %arg19[%887, %c0_268, %c0_269] : memref<8x8x128xf32, #tpu.memory_space<vmem>>, vector<1x8x128xf32>
    %889 = vector.shape_cast %888 : vector<1x8x128xf32> to vector<8x128xf32>
    %890 = vector.shape_cast %886 : vector<8x128xf32> to vector<1x8x128xf32>
    tpu.vector_store %arg19[%887, %c0_268, %c0_269], %890 {strides = array<i32>} : memref<8x8x128xf32, #tpu.memory_space<vmem>>, vector<1x8x128xf32>,
    %c1_i32_270 = arith.constant 1 : i32
    %891 = arith.index_cast %c1_i32_270 : i32 to index
    %c0_271 = arith.constant 0 : index
    %c0_272 = arith.constant 0 : index
    %892 = vector.load %arg20[%891, %c0_271, %c0_272] : memref<8x8x512xf32, #tpu.memory_space<vmem>>, vector<1x8x512xf32>
    %893 = vector.shape_cast %892 : vector<1x8x512xf32> to vector<8x512xf32>
    %cst_273 = arith.constant dense<0.000000e+00> : vector<8x512xf32>
    %894 = tpu.matmul %886, %856, %cst_273 {dimension_numbers = #tpu.dot_dimension_numbers<[1], [0], [0], [1], [0, 0, 1, 1], [], []>} : vector<8x128xf32>, vector<128x512xf32>, vector<8x512xf32> -> vector<8x512xf32>
    %895 = arith.addf %893, %894 : vector<8x512xf32>
    %896 = vector.extract_strided_slice %895 {offsets = [0, 0], sizes = [8, 128], strides = [1, 1]} : vector<8x512xf32> to vector<8x128xf32>
    %897 = arith.negf %896 : vector<8x128xf32>
    %898 = math.exp %897 : vector<8x128xf32>
    %cst_274 = arith.constant 1.000000e+00 : f32
    %899 = vector.broadcast %cst_274 : f32 to vector<8x128xf32>
    %900 = arith.addf %899, %898 : vector<8x128xf32>
    %901 = arith.divf %899, %900 : vector<8x128xf32>
    %902 = vector.extract_strided_slice %895 {offsets = [0, 128], sizes = [8, 128], strides = [1, 1]} : vector<8x512xf32> to vector<8x128xf32>
    %903 = arith.negf %902 : vector<8x128xf32>
    %904 = math.exp %903 : vector<8x128xf32>
    %cst_275 = arith.constant 1.000000e+00 : f32
    %905 = vector.broadcast %cst_275 : f32 to vector<8x128xf32>
    %906 = arith.addf %905, %904 : vector<8x128xf32>
    %907 = arith.divf %905, %906 : vector<8x128xf32>
    %908 = vector.extract_strided_slice %895 {offsets = [0, 256], sizes = [8, 128], strides = [1, 1]} : vector<8x512xf32> to vector<8x128xf32>
    %909 = math.tanh %908 : vector<8x128xf32>
    %910 = vector.extract_strided_slice %895 {offsets = [0, 384], sizes = [8, 128], strides = [1, 1]} : vector<8x512xf32> to vector<8x128xf32>
    %911 = arith.negf %910 : vector<8x128xf32>
    %912 = math.exp %911 : vector<8x128xf32>
    %cst_276 = arith.constant 1.000000e+00 : f32
    %913 = vector.broadcast %cst_276 : f32 to vector<8x128xf32>
    %914 = arith.addf %913, %912 : vector<8x128xf32>
    %915 = arith.divf %913, %914 : vector<8x128xf32>
    %916 = arith.mulf %907, %884 : vector<8x128xf32>
    %917 = arith.mulf %901, %909 : vector<8x128xf32>
    %918 = arith.addf %916, %917 : vector<8x128xf32>
    %919 = math.tanh %918 : vector<8x128xf32>
    %920 = arith.mulf %915, %919 : vector<8x128xf32>
    %921 = arith.index_cast %c1_i32_270 : i32 to index
    %c0_277 = arith.constant 0 : index
    %c0_278 = arith.constant 0 : index
    %922 = vector.load %arg19[%921, %c0_277, %c0_278] : memref<8x8x128xf32, #tpu.memory_space<vmem>>, vector<1x8x128xf32>
    %923 = vector.shape_cast %922 : vector<1x8x128xf32> to vector<8x128xf32>
    %924 = vector.shape_cast %920 : vector<8x128xf32> to vector<1x8x128xf32>
    tpu.vector_store %arg19[%921, %c0_277, %c0_278], %924 {strides = array<i32>} : memref<8x8x128xf32, #tpu.memory_space<vmem>>, vector<1x8x128xf32>,
    %c2_i32_279 = arith.constant 2 : i32
    %925 = arith.index_cast %c2_i32_279 : i32 to index
    %c0_280 = arith.constant 0 : index
    %c0_281 = arith.constant 0 : index
    %926 = vector.load %arg20[%925, %c0_280, %c0_281] : memref<8x8x512xf32, #tpu.memory_space<vmem>>, vector<1x8x512xf32>
    %927 = vector.shape_cast %926 : vector<1x8x512xf32> to vector<8x512xf32>
    %cst_282 = arith.constant dense<0.000000e+00> : vector<8x512xf32>
    %928 = tpu.matmul %920, %856, %cst_282 {dimension_numbers = #tpu.dot_dimension_numbers<[1], [0], [0], [1], [0, 0, 1, 1], [], []>} : vector<8x128xf32>, vector<128x512xf32>, vector<8x512xf32> -> vector<8x512xf32>
    %929 = arith.addf %927, %928 : vector<8x512xf32>
    %930 = vector.extract_strided_slice %929 {offsets = [0, 0], sizes = [8, 128], strides = [1, 1]} : vector<8x512xf32> to vector<8x128xf32>
    %931 = arith.negf %930 : vector<8x128xf32>
    %932 = math.exp %931 : vector<8x128xf32>
    %cst_283 = arith.constant 1.000000e+00 : f32
    %933 = vector.broadcast %cst_283 : f32 to vector<8x128xf32>
    %934 = arith.addf %933, %932 : vector<8x128xf32>
    %935 = arith.divf %933, %934 : vector<8x128xf32>
    %936 = vector.extract_strided_slice %929 {offsets = [0, 128], sizes = [8, 128], strides = [1, 1]} : vector<8x512xf32> to vector<8x128xf32>
    %937 = arith.negf %936 : vector<8x128xf32>
    %938 = math.exp %937 : vector<8x128xf32>
    %cst_284 = arith.constant 1.000000e+00 : f32
    %939 = vector.broadcast %cst_284 : f32 to vector<8x128xf32>
    %940 = arith.addf %939, %938 : vector<8x128xf32>
    %941 = arith.divf %939, %940 : vector<8x128xf32>
    %942 = vector.extract_strided_slice %929 {offsets = [0, 256], sizes = [8, 128], strides = [1, 1]} : vector<8x512xf32> to vector<8x128xf32>
    %943 = math.tanh %942 : vector<8x128xf32>
    %944 = vector.extract_strided_slice %929 {offsets = [0, 384], sizes = [8, 128], strides = [1, 1]} : vector<8x512xf32> to vector<8x128xf32>
    %945 = arith.negf %944 : vector<8x128xf32>
    %946 = math.exp %945 : vector<8x128xf32>
    %cst_285 = arith.constant 1.000000e+00 : f32
    %947 = vector.broadcast %cst_285 : f32 to vector<8x128xf32>
    %948 = arith.addf %947, %946 : vector<8x128xf32>
    %949 = arith.divf %947, %948 : vector<8x128xf32>
    %950 = arith.mulf %941, %918 : vector<8x128xf32>
    %951 = arith.mulf %935, %943 : vector<8x128xf32>
    %952 = arith.addf %950, %951 : vector<8x128xf32>
    %953 = math.tanh %952 : vector<8x128xf32>
    %954 = arith.mulf %949, %953 : vector<8x128xf32>
    %955 = arith.index_cast %c2_i32_279 : i32 to index
    %c0_286 = arith.constant 0 : index
    %c0_287 = arith.constant 0 : index
    %956 = vector.load %arg19[%955, %c0_286, %c0_287] : memref<8x8x128xf32, #tpu.memory_space<vmem>>, vector<1x8x128xf32>
    %957 = vector.shape_cast %956 : vector<1x8x128xf32> to vector<8x128xf32>
    %958 = vector.shape_cast %954 : vector<8x128xf32> to vector<1x8x128xf32>
    tpu.vector_store %arg19[%955, %c0_286, %c0_287], %958 {strides = array<i32>} : memref<8x8x128xf32, #tpu.memory_space<vmem>>, vector<1x8x128xf32>,
    %c3_i32_288 = arith.constant 3 : i32
    %959 = arith.index_cast %c3_i32_288 : i32 to index
    %c0_289 = arith.constant 0 : index
    %c0_290 = arith.constant 0 : index
    %960 = vector.load %arg20[%959, %c0_289, %c0_290] : memref<8x8x512xf32, #tpu.memory_space<vmem>>, vector<1x8x512xf32>
    %961 = vector.shape_cast %960 : vector<1x8x512xf32> to vector<8x512xf32>
    %cst_291 = arith.constant dense<0.000000e+00> : vector<8x512xf32>
    %962 = tpu.matmul %954, %856, %cst_291 {dimension_numbers = #tpu.dot_dimension_numbers<[1], [0], [0], [1], [0, 0, 1, 1], [], []>} : vector<8x128xf32>, vector<128x512xf32>, vector<8x512xf32> -> vector<8x512xf32>
    %963 = arith.addf %961, %962 : vector<8x512xf32>
    %964 = vector.extract_strided_slice %963 {offsets = [0, 0], sizes = [8, 128], strides = [1, 1]} : vector<8x512xf32> to vector<8x128xf32>
    %965 = arith.negf %964 : vector<8x128xf32>
    %966 = math.exp %965 : vector<8x128xf32>
    %cst_292 = arith.constant 1.000000e+00 : f32
    %967 = vector.broadcast %cst_292 : f32 to vector<8x128xf32>
    %968 = arith.addf %967, %966 : vector<8x128xf32>
    %969 = arith.divf %967, %968 : vector<8x128xf32>
    %970 = vector.extract_strided_slice %963 {offsets = [0, 128], sizes = [8, 128], strides = [1, 1]} : vector<8x512xf32> to vector<8x128xf32>
    %971 = arith.negf %970 : vector<8x128xf32>
    %972 = math.exp %971 : vector<8x128xf32>
    %cst_293 = arith.constant 1.000000e+00 : f32
    %973 = vector.broadcast %cst_293 : f32 to vector<8x128xf32>
    %974 = arith.addf %973, %972 : vector<8x128xf32>
    %975 = arith.divf %973, %974 : vector<8x128xf32>
    %976 = vector.extract_strided_slice %963 {offsets = [0, 256], sizes = [8, 128], strides = [1, 1]} : vector<8x512xf32> to vector<8x128xf32>
    %977 = math.tanh %976 : vector<8x128xf32>
    %978 = vector.extract_strided_slice %963 {offsets = [0, 384], sizes = [8, 128], strides = [1, 1]} : vector<8x512xf32> to vector<8x128xf32>
    %979 = arith.negf %978 : vector<8x128xf32>
    %980 = math.exp %979 : vector<8x128xf32>
    %cst_294 = arith.constant 1.000000e+00 : f32
    %981 = vector.broadcast %cst_294 : f32 to vector<8x128xf32>
    %982 = arith.addf %981, %980 : vector<8x128xf32>
    %983 = arith.divf %981, %982 : vector<8x128xf32>
    %984 = arith.mulf %975, %952 : vector<8x128xf32>
    %985 = arith.mulf %969, %977 : vector<8x128xf32>
    %986 = arith.addf %984, %985 : vector<8x128xf32>
    %987 = math.tanh %986 : vector<8x128xf32>
    %988 = arith.mulf %983, %987 : vector<8x128xf32>
    %989 = arith.index_cast %c3_i32_288 : i32 to index
    %c0_295 = arith.constant 0 : index
    %c0_296 = arith.constant 0 : index
    %990 = vector.load %arg19[%989, %c0_295, %c0_296] : memref<8x8x128xf32, #tpu.memory_space<vmem>>, vector<1x8x128xf32>
    %991 = vector.shape_cast %990 : vector<1x8x128xf32> to vector<8x128xf32>
    %992 = vector.shape_cast %988 : vector<8x128xf32> to vector<1x8x128xf32>
    tpu.vector_store %arg19[%989, %c0_295, %c0_296], %992 {strides = array<i32>} : memref<8x8x128xf32, #tpu.memory_space<vmem>>, vector<1x8x128xf32>,
    %c4_i32_297 = arith.constant 4 : i32
    %993 = arith.index_cast %c4_i32_297 : i32 to index
    %c0_298 = arith.constant 0 : index
    %c0_299 = arith.constant 0 : index
    %994 = vector.load %arg20[%993, %c0_298, %c0_299] : memref<8x8x512xf32, #tpu.memory_space<vmem>>, vector<1x8x512xf32>
    %995 = vector.shape_cast %994 : vector<1x8x512xf32> to vector<8x512xf32>
    %cst_300 = arith.constant dense<0.000000e+00> : vector<8x512xf32>
    %996 = tpu.matmul %988, %856, %cst_300 {dimension_numbers = #tpu.dot_dimension_numbers<[1], [0], [0], [1], [0, 0, 1, 1], [], []>} : vector<8x128xf32>, vector<128x512xf32>, vector<8x512xf32> -> vector<8x512xf32>
    %997 = arith.addf %995, %996 : vector<8x512xf32>
    %998 = vector.extract_strided_slice %997 {offsets = [0, 0], sizes = [8, 128], strides = [1, 1]} : vector<8x512xf32> to vector<8x128xf32>
    %999 = arith.negf %998 : vector<8x128xf32>
    %1000 = math.exp %999 : vector<8x128xf32>
    %cst_301 = arith.constant 1.000000e+00 : f32
    %1001 = vector.broadcast %cst_301 : f32 to vector<8x128xf32>
    %1002 = arith.addf %1001, %1000 : vector<8x128xf32>
    %1003 = arith.divf %1001, %1002 : vector<8x128xf32>
    %1004 = vector.extract_strided_slice %997 {offsets = [0, 128], sizes = [8, 128], strides = [1, 1]} : vector<8x512xf32> to vector<8x128xf32>
    %1005 = arith.negf %1004 : vector<8x128xf32>
    %1006 = math.exp %1005 : vector<8x128xf32>
    %cst_302 = arith.constant 1.000000e+00 : f32
    %1007 = vector.broadcast %cst_302 : f32 to vector<8x128xf32>
    %1008 = arith.addf %1007, %1006 : vector<8x128xf32>
    %1009 = arith.divf %1007, %1008 : vector<8x128xf32>
    %1010 = vector.extract_strided_slice %997 {offsets = [0, 256], sizes = [8, 128], strides = [1, 1]} : vector<8x512xf32> to vector<8x128xf32>
    %1011 = math.tanh %1010 : vector<8x128xf32>
    %1012 = vector.extract_strided_slice %997 {offsets = [0, 384], sizes = [8, 128], strides = [1, 1]} : vector<8x512xf32> to vector<8x128xf32>
    %1013 = arith.negf %1012 : vector<8x128xf32>
    %1014 = math.exp %1013 : vector<8x128xf32>
    %cst_303 = arith.constant 1.000000e+00 : f32
    %1015 = vector.broadcast %cst_303 : f32 to vector<8x128xf32>
    %1016 = arith.addf %1015, %1014 : vector<8x128xf32>
    %1017 = arith.divf %1015, %1016 : vector<8x128xf32>
    %1018 = arith.mulf %1009, %986 : vector<8x128xf32>
    %1019 = arith.mulf %1003, %1011 : vector<8x128xf32>
    %1020 = arith.addf %1018, %1019 : vector<8x128xf32>
    %1021 = math.tanh %1020 : vector<8x128xf32>
    %1022 = arith.mulf %1017, %1021 : vector<8x128xf32>
    %1023 = arith.index_cast %c4_i32_297 : i32 to index
    %c0_304 = arith.constant 0 : index
    %c0_305 = arith.constant 0 : index
    %1024 = vector.load %arg19[%1023, %c0_304, %c0_305] : memref<8x8x128xf32, #tpu.memory_space<vmem>>, vector<1x8x128xf32>
    %1025 = vector.shape_cast %1024 : vector<1x8x128xf32> to vector<8x128xf32>
    %1026 = vector.shape_cast %1022 : vector<8x128xf32> to vector<1x8x128xf32>
    tpu.vector_store %arg19[%1023, %c0_304, %c0_305], %1026 {strides = array<i32>} : memref<8x8x128xf32, #tpu.memory_space<vmem>>, vector<1x8x128xf32>,
    %c5_i32_306 = arith.constant 5 : i32
    %1027 = arith.index_cast %c5_i32_306 : i32 to index
    %c0_307 = arith.constant 0 : index
    %c0_308 = arith.constant 0 : index
    %1028 = vector.load %arg20[%1027, %c0_307, %c0_308] : memref<8x8x512xf32, #tpu.memory_space<vmem>>, vector<1x8x512xf32>
    %1029 = vector.shape_cast %1028 : vector<1x8x512xf32> to vector<8x512xf32>
    %cst_309 = arith.constant dense<0.000000e+00> : vector<8x512xf32>
    %1030 = tpu.matmul %1022, %856, %cst_309 {dimension_numbers = #tpu.dot_dimension_numbers<[1], [0], [0], [1], [0, 0, 1, 1], [], []>} : vector<8x128xf32>, vector<128x512xf32>, vector<8x512xf32> -> vector<8x512xf32>
    %1031 = arith.addf %1029, %1030 : vector<8x512xf32>
    %1032 = vector.extract_strided_slice %1031 {offsets = [0, 0], sizes = [8, 128], strides = [1, 1]} : vector<8x512xf32> to vector<8x128xf32>
    %1033 = arith.negf %1032 : vector<8x128xf32>
    %1034 = math.exp %1033 : vector<8x128xf32>
    %cst_310 = arith.constant 1.000000e+00 : f32
    %1035 = vector.broadcast %cst_310 : f32 to vector<8x128xf32>
    %1036 = arith.addf %1035, %1034 : vector<8x128xf32>
    %1037 = arith.divf %1035, %1036 : vector<8x128xf32>
    %1038 = vector.extract_strided_slice %1031 {offsets = [0, 128], sizes = [8, 128], strides = [1, 1]} : vector<8x512xf32> to vector<8x128xf32>
    %1039 = arith.negf %1038 : vector<8x128xf32>
    %1040 = math.exp %1039 : vector<8x128xf32>
    %cst_311 = arith.constant 1.000000e+00 : f32
    %1041 = vector.broadcast %cst_311 : f32 to vector<8x128xf32>
    %1042 = arith.addf %1041, %1040 : vector<8x128xf32>
    %1043 = arith.divf %1041, %1042 : vector<8x128xf32>
    %1044 = vector.extract_strided_slice %1031 {offsets = [0, 256], sizes = [8, 128], strides = [1, 1]} : vector<8x512xf32> to vector<8x128xf32>
    %1045 = math.tanh %1044 : vector<8x128xf32>
    %1046 = vector.extract_strided_slice %1031 {offsets = [0, 384], sizes = [8, 128], strides = [1, 1]} : vector<8x512xf32> to vector<8x128xf32>
    %1047 = arith.negf %1046 : vector<8x128xf32>
    %1048 = math.exp %1047 : vector<8x128xf32>
    %cst_312 = arith.constant 1.000000e+00 : f32
    %1049 = vector.broadcast %cst_312 : f32 to vector<8x128xf32>
    %1050 = arith.addf %1049, %1048 : vector<8x128xf32>
    %1051 = arith.divf %1049, %1050 : vector<8x128xf32>
    %1052 = arith.mulf %1043, %1020 : vector<8x128xf32>
    %1053 = arith.mulf %1037, %1045 : vector<8x128xf32>
    %1054 = arith.addf %1052, %1053 : vector<8x128xf32>
    %1055 = math.tanh %1054 : vector<8x128xf32>
    %1056 = arith.mulf %1051, %1055 : vector<8x128xf32>
    %1057 = arith.index_cast %c5_i32_306 : i32 to index
    %c0_313 = arith.constant 0 : index
    %c0_314 = arith.constant 0 : index
    %1058 = vector.load %arg19[%1057, %c0_313, %c0_314] : memref<8x8x128xf32, #tpu.memory_space<vmem>>, vector<1x8x128xf32>
    %1059 = vector.shape_cast %1058 : vector<1x8x128xf32> to vector<8x128xf32>
    %1060 = vector.shape_cast %1056 : vector<8x128xf32> to vector<1x8x128xf32>
    tpu.vector_store %arg19[%1057, %c0_313, %c0_314], %1060 {strides = array<i32>} : memref<8x8x128xf32, #tpu.memory_space<vmem>>, vector<1x8x128xf32>,
    %c6_i32_315 = arith.constant 6 : i32
    %1061 = arith.index_cast %c6_i32_315 : i32 to index
    %c0_316 = arith.constant 0 : index
    %c0_317 = arith.constant 0 : index
    %1062 = vector.load %arg20[%1061, %c0_316, %c0_317] : memref<8x8x512xf32, #tpu.memory_space<vmem>>, vector<1x8x512xf32>
    %1063 = vector.shape_cast %1062 : vector<1x8x512xf32> to vector<8x512xf32>
    %cst_318 = arith.constant dense<0.000000e+00> : vector<8x512xf32>
    %1064 = tpu.matmul %1056, %856, %cst_318 {dimension_numbers = #tpu.dot_dimension_numbers<[1], [0], [0], [1], [0, 0, 1, 1], [], []>} : vector<8x128xf32>, vector<128x512xf32>, vector<8x512xf32> -> vector<8x512xf32>
    %1065 = arith.addf %1063, %1064 : vector<8x512xf32>
    %1066 = vector.extract_strided_slice %1065 {offsets = [0, 0], sizes = [8, 128], strides = [1, 1]} : vector<8x512xf32> to vector<8x128xf32>
    %1067 = arith.negf %1066 : vector<8x128xf32>
    %1068 = math.exp %1067 : vector<8x128xf32>
    %cst_319 = arith.constant 1.000000e+00 : f32
    %1069 = vector.broadcast %cst_319 : f32 to vector<8x128xf32>
    %1070 = arith.addf %1069, %1068 : vector<8x128xf32>
    %1071 = arith.divf %1069, %1070 : vector<8x128xf32>
    %1072 = vector.extract_strided_slice %1065 {offsets = [0, 128], sizes = [8, 128], strides = [1, 1]} : vector<8x512xf32> to vector<8x128xf32>
    %1073 = arith.negf %1072 : vector<8x128xf32>
    %1074 = math.exp %1073 : vector<8x128xf32>
    %cst_320 = arith.constant 1.000000e+00 : f32
    %1075 = vector.broadcast %cst_320 : f32 to vector<8x128xf32>
    %1076 = arith.addf %1075, %1074 : vector<8x128xf32>
    %1077 = arith.divf %1075, %1076 : vector<8x128xf32>
    %1078 = vector.extract_strided_slice %1065 {offsets = [0, 256], sizes = [8, 128], strides = [1, 1]} : vector<8x512xf32> to vector<8x128xf32>
    %1079 = math.tanh %1078 : vector<8x128xf32>
    %1080 = vector.extract_strided_slice %1065 {offsets = [0, 384], sizes = [8, 128], strides = [1, 1]} : vector<8x512xf32> to vector<8x128xf32>
    %1081 = arith.negf %1080 : vector<8x128xf32>
    %1082 = math.exp %1081 : vector<8x128xf32>
    %cst_321 = arith.constant 1.000000e+00 : f32
    %1083 = vector.broadcast %cst_321 : f32 to vector<8x128xf32>
    %1084 = arith.addf %1083, %1082 : vector<8x128xf32>
    %1085 = arith.divf %1083, %1084 : vector<8x128xf32>
    %1086 = arith.mulf %1077, %1054 : vector<8x128xf32>
    %1087 = arith.mulf %1071, %1079 : vector<8x128xf32>
    %1088 = arith.addf %1086, %1087 : vector<8x128xf32>
    %1089 = math.tanh %1088 : vector<8x128xf32>
    %1090 = arith.mulf %1085, %1089 : vector<8x128xf32>
    %1091 = arith.index_cast %c6_i32_315 : i32 to index
    %c0_322 = arith.constant 0 : index
    %c0_323 = arith.constant 0 : index
    %1092 = vector.load %arg19[%1091, %c0_322, %c0_323] : memref<8x8x128xf32, #tpu.memory_space<vmem>>, vector<1x8x128xf32>
    %1093 = vector.shape_cast %1092 : vector<1x8x128xf32> to vector<8x128xf32>
    %1094 = vector.shape_cast %1090 : vector<8x128xf32> to vector<1x8x128xf32>
    tpu.vector_store %arg19[%1091, %c0_322, %c0_323], %1094 {strides = array<i32>} : memref<8x8x128xf32, #tpu.memory_space<vmem>>, vector<1x8x128xf32>,
    %c7_i32_324 = arith.constant 7 : i32
    %1095 = arith.index_cast %c7_i32_324 : i32 to index
    %c0_325 = arith.constant 0 : index
    %c0_326 = arith.constant 0 : index
    %1096 = vector.load %arg20[%1095, %c0_325, %c0_326] : memref<8x8x512xf32, #tpu.memory_space<vmem>>, vector<1x8x512xf32>
    %1097 = vector.shape_cast %1096 : vector<1x8x512xf32> to vector<8x512xf32>
    %cst_327 = arith.constant dense<0.000000e+00> : vector<8x512xf32>
    %1098 = tpu.matmul %1090, %856, %cst_327 {dimension_numbers = #tpu.dot_dimension_numbers<[1], [0], [0], [1], [0, 0, 1, 1], [], []>} : vector<8x128xf32>, vector<128x512xf32>, vector<8x512xf32> -> vector<8x512xf32>
    %1099 = arith.addf %1097, %1098 : vector<8x512xf32>
    %1100 = vector.extract_strided_slice %1099 {offsets = [0, 0], sizes = [8, 128], strides = [1, 1]} : vector<8x512xf32> to vector<8x128xf32>
    %1101 = arith.negf %1100 : vector<8x128xf32>
    %1102 = math.exp %1101 : vector<8x128xf32>
    %cst_328 = arith.constant 1.000000e+00 : f32
    %1103 = vector.broadcast %cst_328 : f32 to vector<8x128xf32>
    %1104 = arith.addf %1103, %1102 : vector<8x128xf32>
    %1105 = arith.divf %1103, %1104 : vector<8x128xf32>
    %1106 = vector.extract_strided_slice %1099 {offsets = [0, 128], sizes = [8, 128], strides = [1, 1]} : vector<8x512xf32> to vector<8x128xf32>
    %1107 = arith.negf %1106 : vector<8x128xf32>
    %1108 = math.exp %1107 : vector<8x128xf32>
    %cst_329 = arith.constant 1.000000e+00 : f32
    %1109 = vector.broadcast %cst_329 : f32 to vector<8x128xf32>
    %1110 = arith.addf %1109, %1108 : vector<8x128xf32>
    %1111 = arith.divf %1109, %1110 : vector<8x128xf32>
    %1112 = vector.extract_strided_slice %1099 {offsets = [0, 256], sizes = [8, 128], strides = [1, 1]} : vector<8x512xf32> to vector<8x128xf32>
    %1113 = math.tanh %1112 : vector<8x128xf32>
    %1114 = vector.extract_strided_slice %1099 {offsets = [0, 384], sizes = [8, 128], strides = [1, 1]} : vector<8x512xf32> to vector<8x128xf32>
    %1115 = arith.negf %1114 : vector<8x128xf32>
    %1116 = math.exp %1115 : vector<8x128xf32>
    %cst_330 = arith.constant 1.000000e+00 : f32
    %1117 = vector.broadcast %cst_330 : f32 to vector<8x128xf32>
    %1118 = arith.addf %1117, %1116 : vector<8x128xf32>
    %1119 = arith.divf %1117, %1118 : vector<8x128xf32>
    %1120 = arith.mulf %1111, %1088 : vector<8x128xf32>
    %1121 = arith.mulf %1105, %1113 : vector<8x128xf32>
    %1122 = arith.addf %1120, %1121 : vector<8x128xf32>
    %1123 = math.tanh %1122 : vector<8x128xf32>
    %1124 = arith.mulf %1119, %1123 : vector<8x128xf32>
    %1125 = arith.index_cast %c7_i32_324 : i32 to index
    %c0_331 = arith.constant 0 : index
    %c0_332 = arith.constant 0 : index
    %1126 = vector.load %arg19[%1125, %c0_331, %c0_332] : memref<8x8x128xf32, #tpu.memory_space<vmem>>, vector<1x8x128xf32>
    %1127 = vector.shape_cast %1126 : vector<1x8x128xf32> to vector<8x128xf32>
    %1128 = vector.shape_cast %1124 : vector<8x128xf32> to vector<1x8x128xf32>
    tpu.vector_store %arg19[%1125, %c0_331, %c0_332], %1128 {strides = array<i32>} : memref<8x8x128xf32, #tpu.memory_space<vmem>>, vector<1x8x128xf32>,
    %c8_i32_333 = arith.constant 8 : i32
    %c0_334 = arith.constant 0 : index
    %c0_335 = arith.constant 0 : index
    %c0_336 = arith.constant 0 : index
    %1129 = vector.load %arg19[%c0_334, %c0_335, %c0_336] : memref<8x8x128xf32, #tpu.memory_space<vmem>>, vector<8x8x128xf32>
    %1130 = tpu.transpose %1129, [1, 0, 2] : vector<8x8x128xf32> -> vector<8x8x128xf32>
    %c0_337 = arith.constant 0 : index
    %c0_338 = arith.constant 0 : index
    %c0_339 = arith.constant 0 : index
    %1131 = vector.load %arg18[%c0_337, %c0_338, %c0_339] : memref<8x8x128xf32, #tpu.memory_space<vmem>>, vector<8x8x128xf32>
    %1132 = tpu.transpose %1131, [1, 0, 2] : vector<8x8x128xf32> -> vector<8x8x128xf32>
    "tpu.trace_start"() <{level = 10 : i32, message = "bth,bsh->bts"}> : () -> ()
    %cst_340 = arith.constant dense<0.000000e+00> : vector<8x8x8xf32>
    %1133 = tpu.matmul %1130, %1132, %cst_340 {dimension_numbers = #tpu.dot_dimension_numbers<[2], [2], [1], [1], [0, 0, 0, 1, 1, 1], [0], [0]>} : vector<8x8x128xf32>, vector<8x8x128xf32>, vector<8x8x8xf32> -> vector<8x8x8xf32>
    "tpu.trace_stop"() : () -> ()
    %cst_341 = arith.constant dense<0xFF800000> : vector<8x8xf32>
    %1134 = vector.multi_reduction <maximumf>, %1133, %cst_341 [2] : vector<8x8x8xf32> to vector<8x8xf32>
    %1135 = vector.shape_cast %1134 : vector<8x8xf32> to vector<8x8x1xf32>
    %1136 = vector.broadcast %1135 : vector<8x8x1xf32> to vector<8x8x8xf32>
    %1137 = arith.subf %1133, %1136 : vector<8x8x8xf32>
    %1138 = math.exp %1137 : vector<8x8x8xf32>
    %cst_342 = arith.constant dense<0.000000e+00> : vector<8x8xf32>
    %1139 = vector.multi_reduction <add>, %1138, %cst_342 [2] : vector<8x8x8xf32> to vector<8x8xf32>
    %1140 = vector.shape_cast %1139 : vector<8x8xf32> to vector<8x8x1xf32>
    %1141 = tpu.reciprocal %1140 {approx = true} : vector<8x8x1xf32> -> vector<8x8x1xf32>
    %1142 = vector.broadcast %1141 : vector<8x8x1xf32> to vector<8x8x8xf32>
    %1143 = arith.mulf %1138, %1142 : vector<8x8x8xf32>
    "tpu.trace_start"() <{level = 10 : i32, message = "bts,bsh->bth"}> : () -> ()
    %cst_343 = arith.constant dense<0.000000e+00> : vector<8x8x128xf32>
    %1144 = tpu.matmul %1143, %1132, %cst_343 {dimension_numbers = #tpu.dot_dimension_numbers<[2], [1], [1], [2], [0, 0, 0, 1, 1, 2], [0], [0]>} : vector<8x8x8xf32>, vector<8x8x128xf32>, vector<8x8x128xf32> -> vector<8x8x128xf32>
    "tpu.trace_stop"() : () -> ()
    %c0_344 = arith.constant 0 : index
    %c0_345 = arith.constant 0 : index
    %1145 = vector.load %arg14[%c0_344, %c0_345] : memref<128x128xf32, #tpu.memory_space<vmem>>, vector<128x128xf32>
    "tpu.trace_start"() <{level = 10 : i32, message = "bth,hv->btv"}> : () -> ()
    %cst_346 = arith.constant dense<0.000000e+00> : vector<8x8x128xf32>
    %1146 = tpu.matmul %1144, %1145, %cst_346 {dimension_numbers = #tpu.dot_dimension_numbers<[2], [0], [0, 1], [1], [0, 0, 0, 1, 1, 1], [], []>} : vector<8x8x128xf32>, vector<128x128xf32>, vector<8x8x128xf32> -> vector<8x8x128xf32>
    "tpu.trace_stop"() : () -> ()
    %c0_347 = arith.constant 0 : index
    %c0_348 = arith.constant 0 : index
    %1147 = vector.load %arg15[%c0_347, %c0_348] : memref<128x128xf32, #tpu.memory_space<vmem>>, vector<128x128xf32>
    "tpu.trace_start"() <{level = 10 : i32, message = "bth,hv->btv"}> : () -> ()
    %cst_349 = arith.constant dense<0.000000e+00> : vector<8x8x128xf32>
    %1148 = tpu.matmul %1130, %1147, %cst_349 {dimension_numbers = #tpu.dot_dimension_numbers<[2], [0], [0, 1], [1], [0, 0, 0, 1, 1, 1], [], []>} : vector<8x8x128xf32>, vector<128x128xf32>, vector<8x8x128xf32> -> vector<8x8x128xf32>
    "tpu.trace_stop"() : () -> ()
    %1149 = arith.addf %1146, %1148 : vector<8x8x128xf32>
    %c0_350 = arith.constant 0 : index
    %c0_351 = arith.constant 0 : index
    %1150 = vector.load %arg16[%c0_350, %c0_351] : memref<1x128xf32, #tpu.memory_space<vmem>>, vector<1x128xf32>
    %1151 = vector.shape_cast %1150 : vector<1x128xf32> to vector<1x1x128xf32>
    %1152 = vector.broadcast %1151 : vector<1x1x128xf32> to vector<8x8x128xf32>
    %1153 = arith.addf %1149, %1152 : vector<8x8x128xf32>
    %c0_352 = arith.constant 0 : index
    %c0_353 = arith.constant 0 : index
    %c0_354 = arith.constant 0 : index
    %1154 = vector.load %arg17[%c0_352, %c0_353, %c0_354] : memref<8x8x128xf32, #tpu.memory_space<vmem>>, vector<8x8x128xf32>
    tpu.vector_store %arg17[%c0_352, %c0_353, %c0_354], %1153 {strides = array<i32>} : memref<8x8x128xf32, #tpu.memory_space<vmem>>, vector<8x8x128xf32>,
    return
  }
}

</mosaic_0001>

<bundles_post_ra>
// kernel: my_model_forward.1
= control target key start
LH: loop header
LB: loop body
LE: loop exit
PB: predicated region body
PF: predicated region fallthrough
CT: control target
= control target key end

     0   :  { %v16787_v3 = vmov 0.0   ;;  %vm94_vm0 = vcmask 130048   ;;  %vm10260_vm1 = vmmov 0   ;;  %vm8126_vm2 = vcmask 64512   ;;  %s16767_s2 = inlined_call_operand.vmem [shape: f32[16,512], index: 2, kind: input, shape index: {}]   ;;  %s16768_s0 = inlined_call_operand.vmem [shape: f32[8,8,16], index: 0, kind: input, shape index: {}]   ;;  %s16769_s3 = inlined_call_operand.vmem [shape: f32[128,512], index: 3, kind: input, shape index: {}]   ;;  %s16770_s4 = inlined_call_operand.vmem [shape: f32[1,512], index: 4, kind: input, shape index: {}]   ;;  %s16771_s5 = inlined_call_operand.vmem [shape: f32[128,512], index: 5, kind: input, shape index: {}]   ;;  %s16772_s6 = inlined_call_operand.vmem [shape: f32[128,512], index: 6, kind: input, shape index: {}]   ;;  %s16773_s7 = inlined_call_operand.vmem [shape: f32[1,512], index: 7, kind: input, shape index: {}]   ;;  %s16774_s8 = inlined_call_operand.vmem [shape: f32[16,512], index: 8, kind: input, shape index: {}]   ;;  %s16775_s1 = inlined_call_operand.vmem [shape: f32[8,8,16], index: 1, kind: input, shape index: {}]   ;;  %s16776_s9 = inlined_call_operand.vmem [shape: f32[128,512], index: 9, kind: input, shape index: {}]   ;;  %s16777_s10 = inlined_call_operand.vmem [shape: f32[1,512], index: 10, kind: input, shape index: {}]   ;;  %s16778_s11 = inlined_call_operand.vmem [shape: f32[128,512], index: 11, kind: input, shape index: {}]   ;;  %s16779_s12 = inlined_call_operand.vmem [shape: f32[128,512], index: 12, kind: input, shape index: {}]   ;;  %s16780_s13 = inlined_call_operand.vmem [shape: f32[1,512], index: 13, kind: input, shape index: {}]   ;;  %s16781_s15 = inlined_call_operand.vmem [shape: f32[128,128], index: 15, kind: input, shape index: {}]   ;;  %s16782_s14 = inlined_call_operand.vmem [shape: f32[128,128], index: 14, kind: input, shape index: {}]   ;;  %s16783_s16 = inlined_call_operand.vmem [shape: f32[1,128], index: 16, kind: input, shape index: {}]   ;;  %s16784_s17 = inlined_call_operand.vmem [shape: f32[8,8,128], index: 17, kind: output, shape index: {}]  }
   0x1   :  { %17264 = sst [smem:[#allocation76_spill]] %s16767_s2  ;;  %183 = vmatprep.mubr.f32.mxu0 %v16787_v3  ;;  %296 = vmatprep.mubr.f32.mxu1 %v16787_v3  ;;  %v10383_v10 = vld [vmem:[%s16769_s3 + $0x1e8] sm:$0xff]  ;;  %v10388_v11 = vld [vmem:[%s16769_s3 + $0x1f8] sm:$0xff]  ;;  %v10393_v12 = vld [vmem:[%s16769_s3 + $0x1e0] sm:$0xff] }
   0x2   :  { %17265 = sst [smem:[#allocation77_spill]] %s16768_s0  ;;  %17268 = vst [vmem:[#allocation5_spill] sm:$0xff] %v10383_v10  ;;  %17269 = vst [vmem:[#allocation6_spill] sm:$0xff] %v10388_v11  ;;  %v10398_v13 = vld [vmem:[%s16769_s3 + $0x1f0] sm:$0xff]  ;;  %v10405_v14 = vld [vmem:[%s16769_s3 + $0x1c8] sm:$0xff] }
   0x3   :  { %s17266_s26 = sld [smem:[#allocation76_spill]]  ;;  %v10410_v15 = vld [vmem:[%s16769_s3 + $0x1d8] sm:$0xff]  ;;  %v10419_v16 = vld [vmem:[%s16769_s3 + $0x1c0] sm:$0xff]  ;;  %v10424_v17 = vld [vmem:[%s16769_s3 + $0x1d0] sm:$0xff] }
   0x4   :  { %s17267_s29 = sld [smem:[#allocation77_spill]]  ;;  %v10436_v19 = vld [vmem:[%s16769_s3 + $0x1a8] sm:$0xff]  ;;  %v10441_v20 = vld [vmem:[%s16769_s3 + $0x1b8] sm:$0xff]  ;;  %v10448_v21 = vld [vmem:[%s16769_s3 + $0x1a0] sm:$0xff] }
   0x5   :  { %v10453_v22 = vld [vmem:[%s16769_s3 + $0x1b0] sm:$0xff]  ;;  %v10460_v23 = vld [vmem:[%s16769_s3 + $0x188] sm:$0xff]  ;;  %v10465_v24 = vld [vmem:[%s16769_s3 + $0x198] sm:$0xff] }
   0x6   :  { %v10474_v25 = vld [vmem:[%s16769_s3 + $0x180] sm:$0xff]  ;;  %v10479_v26 = vld [vmem:[%s16769_s3 + $0x190] sm:$0xff]  ;;  %v10491_v28 = vld [vmem:[%s16769_s3 + $0x168] sm:$0xff] }
   0x7   :  { %v10496_v29 = vld [vmem:[%s16769_s3 + $0x178] sm:$0xff]  ;;  %v10503_v30 = vld [vmem:[%s16769_s3 + $0x160] sm:$0xff]  ;;  %v10508_v31 = vld [vmem:[%s16769_s3 + $0x170] sm:$0xff] }
   0x8   :  { %v10515_v32 = vld [vmem:[%s16769_s3 + $0x148] sm:$0xff]  ;;  %v10520_v33 = vld [vmem:[%s16769_s3 + $0x158] sm:$0xff]  ;;  %v10529_v34 = vld [vmem:[%s16769_s3 + $0x140] sm:$0xff] }
   0x9   :  { %v69_v0 = vld [vmem:[%s17266_s26 + $0x28] sm:$0xff]  ;;  %v71_v1 = vld [vmem:[%s17266_s26 + $0x38] sm:$0xff]  ;;  %v68_v2 = vld [vmem:[%s17266_s26 + $0x20] sm:$0xff] }
   0xa   :  { %147 = vmatprep.subr.mxu0 %v69_v0  ;;  %260 = vmatprep.subr.mxu1 %v71_v1  ;;  %v70_v4 = vld [vmem:[%s17266_s26 + $0x30] sm:$0xff]  ;;  %v65_v5 = vld [vmem:[%s17266_s26 + $0x8] sm:$0xff]  ;;  %v67_v6 = vld [vmem:[%s17266_s26 + $0x18] sm:$0xff] }
   0xb   :  { %148 = vmatpush1.msra.mxu0 %v68_v2  ;;  %261 = vmatpush1.msra.mxu1 %v70_v4  ;;  %v64_v7 = vld [vmem:[%s17266_s26] sm:$0xff]  ;;  %v66_v8 = vld [vmem:[%s17266_s26 + $0x10] sm:$0xff]  ;;  %v57_v18 = vld [vmem:[%s17267_s29 + $0x8] sm:$0xff] }
   0xc   :  { %v56_v9 = vld [vmem:[%s17267_s29] sm:$0xff]  ;;  %149 = vmatprep.subr.mxu0 %v65_v5  ;;  %262 = vmatprep.subr.mxu1 %v67_v6  ;;  %v58_v27 = vld [vmem:[%s17267_s29 + $0x10] sm:$0xff]  ;;  %v59_v36 = vld [vmem:[%s17267_s29 + $0x18] sm:$0xff] }
   0xd   :  { %150 = vmatpush1.msra.mxu0 %v64_v7  ;;  %263 = vmatpush1.msra.mxu1 %v66_v8  ;;  %v10534_v35 = vld [vmem:[%s16769_s3 + $0x150] sm:$0xff]  ;;  %v10546_v37 = vld [vmem:[%s16769_s3 + $0x128] sm:$0xff]  ;;  %v10551_v38 = vld [vmem:[%s16769_s3 + $0x138] sm:$0xff] }
   0xe   :  { %9068 = vmatmul.mubr.msk.f32.vlgmr.msra.gmra.mxu0 %vm94_vm0, %v56_v9  ;;  %9076 = vmatmul.mubr.msk.f32.vlgmr.msra.gmra.mxu1 %vm94_vm0, %v56_v9  ;;  %v10558_v39 = vld [vmem:[%s16769_s3 + $0x120] sm:$0xff]  ;;  %v10563_v40 = vld [vmem:[%s16769_s3 + $0x130] sm:$0xff]  ;;  %v10570_v41 = vld [vmem:[%s16769_s3 + $0x108] sm:$0xff] }
   0xf   :  { %445 = vmatprep.subr.mxu0 %v10383_v10  ;;  %516 = vmatprep.subr.mxu1 %v10388_v11  ;;  %v10575_v42 = vld [vmem:[%s16769_s3 + $0x118] sm:$0xff]  ;;  %v10584_v43 = vld [vmem:[%s16769_s3 + $0x100] sm:$0xff]  ;;  %v10589_v44 = vld [vmem:[%s16769_s3 + $0x110] sm:$0xff] }
  0x10   :  { %446 = vmatpush1.msra.mxu0 %v10393_v12  ;;  %517 = vmatpush1.msra.mxu1 %v10398_v13  ;;  %v60_v45 = vld [vmem:[%s17267_s29 + $0x20] sm:$0xff]  ;;  %v10601_v46 = vld [vmem:[%s16769_s3 + $0xe8] sm:$0xff]  ;;  %v10606_v47 = vld [vmem:[%s16769_s3 + $0xf8] sm:$0xff] }
  0x11   :  { %447 = vmatprep.subr.mxu0 %v10405_v14  ;;  %518 = vmatprep.subr.mxu1 %v10410_v15  ;;  %v10613_v48 = vld [vmem:[%s16769_s3 + $0xe0] sm:$0xff]  ;;  %v10618_v49 = vld [vmem:[%s16769_s3 + $0xf0] sm:$0xff]  ;;  %v10625_v50 = vld [vmem:[%s16769_s3 + $0xc8] sm:$0xff] }
  0x12   :  { %189 = vmatprep.mubr.f32.mxu0 %v16787_v3  ;;  %302 = vmatprep.mubr.f32.mxu1 %v16787_v3  ;;  %v10630_v51 = vld [vmem:[%s16769_s3 + $0xd8] sm:$0xff]  ;;  %v10639_v52 = vld [vmem:[%s16769_s3 + $0xc0] sm:$0xff]  ;;  %v10644_v53 = vld [vmem:[%s16769_s3 + $0xd0] sm:$0xff] }
  0x13   :  { %448 = vmatpush1.msra.mxu0 %v10419_v16  ;;  %519 = vmatpush1.msra.mxu1 %v10424_v17  ;;  %v61_v54 = vld [vmem:[%s17267_s29 + $0x28] sm:$0xff]  ;;  %v10661_v56 = vld [vmem:[%s16769_s3 + $0xb8] sm:$0xff]  ;;  %v10668_v57 = vld [vmem:[%s16769_s3 + $0xa0] sm:$0xff] }
  0x14   :  { %9069 = vmatmul.mubr.msk.f32.gmra.mxu0 %vm94_vm0, %v57_v18  ;;  %9077 = vmatmul.mubr.msk.f32.gmra.mxu1 %vm94_vm0, %v57_v18  ;;  %v10656_v55 = vld [vmem:[%s16769_s3 + $0xa8] sm:$0xff]  ;;  %v10673_v58 = vld [vmem:[%s16769_s3 + $0xb0] sm:$0xff]  ;;  %v10685_v60 = vld [vmem:[%s16769_s3 + $0x98] sm:$0xff] }
  0x15   :  { %449 = vmatprep.subr.mxu0 %v10436_v19  ;;  %520 = vmatprep.subr.mxu1 %v10441_v20  ;;  %v10680_v59 = vld [vmem:[%s16769_s3 + $0x88] sm:$0xff]  ;;  %17271 = vst [vmem:[#allocation8_spill] sm:$0xff] %v10685_v60  ;;  %v10694_v61 = vld [vmem:[%s16769_s3 + $0x80] sm:$0xff]  ;;  %v10699_v62 = vld [vmem:[%s16769_s3 + $0x90] sm:$0xff] }
  0x16   :  { %450 = vmatpush1.msra.mxu0 %v10448_v21  ;;  %521 = vmatpush1.msra.mxu1 %v10453_v22  ;;  %17270 = vst [vmem:[#allocation7_spill] sm:$0xff] %v10680_v59  ;;  %17272 = vst [vmem:[#allocation9_spill] sm:$0xff] %v10694_v61  ;;  %v62_v63 = vld [vmem:[%s17267_s29 + $0x30] sm:$0xff]  ;;  %v10711_v0 = vld [vmem:[%s16769_s3 + $0x68] sm:$0xff] }
  0x17   :  { %451 = vmatprep.subr.mxu0 %v10460_v23  ;;  %522 = vmatprep.subr.mxu1 %v10465_v24  ;;  %17273 = vst [vmem:[#allocation10_spill] sm:$0xff] %v10699_v62  ;;  %17274 = vst [vmem:[#allocation11_spill] sm:$0xff] %v10711_v0  ;;  %v10716_v1 = vld [vmem:[%s16769_s3 + $0x78] sm:$0xff]  ;;  %v10723_v2 = vld [vmem:[%s16769_s3 + $0x60] sm:$0xff] }
  0x18   :  { %195 = vmatprep.mubr.f32.mxu0 %v16787_v3  ;;  %308 = vmatprep.mubr.f32.mxu1 %v16787_v3  ;;  %17275 = vst [vmem:[#allocation12_spill] sm:$0xff] %v10716_v1  ;;  %17276 = vst [vmem:[#allocation13_spill] sm:$0xff] %v10723_v2  ;;  %v10728_v4 = vld [vmem:[%s16769_s3 + $0x70] sm:$0xff]  ;;  %v10735_v5 = vld [vmem:[%s16769_s3 + $0x48] sm:$0xff] }
  0x19   :  { %452 = vmatpush1.msra.mxu0 %v10474_v25  ;;  %523 = vmatpush1.msra.mxu1 %v10479_v26  ;;  %17277 = vst [vmem:[#allocation14_spill] sm:$0xff] %v10728_v4  ;;  %17278 = vst [vmem:[#allocation15_spill] sm:$0xff] %v10735_v5  ;;  %v10740_v6 = vld [vmem:[%s16769_s3 + $0x58] sm:$0xff]  ;;  %v10749_v7 = vld [vmem:[%s16769_s3 + $0x40] sm:$0xff] }
  0x1a   :  { %9070 = vmatmul.mubr.msk.f32.gmra.mxu0 %vm94_vm0, %v58_v27  ;;  %9078 = vmatmul.mubr.msk.f32.gmra.mxu1 %vm94_vm0, %v58_v27  ;;  %17279 = vst [vmem:[#allocation16_spill] sm:$0xff] %v10740_v6  ;;  %17280 = vst [vmem:[#allocation17_spill] sm:$0xff] %v10749_v7  ;;  %v10754_v8 = vld [vmem:[%s16769_s3 + $0x50] sm:$0xff]  ;;  %v63_v9 = vld [vmem:[%s17267_s29 + $0x38] sm:$0xff] }
  0x1b   :  { %453 = vmatprep.subr.mxu0 %v10491_v28  ;;  %524 = vmatprep.subr.mxu1 %v10496_v29  ;;  %17281 = vst [vmem:[#allocation18_spill] sm:$0xff] %v10754_v8  ;;  %v10766_v18 = vld [vmem:[%s16769_s3 + $0x28] sm:$0xff]  ;;  %v10771_v27 = vld [vmem:[%s16769_s3 + $0x38] sm:$0xff] }
  0x1c   :  { %454 = vmatpush1.msra.mxu0 %v10503_v30  ;;  %525 = vmatpush1.msra.mxu1 %v10508_v31  ;;  %17282 = vst [vmem:[#allocation19_spill] sm:$0xff] %v10766_v18  ;;  %17283 = vst [vmem:[#allocation20_spill] sm:$0xff] %v10771_v27 }
  0x1d   :  { %455 = vmatprep.subr.mxu0 %v10515_v32  ;;  %526 = vmatprep.subr.mxu1 %v10520_v33 }
  0x1e   :  { %201 = vmatprep.mubr.f32.mxu0 %v16787_v3  ;;  %314 = vmatprep.mubr.f32.mxu1 %v16787_v3 }
  0x1f   :  { %456 = vmatpush1.msra.mxu0 %v10529_v34  ;;  %527 = vmatpush1.msra.mxu1 %v10534_v35 }
  0x20   :  { %9071 = vmatmul.mubr.msk.f32.gmra.mxu0 %vm94_vm0, %v59_v36  ;;  %9079 = vmatmul.mubr.msk.f32.gmra.mxu1 %vm94_vm0, %v59_v36  ;;  %v10778_v36 = vld [vmem:[%s16769_s3 + $0x20] sm:$0xff] }
  0x21   :  { %457 = vmatprep.subr.mxu0 %v10546_v37  ;;  %528 = vmatprep.subr.mxu1 %v10551_v38  ;;  %17284 = vst [vmem:[#allocation21_spill] sm:$0xff] %v10778_v36 }
  0x22   :  { %458 = vmatpush1.msra.mxu0 %v10558_v39  ;;  %529 = vmatpush1.msra.mxu1 %v10563_v40 }
  0x23   :  { %459 = vmatprep.subr.mxu0 %v10570_v41  ;;  %530 = vmatprep.subr.mxu1 %v10575_v42 }
  0x24   :  { %207 = vmatprep.mubr.f32.mxu0 %v16787_v3  ;;  %320 = vmatprep.mubr.f32.mxu1 %v16787_v3 }
  0x25   :  { %460 = vmatpush1.msra.mxu0 %v10584_v43  ;;  %531 = vmatpush1.msra.mxu1 %v10589_v44 }
  0x26   :  { %9072 = vmatmul.mubr.msk.f32.gmra.mxu0 %vm94_vm0, %v60_v45  ;;  %9080 = vmatmul.mubr.msk.f32.gmra.mxu1 %vm94_vm0, %v60_v45  ;;  %v10783_v45 = vld [vmem:[%s16769_s3 + $0x30] sm:$0xff] }
  0x27   :  { %461 = vmatprep.subr.mxu0 %v10601_v46  ;;  %532 = vmatprep.subr.mxu1 %v10606_v47  ;;  %17285 = vst [vmem:[#allocation22_spill] sm:$0xff] %v10783_v45 }
  0x28   :  { %462 = vmatpush1.msra.mxu0 %v10613_v48  ;;  %533 = vmatpush1.msra.mxu1 %v10618_v49 }
  0x29   :  { %463 = vmatprep.subr.mxu0 %v10625_v50  ;;  %534 = vmatprep.subr.mxu1 %v10630_v51 }
  0x2a   :  { %213 = vmatprep.mubr.f32.mxu0 %v16787_v3  ;;  %326 = vmatprep.mubr.f32.mxu1 %v16787_v3 }
  0x2b   :  { %464 = vmatpush1.msra.mxu0 %v10639_v52  ;;  %535 = vmatpush1.msra.mxu1 %v10644_v53 }
  0x2c   :  { %9073 = vmatmul.mubr.msk.f32.gmra.mxu0 %vm94_vm0, %v61_v54  ;;  %9081 = vmatmul.mubr.msk.f32.gmra.mxu1 %vm94_vm0, %v61_v54  ;;  %v10790_v54 = vld [vmem:[%s16769_s3 + $0x8] sm:$0xff] }
  0x2d   :  { %465 = vmatprep.subr.mxu0 %v10656_v55  ;;  %536 = vmatprep.subr.mxu1 %v10661_v56  ;;  %17286 = vst [vmem:[#allocation23_spill] sm:$0xff] %v10790_v54 }
  0x2e   :  { %466 = vmatpush1.msra.mxu0 %v10668_v57  ;;  %537 = vmatpush1.msra.mxu1 %v10673_v58 }
  0x2f   :  { %467 = vmatprep.subr.mxu0 %v10680_v59  ;;  %538 = vmatprep.subr.mxu1 %v10685_v60 }
  0x30   :  { %219 = vmatprep.mubr.f32.mxu0 %v16787_v3  ;;  %332 = vmatprep.mubr.f32.mxu1 %v16787_v3 }
  0x31   :  { %468 = vmatpush1.msra.mxu0 %v10694_v61  ;;  %539 = vmatpush1.msra.mxu1 %v10699_v62 }
  0x32   :  { %9074 = vmatmul.mubr.msk.f32.gmra.mxu0 %vm94_vm0, %v62_v63  ;;  %9082 = vmatmul.mubr.msk.f32.gmra.mxu1 %vm94_vm0, %v62_v63  ;;  %v10795_v63 = vld [vmem:[%s16769_s3 + $0x18] sm:$0xff] }
  0x33   :  { %469 = vmatprep.subr.mxu0 %v10711_v0  ;;  %540 = vmatprep.subr.mxu1 %v10716_v1  ;;  %17287 = vst [vmem:[#allocation24_spill] sm:$0xff] %v10795_v63 }
  0x34   :  { %470 = vmatpush1.msra.mxu0 %v10723_v2  ;;  %541 = vmatpush1.msra.mxu1 %v10728_v4 }
  0x35   :  { %471 = vmatprep.subr.mxu0 %v10735_v5  ;;  %542 = vmatprep.subr.mxu1 %v10740_v6 }
  0x36   :  { %225 = vmatprep.mubr.f32.mxu0 %v16787_v3  ;;  %338 = vmatprep.mubr.f32.mxu1 %v16787_v3  ;;  %v10802_v3 = vld [vmem:[%s16769_s3] sm:$0xff] }
  0x37   :  { %472 = vmatpush1.msra.mxu0 %v10749_v7  ;;  %543 = vmatpush1.msra.mxu1 %v10754_v8  ;;  %17288 = vst [vmem:[#allocation25_spill] sm:$0xff] %v10802_v3 }
  0x38   :  { %9075 = vmatmul.mubr.msk.f32.gmra.mxu0 %vm94_vm0, %v63_v9  ;;  %9083 = vmatmul.mubr.msk.f32.gmra.mxu1 %vm94_vm0, %v63_v9  ;;  %v10809_v9 = vld [vmem:[%s16769_s3 + $0x10] sm:$0xff] }
  0x39   :  { %473 = vmatprep.subr.mxu0 %v10766_v18  ;;  %544 = vmatprep.subr.mxu1 %v10771_v27  ;;  %17289 = vst [vmem:[#allocation26_spill] sm:$0xff] %v10809_v9  ;;  %v17290_v27 = vmov 0.0  }
  0x3a   :  { %474 = vmatpush1.msra.mxu0 %v10778_v36  ;;  %545 = vmatpush1.msra.mxu1 %v10783_v45 }
  0x3b   :  { %475 = vmatprep.subr.mxu0 %v10790_v54  ;;  %546 = vmatprep.subr.mxu1 %v10795_v63 }
  0x3c   :  { %476 = vmatpush1.msra.mxu0 %v10802_v3  ;;  %509 = vmatprep.mubr.f32.mxu0 %v17290_v27 }
  0x3d   :  { %547 = vmatpush1.msra.mxu1 %v10809_v9  ;;  %580 = vmatprep.mubr.f32.mxu1 %v17290_v27 }
  0x3e   :  { %510 = vmatmul.mubr.f32.vlgmr.msra.gmra.mxu0 %v17290_v27  ;;  %581 = vmatmul.mubr.f32.vlgmr.msra.gmra.mxu1 %v17290_v27 }
  0x3f   :  { %621 = vmatprep.subr.mxu0 %v10383_v10  ;;  %692 = vmatprep.subr.mxu1 %v10388_v11 }
  0x40   :  { %622 = vmatpush1.msra.mxu0 %v10393_v12  ;;  %693 = vmatpush1.msra.mxu1 %v10398_v13 }
  0x41   :  { %623 = vmatprep.subr.mxu0 %v10405_v14  ;;  %694 = vmatprep.subr.mxu1 %v10410_v15 }
  0x42   :  { %624 = vmatpush1.msra.mxu0 %v10419_v16  ;;  %695 = vmatpush1.msra.mxu1 %v10424_v17 }
  0x43   :  { %625 = vmatprep.subr.mxu0 %v10436_v19  ;;  %696 = vmatprep.subr.mxu1 %v10441_v20 }
  0x44   :  { %626 = vmatpush1.msra.mxu0 %v10448_v21  ;;  %697 = vmatpush1.msra.mxu1 %v10453_v22 }
  0x45   :  { %627 = vmatprep.subr.mxu0 %v10460_v23  ;;  %698 = vmatprep.subr.mxu1 %v10465_v24 }
  0x46   :  { %628 = vmatpush1.msra.mxu0 %v10474_v25  ;;  %699 = vmatpush1.msra.mxu1 %v10479_v26 }
  0x47   :  { %629 = vmatprep.subr.mxu0 %v10491_v28  ;;  %700 = vmatprep.subr.mxu1 %v10496_v29 }
  0x48   :  { %630 = vmatpush1.msra.mxu0 %v10503_v30  ;;  %701 = vmatpush1.msra.mxu1 %v10508_v31 }
  0x49   :  { %631 = vmatprep.subr.mxu0 %v10515_v32  ;;  %702 = vmatprep.subr.mxu1 %v10520_v33 }
  0x4a   :  { %632 = vmatpush1.msra.mxu0 %v10529_v34  ;;  %703 = vmatpush1.msra.mxu1 %v10534_v35 }
  0x4b   :  { %633 = vmatprep.subr.mxu0 %v10546_v37  ;;  %704 = vmatprep.subr.mxu1 %v10551_v38 }
  0x4c   :  { %634 = vmatpush1.msra.mxu0 %v10558_v39  ;;  %705 = vmatpush1.msra.mxu1 %v10563_v40 }
  0x4d   :  { %635 = vmatprep.subr.mxu0 %v10570_v41  ;;  %706 = vmatprep.subr.mxu1 %v10575_v42 }
  0x4e   :  { %636 = vmatpush1.msra.mxu0 %v10584_v43  ;;  %707 = vmatpush1.msra.mxu1 %v10589_v44 }
  0x4f   :  { %637 = vmatprep.subr.mxu0 %v10601_v46  ;;  %708 = vmatprep.subr.mxu1 %v10606_v47 }
  0x50   :  { %638 = vmatpush1.msra.mxu0 %v10613_v48  ;;  %709 = vmatpush1.msra.mxu1 %v10618_v49 }
  0x51   :  { %639 = vmatprep.subr.mxu0 %v10625_v50  ;;  %710 = vmatprep.subr.mxu1 %v10630_v51 }
  0x52   :  { %640 = vmatpush1.msra.mxu0 %v10639_v52  ;;  %711 = vmatpush1.msra.mxu1 %v10644_v53 }
  0x53   :  { %641 = vmatprep.subr.mxu0 %v10656_v55  ;;  %712 = vmatprep.subr.mxu1 %v10661_v56 }
  0x54   :  { %642 = vmatpush1.msra.mxu0 %v10668_v57  ;;  %713 = vmatpush1.msra.mxu1 %v10673_v58 }
  0x55   :  { %643 = vmatprep.subr.mxu0 %v10680_v59  ;;  %714 = vmatprep.subr.mxu1 %v10685_v60 }
  0x56   :  { %644 = vmatpush1.msra.mxu0 %v10694_v61  ;;  %715 = vmatpush1.msra.mxu1 %v10699_v62  ;;  %v17291_v61 = vld [vmem:[#allocation20_spill] sm:$0xff] }
  0x57   :  { %645 = vmatprep.subr.mxu0 %v10711_v0  ;;  %716 = vmatprep.subr.mxu1 %v10716_v1 }
  0x58   :  { %646 = vmatpush1.msra.mxu0 %v10723_v2  ;;  %717 = vmatpush1.msra.mxu1 %v10728_v4 }
  0x59   :  { %647 = vmatprep.subr.mxu0 %v10735_v5  ;;  %718 = vmatprep.subr.mxu1 %v10740_v6 }
  0x5a   :  { %648 = vmatpush1.msra.mxu0 %v10749_v7  ;;  %719 = vmatpush1.msra.mxu1 %v10754_v8 }
  0x5b   :  { %649 = vmatprep.subr.mxu0 %v10766_v18  ;;  %720 = vmatprep.subr.mxu1 %v17291_v61  ;;  %v74_v61 = vlaneseq }
  0x5c   :  { %650 = vmatpush1.msra.mxu0 %v10778_v36  ;;  %721 = vmatpush1.msra.mxu1 %v10783_v45 }
  0x5d   :  { %651 = vmatprep.subr.mxu0 %v10790_v54  ;;  %722 = vmatprep.subr.mxu1 %v10795_v63  ;;  %v10887_v36 = vshrl.u32 %v74_v61, 7 }
  0x5e   :  { %652 = vmatpush1.msra.mxu0 %v10802_v3  ;;  %685 = vmatprep.mubr.f32.mxu0 %v17290_v27 }
  0x5f   :  { %723 = vmatpush1.msra.mxu1 %v10809_v9  ;;  %756 = vmatprep.mubr.f32.mxu1 %v17290_v27  ;;  %17292 = vst [vmem:[#allocation27_spill] sm:$0xff] %v10887_v36  ;;  %v10892_v63 = vsub.s32 0, %v10887_v36  ;;  %v10895_v3 = vsub.s32 2, %v10887_v36  ;;  %v72_v9 = vld [vmem:[%s16770_s4] sm:$0xf] }
  0x60   :  { %798 = vmatprep.subr.mxu0 %v10383_v10  ;;  %869 = vmatprep.subr.mxu1 %v10388_v11 }
  0x61   :  { %17293 = vst [vmem:[#allocation28_spill] sm:$0xff] %v10892_v63  ;;  %17294 = vst [vmem:[#allocation29_spill] sm:$0xff] %v10895_v3  ;;  %v77_v11 = vrot.slane %v72_v9, %v10892_v63  ;;  %v85_v61 = vrot.slane %v72_v9, %v10895_v3 }
  0xce   :  { %v185_v45 = vpop.f32.mrf.mxu0  ;;  %v10889_v18 = vpop.f32.mrf.mxu1 }
  0xd0   :  { %v187_v27 = vpop.f32.mrf.mxu0  ;;  %v300_v10 = vpop.f32.mrf.mxu1 }
  0xd4   :  { %v191_v54 = vpop.f32.mrf.mxu0  ;;  %v304_v8 = vpop.f32.mrf.mxu1 }
  0xd5   :  { %v10902_v7 = vadd.f32 %v191_v54, %v77_v11  ;;  %v10904_v6 = vadd.f32 %v304_v8, %v85_v61 }
  0xd6   :  { %v10906_v5 = vpop.f32.mrf.mxu0  ;;  %v10908_v4 = vpop.f32.mrf.mxu1 }
  0xd7   :  { %17295 = vst [vmem:[#allocation30_spill] sm:$0xff] %v10902_v7  ;;  %17296 = vst [vmem:[#allocation31_spill] sm:$0xff] %v10904_v6 }
  0xd8   :  { %17297 = vst [vmem:[#allocation32_spill] sm:$0xff] %v10906_v5  ;;  %17298 = vst [vmem:[#allocation33_spill] sm:$0xff] %v10908_v4 }
  0xda   :  { %v197_v2 = vpop.f32.mrf.mxu0  ;;  %v310_v1 = vpop.f32.mrf.mxu1 }
  0xdb   :  { %v10910_v0 = vadd.f32 %v197_v2, %v77_v11  ;;  %v10912_v62 = vadd.f32 %v310_v1, %v85_v61 }
  0xdc   :  { %v10914_v60 = vpop.f32.mrf.mxu0  ;;  %v10916_v63 = vpop.f32.mrf.mxu1 }
  0xdd   :  { %17299 = vst [vmem:[#allocation34_spill] sm:$0xff] %v10910_v0  ;;  %17300 = vst [vmem:[#allocation35_spill] sm:$0xff] %v10912_v62 }
  0xde   :  { %17301 = vst [vmem:[#allocation36_spill] sm:$0xff] %v10914_v60  ;;  %17302 = vst [vmem:[#allocation37_spill] sm:$0xff] %v10916_v63 }
  0xe0   :  { %v203_v3 = vpop.f32.mrf.mxu0  ;;  %v316_v59 = vpop.f32.mrf.mxu1 }
  0xe1   :  { %v10918_v54 = vadd.f32 %v203_v3, %v77_v11  ;;  %v10920_v8 = vadd.f32 %v316_v59, %v85_v61 }
  0xe2   :  { %v10922_v6 = vpop.f32.mrf.mxu0  ;;  %v10924_v7 = vpop.f32.mrf.mxu1 }
  0xe3   :  { %17303 = vst [vmem:[#allocation38_spill] sm:$0xff] %v10918_v54  ;;  %17304 = vst [vmem:[#allocation39_spill] sm:$0xff] %v10920_v8 }
  0xe4   :  { %17305 = vst [vmem:[#allocation40_spill] sm:$0xff] %v10922_v6  ;;  %17306 = vst [vmem:[#allocation41_spill] sm:$0xff] %v10924_v7 }
  0xe6   :  { %v209_v4 = vpop.f32.mrf.mxu0  ;;  %v322_v5 = vpop.f32.mrf.mxu1 }
  0xe7   :  { %v10926_v2 = vadd.f32 %v209_v4, %v77_v11  ;;  %v10928_v1 = vadd.f32 %v322_v5, %v85_v61 }
  0xe8   :  { %v10930_v62 = vpop.f32.mrf.mxu0  ;;  %v10932_v0 = vpop.f32.mrf.mxu1 }
  0xe9   :  { %17307 = vst [vmem:[#allocation42_spill] sm:$0xff] %v10926_v2  ;;  %17308 = vst [vmem:[#allocation43_spill] sm:$0xff] %v10928_v1 }
  0xea   :  { %17309 = vst [vmem:[#allocation44_spill] sm:$0xff] %v10930_v62  ;;  %17310 = vst [vmem:[#allocation45_spill] sm:$0xff] %v10932_v0  ;;  %v10951_v0 = vsub.s32 1, %v10887_v36 }
  0xec   :  { %v215_v63 = vpop.f32.mrf.mxu0  ;;  %v328_v60 = vpop.f32.mrf.mxu1  ;;  %17319 = vst [vmem:[#allocation54_spill] sm:$0xff] %v10951_v0 }
  0xed   :  { %v10934_v3 = vadd.f32 %v215_v63, %v77_v11  ;;  %v10936_v59 = vadd.f32 %v328_v60, %v85_v61 }
  0xee   :  { %v10938_v8 = vpop.f32.mrf.mxu0  ;;  %v10940_v54 = vpop.f32.mrf.mxu1 }
  0xef   :  { %17311 = vst [vmem:[#allocation46_spill] sm:$0xff] %v10934_v3  ;;  %17312 = vst [vmem:[#allocation47_spill] sm:$0xff] %v10936_v59 }
  0xf0   :  { %17313 = vst [vmem:[#allocation48_spill] sm:$0xff] %v10938_v8  ;;  %17314 = vst [vmem:[#allocation49_spill] sm:$0xff] %v10940_v54  ;;  %v10966_v8 = vsub.s32 3, %v10887_v36 }
  0xf2   :  { %v221_v7 = vpop.f32.mrf.mxu0  ;;  %v334_v6 = vpop.f32.mrf.mxu1  ;;  %17325 = vst [vmem:[#allocation60_spill] sm:$0xff] %v10966_v8 }
  0xf3   :  { %v10942_v4 = vadd.f32 %v221_v7, %v77_v11  ;;  %v10944_v5 = vadd.f32 %v334_v6, %v85_v61  ;;  %v10960_v7 = vrot.slane %v72_v9, %v10951_v0  ;;  %v186_v6 = vadd.f32 %v185_v45, %v77_v11 }
  0xf4   :  { %v10946_v1 = vpop.f32.mrf.mxu0  ;;  %v10948_v2 = vpop.f32.mrf.mxu1  ;;  %v299_v0 = vadd.f32 %v10889_v18, %v85_v61 }
  0xf5   :  { %17315 = vst [vmem:[#allocation50_spill] sm:$0xff] %v10942_v4  ;;  %17316 = vst [vmem:[#allocation51_spill] sm:$0xff] %v10944_v5  ;;  %v188_v4 = vadd.f32 %v187_v27, %v10960_v7 }
  0xf6   :  { %17317 = vst [vmem:[#allocation52_spill] sm:$0xff] %v10946_v1  ;;  %17318 = vst [vmem:[#allocation53_spill] sm:$0xff] %v10948_v2 }
  0xf7   :  { %17323 = vst [vmem:[#allocation58_spill] sm:$0xff] %v10960_v7 }
  0xf8   :  { %v227_v63 = vpop.f32.mrf.mxu0  ;;  %v340_v60 = vpop.f32.mrf.mxu1 }
  0xf9   :  { %v10953_v59 = vadd.f32 %v227_v63, %v77_v11  ;;  %v10955_v3 = vadd.f32 %v340_v60, %v85_v61 }
  0xfa   :  { %v10957_v54 = vpop.f32.mrf.mxu0  ;;  %v10963_v1 = vpop.f32.mrf.mxu1 }
  0xfb   :  { %17320 = vst [vmem:[#allocation55_spill] sm:$0xff] %v10953_v59  ;;  %17321 = vst [vmem:[#allocation56_spill] sm:$0xff] %v10955_v3 }
  0xfc   :  { %17322 = vst [vmem:[#allocation57_spill] sm:$0xff] %v10957_v54  ;;  %17324 = vst [vmem:[#allocation59_spill] sm:$0xff] %v10963_v1  ;;  %v10969_v54 = vrot.slane %v72_v9, %v10966_v8  ;;  %v17345_v8 = vld [vmem:[#allocation25_spill] sm:$0xff] }
  0xfe   :  { %v511_v5 = vpop.f32.mrf.mxu0  ;;  %v582_v60 = vpop.f32.mrf.mxu1  ;;  %v301_v45 = vadd.f32 %v300_v10, %v10969_v54 }
  0xff   :  { %v587_v2 = vadd.f32 %v511_v5, %v186_v6  ;;  %v589_v36 = vadd.f32 %v582_v60, %v299_v0  ;;  %v17330_v60 = vld [vmem:[#allocation10_spill] sm:$0xff] }
 0x100   :  { %v513_v62 = vpop.f32.mrf.mxu0  ;;  %v584_v11 = vpop.f32.mrf.mxu1 }
 0x101   :  { %v9084_v63 = vmul.f32 -1.442695, %v587_v2  ;;  %v588_v59 = vadd.f32 %v513_v62, %v188_v4  ;;  %v590_v27 = vadd.f32 %v584_v11, %v301_v45  ;;  %v17331_v45 = vld [vmem:[#allocation11_spill] sm:$0xff] }
 0x103   :  { %9457 = vpow2.f32 %v9084_v63  ;;  %v9085_v3 = vmul.f32 -1.442695, %v588_v59  ;;  %v9086_v5 = vmul.f32 -1.442695, %v590_v27  ;;  %v17332_v27 = vld [vmem:[#allocation12_spill] sm:$0xff] }
 0x105   :  { %9459 = vpow2.f32 %v9085_v3 }
 0x106   :  { %9461 = vpow2.f32 %v9086_v5  ;;  %v17333_v5 = vld [vmem:[#allocation13_spill] sm:$0xff] }
 0x110   :  { %v9458_v6 = vpop.eup %9457 }
 0x111   :  { %v594_v1 = vadd.f32 1.0, %v9458_v6  ;;  %v17334_v6 = vld [vmem:[#allocation14_spill] sm:$0xff] }
 0x112   :  { %v9460_v7 = vpop.eup %9459 }
 0x113   :  { %9463 = vrcp.f32 %v594_v1  ;;  %v600_v62 = vadd.f32 1.0, %v9460_v7  ;;  %v9462_v2 = vpop.eup %9461  ;;  %v17328_v1 = vld [vmem:[#allocation8_spill] sm:$0xff]  ;;  %v17329_v7 = vld [vmem:[#allocation9_spill] sm:$0xff] }
 0x114   :  { %9465 = vtanh.f32 %v589_v36  ;;  %v607_v4 = vadd.f32 1.0, %v9462_v2  ;;  %v17327_v36 = vld [vmem:[#allocation7_spill] sm:$0xff]  ;;  %v17336_v2 = vld [vmem:[#allocation16_spill] sm:$0xff] }
 0x115   :  { %9467 = vrcp.f32 %v600_v62  ;;  %v17335_v62 = vld [vmem:[#allocation15_spill] sm:$0xff] }
 0x116   :  { %9469 = vrcp.f32 %v607_v4  ;;  %v17340_v4 = vld [vmem:[#allocation20_spill] sm:$0xff] }
 0x120   :  { %v9464_v9 = vpop.eup %9463 }
 0x121   :  { %v9466_v59 = vpop.eup %9465 }
 0x122   :  { %v9468_v3 = vpop.eup %9467  ;;  %v611_v10 = vmul.f32 %v9466_v59, %v9464_v9  ;;  %v17337_v9 = vld [vmem:[#allocation17_spill] sm:$0xff]  ;;  %v17338_v59 = vld [vmem:[#allocation18_spill] sm:$0xff] }
 0x123   :  { %v610_v63 = vmul.f32 0.0, %v9468_v3  ;;  %v9470_v0 = vpop.eup %9469  ;;  %v17339_v3 = vld [vmem:[#allocation19_spill] sm:$0xff] }
 0x125   :  { %v10973_v11 = vadd.f32 %v611_v10, %v610_v63  ;;  %v17341_v63 = vld [vmem:[#allocation21_spill] sm:$0xff]  ;;  %v17342_v10 = vld [vmem:[#allocation22_spill] sm:$0xff] }
 0x127   :  { %9471 = vtanh.f32 %v10973_v11 }
 0x134   :  { %v9472_v18 = vpop.eup %9471 }
 0x135   :  { %v10976_v61 = vmul.f32 %v9472_v18, %v9470_v0  ;;  %v17343_v0 = vld [vmem:[#allocation23_spill] sm:$0xff]  ;;  %v17344_v18 = vld [vmem:[#allocation24_spill] sm:$0xff] }
 0x137   :  { %17326 = vst [vmem:[#allocation61_spill] sm:$0xff] %v10976_v61  ;;  %686 = vmatmul.mubr.f32.vlgmr.msra.gmra.mxu0 %v10976_v61  ;;  %757 = vmatmul.mubr.f32.vlgmr.msra.gmra.mxu1 %v10976_v61  ;;  %v17346_v61 = vmov 0.0  }
 0x138   :  { %799 = vmatpush1.msra.mxu0 %v10393_v12  ;;  %870 = vmatpush1.msra.mxu1 %v10398_v13 }
 0x139   :  { %800 = vmatprep.subr.mxu0 %v10405_v14  ;;  %871 = vmatprep.subr.mxu1 %v10410_v15 }
 0x13a   :  { %801 = vmatpush1.msra.mxu0 %v10419_v16  ;;  %872 = vmatpush1.msra.mxu1 %v10424_v17 }
 0x13b   :  { %802 = vmatprep.subr.mxu0 %v10436_v19  ;;  %873 = vmatprep.subr.mxu1 %v10441_v20 }
 0x13c   :  { %803 = vmatpush1.msra.mxu0 %v10448_v21  ;;  %874 = vmatpush1.msra.mxu1 %v10453_v22 }
 0x13d   :  { %804 = vmatprep.subr.mxu0 %v10460_v23  ;;  %875 = vmatprep.subr.mxu1 %v10465_v24 }
 0x13e   :  { %805 = vmatpush1.msra.mxu0 %v10474_v25  ;;  %876 = vmatpush1.msra.mxu1 %v10479_v26 }
 0x13f   :  { %806 = vmatprep.subr.mxu0 %v10491_v28  ;;  %877 = vmatprep.subr.mxu1 %v10496_v29 }
 0x140   :  { %807 = vmatpush1.msra.mxu0 %v10503_v30  ;;  %878 = vmatpush1.msra.mxu1 %v10508_v31 }
 0x141   :  { %808 = vmatprep.subr.mxu0 %v10515_v32  ;;  %879 = vmatprep.subr.mxu1 %v10520_v33 }
 0x142   :  { %809 = vmatpush1.msra.mxu0 %v10529_v34  ;;  %880 = vmatpush1.msra.mxu1 %v10534_v35 }
 0x143   :  { %810 = vmatprep.subr.mxu0 %v10546_v37  ;;  %881 = vmatprep.subr.mxu1 %v10551_v38 }
 0x144   :  { %811 = vmatpush1.msra.mxu0 %v10558_v39  ;;  %882 = vmatpush1.msra.mxu1 %v10563_v40 }
 0x145   :  { %812 = vmatprep.subr.mxu0 %v10570_v41  ;;  %883 = vmatprep.subr.mxu1 %v10575_v42 }
 0x146   :  { %813 = vmatpush1.msra.mxu0 %v10584_v43  ;;  %884 = vmatpush1.msra.mxu1 %v10589_v44 }
 0x147   :  { %814 = vmatprep.subr.mxu0 %v10601_v46  ;;  %885 = vmatprep.subr.mxu1 %v10606_v47 }
 0x148   :  { %815 = vmatpush1.msra.mxu0 %v10613_v48  ;;  %886 = vmatpush1.msra.mxu1 %v10618_v49 }
 0x149   :  { %816 = vmatprep.subr.mxu0 %v10625_v50  ;;  %887 = vmatprep.subr.mxu1 %v10630_v51 }
 0x14a   :  { %817 = vmatpush1.msra.mxu0 %v10639_v52  ;;  %888 = vmatpush1.msra.mxu1 %v10644_v53 }
 0x14b   :  { %818 = vmatprep.subr.mxu0 %v10656_v55  ;;  %889 = vmatprep.subr.mxu1 %v10661_v56 }
 0x14c   :  { %819 = vmatpush1.msra.mxu0 %v10668_v57  ;;  %890 = vmatpush1.msra.mxu1 %v10673_v58 }
 0x14d   :  { %820 = vmatprep.subr.mxu0 %v17327_v36  ;;  %891 = vmatprep.subr.mxu1 %v17328_v1 }
 0x14e   :  { %821 = vmatpush1.msra.mxu0 %v17329_v7  ;;  %892 = vmatpush1.msra.mxu1 %v17330_v60  ;;  %v17354_v60 = vld [vmem:[#allocation31_spill] sm:$0xff] }
 0x14f   :  { %822 = vmatprep.subr.mxu0 %v17331_v45  ;;  %893 = vmatprep.subr.mxu1 %v17332_v27 }
 0x150   :  { %823 = vmatpush1.msra.mxu0 %v17333_v5  ;;  %894 = vmatpush1.msra.mxu1 %v17334_v6 }
 0x151   :  { %824 = vmatprep.subr.mxu0 %v17335_v62  ;;  %895 = vmatprep.subr.mxu1 %v17336_v2  ;;  %v17347_v2 = vld [vmem:[#allocation26_spill] sm:$0xff] }
 0x152   :  { %825 = vmatpush1.msra.mxu0 %v17337_v9  ;;  %896 = vmatpush1.msra.mxu1 %v17338_v59  ;;  %v17348_v59 = vld [vmem:[#allocation5_spill] sm:$0xff]  ;;  %v17351_v9 = vld [vmem:[#allocation32_spill] sm:$0xff]  ;;  %v17352_v62 = vld [vmem:[#allocation30_spill] sm:$0xff] }
 0x153   :  { %826 = vmatprep.subr.mxu0 %v17339_v3  ;;  %897 = vmatprep.subr.mxu1 %v17340_v4  ;;  %v17349_v3 = vld [vmem:[#allocation6_spill] sm:$0xff] }
 0x154   :  { %827 = vmatpush1.msra.mxu0 %v17341_v63  ;;  %898 = vmatpush1.msra.mxu1 %v17342_v10  ;;  %v17350_v63 = vld [vmem:[#allocation58_spill] sm:$0xff] }
 0x155   :  { %828 = vmatprep.subr.mxu0 %v17343_v0  ;;  %899 = vmatprep.subr.mxu1 %v17344_v18  ;;  %v194_v10 = vadd.f32 %v17351_v9, %v17350_v63 }
 0x156   :  { %829 = vmatpush1.msra.mxu0 %v17345_v8  ;;  %862 = vmatprep.mubr.f32.mxu0 %v17346_v61 }
 0x157   :  { %900 = vmatpush1.msra.mxu1 %v17347_v2  ;;  %933 = vmatprep.mubr.f32.mxu1 %v17346_v61  ;;  %v17353_v61 = vld [vmem:[#allocation33_spill] sm:$0xff] }
 0x158   :  { %975 = vmatprep.subr.mxu0 %v17348_v59  ;;  %1046 = vmatprep.subr.mxu1 %v17349_v3  ;;  %v307_v45 = vadd.f32 %v17353_v61, %v10969_v54 }
 0x1f7   :  { %v687_v4 = vpop.f32.mrf.mxu0  ;;  %v758_v8 = vpop.f32.mrf.mxu1 }
 0x1f8   :  { %v763_v0 = vadd.f32 %v687_v4, %v17352_v62  ;;  %v765_v3 = vadd.f32 %v758_v8, %v17354_v60 }
 0x1f9   :  { %v689_v6 = vpop.f32.mrf.mxu0  ;;  %v760_v2 = vpop.f32.mrf.mxu1 }
 0x1fa   :  { %v9087_v18 = vmul.f32 -1.442695, %v763_v0  ;;  %v764_v5 = vadd.f32 %v689_v6, %v194_v10  ;;  %v766_v59 = vadd.f32 %v760_v2, %v307_v45 }
 0x1fc   :  { %9473 = vpow2.f32 %v9087_v18  ;;  %v9088_v27 = vmul.f32 -1.442695, %v764_v5  ;;  %v9089_v7 = vmul.f32 -1.442695, %v766_v59  ;;  %v17379_v59 = vld [vmem:[#allocation36_spill] sm:$0xff]  ;;  %v17380_v18 = vld [vmem:[#allocation34_spill] sm:$0xff] }
 0x1fe   :  { %9475 = vpow2.f32 %v9088_v27 }
 0x1ff   :  { %9477 = vtanh.f32 %v765_v3  ;;  %v200_v3 = vadd.f32 %v17379_v59, %v17350_v63 }
 0x200   :  { %9479 = vpow2.f32 %v9089_v7  ;;  %v17378_v7 = vld [vmem:[#allocation6_spill] sm:$0xff] }
 0x209   :  { %v9474_v1 = vpop.eup %9473 }
 0x20a   :  { %v770_v36 = vadd.f32 1.0, %v9474_v1 }
 0x20b   :  { %v9476_v9 = vpop.eup %9475 }
 0x20c   :  { %9481 = vrcp.f32 %v770_v36  ;;  %v776_v62 = vadd.f32 1.0, %v9476_v9  ;;  %v9478_v6 = vpop.eup %9477  ;;  %v17377_v36 = vld [vmem:[#allocation5_spill] sm:$0xff] }
 0x20d   :  { %v9480_v4 = vpop.eup %9479 }
 0x20e   :  { %9483 = vrcp.f32 %v776_v62  ;;  %v783_v0 = vadd.f32 1.0, %v9480_v4 }
 0x210   :  { %9485 = vrcp.f32 %v783_v0  ;;  %v17381_v0 = vld [vmem:[#allocation37_spill] sm:$0xff] }
 0x219   :  { %v9482_v5 = vpop.eup %9481 }
 0x21a   :  { %v787_v27 = vmul.f32 %v9482_v5, %v9478_v6 }
 0x21b   :  { %v9484_v10 = vpop.eup %9483 }
 0x21c   :  { %v786_v61 = vmul.f32 %v9484_v10, %v10973_v11  ;;  %v17376_v11 = vld [vmem:[#allocation26_spill] sm:$0xff] }
 0x21d   :  { %v9486_v8 = vpop.eup %9485 }
 0x21e   :  { %v11053_v45 = vadd.f32 %v787_v27, %v786_v61  ;;  %v313_v61 = vadd.f32 %v17381_v0, %v10969_v54 }
 0x220   :  { %9487 = vtanh.f32 %v11053_v45 }
 0x22d   :  { %v9488_v1 = vpop.eup %9487 }
 0x22e   :  { %v11056_v60 = vmul.f32 %v9488_v1, %v9486_v8  ;;  %v17382_v1 = vld [vmem:[#allocation35_spill] sm:$0xff] }
 0x230   :  { %17355 = vst [vmem:[#allocation58_spill] sm:$0xff] %v11056_v60  ;;  %863 = vmatmul.mubr.f32.vlgmr.msra.gmra.mxu0 %v11056_v60  ;;  %934 = vmatmul.mubr.f32.vlgmr.msra.gmra.mxu1 %v11056_v60 }
 0x231   :  { %976 = vmatpush1.msra.mxu0 %v10393_v12  ;;  %1047 = vmatpush1.msra.mxu1 %v10398_v13  ;;  %v17356_v12 = vld [vmem:[#allocation7_spill] sm:$0xff]  ;;  %v17357_v13 = vld [vmem:[#allocation8_spill] sm:$0xff] }
 0x232   :  { %977 = vmatprep.subr.mxu0 %v10405_v14  ;;  %1048 = vmatprep.subr.mxu1 %v10410_v15  ;;  %v17358_v14 = vld [vmem:[#allocation9_spill] sm:$0xff]  ;;  %v17359_v15 = vld [vmem:[#allocation10_spill] sm:$0xff] }
 0x233   :  { %978 = vmatpush1.msra.mxu0 %v10419_v16  ;;  %1049 = vmatpush1.msra.mxu1 %v10424_v17  ;;  %v17360_v16 = vld [vmem:[#allocation11_spill] sm:$0xff]  ;;  %v17361_v17 = vld [vmem:[#allocation12_spill] sm:$0xff] }
 0x234   :  { %979 = vmatprep.subr.mxu0 %v10436_v19  ;;  %1050 = vmatprep.subr.mxu1 %v10441_v20  ;;  %v17362_v19 = vld [vmem:[#allocation13_spill] sm:$0xff]  ;;  %v17363_v20 = vld [vmem:[#allocation14_spill] sm:$0xff] }
 0x235   :  { %980 = vmatpush1.msra.mxu0 %v10448_v21  ;;  %1051 = vmatpush1.msra.mxu1 %v10453_v22  ;;  %v17364_v21 = vld [vmem:[#allocation15_spill] sm:$0xff]  ;;  %v17365_v22 = vld [vmem:[#allocation16_spill] sm:$0xff] }
 0x236   :  { %981 = vmatprep.subr.mxu0 %v10460_v23  ;;  %1052 = vmatprep.subr.mxu1 %v10465_v24  ;;  %v17366_v23 = vld [vmem:[#allocation17_spill] sm:$0xff]  ;;  %v17367_v24 = vld [vmem:[#allocation18_spill] sm:$0xff] }
 0x237   :  { %982 = vmatpush1.msra.mxu0 %v10474_v25  ;;  %1053 = vmatpush1.msra.mxu1 %v10479_v26  ;;  %v17368_v25 = vld [vmem:[#allocation19_spill] sm:$0xff]  ;;  %v17369_v26 = vld [vmem:[#allocation20_spill] sm:$0xff] }
 0x238   :  { %983 = vmatprep.subr.mxu0 %v10491_v28  ;;  %1054 = vmatprep.subr.mxu1 %v10496_v29  ;;  %v17370_v28 = vld [vmem:[#allocation21_spill] sm:$0xff]  ;;  %v17371_v29 = vld [vmem:[#allocation22_spill] sm:$0xff] }
 0x239   :  { %984 = vmatpush1.msra.mxu0 %v10503_v30  ;;  %1055 = vmatpush1.msra.mxu1 %v10508_v31  ;;  %v17372_v30 = vld [vmem:[#allocation23_spill] sm:$0xff]  ;;  %v17373_v31 = vld [vmem:[#allocation24_spill] sm:$0xff] }
 0x23a   :  { %985 = vmatprep.subr.mxu0 %v10515_v32  ;;  %1056 = vmatprep.subr.mxu1 %v10520_v33  ;;  %v17374_v32 = vld [vmem:[#allocation25_spill] sm:$0xff]  ;;  %v17375_v33 = vmov 0.0  }
 0x23b   :  { %986 = vmatpush1.msra.mxu0 %v10529_v34  ;;  %1057 = vmatpush1.msra.mxu1 %v10534_v35 }
 0x23c   :  { %987 = vmatprep.subr.mxu0 %v10546_v37  ;;  %1058 = vmatprep.subr.mxu1 %v10551_v38 }
 0x23d   :  { %988 = vmatpush1.msra.mxu0 %v10558_v39  ;;  %1059 = vmatpush1.msra.mxu1 %v10563_v40 }
 0x23e   :  { %989 = vmatprep.subr.mxu0 %v10570_v41  ;;  %1060 = vmatprep.subr.mxu1 %v10575_v42 }
 0x23f   :  { %990 = vmatpush1.msra.mxu0 %v10584_v43  ;;  %1061 = vmatpush1.msra.mxu1 %v10589_v44 }
 0x240   :  { %991 = vmatprep.subr.mxu0 %v10601_v46  ;;  %1062 = vmatprep.subr.mxu1 %v10606_v47 }
 0x241   :  { %992 = vmatpush1.msra.mxu0 %v10613_v48  ;;  %1063 = vmatpush1.msra.mxu1 %v10618_v49 }
 0x242   :  { %993 = vmatprep.subr.mxu0 %v10625_v50  ;;  %1064 = vmatprep.subr.mxu1 %v10630_v51 }
 0x243   :  { %994 = vmatpush1.msra.mxu0 %v10639_v52  ;;  %1065 = vmatpush1.msra.mxu1 %v10644_v53 }
 0x244   :  { %995 = vmatprep.subr.mxu0 %v10656_v55  ;;  %1066 = vmatprep.subr.mxu1 %v10661_v56 }
 0x245   :  { %996 = vmatpush1.msra.mxu0 %v10668_v57  ;;  %1067 = vmatpush1.msra.mxu1 %v10673_v58 }
 0x246   :  { %997 = vmatprep.subr.mxu0 %v17356_v12  ;;  %1068 = vmatprep.subr.mxu1 %v17357_v13 }
 0x247   :  { %998 = vmatpush1.msra.mxu0 %v17358_v14  ;;  %1069 = vmatpush1.msra.mxu1 %v17359_v15 }
 0x248   :  { %999 = vmatprep.subr.mxu0 %v17360_v16  ;;  %1070 = vmatprep.subr.mxu1 %v17361_v17 }
 0x249   :  { %1000 = vmatpush1.msra.mxu0 %v17362_v19  ;;  %1071 = vmatpush1.msra.mxu1 %v17363_v20 }
 0x24a   :  { %1001 = vmatprep.subr.mxu0 %v17364_v21  ;;  %1072 = vmatprep.subr.mxu1 %v17365_v22 }
 0x24b   :  { %1002 = vmatpush1.msra.mxu0 %v17366_v23  ;;  %1073 = vmatpush1.msra.mxu1 %v17367_v24 }
 0x24c   :  { %1003 = vmatprep.subr.mxu0 %v17368_v25  ;;  %1074 = vmatprep.subr.mxu1 %v17369_v26 }
 0x24d   :  { %1004 = vmatpush1.msra.mxu0 %v17370_v28  ;;  %1075 = vmatpush1.msra.mxu1 %v17371_v29 }
 0x24e   :  { %1005 = vmatprep.subr.mxu0 %v17372_v30  ;;  %1076 = vmatprep.subr.mxu1 %v17373_v31 }
 0x24f   :  { %1006 = vmatpush1.msra.mxu0 %v17374_v32  ;;  %1039 = vmatprep.mubr.f32.mxu0 %v17375_v33 }
 0x250   :  { %1077 = vmatpush1.msra.mxu1 %v17376_v11  ;;  %1110 = vmatprep.mubr.f32.mxu1 %v17375_v33 }
 0x251   :  { %1152 = vmatprep.subr.mxu0 %v17377_v36  ;;  %1223 = vmatprep.subr.mxu1 %v17378_v7 }
 0x2f0   :  { %v864_v2 = vpop.f32.mrf.mxu0  ;;  %v935_v5 = vpop.f32.mrf.mxu1 }
 0x2f1   :  { %v940_v9 = vadd.f32 %v864_v2, %v17380_v18  ;;  %v942_v36 = vadd.f32 %v935_v5, %v17382_v1  ;;  %v11167_v1 = vld [vmem:[%s16769_s3 + $0x1c0] sm:$0xff] }
 0x2f2   :  { %v866_v62 = vpop.f32.mrf.mxu0  ;;  %v937_v10 = vpop.f32.mrf.mxu1 }
 0x2f3   :  { %v9090_v6 = vmul.f32 -1.442695, %v940_v9  ;;  %v941_v4 = vadd.f32 %v866_v62, %v200_v3  ;;  %v943_v8 = vadd.f32 %v937_v10, %v313_v61  ;;  %v11155_v61 = vld [vmem:[%s16769_s3 + $0x1c8] sm:$0xff] }
 0x2f5   :  { %9489 = vpow2.f32 %v9090_v6  ;;  %v9091_v27 = vmul.f32 -1.442695, %v941_v4  ;;  %v9092_v7 = vmul.f32 -1.442695, %v943_v8  ;;  %v11161_v8 = vld [vmem:[%s16769_s3 + $0x1d8] sm:$0xff] }
 0x2f7   :  { %9491 = vpow2.f32 %v9091_v27 }
 0x2f8   :  { %9493 = vtanh.f32 %v942_v36  ;;  %v11173_v36 = vld [vmem:[%s16769_s3 + $0x1d0] sm:$0xff] }
 0x2f9   :  { %9495 = vpow2.f32 %v9092_v7  ;;  %v11179_v7 = vld [vmem:[%s16769_s3 + $0x1a8] sm:$0xff] }
 0x302   :  { %v9490_v60 = vpop.eup %9489 }
 0x303   :  { %v947_v11 = vadd.f32 1.0, %v9490_v60 }
 0x304   :  { %v9492_v59 = vpop.eup %9491 }
 0x305   :  { %9497 = vrcp.f32 %v947_v11  ;;  %v953_v2 = vadd.f32 1.0, %v9492_v59  ;;  %v9494_v3 = vpop.eup %9493  ;;  %v11143_v11 = vld [vmem:[%s16769_s3 + $0x1e0] sm:$0xff]  ;;  %v11185_v59 = vld [vmem:[%s16769_s3 + $0x1b8] sm:$0xff] }
 0x306   :  { %v9496_v18 = vpop.eup %9495 }
 0x307   :  { %9499 = vrcp.f32 %v953_v2  ;;  %v960_v4 = vadd.f32 1.0, %v9496_v18  ;;  %v11191_v2 = vld [vmem:[%s16769_s3 + $0x1a0] sm:$0xff]  ;;  %v11203_v18 = vld [vmem:[%s16769_s3 + $0x188] sm:$0xff] }
 0x309   :  { %9501 = vrcp.f32 %v960_v4  ;;  %v11227_v4 = vld [vmem:[%s16769_s3 + $0x168] sm:$0xff] }
 0x312   :  { %v9498_v9 = vpop.eup %9497 }
 0x313   :  { %v964_v62 = vmul.f32 %v9498_v9, %v9494_v3  ;;  %v11197_v3 = vld [vmem:[%s16769_s3 + $0x1b0] sm:$0xff]  ;;  %v11209_v9 = vld [vmem:[%s16769_s3 + $0x198] sm:$0xff] }
 0x314   :  { %v9500_v6 = vpop.eup %9499 }
 0x315   :  { %v963_v27 = vmul.f32 %v9500_v6, %v11053_v45  ;;  %v11149_v45 = vld [vmem:[%s16769_s3 + $0x1f0] sm:$0xff] }
 0x316   :  { %v9502_v60 = vpop.eup %9501  ;;  %v11221_v6 = vld [vmem:[%s16769_s3 + $0x190] sm:$0xff] }
 0x317   :  { %v11133_v10 = vadd.f32 %v964_v62, %v963_v27  ;;  %v11215_v62 = vld [vmem:[%s16769_s3 + $0x180] sm:$0xff]  ;;  %v11233_v27 = vld [vmem:[%s16769_s3 + $0x178] sm:$0xff] }
 0x318   :  { %17384 = vst [vmem:[#allocation30_spill] sm:$0xff] %v11233_v27 }
 0x319   :  { %9503 = vtanh.f32 %v11133_v10 }
 0x326   :  { %v9504_v5 = vpop.eup %9503 }
 0x327   :  { %v11136_v0 = vmul.f32 %v9504_v5, %v9502_v60  ;;  %v11239_v60 = vld [vmem:[%s16769_s3 + $0x160] sm:$0xff]  ;;  %v11245_v5 = vld [vmem:[%s16769_s3 + $0x170] sm:$0xff] }
 0x329   :  { %17383 = vst [vmem:[#allocation32_spill] sm:$0xff] %v11136_v0  ;;  %1040 = vmatmul.mubr.f32.vlgmr.msra.gmra.mxu0 %v11136_v0  ;;  %1111 = vmatmul.mubr.f32.vlgmr.msra.gmra.mxu1 %v11136_v0  ;;  %v11251_v0 = vld [vmem:[%s16769_s3 + $0x148] sm:$0xff] }
 0x32a   :  { %1153 = vmatpush1.msra.mxu0 %v11143_v11  ;;  %1224 = vmatpush1.msra.mxu1 %v11149_v45 }
 0x32b   :  { %1154 = vmatprep.subr.mxu0 %v11155_v61  ;;  %1225 = vmatprep.subr.mxu1 %v11161_v8 }
 0x32c   :  { %1155 = vmatpush1.msra.mxu0 %v11167_v1  ;;  %1226 = vmatpush1.msra.mxu1 %v11173_v36 }
 0x32d   :  { %1156 = vmatprep.subr.mxu0 %v11179_v7  ;;  %1227 = vmatprep.subr.mxu1 %v11185_v59 }
 0x32e   :  { %1157 = vmatpush1.msra.mxu0 %v11191_v2  ;;  %1228 = vmatpush1.msra.mxu1 %v11197_v3 }
 0x32f   :  { %1158 = vmatprep.subr.mxu0 %v11203_v18  ;;  %1229 = vmatprep.subr.mxu1 %v11209_v9 }
 0x330   :  { %1159 = vmatpush1.msra.mxu0 %v11215_v62  ;;  %1230 = vmatpush1.msra.mxu1 %v11221_v6 }
 0x331   :  { %1160 = vmatprep.subr.mxu0 %v11227_v4  ;;  %1231 = vmatprep.subr.mxu1 %v11233_v27  ;;  %v11257_v27 = vld [vmem:[%s16769_s3 + $0x158] sm:$0xff] }
 0x332   :  { %1161 = vmatpush1.msra.mxu0 %v11239_v60  ;;  %1232 = vmatpush1.msra.mxu1 %v11245_v5 }
 0x333   :  { %1162 = vmatprep.subr.mxu0 %v11251_v0  ;;  %1233 = vmatprep.subr.mxu1 %v11257_v27 }
 0x334   :  { %1163 = vmatpush1.msra.mxu0 %v10529_v34  ;;  %1234 = vmatpush1.msra.mxu1 %v10534_v35  ;;  %v17385_v34 = vld [vmem:[#allocation26_spill] sm:$0xff] }
 0x335   :  { %1164 = vmatprep.subr.mxu0 %v10546_v37  ;;  %1235 = vmatprep.subr.mxu1 %v10551_v38  ;;  %v11307_v35 = vld [vmem:[%s16769_s3 + $0x1e8] sm:$0xff]  ;;  %v11313_v37 = vld [vmem:[%s16769_s3 + $0x1f8] sm:$0xff] }
 0x336   :  { %1165 = vmatpush1.msra.mxu0 %v10558_v39  ;;  %1236 = vmatpush1.msra.mxu1 %v10563_v40  ;;  %17386 = vst [vmem:[#allocation33_spill] sm:$0xff] %v11307_v35  ;;  %17387 = vst [vmem:[#allocation31_spill] sm:$0xff] %v11313_v37  ;;  %v17388_v39 = vld [vmem:[#allocation40_spill] sm:$0xff] }
 0x337   :  { %1166 = vmatprep.subr.mxu0 %v10570_v41  ;;  %1237 = vmatprep.subr.mxu1 %v10575_v42  ;;  %v206_v40 = vadd.f32 %v17388_v39, %v17350_v63  ;;  %v17389_v41 = vld [vmem:[#allocation38_spill] sm:$0xff]  ;;  %v11401_v39 = vld [vmem:[%s16769_s3 + $0x100] sm:$0xff] }
 0x338   :  { %1167 = vmatpush1.msra.mxu0 %v10584_v43  ;;  %1238 = vmatpush1.msra.mxu1 %v10589_v44 }
 0x339   :  { %1168 = vmatprep.subr.mxu0 %v10601_v46  ;;  %1239 = vmatprep.subr.mxu1 %v10606_v47 }
 0x33a   :  { %1169 = vmatpush1.msra.mxu0 %v10613_v48  ;;  %1240 = vmatpush1.msra.mxu1 %v10618_v49 }
 0x33b   :  { %1170 = vmatprep.subr.mxu0 %v10625_v50  ;;  %1241 = vmatprep.subr.mxu1 %v10630_v51  ;;  %v17390_v50 = vld [vmem:[#allocation41_spill] sm:$0xff] }
 0x33c   :  { %1171 = vmatpush1.msra.mxu0 %v10639_v52  ;;  %1242 = vmatpush1.msra.mxu1 %v10644_v53  ;;  %v319_v51 = vadd.f32 %v17390_v50, %v10969_v54  ;;  %v17391_v53 = vld [vmem:[#allocation39_spill] sm:$0xff]  ;;  %v11461_v50 = vld [vmem:[%s16769_s3 + $0xa8] sm:$0xff] }
 0x33d   :  { %1172 = vmatprep.subr.mxu0 %v10656_v55  ;;  %1243 = vmatprep.subr.mxu1 %v10661_v56 }
 0x33e   :  { %1173 = vmatpush1.msra.mxu0 %v10668_v57  ;;  %1244 = vmatpush1.msra.mxu1 %v10673_v58 }
 0x33f   :  { %1174 = vmatprep.subr.mxu0 %v17356_v12  ;;  %1245 = vmatprep.subr.mxu1 %v17357_v13 }
 0x340   :  { %1175 = vmatpush1.msra.mxu0 %v17358_v14  ;;  %1246 = vmatpush1.msra.mxu1 %v17359_v15 }
 0x341   :  { %1176 = vmatprep.subr.mxu0 %v17360_v16  ;;  %1247 = vmatprep.subr.mxu1 %v17361_v17 }
 0x342   :  { %1177 = vmatpush1.msra.mxu0 %v17362_v19  ;;  %1248 = vmatpush1.msra.mxu1 %v17363_v20 }
 0x343   :  { %1178 = vmatprep.subr.mxu0 %v17364_v21  ;;  %1249 = vmatprep.subr.mxu1 %v17365_v22 }
 0x344   :  { %1179 = vmatpush1.msra.mxu0 %v17366_v23  ;;  %1250 = vmatpush1.msra.mxu1 %v17367_v24 }
 0x345   :  { %1180 = vmatprep.subr.mxu0 %v17368_v25  ;;  %1251 = vmatprep.subr.mxu1 %v17369_v26  ;;  %v17393_v26 = vld [vmem:[#allocation30_spill] sm:$0xff] }
 0x346   :  { %1181 = vmatpush1.msra.mxu0 %v17370_v28  ;;  %1252 = vmatpush1.msra.mxu1 %v17371_v29  ;;  %v11353_v28 = vld [vmem:[%s16769_s3 + $0x140] sm:$0xff]  ;;  %v11359_v29 = vld [vmem:[%s16769_s3 + $0x150] sm:$0xff] }
 0x347   :  { %1182 = vmatprep.subr.mxu0 %v17372_v30  ;;  %1253 = vmatprep.subr.mxu1 %v17373_v31  ;;  %v11365_v30 = vld [vmem:[%s16769_s3 + $0x128] sm:$0xff]  ;;  %v11371_v31 = vld [vmem:[%s16769_s3 + $0x138] sm:$0xff] }
 0x348   :  { %1183 = vmatpush1.msra.mxu0 %v17374_v32  ;;  %1216 = vmatprep.mubr.f32.mxu0 %v17375_v33  ;;  %v11377_v32 = vld [vmem:[%s16769_s3 + $0x120] sm:$0xff] }
 0x349   :  { %1254 = vmatpush1.msra.mxu1 %v17385_v34  ;;  %1287 = vmatprep.mubr.f32.mxu1 %v17375_v33  ;;  %v11389_v34 = vld [vmem:[%s16769_s3 + $0x108] sm:$0xff] }
 0x34a   :  { %1329 = vmatprep.subr.mxu0 %v11307_v35  ;;  %1400 = vmatprep.subr.mxu1 %v11313_v37 }
 0x3e9   :  { %v1041_v38 = vpop.f32.mrf.mxu0  ;;  %v1112_v47 = vpop.f32.mrf.mxu1 }
 0x3ea   :  { %v1117_v42 = vadd.f32 %v1041_v38, %v17389_v41  ;;  %v1119_v55 = vadd.f32 %v1112_v47, %v17391_v53  ;;  %v11395_v38 = vld [vmem:[%s16769_s3 + $0x118] sm:$0xff]  ;;  %v11413_v41 = vld [vmem:[%s16769_s3 + $0xe8] sm:$0xff]  ;;  %v11479_v53 = vld [vmem:[%s16769_s3 + $0xb0] sm:$0xff] }
 0x3eb   :  { %v1043_v43 = vpop.f32.mrf.mxu0  ;;  %v1114_v49 = vpop.f32.mrf.mxu1  ;;  %v11443_v47 = vld [vmem:[%s16769_s3 + $0xd8] sm:$0xff] }
 0x3ec   :  { %v9093_v44 = vmul.f32 -1.442695, %v1117_v42  ;;  %v1118_v46 = vadd.f32 %v1043_v43, %v206_v40  ;;  %v1120_v52 = vadd.f32 %v1114_v49, %v319_v51  ;;  %v11407_v40 = vld [vmem:[%s16769_s3 + $0x110] sm:$0xff]  ;;  %v11419_v42 = vld [vmem:[%s16769_s3 + $0xf8] sm:$0xff]  ;;  %v11425_v43 = vld [vmem:[%s16769_s3 + $0xe0] sm:$0xff] }
 0x3ed   :  { %v11455_v49 = vld [vmem:[%s16769_s3 + $0xd0] sm:$0xff]  ;;  %v11467_v51 = vld [vmem:[%s16769_s3 + $0xb8] sm:$0xff] }
 0x3ee   :  { %9505 = vpow2.f32 %v9093_v44  ;;  %v9094_v48 = vmul.f32 -1.442695, %v1118_v46  ;;  %v9095_v56 = vmul.f32 -1.442695, %v1120_v52  ;;  %v11431_v44 = vld [vmem:[%s16769_s3 + $0xf0] sm:$0xff]  ;;  %v11437_v46 = vld [vmem:[%s16769_s3 + $0xc8] sm:$0xff] }
 0x3ef   :  { %v11473_v52 = vld [vmem:[%s16769_s3 + $0xa0] sm:$0xff] }
 0x3f0   :  { %9507 = vpow2.f32 %v9094_v48  ;;  %v11449_v48 = vld [vmem:[%s16769_s3 + $0xc0] sm:$0xff] }
 0x3f1   :  { %9509 = vtanh.f32 %v1119_v55  ;;  %v11485_v55 = vld [vmem:[%s16769_s3 + $0x88] sm:$0xff] }
 0x3f2   :  { %9511 = vpow2.f32 %v9095_v56  ;;  %17394 = vst [vmem:[#allocation8_spill] sm:$0xff] %v11485_v55  ;;  %v11491_v56 = vld [vmem:[%s16769_s3 + $0x98] sm:$0xff] }
 0x3f3   :  { %17395 = vst [vmem:[#allocation9_spill] sm:$0xff] %v11491_v56 }
 0x3fb   :  { %v9506_v57 = vpop.eup %9505 }
 0x3fc   :  { %v1124_v58 = vadd.f32 1.0, %v9506_v57  ;;  %v11497_v57 = vld [vmem:[%s16769_s3 + $0x80] sm:$0xff] }
 0x3fd   :  { %v9508_v12 = vpop.eup %9507  ;;  %17396 = vst [vmem:[#allocation10_spill] sm:$0xff] %v11497_v57 }
 0x3fe   :  { %9513 = vrcp.f32 %v1124_v58  ;;  %v1130_v13 = vadd.f32 1.0, %v9508_v12  ;;  %v9510_v14 = vpop.eup %9509  ;;  %v11503_v58 = vld [vmem:[%s16769_s3 + $0x90] sm:$0xff]  ;;  %v11509_v12 = vld [vmem:[%s16769_s3 + $0x68] sm:$0xff] }
 0x3ff   :  { %v9512_v15 = vpop.eup %9511  ;;  %17397 = vst [vmem:[#allocation11_spill] sm:$0xff] %v11503_v58  ;;  %17398 = vst [vmem:[#allocation12_spill] sm:$0xff] %v11509_v12 }
 0x400   :  { %9515 = vrcp.f32 %v1130_v13  ;;  %v1137_v20 = vadd.f32 1.0, %v9512_v15  ;;  %v11515_v13 = vld [vmem:[%s16769_s3 + $0x78] sm:$0xff]  ;;  %v11527_v15 = vld [vmem:[%s16769_s3 + $0x70] sm:$0xff] }
 0x401   :  { %17399 = vst [vmem:[#allocation13_spill] sm:$0xff] %v11515_v13  ;;  %17401 = vst [vmem:[#allocation15_spill] sm:$0xff] %v11527_v15 }
 0x402   :  { %9517 = vrcp.f32 %v1137_v20  ;;  %v11551_v20 = vld [vmem:[%s16769_s3 + $0x50] sm:$0xff] }
 0x403   :  { %17405 = vst [vmem:[#allocation19_spill] sm:$0xff] %v11551_v20 }
 0x40b   :  { %v9514_v16 = vpop.eup %9513 }
 0x40c   :  { %v1141_v17 = vmul.f32 %v9514_v16, %v9510_v14  ;;  %v11521_v14 = vld [vmem:[%s16769_s3 + $0x60] sm:$0xff]  ;;  %v11533_v16 = vld [vmem:[%s16769_s3 + $0x48] sm:$0xff] }
 0x40d   :  { %v9516_v19 = vpop.eup %9515  ;;  %17400 = vst [vmem:[#allocation14_spill] sm:$0xff] %v11521_v14  ;;  %17402 = vst [vmem:[#allocation16_spill] sm:$0xff] %v11533_v16 }
 0x40e   :  { %v1140_v21 = vmul.f32 %v9516_v19, %v11133_v10  ;;  %v11383_v10 = vld [vmem:[%s16769_s3 + $0x130] sm:$0xff]  ;;  %v11545_v19 = vld [vmem:[%s16769_s3 + $0x40] sm:$0xff] }
 0x40f   :  { %v9518_v23 = vpop.eup %9517  ;;  %17404 = vst [vmem:[#allocation18_spill] sm:$0xff] %v11545_v19 }
 0x410   :  { %v11323_v22 = vadd.f32 %v1141_v17, %v1140_v21  ;;  %v11539_v17 = vld [vmem:[%s16769_s3 + $0x58] sm:$0xff]  ;;  %v11557_v21 = vld [vmem:[%s16769_s3 + $0x28] sm:$0xff] }
 0x411   :  { %17403 = vst [vmem:[#allocation17_spill] sm:$0xff] %v11539_v17  ;;  %17406 = vst [vmem:[#allocation20_spill] sm:$0xff] %v11557_v21 }
 0x412   :  { %9519 = vtanh.f32 %v11323_v22 }
 0x41f   :  { %v9520_v24 = vpop.eup %9519 }
 0x420   :  { %v11326_v25 = vmul.f32 %v9520_v24, %v9518_v23  ;;  %v11563_v23 = vld [vmem:[%s16769_s3 + $0x38] sm:$0xff]  ;;  %v11569_v24 = vld [vmem:[%s16769_s3 + $0x20] sm:$0xff] }
 0x421   :  { %17407 = vst [vmem:[#allocation21_spill] sm:$0xff] %v11563_v23  ;;  %17408 = vst [vmem:[#allocation22_spill] sm:$0xff] %v11569_v24 }
 0x422   :  { %17392 = vst [vmem:[#allocation7_spill] sm:$0xff] %v11326_v25  ;;  %1217 = vmatmul.mubr.f32.vlgmr.msra.gmra.mxu0 %v11326_v25  ;;  %1288 = vmatmul.mubr.f32.vlgmr.msra.gmra.mxu1 %v11326_v25  ;;  %v11575_v25 = vld [vmem:[%s16769_s3 + $0x30] sm:$0xff] }
 0x423   :  { %1330 = vmatpush1.msra.mxu0 %v11143_v11  ;;  %1401 = vmatpush1.msra.mxu1 %v11149_v45  ;;  %17409 = vst [vmem:[#allocation23_spill] sm:$0xff] %v11575_v25 }
 0x424   :  { %1331 = vmatprep.subr.mxu0 %v11155_v61  ;;  %1402 = vmatprep.subr.mxu1 %v11161_v8 }
 0x425   :  { %1332 = vmatpush1.msra.mxu0 %v11167_v1  ;;  %1403 = vmatpush1.msra.mxu1 %v11173_v36 }
 0x426   :  { %1333 = vmatprep.subr.mxu0 %v11179_v7  ;;  %1404 = vmatprep.subr.mxu1 %v11185_v59 }
 0x427   :  { %1334 = vmatpush1.msra.mxu0 %v11191_v2  ;;  %1405 = vmatpush1.msra.mxu1 %v11197_v3 }
 0x428   :  { %1335 = vmatprep.subr.mxu0 %v11203_v18  ;;  %1406 = vmatprep.subr.mxu1 %v11209_v9 }
 0x429   :  { %1336 = vmatpush1.msra.mxu0 %v11215_v62  ;;  %1407 = vmatpush1.msra.mxu1 %v11221_v6 }
 0x42a   :  { %1337 = vmatprep.subr.mxu0 %v11227_v4  ;;  %1408 = vmatprep.subr.mxu1 %v17393_v26 }
 0x42b   :  { %1338 = vmatpush1.msra.mxu0 %v11239_v60  ;;  %1409 = vmatpush1.msra.mxu1 %v11245_v5 }
 0x42c   :  { %1339 = vmatprep.subr.mxu0 %v11251_v0  ;;  %1410 = vmatprep.subr.mxu1 %v11257_v27 }
 0x42d   :  { %1340 = vmatpush1.msra.mxu0 %v11353_v28  ;;  %1411 = vmatpush1.msra.mxu1 %v11359_v29 }
 0x42e   :  { %1341 = vmatprep.subr.mxu0 %v11365_v30  ;;  %1412 = vmatprep.subr.mxu1 %v11371_v31 }
 0x42f   :  { %1342 = vmatpush1.msra.mxu0 %v11377_v32  ;;  %1413 = vmatpush1.msra.mxu1 %v11383_v10 }
 0x430   :  { %1343 = vmatprep.subr.mxu0 %v11389_v34  ;;  %1414 = vmatprep.subr.mxu1 %v11395_v38 }
 0x431   :  { %1344 = vmatpush1.msra.mxu0 %v11401_v39  ;;  %1415 = vmatpush1.msra.mxu1 %v11407_v40 }
 0x432   :  { %1345 = vmatprep.subr.mxu0 %v11413_v41  ;;  %1416 = vmatprep.subr.mxu1 %v11419_v42 }
 0x433   :  { %1346 = vmatpush1.msra.mxu0 %v11425_v43  ;;  %1417 = vmatpush1.msra.mxu1 %v11431_v44 }
 0x434   :  { %1347 = vmatprep.subr.mxu0 %v11437_v46  ;;  %1418 = vmatprep.subr.mxu1 %v11443_v47 }
 0x435   :  { %1348 = vmatpush1.msra.mxu0 %v11449_v48  ;;  %1419 = vmatpush1.msra.mxu1 %v11455_v49 }
 0x436   :  { %1349 = vmatprep.subr.mxu0 %v11461_v50  ;;  %1420 = vmatprep.subr.mxu1 %v11467_v51 }
 0x437   :  { %1350 = vmatpush1.msra.mxu0 %v11473_v52  ;;  %1421 = vmatpush1.msra.mxu1 %v11479_v53 }
 0x438   :  { %1351 = vmatprep.subr.mxu0 %v11485_v55  ;;  %1422 = vmatprep.subr.mxu1 %v11491_v56 }
 0x439   :  { %1352 = vmatpush1.msra.mxu0 %v11497_v57  ;;  %1423 = vmatpush1.msra.mxu1 %v11503_v58  ;;  %v17417_v58 = vld [vmem:[#allocation43_spill] sm:$0xff] }
 0x43a   :  { %1353 = vmatprep.subr.mxu0 %v11509_v12  ;;  %1424 = vmatprep.subr.mxu1 %v11515_v13 }
 0x43b   :  { %1354 = vmatpush1.msra.mxu0 %v11521_v14  ;;  %1425 = vmatpush1.msra.mxu1 %v11527_v15 }
 0x43c   :  { %1355 = vmatprep.subr.mxu0 %v11533_v16  ;;  %1426 = vmatprep.subr.mxu1 %v11539_v17 }
 0x43d   :  { %1356 = vmatpush1.msra.mxu0 %v11545_v19  ;;  %1427 = vmatpush1.msra.mxu1 %v11551_v20 }
 0x43e   :  { %1357 = vmatprep.subr.mxu0 %v11557_v21  ;;  %1428 = vmatprep.subr.mxu1 %v11563_v23  ;;  %v11581_v21 = vld [vmem:[%s16769_s3 + $0x8] sm:$0xff]  ;;  %v11587_v23 = vld [vmem:[%s16769_s3 + $0x18] sm:$0xff] }
 0x43f   :  { %1358 = vmatpush1.msra.mxu0 %v11569_v24  ;;  %1429 = vmatpush1.msra.mxu1 %v11575_v25  ;;  %17410 = vst [vmem:[#allocation24_spill] sm:$0xff] %v11581_v21  ;;  %17411 = vst [vmem:[#allocation25_spill] sm:$0xff] %v11587_v23  ;;  %v11593_v24 = vld [vmem:[%s16769_s3] sm:$0xff]  ;;  %v17414_v25 = vld [vmem:[#allocation44_spill] sm:$0xff] }
 0x440   :  { %1359 = vmatprep.subr.mxu0 %v11581_v21  ;;  %1430 = vmatprep.subr.mxu1 %v11587_v23  ;;  %17412 = vst [vmem:[#allocation5_spill] sm:$0xff] %v11593_v24  ;;  %v11600_v21 = vld [vmem:[%s16769_s3 + $0x10] sm:$0xff]  ;;  %v212_v20 = vadd.f32 %v17414_v25, %v17350_v63 }
 0x441   :  { %1360 = vmatpush1.msra.mxu0 %v11593_v24  ;;  %1393 = vmatprep.mubr.f32.mxu0 %v17375_v33  ;;  %17413 = vst [vmem:[#allocation6_spill] sm:$0xff] %v11600_v21  ;;  %v17415_v24 = vld [vmem:[#allocation42_spill] sm:$0xff] }
 0x442   :  { %1431 = vmatpush1.msra.mxu1 %v11600_v21  ;;  %1464 = vmatprep.mubr.f32.mxu1 %v17375_v33  ;;  %v17416_v33 = vld [vmem:[#allocation45_spill] sm:$0xff] }
 0x443   :  { %1506 = vmatprep.subr.mxu0 %v11307_v35  ;;  %1577 = vmatprep.subr.mxu1 %v11313_v37  ;;  %v325_v12 = vadd.f32 %v17416_v33, %v10969_v54 }
 0x4e2   :  { %v1218_v23 = vpop.f32.mrf.mxu0  ;;  %v1289_v14 = vpop.f32.mrf.mxu1 }
 0x4e3   :  { %v1294_v19 = vadd.f32 %v1218_v23, %v17415_v24  ;;  %v1296_v37 = vadd.f32 %v1289_v14, %v17417_v58  ;;  %v17422_v58 = vld [vmem:[#allocation11_spill] sm:$0xff]  ;;  %v17423_v14 = vld [vmem:[#allocation12_spill] sm:$0xff]  ;;  %v17425_v24 = vld [vmem:[#allocation14_spill] sm:$0xff] }
 0x4e4   :  { %v1220_v17 = vpop.f32.mrf.mxu0  ;;  %v1291_v21 = vpop.f32.mrf.mxu1 }
 0x4e5   :  { %v9096_v16 = vmul.f32 -1.442695, %v1294_v19  ;;  %v1295_v15 = vadd.f32 %v1220_v17, %v212_v20  ;;  %v1297_v35 = vadd.f32 %v1291_v21, %v325_v12  ;;  %v17424_v21 = vld [vmem:[#allocation13_spill] sm:$0xff] }
 0x4e7   :  { %9521 = vpow2.f32 %v9096_v16  ;;  %v9097_v13 = vmul.f32 -1.442695, %v1295_v15  ;;  %v9098_v57 = vmul.f32 -1.442695, %v1297_v35 }
 0x4e9   :  { %9523 = vpow2.f32 %v9097_v13 }
 0x4ea   :  { %9525 = vtanh.f32 %v1296_v37 }
 0x4eb   :  { %9527 = vpow2.f32 %v9098_v57  ;;  %v17421_v57 = vld [vmem:[#allocation10_spill] sm:$0xff] }
 0x4f4   :  { %v9522_v56 = vpop.eup %9521 }
 0x4f5   :  { %v1301_v55 = vadd.f32 1.0, %v9522_v56 }
 0x4f6   :  { %v9524_v25 = vpop.eup %9523 }
 0x4f7   :  { %9529 = vrcp.f32 %v1301_v55  ;;  %v1307_v19 = vadd.f32 1.0, %v9524_v25  ;;  %v9526_v16 = vpop.eup %9525  ;;  %v17420_v55 = vld [vmem:[#allocation9_spill] sm:$0xff]  ;;  %v17426_v25 = vld [vmem:[#allocation15_spill] sm:$0xff] }
 0x4f8   :  { %v9528_v17 = vpop.eup %9527 }
 0x4f9   :  { %9531 = vrcp.f32 %v1307_v19  ;;  %v1314_v23 = vadd.f32 1.0, %v9528_v17  ;;  %v17427_v19 = vld [vmem:[#allocation16_spill] sm:$0xff]  ;;  %v17429_v17 = vld [vmem:[#allocation18_spill] sm:$0xff] }
 0x4fb   :  { %9533 = vrcp.f32 %v1314_v23  ;;  %v17433_v23 = vld [vmem:[#allocation22_spill] sm:$0xff] }
 0x504   :  { %v9530_v15 = vpop.eup %9529 }
 0x505   :  { %v1318_v13 = vmul.f32 %v9530_v15, %v9526_v16  ;;  %v17428_v16 = vld [vmem:[#allocation17_spill] sm:$0xff]  ;;  %v17430_v15 = vld [vmem:[#allocation19_spill] sm:$0xff] }
 0x506   :  { %v9532_v20 = vpop.eup %9531 }
 0x507   :  { %v1317_v33 = vmul.f32 %v9532_v20, %v11323_v22  ;;  %v17419_v22 = vld [vmem:[#allocation8_spill] sm:$0xff]  ;;  %v17432_v20 = vld [vmem:[#allocation21_spill] sm:$0xff] }
 0x508   :  { %v9534_v35 = vpop.eup %9533 }
 0x509   :  { %v11613_v12 = vadd.f32 %v1318_v13, %v1317_v33  ;;  %v17431_v13 = vld [vmem:[#allocation20_spill] sm:$0xff]  ;;  %v17434_v33 = vld [vmem:[#allocation23_spill] sm:$0xff] }
 0x50b   :  { %9535 = vtanh.f32 %v11613_v12 }
 0x518   :  { %v9536_v37 = vpop.eup %9535 }
 0x519   :  { %v11616_v56 = vmul.f32 %v9536_v37, %v9534_v35  ;;  %v17435_v35 = vld [vmem:[#allocation24_spill] sm:$0xff]  ;;  %v17436_v37 = vld [vmem:[#allocation25_spill] sm:$0xff] }
 0x51b   :  { %17418 = vst [vmem:[#allocation36_spill] sm:$0xff] %v11616_v56  ;;  %1394 = vmatmul.mubr.f32.vlgmr.msra.gmra.mxu0 %v11616_v56  ;;  %1465 = vmatmul.mubr.f32.vlgmr.msra.gmra.mxu1 %v11616_v56  ;;  %v17437_v56 = vld [vmem:[#allocation5_spill] sm:$0xff] }
 0x51c   :  { %1507 = vmatpush1.msra.mxu0 %v11143_v11  ;;  %1578 = vmatpush1.msra.mxu1 %v11149_v45 }
 0x51d   :  { %1508 = vmatprep.subr.mxu0 %v11155_v61  ;;  %1579 = vmatprep.subr.mxu1 %v11161_v8 }
 0x51e   :  { %1509 = vmatpush1.msra.mxu0 %v11167_v1  ;;  %1580 = vmatpush1.msra.mxu1 %v11173_v36 }
 0x51f   :  { %1510 = vmatprep.subr.mxu0 %v11179_v7  ;;  %1581 = vmatprep.subr.mxu1 %v11185_v59 }
 0x520   :  { %1511 = vmatpush1.msra.mxu0 %v11191_v2  ;;  %1582 = vmatpush1.msra.mxu1 %v11197_v3 }
 0x521   :  { %1512 = vmatprep.subr.mxu0 %v11203_v18  ;;  %1583 = vmatprep.subr.mxu1 %v11209_v9 }
 0x522   :  { %1513 = vmatpush1.msra.mxu0 %v11215_v62  ;;  %1584 = vmatpush1.msra.mxu1 %v11221_v6 }
 0x523   :  { %1514 = vmatprep.subr.mxu0 %v11227_v4  ;;  %1585 = vmatprep.subr.mxu1 %v17393_v26 }
 0x524   :  { %1515 = vmatpush1.msra.mxu0 %v11239_v60  ;;  %1586 = vmatpush1.msra.mxu1 %v11245_v5 }
 0x525   :  { %1516 = vmatprep.subr.mxu0 %v11251_v0  ;;  %1587 = vmatprep.subr.mxu1 %v11257_v27 }
 0x526   :  { %1517 = vmatpush1.msra.mxu0 %v11353_v28  ;;  %1588 = vmatpush1.msra.mxu1 %v11359_v29 }
 0x527   :  { %1518 = vmatprep.subr.mxu0 %v11365_v30  ;;  %1589 = vmatprep.subr.mxu1 %v11371_v31 }
 0x528   :  { %1519 = vmatpush1.msra.mxu0 %v11377_v32  ;;  %1590 = vmatpush1.msra.mxu1 %v11383_v10 }
 0x529   :  { %1520 = vmatprep.subr.mxu0 %v11389_v34  ;;  %1591 = vmatprep.subr.mxu1 %v11395_v38 }
 0x52a   :  { %1521 = vmatpush1.msra.mxu0 %v11401_v39  ;;  %1592 = vmatpush1.msra.mxu1 %v11407_v40 }
 0x52b   :  { %1522 = vmatprep.subr.mxu0 %v11413_v41  ;;  %1593 = vmatprep.subr.mxu1 %v11419_v42 }
 0x52c   :  { %1523 = vmatpush1.msra.mxu0 %v11425_v43  ;;  %1594 = vmatpush1.msra.mxu1 %v11431_v44 }
 0x52d   :  { %1524 = vmatprep.subr.mxu0 %v11437_v46  ;;  %1595 = vmatprep.subr.mxu1 %v11443_v47 }
 0x52e   :  { %1525 = vmatpush1.msra.mxu0 %v11449_v48  ;;  %1596 = vmatpush1.msra.mxu1 %v11455_v49 }
 0x52f   :  { %1526 = vmatprep.subr.mxu0 %v11461_v50  ;;  %1597 = vmatprep.subr.mxu1 %v11467_v51 }
 0x530   :  { %1527 = vmatpush1.msra.mxu0 %v11473_v52  ;;  %1598 = vmatpush1.msra.mxu1 %v11479_v53 }
 0x531   :  { %1528 = vmatprep.subr.mxu0 %v17419_v22  ;;  %1599 = vmatprep.subr.mxu1 %v17420_v55 }
 0x532   :  { %1529 = vmatpush1.msra.mxu0 %v17421_v57  ;;  %1600 = vmatpush1.msra.mxu1 %v17422_v58  ;;  %v17445_v58 = vld [vmem:[#allocation47_spill] sm:$0xff] }
 0x533   :  { %1530 = vmatprep.subr.mxu0 %v17423_v14  ;;  %1601 = vmatprep.subr.mxu1 %v17424_v21 }
 0x534   :  { %1531 = vmatpush1.msra.mxu0 %v17425_v24  ;;  %1602 = vmatpush1.msra.mxu1 %v17426_v25 }
 0x535   :  { %1532 = vmatprep.subr.mxu0 %v17427_v19  ;;  %1603 = vmatprep.subr.mxu1 %v17428_v16  ;;  %v17438_v19 = vmov 0.0   ;;  %v17439_v16 = vld [vmem:[#allocation6_spill] sm:$0xff] }
 0x536   :  { %1533 = vmatpush1.msra.mxu0 %v17429_v17  ;;  %1604 = vmatpush1.msra.mxu1 %v17430_v15  ;;  %v17440_v15 = vld [vmem:[#allocation33_spill] sm:$0xff]  ;;  %v17443_v17 = vld [vmem:[#allocation46_spill] sm:$0xff] }
 0x537   :  { %1534 = vmatprep.subr.mxu0 %v17431_v13  ;;  %1605 = vmatprep.subr.mxu1 %v17432_v20  ;;  %v17441_v13 = vld [vmem:[#allocation31_spill] sm:$0xff] }
 0x538   :  { %1535 = vmatpush1.msra.mxu0 %v17433_v23  ;;  %1606 = vmatpush1.msra.mxu1 %v17434_v33  ;;  %v17442_v23 = vld [vmem:[#allocation48_spill] sm:$0xff] }
 0x539   :  { %1536 = vmatprep.subr.mxu0 %v17435_v35  ;;  %1607 = vmatprep.subr.mxu1 %v17436_v37  ;;  %v218_v33 = vadd.f32 %v17442_v23, %v17350_v63 }
 0x53a   :  { %1537 = vmatpush1.msra.mxu0 %v17437_v56  ;;  %1570 = vmatprep.mubr.f32.mxu0 %v17438_v19 }
 0x53b   :  { %1608 = vmatpush1.msra.mxu1 %v17439_v16  ;;  %1641 = vmatprep.mubr.f32.mxu1 %v17438_v19  ;;  %v17444_v19 = vld [vmem:[#allocation49_spill] sm:$0xff] }
 0x53c   :  { %1683 = vmatprep.subr.mxu0 %v17440_v15  ;;  %1754 = vmatprep.subr.mxu1 %v17441_v13  ;;  %v331_v14 = vadd.f32 %v17444_v19, %v10969_v54 }
 0x5db   :  { %v1395_v20 = vpop.f32.mrf.mxu0  ;;  %v1466_v56 = vpop.f32.mrf.mxu1 }
 0x5dc   :  { %v1471_v35 = vadd.f32 %v1395_v20, %v17443_v17  ;;  %v1473_v13 = vadd.f32 %v1466_v56, %v17445_v58 }
 0x5dd   :  { %v1397_v25 = vpop.f32.mrf.mxu0  ;;  %v1468_v16 = vpop.f32.mrf.mxu1 }
 0x5de   :  { %v9099_v37 = vmul.f32 -1.442695, %v1471_v35  ;;  %v1472_v24 = vadd.f32 %v1397_v25, %v218_v33  ;;  %v1474_v15 = vadd.f32 %v1468_v16, %v331_v14 }
 0x5e0   :  { %9537 = vpow2.f32 %v9099_v37  ;;  %v9100_v21 = vmul.f32 -1.442695, %v1472_v24  ;;  %v9101_v57 = vmul.f32 -1.442695, %v1474_v15 }
 0x5e2   :  { %9539 = vpow2.f32 %v9100_v21 }
 0x5e3   :  { %9541 = vtanh.f32 %v1473_v13 }
 0x5e4   :  { %9543 = vpow2.f32 %v9101_v57 }
 0x5ed   :  { %v9538_v55 = vpop.eup %9537 }
 0x5ee   :  { %v1478_v22 = vadd.f32 1.0, %v9538_v55 }
 0x5ef   :  { %v9540_v23 = vpop.eup %9539 }
 0x5f0   :  { %9545 = vrcp.f32 %v1478_v22  ;;  %v1484_v17 = vadd.f32 1.0, %v9540_v23  ;;  %v9542_v25 = vpop.eup %9541 }
 0x5f1   :  { %v9544_v20 = vpop.eup %9543 }
 0x5f2   :  { %9547 = vrcp.f32 %v1484_v17  ;;  %v1491_v35 = vadd.f32 1.0, %v9544_v20 }
 0x5f4   :  { %9549 = vrcp.f32 %v1491_v35  ;;  %v1925_v35 = vld [vmem:[%s16771_s5 + $0x1f0] sm:$0xff] }
 0x5fd   :  { %v9546_v24 = vpop.eup %9545 }
 0x5fe   :  { %v1495_v21 = vmul.f32 %v9546_v24, %v9542_v25 }
 0x5ff   :  { %v9548_v33 = vpop.eup %9547 }
 0x600   :  { %v1494_v19 = vmul.f32 %v9548_v33, %v11613_v12  ;;  %v1923_v33 = vld [vmem:[%s16771_s5 + $0x1e0] sm:$0xff] }
 0x601   :  { %v9550_v56 = vpop.eup %9549 }
 0x602   :  { %v11693_v14 = vadd.f32 %v1495_v21, %v1494_v19  ;;  %v1920_v19 = vld [vmem:[%s16771_s5 + $0x1c8] sm:$0xff] }
 0x604   :  { %9551 = vtanh.f32 %v11693_v14 }
 0x611   :  { %v9552_v55 = vpop.eup %9551 }
 0x612   :  { %v11696_v58 = vmul.f32 %v9552_v55, %v9550_v56  ;;  %v1919_v56 = vld [vmem:[%s16771_s5 + $0x1c0] sm:$0xff]  ;;  %v1921_v55 = vld [vmem:[%s16771_s5 + $0x1d0] sm:$0xff] }
 0x614   :  { %1571 = vmatmul.mubr.f32.vlgmr.msra.gmra.mxu0 %v11696_v58  ;;  %1642 = vmatmul.mubr.f32.vlgmr.msra.gmra.mxu1 %v11696_v58 }
 0x615   :  { %1684 = vmatpush1.msra.mxu0 %v11143_v11  ;;  %1755 = vmatpush1.msra.mxu1 %v11149_v45  ;;  %v17447_v11 = vld [vmem:[#allocation9_spill] sm:$0xff]  ;;  %v17448_v45 = vld [vmem:[#allocation10_spill] sm:$0xff] }
 0x616   :  { %1685 = vmatprep.subr.mxu0 %v11155_v61  ;;  %1756 = vmatprep.subr.mxu1 %v11161_v8  ;;  %v17449_v61 = vld [vmem:[#allocation11_spill] sm:$0xff]  ;;  %v17450_v8 = vld [vmem:[#allocation12_spill] sm:$0xff] }
 0x617   :  { %1686 = vmatpush1.msra.mxu0 %v11167_v1  ;;  %1757 = vmatpush1.msra.mxu1 %v11173_v36  ;;  %v17451_v1 = vld [vmem:[#allocation13_spill] sm:$0xff]  ;;  %v17452_v36 = vld [vmem:[#allocation14_spill] sm:$0xff] }
 0x618   :  { %1687 = vmatprep.subr.mxu0 %v11179_v7  ;;  %1758 = vmatprep.subr.mxu1 %v11185_v59  ;;  %v17453_v7 = vld [vmem:[#allocation15_spill] sm:$0xff]  ;;  %v17454_v59 = vld [vmem:[#allocation16_spill] sm:$0xff] }
 0x619   :  { %1688 = vmatpush1.msra.mxu0 %v11191_v2  ;;  %1759 = vmatpush1.msra.mxu1 %v11197_v3  ;;  %v17455_v2 = vld [vmem:[#allocation17_spill] sm:$0xff]  ;;  %v17456_v3 = vld [vmem:[#allocation18_spill] sm:$0xff] }
 0x61a   :  { %1689 = vmatprep.subr.mxu0 %v11203_v18  ;;  %1760 = vmatprep.subr.mxu1 %v11209_v9  ;;  %v17457_v18 = vld [vmem:[#allocation19_spill] sm:$0xff]  ;;  %v17458_v9 = vld [vmem:[#allocation20_spill] sm:$0xff] }
 0x61b   :  { %1690 = vmatpush1.msra.mxu0 %v11215_v62  ;;  %1761 = vmatpush1.msra.mxu1 %v11221_v6  ;;  %v17459_v62 = vld [vmem:[#allocation21_spill] sm:$0xff]  ;;  %v17460_v6 = vld [vmem:[#allocation22_spill] sm:$0xff] }
 0x61c   :  { %1691 = vmatprep.subr.mxu0 %v11227_v4  ;;  %1762 = vmatprep.subr.mxu1 %v17393_v26  ;;  %v17461_v4 = vld [vmem:[#allocation23_spill] sm:$0xff]  ;;  %v17465_v26 = vld [vmem:[#allocation6_spill] sm:$0xff] }
 0x61d   :  { %1692 = vmatpush1.msra.mxu0 %v11239_v60  ;;  %1763 = vmatpush1.msra.mxu1 %v11245_v5  ;;  %v17463_v60 = vld [vmem:[#allocation25_spill] sm:$0xff] }
 0x61e   :  { %1693 = vmatprep.subr.mxu0 %v11251_v0  ;;  %1764 = vmatprep.subr.mxu1 %v11257_v27  ;;  %v17446_v0 = vld [vmem:[#allocation8_spill] sm:$0xff]  ;;  %v17464_v5 = vld [vmem:[#allocation5_spill] sm:$0xff] }
 0x61f   :  { %1694 = vmatpush1.msra.mxu0 %v11353_v28  ;;  %1765 = vmatpush1.msra.mxu1 %v11359_v29  ;;  %v17462_v27 = vld [vmem:[#allocation24_spill] sm:$0xff]  ;;  %v17466_v28 = vmov 0.0   ;;  %v1924_v29 = vld [vmem:[%s16771_s5 + $0x1e8] sm:$0xff] }
 0x620   :  { %1695 = vmatprep.subr.mxu0 %v11365_v30  ;;  %1766 = vmatprep.subr.mxu1 %v11371_v31  ;;  %v1926_v30 = vld [vmem:[%s16771_s5 + $0x1f8] sm:$0xff] }
 0x621   :  { %1696 = vmatpush1.msra.mxu0 %v11377_v32  ;;  %1767 = vmatpush1.msra.mxu1 %v11383_v10  ;;  %v17467_v32 = vld [vmem:[#allocation52_spill] sm:$0xff] }
 0x622   :  { %1697 = vmatprep.subr.mxu0 %v11389_v34  ;;  %1768 = vmatprep.subr.mxu1 %v11395_v38  ;;  %v224_v10 = vadd.f32 %v17467_v32, %v17350_v63  ;;  %v17468_v34 = vld [vmem:[#allocation50_spill] sm:$0xff]  ;;  %v1897_v32 = vld [vmem:[%s16771_s5 + $0x110] sm:$0xff] }
 0x623   :  { %1698 = vmatpush1.msra.mxu0 %v11401_v39  ;;  %1769 = vmatpush1.msra.mxu1 %v11407_v40 }
 0x624   :  { %1699 = vmatprep.subr.mxu0 %v11413_v41  ;;  %1770 = vmatprep.subr.mxu1 %v11419_v42 }
 0x625   :  { %1700 = vmatpush1.msra.mxu0 %v11425_v43  ;;  %1771 = vmatpush1.msra.mxu1 %v11431_v44 }
 0x626   :  { %1701 = vmatprep.subr.mxu0 %v11437_v46  ;;  %1772 = vmatprep.subr.mxu1 %v11443_v47  ;;  %v17469_v46 = vld [vmem:[#allocation53_spill] sm:$0xff] }
 0x627   :  { %1702 = vmatpush1.msra.mxu0 %v11449_v48  ;;  %1773 = vmatpush1.msra.mxu1 %v11455_v49  ;;  %v337_v47 = vadd.f32 %v17469_v46, %v10969_v54  ;;  %v17470_v49 = vld [vmem:[#allocation51_spill] sm:$0xff]  ;;  %v1886_v46 = vld [vmem:[%s16771_s5 + $0xb8] sm:$0xff] }
 0x628   :  { %1703 = vmatprep.subr.mxu0 %v11461_v50  ;;  %1774 = vmatprep.subr.mxu1 %v11467_v51 }
 0x629   :  { %1704 = vmatpush1.msra.mxu0 %v11473_v52  ;;  %1775 = vmatpush1.msra.mxu1 %v11479_v53 }
 0x62a   :  { %1705 = vmatprep.subr.mxu0 %v17446_v0  ;;  %1776 = vmatprep.subr.mxu1 %v17447_v11  ;;  %v1916_v0 = vld [vmem:[%s16771_s5 + $0x1a8] sm:$0xff]  ;;  %v1918_v11 = vld [vmem:[%s16771_s5 + $0x1b8] sm:$0xff] }
 0x62b   :  { %1706 = vmatpush1.msra.mxu0 %v17448_v45  ;;  %1777 = vmatpush1.msra.mxu1 %v17449_v61  ;;  %v1915_v45 = vld [vmem:[%s16771_s5 + $0x1a0] sm:$0xff]  ;;  %v1917_v61 = vld [vmem:[%s16771_s5 + $0x1b0] sm:$0xff] }
 0x62c   :  { %1707 = vmatprep.subr.mxu0 %v17450_v8  ;;  %1778 = vmatprep.subr.mxu1 %v17451_v1  ;;  %v1912_v8 = vld [vmem:[%s16771_s5 + $0x188] sm:$0xff]  ;;  %v1914_v1 = vld [vmem:[%s16771_s5 + $0x198] sm:$0xff] }
 0x62d   :  { %1708 = vmatpush1.msra.mxu0 %v17452_v36  ;;  %1779 = vmatpush1.msra.mxu1 %v17453_v7  ;;  %v1911_v36 = vld [vmem:[%s16771_s5 + $0x180] sm:$0xff]  ;;  %v1913_v7 = vld [vmem:[%s16771_s5 + $0x190] sm:$0xff] }
 0x62e   :  { %1709 = vmatprep.subr.mxu0 %v17454_v59  ;;  %1780 = vmatprep.subr.mxu1 %v17455_v2  ;;  %v1908_v59 = vld [vmem:[%s16771_s5 + $0x168] sm:$0xff]  ;;  %v1910_v2 = vld [vmem:[%s16771_s5 + $0x178] sm:$0xff] }
 0x62f   :  { %1710 = vmatpush1.msra.mxu0 %v17456_v3  ;;  %1781 = vmatpush1.msra.mxu1 %v17457_v18  ;;  %v1907_v3 = vld [vmem:[%s16771_s5 + $0x160] sm:$0xff]  ;;  %v1909_v18 = vld [vmem:[%s16771_s5 + $0x170] sm:$0xff] }
 0x630   :  { %1711 = vmatprep.subr.mxu0 %v17458_v9  ;;  %1782 = vmatprep.subr.mxu1 %v17459_v62  ;;  %v1904_v9 = vld [vmem:[%s16771_s5 + $0x148] sm:$0xff]  ;;  %v1906_v62 = vld [vmem:[%s16771_s5 + $0x158] sm:$0xff] }
 0x631   :  { %1712 = vmatpush1.msra.mxu0 %v17460_v6  ;;  %1783 = vmatpush1.msra.mxu1 %v17461_v4  ;;  %v1903_v6 = vld [vmem:[%s16771_s5 + $0x140] sm:$0xff]  ;;  %v1905_v4 = vld [vmem:[%s16771_s5 + $0x150] sm:$0xff] }
 0x632   :  { %1713 = vmatprep.subr.mxu0 %v17462_v27  ;;  %1784 = vmatprep.subr.mxu1 %v17463_v60  ;;  %v1900_v27 = vld [vmem:[%s16771_s5 + $0x128] sm:$0xff]  ;;  %v1902_v60 = vld [vmem:[%s16771_s5 + $0x138] sm:$0xff] }
 0x633   :  { %1714 = vmatpush1.msra.mxu0 %v17464_v5  ;;  %1785 = vmatpush1.msra.mxu1 %v17465_v26  ;;  %v1899_v5 = vld [vmem:[%s16771_s5 + $0x120] sm:$0xff]  ;;  %v1901_v26 = vld [vmem:[%s16771_s5 + $0x130] sm:$0xff] }
 0x634   :  { %1747 = vmatprep.mubr.f32.mxu0 %v17466_v28  ;;  %1818 = vmatprep.mubr.f32.mxu1 %v17466_v28 }
 0x635   :  { %1949 = vmatprep.subr.mxu0 %v1924_v29  ;;  %2062 = vmatprep.subr.mxu1 %v1926_v30  ;;  %v1896_v29 = vld [vmem:[%s16771_s5 + $0x108] sm:$0xff]  ;;  %v1898_v30 = vld [vmem:[%s16771_s5 + $0x118] sm:$0xff] }
 0x6d4   :  { %v1572_v31 = vpop.f32.mrf.mxu0  ;;  %v1643_v42 = vpop.f32.mrf.mxu1 }
 0x6d5   :  { %v1648_v38 = vadd.f32 %v1572_v31, %v17468_v34  ;;  %v1650_v50 = vadd.f32 %v1643_v42, %v17470_v49  ;;  %v1895_v31 = vld [vmem:[%s16771_s5 + $0x100] sm:$0xff]  ;;  %v1894_v34 = vld [vmem:[%s16771_s5 + $0xf8] sm:$0xff]  ;;  %v1880_v49 = vld [vmem:[%s16771_s5 + $0x88] sm:$0xff] }
 0x6d6   :  { %v1574_v39 = vpop.f32.mrf.mxu0  ;;  %v1645_v44 = vpop.f32.mrf.mxu1  ;;  %v1887_v42 = vld [vmem:[%s16771_s5 + $0xc0] sm:$0xff] }
 0x6d7   :  { %v9102_v40 = vmul.f32 -1.442695, %v1648_v38  ;;  %v1649_v41 = vadd.f32 %v1574_v39, %v224_v10  ;;  %v1651_v48 = vadd.f32 %v1645_v44, %v337_v47  ;;  %v1892_v10 = vld [vmem:[%s16771_s5 + $0xe8] sm:$0xff]  ;;  %v1891_v38 = vld [vmem:[%s16771_s5 + $0xe0] sm:$0xff]  ;;  %v1893_v39 = vld [vmem:[%s16771_s5 + $0xf0] sm:$0xff] }
 0x6d8   :  { %v1884_v44 = vld [vmem:[%s16771_s5 + $0xa8] sm:$0xff]  ;;  %v1883_v47 = vld [vmem:[%s16771_s5 + $0xa0] sm:$0xff] }
 0x6d9   :  { %9553 = vpow2.f32 %v9102_v40  ;;  %v9103_v43 = vmul.f32 -1.442695, %v1649_v41  ;;  %v9104_v51 = vmul.f32 -1.442695, %v1651_v48  ;;  %v1888_v40 = vld [vmem:[%s16771_s5 + $0xc8] sm:$0xff]  ;;  %v1890_v41 = vld [vmem:[%s16771_s5 + $0xd8] sm:$0xff] }
 0x6da   :  { %v1885_v48 = vld [vmem:[%s16771_s5 + $0xb0] sm:$0xff] }
 0x6db   :  { %9555 = vpow2.f32 %v9103_v43  ;;  %v1889_v43 = vld [vmem:[%s16771_s5 + $0xd0] sm:$0xff] }
 0x6dc   :  { %9557 = vtanh.f32 %v1650_v50  ;;  %v1882_v50 = vld [vmem:[%s16771_s5 + $0x98] sm:$0xff] }
 0x6dd   :  { %9559 = vpow2.f32 %v9104_v51  ;;  %v1879_v51 = vld [vmem:[%s16771_s5 + $0x80] sm:$0xff] }
 0x6e6   :  { %v9554_v52 = vpop.eup %9553 }
 0x6e7   :  { %v1655_v53 = vadd.f32 1.0, %v9554_v52  ;;  %v1881_v52 = vld [vmem:[%s16771_s5 + $0x90] sm:$0xff] }
 0x6e8   :  { %v9556_v12 = vpop.eup %9555 }
 0x6e9   :  { %9561 = vrcp.f32 %v1655_v53  ;;  %v1661_v22 = vadd.f32 1.0, %v9556_v12  ;;  %v9558_v57 = vpop.eup %9557  ;;  %v1876_v53 = vld [vmem:[%s16771_s5 + $0x68] sm:$0xff]  ;;  %v1878_v12 = vld [vmem:[%s16771_s5 + $0x78] sm:$0xff] }
 0x6ea   :  { %v9560_v16 = vpop.eup %9559 }
 0x6eb   :  { %9563 = vrcp.f32 %v1661_v22  ;;  %v1668_v23 = vadd.f32 1.0, %v9560_v16  ;;  %v1875_v22 = vld [vmem:[%s16771_s5 + $0x60] sm:$0xff]  ;;  %v1872_v16 = vld [vmem:[%s16771_s5 + $0x48] sm:$0xff] }
 0x6ed   :  { %9565 = vrcp.f32 %v1668_v23  ;;  %v1868_v23 = vld [vmem:[%s16771_s5 + $0x28] sm:$0xff] }
 0x6f6   :  { %v9562_v37 = vpop.eup %9561 }
 0x6f7   :  { %v1672_v15 = vmul.f32 %v9562_v37, %v9558_v57  ;;  %v1877_v57 = vld [vmem:[%s16771_s5 + $0x70] sm:$0xff]  ;;  %v1874_v37 = vld [vmem:[%s16771_s5 + $0x58] sm:$0xff] }
 0x6f8   :  { %v9564_v13 = vpop.eup %9563 }
 0x6f9   :  { %v1671_v17 = vmul.f32 %v9564_v13, %v11693_v14  ;;  %v1922_v14 = vld [vmem:[%s16771_s5 + $0x1d8] sm:$0xff]  ;;  %v1873_v13 = vld [vmem:[%s16771_s5 + $0x50] sm:$0xff] }
 0x6fa   :  { %v9566_v20 = vpop.eup %9565 }
 0x6fb   :  { %v11777_v25 = vadd.f32 %v1672_v15, %v1671_v17  ;;  %v1871_v15 = vld [vmem:[%s16771_s5 + $0x40] sm:$0xff]  ;;  %v1870_v17 = vld [vmem:[%s16771_s5 + $0x38] sm:$0xff] }
 0x6fd   :  { %9567 = vtanh.f32 %v11777_v25 }
 0x70a   :  { %v9568_v24 = vpop.eup %9567 }
 0x70b   :  { %v11780_v21 = vmul.f32 %v9568_v24, %v9566_v20  ;;  %v1867_v20 = vld [vmem:[%s16771_s5 + $0x20] sm:$0xff]  ;;  %v1869_v24 = vld [vmem:[%s16771_s5 + $0x30] sm:$0xff] }
 0x70d   :  { %1748 = vmatmul.mubr.f32.vlgmr.msra.gmra.mxu0 %v11780_v21  ;;  %1819 = vmatmul.mubr.f32.vlgmr.msra.gmra.mxu1 %v11780_v21 }
 0x70e   :  { %1950 = vmatpush1.msra.mxu0 %v1923_v33  ;;  %2063 = vmatpush1.msra.mxu1 %v1925_v35  ;;  %v1864_v33 = vld [vmem:[%s16771_s5 + $0x8] sm:$0xff]  ;;  %v1866_v35 = vld [vmem:[%s16771_s5 + $0x18] sm:$0xff] }
 0x70f   :  { %1951 = vmatprep.subr.mxu0 %v1920_v19  ;;  %2064 = vmatprep.subr.mxu1 %v1922_v14  ;;  %v1863_v19 = vld [vmem:[%s16771_s5] sm:$0xff]  ;;  %v1865_v14 = vld [vmem:[%s16771_s5 + $0x10] sm:$0xff] }
 0x710   :  { %1952 = vmatpush1.msra.mxu0 %v1919_v56  ;;  %2065 = vmatpush1.msra.mxu1 %v1921_v55  ;;  %v17471_v56 = vld [vmem:[#allocation61_spill] sm:$0xff]  ;;  %v17472_v55 = vld [vmem:[#allocation58_spill] sm:$0xff] }
 0x711   :  { %1953 = vmatprep.subr.mxu0 %v1916_v0  ;;  %2066 = vmatprep.subr.mxu1 %v1918_v11  ;;  %v17473_v0 = vld [vmem:[#allocation32_spill] sm:$0xff]  ;;  %v17474_v11 = vld [vmem:[#allocation7_spill] sm:$0xff] }
 0x712   :  { %1954 = vmatpush1.msra.mxu0 %v1915_v45  ;;  %2067 = vmatpush1.msra.mxu1 %v1917_v61  ;;  %v17475_v45 = vld [vmem:[#allocation36_spill] sm:$0xff]  ;;  %v12003_v61 = vld [vmem:[%s16772_s6 + $0x1e8] sm:$0xff] }
 0x713   :  { %1955 = vmatprep.subr.mxu0 %v1912_v8  ;;  %2068 = vmatprep.subr.mxu1 %v1914_v1  ;;  %17476 = vst [vmem:[#allocation34_spill] sm:$0xff] %v12003_v61  ;;  %v12020_v8 = vld [vmem:[%s16772_s6 + $0x1f0] sm:$0xff]  ;;  %v12027_v1 = vld [vmem:[%s16772_s6 + $0x1c8] sm:$0xff] }
 0x714   :  { %1956 = vmatpush1.msra.mxu0 %v1911_v36  ;;  %2069 = vmatpush1.msra.mxu1 %v1913_v7  ;;  %v12032_v36 = vld [vmem:[%s16772_s6 + $0x1d8] sm:$0xff]  ;;  %v12039_v7 = vld [vmem:[%s16772_s6 + $0x1c0] sm:$0xff] }
 0x715   :  { %1957 = vmatprep.subr.mxu0 %v1908_v59  ;;  %2070 = vmatprep.subr.mxu1 %v1910_v2  ;;  %v12044_v59 = vld [vmem:[%s16772_s6 + $0x1d0] sm:$0xff]  ;;  %v12051_v2 = vld [vmem:[%s16772_s6 + $0x1a8] sm:$0xff] }
 0x716   :  { %1958 = vmatpush1.msra.mxu0 %v1907_v3  ;;  %2071 = vmatpush1.msra.mxu1 %v1909_v18  ;;  %v12056_v3 = vld [vmem:[%s16772_s6 + $0x1b8] sm:$0xff]  ;;  %v12063_v18 = vld [vmem:[%s16772_s6 + $0x1a0] sm:$0xff] }
 0x717   :  { %1959 = vmatprep.subr.mxu0 %v1904_v9  ;;  %2072 = vmatprep.subr.mxu1 %v1906_v62  ;;  %v12068_v9 = vld [vmem:[%s16772_s6 + $0x1b0] sm:$0xff]  ;;  %v12075_v62 = vld [vmem:[%s16772_s6 + $0x188] sm:$0xff] }
 0x718   :  { %1960 = vmatpush1.msra.mxu0 %v1903_v6  ;;  %2073 = vmatpush1.msra.mxu1 %v1905_v4  ;;  %v12080_v6 = vld [vmem:[%s16772_s6 + $0x198] sm:$0xff]  ;;  %v12087_v4 = vld [vmem:[%s16772_s6 + $0x180] sm:$0xff] }
 0x719   :  { %1961 = vmatprep.subr.mxu0 %v1900_v27  ;;  %2074 = vmatprep.subr.mxu1 %v1902_v60  ;;  %v12092_v27 = vld [vmem:[%s16772_s6 + $0x190] sm:$0xff]  ;;  %v12099_v60 = vld [vmem:[%s16772_s6 + $0x168] sm:$0xff] }
 0x71a   :  { %1962 = vmatpush1.msra.mxu0 %v1899_v5  ;;  %2075 = vmatpush1.msra.mxu1 %v1901_v26  ;;  %v12104_v5 = vld [vmem:[%s16772_s6 + $0x178] sm:$0xff]  ;;  %v12111_v26 = vld [vmem:[%s16772_s6 + $0x160] sm:$0xff] }
 0x71b   :  { %1963 = vmatprep.subr.mxu0 %v1896_v29  ;;  %2076 = vmatprep.subr.mxu1 %v1898_v30  ;;  %v12116_v29 = vld [vmem:[%s16772_s6 + $0x170] sm:$0xff]  ;;  %v12123_v30 = vld [vmem:[%s16772_s6 + $0x148] sm:$0xff] }
 0x71c   :  { %1964 = vmatpush1.msra.mxu0 %v1895_v31  ;;  %2077 = vmatpush1.msra.mxu1 %v1897_v32  ;;  %v12128_v31 = vld [vmem:[%s16772_s6 + $0x158] sm:$0xff]  ;;  %v12135_v32 = vld [vmem:[%s16772_s6 + $0x140] sm:$0xff] }
 0x71d   :  { %1965 = vmatprep.subr.mxu0 %v1892_v10  ;;  %2078 = vmatprep.subr.mxu1 %v1894_v34  ;;  %v12140_v10 = vld [vmem:[%s16772_s6 + $0x150] sm:$0xff]  ;;  %v12147_v34 = vld [vmem:[%s16772_s6 + $0x128] sm:$0xff] }
 0x71e   :  { %1966 = vmatpush1.msra.mxu0 %v1891_v38  ;;  %2079 = vmatpush1.msra.mxu1 %v1893_v39  ;;  %v12152_v38 = vld [vmem:[%s16772_s6 + $0x138] sm:$0xff]  ;;  %v12159_v39 = vld [vmem:[%s16772_s6 + $0x120] sm:$0xff] }
 0x71f   :  { %1967 = vmatprep.subr.mxu0 %v1888_v40  ;;  %2080 = vmatprep.subr.mxu1 %v1890_v41  ;;  %v12164_v40 = vld [vmem:[%s16772_s6 + $0x130] sm:$0xff]  ;;  %v12171_v41 = vld [vmem:[%s16772_s6 + $0x108] sm:$0xff] }
 0x720   :  { %1968 = vmatpush1.msra.mxu0 %v1887_v42  ;;  %2081 = vmatpush1.msra.mxu1 %v1889_v43  ;;  %v12176_v42 = vld [vmem:[%s16772_s6 + $0x118] sm:$0xff]  ;;  %v12183_v43 = vld [vmem:[%s16772_s6 + $0x100] sm:$0xff] }
 0x721   :  { %1969 = vmatprep.subr.mxu0 %v1884_v44  ;;  %2082 = vmatprep.subr.mxu1 %v1886_v46  ;;  %v12188_v44 = vld [vmem:[%s16772_s6 + $0x110] sm:$0xff]  ;;  %v12195_v46 = vld [vmem:[%s16772_s6 + $0xe8] sm:$0xff] }
 0x722   :  { %1970 = vmatpush1.msra.mxu0 %v1883_v47  ;;  %2083 = vmatpush1.msra.mxu1 %v1885_v48  ;;  %v12200_v47 = vld [vmem:[%s16772_s6 + $0xf8] sm:$0xff]  ;;  %v12207_v48 = vld [vmem:[%s16772_s6 + $0xe0] sm:$0xff] }
 0x723   :  { %1971 = vmatprep.subr.mxu0 %v1880_v49  ;;  %2084 = vmatprep.subr.mxu1 %v1882_v50  ;;  %v12212_v49 = vld [vmem:[%s16772_s6 + $0xf0] sm:$0xff]  ;;  %v12219_v50 = vld [vmem:[%s16772_s6 + $0xc8] sm:$0xff] }
 0x724   :  { %1972 = vmatpush1.msra.mxu0 %v1879_v51  ;;  %2085 = vmatpush1.msra.mxu1 %v1881_v52  ;;  %v12224_v51 = vld [vmem:[%s16772_s6 + $0xd8] sm:$0xff]  ;;  %v12231_v52 = vld [vmem:[%s16772_s6 + $0xc0] sm:$0xff] }
 0x725   :  { %1973 = vmatprep.subr.mxu0 %v1876_v53  ;;  %2086 = vmatprep.subr.mxu1 %v1878_v12  ;;  %v12236_v53 = vld [vmem:[%s16772_s6 + $0xd0] sm:$0xff]  ;;  %v12243_v12 = vld [vmem:[%s16772_s6 + $0xa8] sm:$0xff] }
 0x726   :  { %1974 = vmatpush1.msra.mxu0 %v1875_v22  ;;  %2087 = vmatpush1.msra.mxu1 %v1877_v57  ;;  %v12248_v22 = vld [vmem:[%s16772_s6 + $0xb8] sm:$0xff]  ;;  %v12255_v57 = vld [vmem:[%s16772_s6 + $0xa0] sm:$0xff] }
 0x727   :  { %1975 = vmatprep.subr.mxu0 %v1872_v16  ;;  %2088 = vmatprep.subr.mxu1 %v1874_v37  ;;  %v12260_v16 = vld [vmem:[%s16772_s6 + $0xb0] sm:$0xff]  ;;  %v12267_v37 = vld [vmem:[%s16772_s6 + $0x88] sm:$0xff] }
 0x728   :  { %1976 = vmatpush1.msra.mxu0 %v1871_v15  ;;  %2089 = vmatpush1.msra.mxu1 %v1873_v13  ;;  %17478 = vst [vmem:[#allocation35_spill] sm:$0xff] %v12260_v16  ;;  %17479 = vst [vmem:[#allocation26_spill] sm:$0xff] %v12267_v37  ;;  %v12272_v15 = vld [vmem:[%s16772_s6 + $0x98] sm:$0xff]  ;;  %v12279_v13 = vld [vmem:[%s16772_s6 + $0x80] sm:$0xff] }
 0x729   :  { %1977 = vmatprep.subr.mxu0 %v1868_v23  ;;  %2090 = vmatprep.subr.mxu1 %v1870_v17  ;;  %17480 = vst [vmem:[#allocation40_spill] sm:$0xff] %v12272_v15  ;;  %17481 = vst [vmem:[#allocation38_spill] sm:$0xff] %v12279_v13  ;;  %v12284_v23 = vld [vmem:[%s16772_s6 + $0x90] sm:$0xff]  ;;  %v12291_v17 = vld [vmem:[%s16772_s6 + $0x68] sm:$0xff] }
 0x72a   :  { %1978 = vmatpush1.msra.mxu0 %v1867_v20  ;;  %2091 = vmatpush1.msra.mxu1 %v1869_v24  ;;  %17482 = vst [vmem:[#allocation41_spill] sm:$0xff] %v12284_v23  ;;  %17483 = vst [vmem:[#allocation39_spill] sm:$0xff] %v12291_v17  ;;  %v12296_v20 = vld [vmem:[%s16772_s6 + $0x78] sm:$0xff]  ;;  %v12303_v24 = vld [vmem:[%s16772_s6 + $0x60] sm:$0xff] }
 0x72b   :  { %1979 = vmatprep.subr.mxu0 %v1864_v33  ;;  %2092 = vmatprep.subr.mxu1 %v1866_v35  ;;  %17484 = vst [vmem:[#allocation30_spill] sm:$0xff] %v12296_v20  ;;  %17485 = vst [vmem:[#allocation44_spill] sm:$0xff] %v12303_v24  ;;  %v12308_v33 = vld [vmem:[%s16772_s6 + $0x70] sm:$0xff]  ;;  %v12315_v35 = vld [vmem:[%s16772_s6 + $0x48] sm:$0xff] }
 0x72c   :  { %1980 = vmatpush1.msra.mxu0 %v1863_v19  ;;  %2013 = vmatprep.mubr.f32.mxu0 %v17466_v28  ;;  %17486 = vst [vmem:[#allocation42_spill] sm:$0xff] %v12308_v33  ;;  %17487 = vst [vmem:[#allocation45_spill] sm:$0xff] %v12315_v35  ;;  %v12320_v19 = vld [vmem:[%s16772_s6 + $0x58] sm:$0xff] }
 0x72d   :  { %2093 = vmatpush1.msra.mxu1 %v1865_v14  ;;  %2126 = vmatprep.mubr.f32.mxu1 %v17466_v28  ;;  %17488 = vst [vmem:[#allocation43_spill] sm:$0xff] %v12320_v19  ;;  %v12327_v14 = vld [vmem:[%s16772_s6 + $0x40] sm:$0xff] }
 0x72e   :  { %2014 = vmatmul.mubr.f32.vlgmr.msra.gmra.mxu0 %v17471_v56  ;;  %2127 = vmatmul.mubr.f32.vlgmr.msra.gmra.mxu1 %v17471_v56  ;;  %17489 = vst [vmem:[#allocation33_spill] sm:$0xff] %v12327_v14  ;;  %v12332_v56 = vld [vmem:[%s16772_s6 + $0x50] sm:$0xff] }
 0x72f   :  { %2019 = vmatprep.mubr.f32.mxu0 %v17466_v28  ;;  %2132 = vmatprep.mubr.f32.mxu1 %v17466_v28  ;;  %17490 = vst [vmem:[#allocation31_spill] sm:$0xff] %v12332_v56 }
 0x730   :  { %2275 = vmatprep.subr.mxu0 %v12003_v61 }
 0x732   :  { %2020 = vmatmul.mubr.f32.gmra.mxu0 %v17472_v55  ;;  %2133 = vmatmul.mubr.f32.gmra.mxu1 %v17472_v55  ;;  %v12339_v55 = vld [vmem:[%s16772_s6 + $0x28] sm:$0xff] }
 0x733   :  { %2025 = vmatprep.mubr.f32.mxu0 %v17466_v28  ;;  %2138 = vmatprep.mubr.f32.mxu1 %v17466_v28  ;;  %17491 = vst [vmem:[#allocation48_spill] sm:$0xff] %v12339_v55 }
 0x736   :  { %2026 = vmatmul.mubr.f32.gmra.mxu0 %v17473_v0  ;;  %2139 = vmatmul.mubr.f32.gmra.mxu1 %v17473_v0  ;;  %v12344_v0 = vld [vmem:[%s16772_s6 + $0x38] sm:$0xff] }
 0x737   :  { %2031 = vmatprep.mubr.f32.mxu0 %v17466_v28  ;;  %2144 = vmatprep.mubr.f32.mxu1 %v17466_v28  ;;  %17492 = vst [vmem:[#allocation46_spill] sm:$0xff] %v12344_v0 }
 0x73a   :  { %2032 = vmatmul.mubr.f32.gmra.mxu0 %v17474_v11  ;;  %2145 = vmatmul.mubr.f32.gmra.mxu1 %v17474_v11  ;;  %v12351_v11 = vld [vmem:[%s16772_s6 + $0x20] sm:$0xff] }
 0x73b   :  { %2037 = vmatprep.mubr.f32.mxu0 %v17466_v28  ;;  %2150 = vmatprep.mubr.f32.mxu1 %v17466_v28  ;;  %17493 = vst [vmem:[#allocation49_spill] sm:$0xff] %v12351_v11 }
 0x73e   :  { %2038 = vmatmul.mubr.f32.gmra.mxu0 %v17475_v45  ;;  %2151 = vmatmul.mubr.f32.gmra.mxu1 %v17475_v45  ;;  %v12356_v45 = vld [vmem:[%s16772_s6 + $0x30] sm:$0xff] }
 0x73f   :  { %2043 = vmatprep.mubr.f32.mxu0 %v17466_v28  ;;  %2156 = vmatprep.mubr.f32.mxu1 %v17466_v28  ;;  %17494 = vst [vmem:[#allocation47_spill] sm:$0xff] %v12356_v45 }
 0x742   :  { %2044 = vmatmul.mubr.f32.gmra.mxu0 %v11696_v58  ;;  %2157 = vmatmul.mubr.f32.gmra.mxu1 %v11696_v58  ;;  %v12008_v58 = vld [vmem:[%s16772_s6 + $0x1f8] sm:$0xff] }
 0x743   :  { %2049 = vmatprep.mubr.f32.mxu0 %v17466_v28  ;;  %2162 = vmatprep.mubr.f32.mxu1 %v17466_v28  ;;  %17477 = vst [vmem:[#allocation37_spill] sm:$0xff] %v12008_v58 }
 0x744   :  { %2346 = vmatprep.subr.mxu1 %v12008_v58 }
 0x745   :  { %2347 = vmatpush1.msra.mxu1 %v12020_v8 }
 0x746   :  { %2050 = vmatmul.mubr.f32.gmra.mxu0 %v11780_v21  ;;  %2163 = vmatmul.mubr.f32.gmra.mxu1 %v11780_v21  ;;  %v12015_v21 = vld [vmem:[%s16772_s6 + $0x1e0] sm:$0xff] }
 0x747   :  { %2055 = vmatprep.mubr.f32.mxu0 %v17466_v28  ;;  %2168 = vmatprep.mubr.f32.mxu1 %v17466_v28 }
 0x748   :  { %2276 = vmatpush1.msra.mxu0 %v12015_v21  ;;  %2348 = vmatprep.subr.mxu1 %v12032_v36 }
 0x749   :  { %2277 = vmatprep.subr.mxu0 %v12027_v1  ;;  %2349 = vmatpush1.msra.mxu1 %v12044_v59 }
 0x74a   :  { %2278 = vmatpush1.msra.mxu0 %v12039_v7  ;;  %2350 = vmatprep.subr.mxu1 %v12056_v3 }
 0x74b   :  { %2279 = vmatprep.subr.mxu0 %v12051_v2  ;;  %2351 = vmatpush1.msra.mxu1 %v12068_v9 }
 0x74c   :  { %2280 = vmatpush1.msra.mxu0 %v12063_v18  ;;  %2352 = vmatprep.subr.mxu1 %v12080_v6 }
 0x74d   :  { %2281 = vmatprep.subr.mxu0 %v12075_v62  ;;  %2353 = vmatpush1.msra.mxu1 %v12092_v27 }
 0x74e   :  { %2282 = vmatpush1.msra.mxu0 %v12087_v4  ;;  %2354 = vmatprep.subr.mxu1 %v12104_v5 }
 0x74f   :  { %2283 = vmatprep.subr.mxu0 %v12099_v60  ;;  %2355 = vmatpush1.msra.mxu1 %v12116_v29 }
 0x750   :  { %2284 = vmatpush1.msra.mxu0 %v12111_v26  ;;  %2356 = vmatprep.subr.mxu1 %v12128_v31 }
 0x751   :  { %2285 = vmatprep.subr.mxu0 %v12123_v30  ;;  %2357 = vmatpush1.msra.mxu1 %v12140_v10 }
 0x752   :  { %2286 = vmatpush1.msra.mxu0 %v12135_v32  ;;  %2358 = vmatprep.subr.mxu1 %v12152_v38 }
 0x753   :  { %2287 = vmatprep.subr.mxu0 %v12147_v34  ;;  %2359 = vmatpush1.msra.mxu1 %v12164_v40 }
 0x754   :  { %2288 = vmatpush1.msra.mxu0 %v12159_v39  ;;  %2360 = vmatprep.subr.mxu1 %v12176_v42 }
 0x755   :  { %2289 = vmatprep.subr.mxu0 %v12171_v41  ;;  %2361 = vmatpush1.msra.mxu1 %v12188_v44 }
 0x756   :  { %2290 = vmatpush1.msra.mxu0 %v12183_v43  ;;  %2362 = vmatprep.subr.mxu1 %v12200_v47 }
 0x757   :  { %2291 = vmatprep.subr.mxu0 %v12195_v46  ;;  %2363 = vmatpush1.msra.mxu1 %v12212_v49 }
 0x758   :  { %2292 = vmatpush1.msra.mxu0 %v12207_v48  ;;  %2364 = vmatprep.subr.mxu1 %v12224_v51 }
 0x759   :  { %2293 = vmatprep.subr.mxu0 %v12219_v50  ;;  %2365 = vmatpush1.msra.mxu1 %v12236_v53 }
 0x75a   :  { %2294 = vmatpush1.msra.mxu0 %v12231_v52  ;;  %2366 = vmatprep.subr.mxu1 %v12248_v22 }
 0x75b   :  { %2295 = vmatprep.subr.mxu0 %v12243_v12  ;;  %2367 = vmatpush1.msra.mxu1 %v12260_v16 }
 0x75c   :  { %2296 = vmatpush1.msra.mxu0 %v12255_v57  ;;  %2368 = vmatprep.subr.mxu1 %v12272_v15 }
 0x75d   :  { %2297 = vmatprep.subr.mxu0 %v12267_v37  ;;  %2369 = vmatpush1.msra.mxu1 %v12284_v23 }
 0x75e   :  { %2298 = vmatpush1.msra.mxu0 %v12279_v13  ;;  %2370 = vmatprep.subr.mxu1 %v12296_v20  ;;  %v17502_v13 = vld [vmem:[#allocation56_spill] sm:$0xff] }
 0x75f   :  { %2299 = vmatprep.subr.mxu0 %v12291_v17  ;;  %2371 = vmatpush1.msra.mxu1 %v12308_v33 }
 0x760   :  { %2300 = vmatpush1.msra.mxu0 %v12303_v24  ;;  %2372 = vmatprep.subr.mxu1 %v12320_v19 }
 0x761   :  { %2301 = vmatprep.subr.mxu0 %v12315_v35  ;;  %2373 = vmatpush1.msra.mxu1 %v12332_v56  ;;  %v12373_v56 = vld [vmem:[%s16772_s6] sm:$0xff] }
 0x762   :  { %2302 = vmatpush1.msra.mxu0 %v12327_v14  ;;  %2374 = vmatprep.subr.mxu1 %v12344_v0  ;;  %v12368_v0 = vld [vmem:[%s16772_s6 + $0x18] sm:$0xff]  ;;  %17497 = vst [vmem:[#allocation10_spill] sm:$0xff] %v12373_v56  ;;  %v17499_v14 = vld [vmem:[#allocation57_spill] sm:$0xff] }
 0x763   :  { %2303 = vmatprep.subr.mxu0 %v12339_v55  ;;  %2375 = vmatpush1.msra.mxu1 %v12356_v45  ;;  %v12363_v55 = vld [vmem:[%s16772_s6 + $0x8] sm:$0xff]  ;;  %17496 = vst [vmem:[#allocation9_spill] sm:$0xff] %v12368_v0  ;;  %v12380_v45 = vld [vmem:[%s16772_s6 + $0x10] sm:$0xff]  ;;  %v230_v19 = vadd.f32 %v17499_v14, %v17350_v63 }
 0x764   :  { %2304 = vmatpush1.msra.mxu0 %v12351_v11  ;;  %17495 = vst [vmem:[#allocation8_spill] sm:$0xff] %v12363_v55  ;;  %2376 = vmatprep.subr.mxu1 %v12368_v0  ;;  %17498 = vst [vmem:[#allocation11_spill] sm:$0xff] %v12380_v45 }
 0x765   :  { %2305 = vmatprep.subr.mxu0 %v12363_v55  ;;  %2377 = vmatpush1.msra.mxu1 %v12380_v45  ;;  %v17500_v55 = vld [vmem:[#allocation55_spill] sm:$0xff] }
 0x766   :  { %2306 = vmatpush1.msra.mxu0 %v12373_v56  ;;  %2521 = vmatprep.subr.mxu1 %v12008_v58  ;;  %v17501_v45 = vld [vmem:[#allocation59_spill] sm:$0xff] }
 0x767   :  { %2450 = vmatprep.subr.mxu0 %v12003_v61  ;;  %v343_v23 = vadd.f32 %v17501_v45, %v10969_v54  ;;  %v17513_v45 = vld [vmem:[#allocation42_spill] sm:$0xff] }
 0x7cd   :  { %v1749_v11 = vpop.f32.mrf.mxu0  ;;  %v1820_v20 = vpop.f32.mrf.mxu1 }
 0x7ce   :  { %v1825_v35 = vadd.f32 %v1749_v11, %v17500_v55  ;;  %v1827_v58 = vadd.f32 %v1820_v20, %v17502_v13  ;;  %v17508_v13 = vld [vmem:[#allocation38_spill] sm:$0xff]  ;;  %v17509_v20 = vld [vmem:[#allocation41_spill] sm:$0xff]  ;;  %v17512_v11 = vld [vmem:[#allocation44_spill] sm:$0xff] }
 0x7cf   :  { %v1751_v0 = vpop.f32.mrf.mxu0  ;;  %v1822_v56 = vpop.f32.mrf.mxu1 }
 0x7d0   :  { %v9105_v33 = vmul.f32 -1.442695, %v1825_v35  ;;  %v1826_v24 = vadd.f32 %v1751_v0, %v230_v19  ;;  %v1828_v61 = vadd.f32 %v1822_v56, %v343_v23  ;;  %v17510_v56 = vld [vmem:[#allocation39_spill] sm:$0xff]  ;;  %v17511_v0 = vld [vmem:[#allocation30_spill] sm:$0xff] }
 0x7d2   :  { %9569 = vpow2.f32 %v9105_v33  ;;  %v9106_v17 = vmul.f32 -1.442695, %v1826_v24  ;;  %v9107_v15 = vmul.f32 -1.442695, %v1828_v61 }
 0x7d4   :  { %9571 = vpow2.f32 %v9106_v17 }
 0x7d5   :  { %9573 = vtanh.f32 %v1827_v58 }
 0x7d6   :  { %9575 = vpow2.f32 %v9107_v15  ;;  %v17507_v15 = vld [vmem:[#allocation40_spill] sm:$0xff] }
 0x7df   :  { %v9570_v37 = vpop.eup %9569 }
 0x7e0   :  { %v1832_v16 = vadd.f32 1.0, %v9570_v37 }
 0x7e1   :  { %v9572_v63 = vpop.eup %9571 }
 0x7e2   :  { %9577 = vrcp.f32 %v1832_v16  ;;  %v1838_v35 = vadd.f32 1.0, %v9572_v63  ;;  %v9574_v33 = vpop.eup %9573  ;;  %v17506_v16 = vld [vmem:[#allocation26_spill] sm:$0xff]  ;;  %v17514_v63 = vld [vmem:[#allocation45_spill] sm:$0xff] }
 0x7e3   :  { %v9576_v19 = vpop.eup %9575 }
 0x7e4   :  { %9579 = vrcp.f32 %v1838_v35  ;;  %v1845_v55 = vadd.f32 1.0, %v9576_v19  ;;  %v17515_v35 = vld [vmem:[#allocation43_spill] sm:$0xff] }
 0x7e5   :  { %v17517_v19 = vld [vmem:[#allocation31_spill] sm:$0xff] }
 0x7e6   :  { %9581 = vrcp.f32 %v1845_v55  ;;  %v17521_v55 = vld [vmem:[#allocation47_spill] sm:$0xff] }
 0x7ef   :  { %v9578_v24 = vpop.eup %9577 }
 0x7f0   :  { %v1849_v17 = vmul.f32 %v9578_v24, %v9574_v33  ;;  %v17516_v33 = vld [vmem:[#allocation33_spill] sm:$0xff]  ;;  %v17518_v24 = vld [vmem:[#allocation48_spill] sm:$0xff] }
 0x7f1   :  { %v9580_v14 = vpop.eup %9579 }
 0x7f2   :  { %v1848_v54 = vmul.f32 %v9580_v14, %v11777_v25  ;;  %v17505_v25 = vld [vmem:[#allocation35_spill] sm:$0xff]  ;;  %v17520_v14 = vld [vmem:[#allocation49_spill] sm:$0xff] }
 0x7f3   :  { %v9582_v61 = vpop.eup %9581 }
 0x7f4   :  { %v12393_v23 = vadd.f32 %v1849_v17, %v1848_v54  ;;  %v17519_v17 = vld [vmem:[#allocation46_spill] sm:$0xff]  ;;  %v17522_v54 = vld [vmem:[#allocation8_spill] sm:$0xff] }
 0x7f6   :  { %17503 = vst [vmem:[#allocation12_spill] sm:$0xff] %v12393_v23  ;;  %9583 = vtanh.f32 %v12393_v23  ;;  %v17525_v23 = vld [vmem:[#allocation11_spill] sm:$0xff] }
 0x803   :  { %v9584_v58 = vpop.eup %9583 }
 0x804   :  { %v12396_v37 = vmul.f32 %v9584_v58, %v9582_v61  ;;  %v17523_v61 = vld [vmem:[#allocation9_spill] sm:$0xff]  ;;  %v17524_v58 = vld [vmem:[#allocation10_spill] sm:$0xff] }
 0x806   :  { %17504 = vst [vmem:[#allocation13_spill] sm:$0xff] %v12396_v37  ;;  %2056 = vmatmul.mubr.f32.gmra.mxu0 %v12396_v37  ;;  %2169 = vmatmul.mubr.f32.gmra.mxu1 %v12396_v37  ;;  %v17526_v37 = vld [vmem:[#allocation34_spill] sm:$0xff] }
 0x807   :  { %2339 = vmatprep.mubr.f32.mxu0 %v17466_v28  ;;  %2410 = vmatprep.mubr.f32.mxu1 %v17466_v28 }
 0x80a   :  { %2340 = vmatmul.mubr.f32.vlgmr.msra.gmra.mxu0 %v17466_v28  ;;  %2411 = vmatmul.mubr.f32.vlgmr.msra.gmra.mxu1 %v17466_v28 }
 0x80b   :  { %2451 = vmatpush1.msra.mxu0 %v12015_v21  ;;  %2522 = vmatpush1.msra.mxu1 %v12020_v8 }
 0x80c   :  { %2452 = vmatprep.subr.mxu0 %v12027_v1  ;;  %2523 = vmatprep.subr.mxu1 %v12032_v36 }
 0x80d   :  { %2453 = vmatpush1.msra.mxu0 %v12039_v7  ;;  %2524 = vmatpush1.msra.mxu1 %v12044_v59 }
 0x80e   :  { %2454 = vmatprep.subr.mxu0 %v12051_v2  ;;  %2525 = vmatprep.subr.mxu1 %v12056_v3 }
 0x80f   :  { %2455 = vmatpush1.msra.mxu0 %v12063_v18  ;;  %2526 = vmatpush1.msra.mxu1 %v12068_v9 }
 0x810   :  { %2456 = vmatprep.subr.mxu0 %v12075_v62  ;;  %2527 = vmatprep.subr.mxu1 %v12080_v6 }
 0x811   :  { %2457 = vmatpush1.msra.mxu0 %v12087_v4  ;;  %2528 = vmatpush1.msra.mxu1 %v12092_v27 }
 0x812   :  { %2458 = vmatprep.subr.mxu0 %v12099_v60  ;;  %2529 = vmatprep.subr.mxu1 %v12104_v5 }
 0x813   :  { %2459 = vmatpush1.msra.mxu0 %v12111_v26  ;;  %2530 = vmatpush1.msra.mxu1 %v12116_v29 }
 0x814   :  { %2460 = vmatprep.subr.mxu0 %v12123_v30  ;;  %2531 = vmatprep.subr.mxu1 %v12128_v31 }
 0x815   :  { %2461 = vmatpush1.msra.mxu0 %v12135_v32  ;;  %2532 = vmatpush1.msra.mxu1 %v12140_v10 }
 0x816   :  { %2462 = vmatprep.subr.mxu0 %v12147_v34  ;;  %2533 = vmatprep.subr.mxu1 %v12152_v38 }
 0x817   :  { %2463 = vmatpush1.msra.mxu0 %v12159_v39  ;;  %2534 = vmatpush1.msra.mxu1 %v12164_v40 }
 0x818   :  { %2464 = vmatprep.subr.mxu0 %v12171_v41  ;;  %2535 = vmatprep.subr.mxu1 %v12176_v42 }
 0x819   :  { %2465 = vmatpush1.msra.mxu0 %v12183_v43  ;;  %2536 = vmatpush1.msra.mxu1 %v12188_v44 }
 0x81a   :  { %2466 = vmatprep.subr.mxu0 %v12195_v46  ;;  %2537 = vmatprep.subr.mxu1 %v12200_v47 }
 0x81b   :  { %2467 = vmatpush1.msra.mxu0 %v12207_v48  ;;  %2538 = vmatpush1.msra.mxu1 %v12212_v49 }
 0x81c   :  { %2468 = vmatprep.subr.mxu0 %v12219_v50  ;;  %2539 = vmatprep.subr.mxu1 %v12224_v51 }
 0x81d   :  { %2469 = vmatpush1.msra.mxu0 %v12231_v52  ;;  %2540 = vmatpush1.msra.mxu1 %v12236_v53 }
 0x81e   :  { %2470 = vmatprep.subr.mxu0 %v12243_v12  ;;  %2541 = vmatprep.subr.mxu1 %v12248_v22 }
 0x81f   :  { %2471 = vmatpush1.msra.mxu0 %v12255_v57  ;;  %2542 = vmatpush1.msra.mxu1 %v17505_v25 }
 0x820   :  { %2472 = vmatprep.subr.mxu0 %v17506_v16  ;;  %2543 = vmatprep.subr.mxu1 %v17507_v15 }
 0x821   :  { %2473 = vmatpush1.msra.mxu0 %v17508_v13  ;;  %2544 = vmatpush1.msra.mxu1 %v17509_v20 }
 0x822   :  { %2474 = vmatprep.subr.mxu0 %v17510_v56  ;;  %2545 = vmatprep.subr.mxu1 %v17511_v0 }
 0x823   :  { %2475 = vmatpush1.msra.mxu0 %v17512_v11  ;;  %2546 = vmatpush1.msra.mxu1 %v17513_v45 }
 0x824   :  { %2476 = vmatprep.subr.mxu0 %v17514_v63  ;;  %2547 = vmatprep.subr.mxu1 %v17515_v35 }
 0x825   :  { %2477 = vmatpush1.msra.mxu0 %v17516_v33  ;;  %2548 = vmatpush1.msra.mxu1 %v17517_v19 }
 0x826   :  { %2478 = vmatprep.subr.mxu0 %v17518_v24  ;;  %2549 = vmatprep.subr.mxu1 %v17519_v17  ;;  %v17527_v24 = vld [vmem:[#allocation37_spill] sm:$0xff]  ;;  %v2015_v17 = vpop.f32.mrf.mxu0 }
 0x827   :  { %2479 = vmatpush1.msra.mxu0 %v17520_v14  ;;  %2550 = vmatpush1.msra.mxu1 %v17521_v55  ;;  %v2128_v14 = vpop.f32.mrf.mxu1 }
 0x828   :  { %2480 = vmatprep.subr.mxu0 %v17522_v54  ;;  %2551 = vmatprep.subr.mxu1 %v17523_v61  ;;  %v2017_v19 = vpop.f32.mrf.mxu0 }
 0x829   :  { %2481 = vmatpush1.msra.mxu0 %v17524_v58  ;;  %2514 = vmatprep.mubr.f32.mxu0 %v17466_v28  ;;  %v2130_v55 = vpop.f32.mrf.mxu1 }
 0x82a   :  { %2552 = vmatpush1.msra.mxu1 %v17525_v23  ;;  %2585 = vmatprep.mubr.f32.mxu1 %v17466_v28  ;;  %v12470_v33 = vpop.f32.mrf.mxu0 }
 0x82b   :  { %2625 = vmatprep.subr.mxu0 %v17526_v37  ;;  %2696 = vmatprep.subr.mxu1 %v17527_v24  ;;  %17528 = vst [vmem:[#allocation14_spill] sm:$0xff] %v12470_v33  ;;  %v12472_v54 = vpop.f32.mrf.mxu1 }
 0x82c   :  { %17529 = vst [vmem:[#allocation15_spill] sm:$0xff] %v12472_v54  ;;  %v12474_v61 = vpop.f32.mrf.mxu0 }
 0x82d   :  { %17530 = vst [vmem:[#allocation16_spill] sm:$0xff] %v12474_v61  ;;  %v12476_v58 = vpop.f32.mrf.mxu1 }
 0x82e   :  { %17531 = vst [vmem:[#allocation17_spill] sm:$0xff] %v12476_v58  ;;  %v12478_v35 = vpop.f32.mrf.mxu0 }
 0x82f   :  { %17532 = vst [vmem:[#allocation18_spill] sm:$0xff] %v12478_v35  ;;  %v12480_v23 = vpop.f32.mrf.mxu1 }
 0x830   :  { %17533 = vst [vmem:[#allocation19_spill] sm:$0xff] %v12480_v23  ;;  %v12482_v28 = vpop.f32.mrf.mxu0 }
 0x831   :  { %17534 = vst [vmem:[#allocation20_spill] sm:$0xff] %v12482_v28  ;;  %v12484_v37 = vpop.f32.mrf.mxu1 }
 0x832   :  { %17535 = vst [vmem:[#allocation21_spill] sm:$0xff] %v12484_v37  ;;  %v12486_v24 = vpop.f32.mrf.mxu0 }
 0x833   :  { %17536 = vst [vmem:[#allocation22_spill] sm:$0xff] %v12486_v24  ;;  %v12488_v63 = vpop.f32.mrf.mxu1 }
 0x834   :  { %17537 = vst [vmem:[#allocation23_spill] sm:$0xff] %v12488_v63  ;;  %v12490_v45 = vpop.f32.mrf.mxu0 }
 0x835   :  { %17538 = vst [vmem:[#allocation24_spill] sm:$0xff] %v12490_v45  ;;  %v12492_v33 = vpop.f32.mrf.mxu1 }
 0x836   :  { %17539 = vst [vmem:[#allocation25_spill] sm:$0xff] %v12492_v33  ;;  %v12494_v54 = vpop.f32.mrf.mxu0 }
 0x837   :  { %17540 = vst [vmem:[#allocation5_spill] sm:$0xff] %v12494_v54  ;;  %v12496_v61 = vpop.f32.mrf.mxu1 }
 0x838   :  { %17541 = vst [vmem:[#allocation6_spill] sm:$0xff] %v12496_v61  ;;  %v12498_v58 = vpop.f32.mrf.mxu0  ;;  %v1927_v61 = vld [vmem:[%s16773_s7] sm:$0xf] }
 0x839   :  { %17542 = vst [vmem:[#allocation52_spill] sm:$0xff] %v12498_v58  ;;  %v12500_v35 = vpop.f32.mrf.mxu1  ;;  %v17551_v58 = vld [vmem:[#allocation28_spill] sm:$0xff] }
 0x83a   :  { %17543 = vst [vmem:[#allocation50_spill] sm:$0xff] %v12500_v35  ;;  %v12502_v23 = vpop.f32.mrf.mxu0  ;;  %v12520_v35 = vrot.slane %v1927_v61, %v17551_v58 }
 0x83b   :  { %17544 = vst [vmem:[#allocation53_spill] sm:$0xff] %v12502_v23  ;;  %v12504_v28 = vpop.f32.mrf.mxu1 }
 0x83c   :  { %17545 = vst [vmem:[#allocation51_spill] sm:$0xff] %v12504_v28  ;;  %v12506_v37 = vpop.f32.mrf.mxu0  ;;  %17552 = vst [vmem:[#allocation57_spill] sm:$0xff] %v12520_v35 }
 0x83d   :  { %17546 = vst [vmem:[#allocation61_spill] sm:$0xff] %v12506_v37  ;;  %v12508_v24 = vpop.f32.mrf.mxu1  ;;  %v17555_v37 = vld [vmem:[#allocation54_spill] sm:$0xff] }
 0x83e   :  { %17547 = vst [vmem:[#allocation58_spill] sm:$0xff] %v12508_v24  ;;  %v12510_v63 = vpop.f32.mrf.mxu0  ;;  %v12527_v33 = vrot.slane %v1927_v61, %v17555_v37  ;;  %v17560_v37 = vld [vmem:[#allocation60_spill] sm:$0xff] }
 0x83f   :  { %17548 = vst [vmem:[#allocation32_spill] sm:$0xff] %v12510_v63  ;;  %v12512_v45 = vpop.f32.mrf.mxu1  ;;  %v12538_v15 = vrot.slane %v1927_v61, %v17560_v37 }
 0x840   :  { %17549 = vst [vmem:[#allocation7_spill] sm:$0xff] %v12512_v45  ;;  %v12517_v54 = vpop.f32.mrf.mxu0  ;;  %17556 = vst [vmem:[#allocation56_spill] sm:$0xff] %v12527_v33  ;;  %v2016_v45 = vadd.f32 %v2015_v17, %v12520_v35  ;;  %v2018_v0 = vadd.f32 %v2017_v19, %v12527_v33  ;;  %v17562_v17 = vld [vmem:[#allocation29_spill] sm:$0xff] }
 0x841   :  { %17550 = vst [vmem:[#allocation36_spill] sm:$0xff] %v12517_v54  ;;  %v12522_v23 = vpop.f32.mrf.mxu1  ;;  %17561 = vst [vmem:[#allocation65_spill] sm:$0xff] %v12538_v15  ;;  %v12542_v35 = vrot.slane %v1927_v61, %v17562_v17 }
 0x842   :  { %17553 = vst [vmem:[#allocation55_spill] sm:$0xff] %v12522_v23 }
 0x843   :  { %17563 = vst [vmem:[#allocation66_spill] sm:$0xff] %v12542_v35 }
 0x8c6   :  { %v12524_v28 = vpop.f32.mrf.mxu0  ;;  %v12529_v24 = vpop.f32.mrf.mxu1 }
 0x8c7   :  { %17554 = vst [vmem:[#allocation59_spill] sm:$0xff] %v12524_v28  ;;  %17557 = vst [vmem:[#allocation62_spill] sm:$0xff] %v12529_v24 }
 0x8c8   :  { %v12531_v63 = vpop.f32.mrf.mxu0  ;;  %v12535_v54 = vpop.f32.mrf.mxu1 }
 0x8c9   :  { %17558 = vst [vmem:[#allocation63_spill] sm:$0xff] %v12531_v63  ;;  %17559 = vst [vmem:[#allocation64_spill] sm:$0xff] %v12535_v54  ;;  %v2131_v63 = vadd.f32 %v2130_v55, %v12538_v15  ;;  %v2129_v54 = vadd.f32 %v2128_v14, %v12542_v35 }
 0x8ca   :  { %v2341_v11 = vpop.f32.mrf.mxu0  ;;  %v2412_v28 = vpop.f32.mrf.mxu1 }
 0x8cb   :  { %v2417_v58 = vadd.f32 %v2341_v11, %v2016_v45 }
 0x8cc   :  { %v2343_v56 = vpop.f32.mrf.mxu0  ;;  %v2414_v24 = vpop.f32.mrf.mxu1 }
 0x8cd   :  { %v9108_v20 = vmul.f32 -1.442695, %v2417_v58  ;;  %v2418_v23 = vadd.f32 %v2343_v56, %v2018_v0  ;;  %v2420_v19 = vadd.f32 %v2414_v24, %v2131_v63  ;;  %v2419_v58 = vadd.f32 %v2412_v28, %v2129_v54  ;;  %v17567_v54 = vld [vmem:[#allocation41_spill] sm:$0xff] }
 0x8cf   :  { %9585 = vpow2.f32 %v9108_v20  ;;  %v9109_v13 = vmul.f32 -1.442695, %v2418_v23  ;;  %v9110_v11 = vmul.f32 -1.442695, %v2420_v19  ;;  %v17569_v19 = vld [vmem:[#allocation30_spill] sm:$0xff] }
 0x8d1   :  { %9587 = vpow2.f32 %v9109_v13 }
 0x8d2   :  { %9589 = vpow2.f32 %v9110_v11  ;;  %v17570_v11 = vld [vmem:[#allocation44_spill] sm:$0xff] }
 0x8dc   :  { %v9586_v45 = vpop.eup %9585 }
 0x8dd   :  { %v2424_v56 = vadd.f32 1.0, %v9586_v45  ;;  %v17571_v45 = vld [vmem:[#allocation42_spill] sm:$0xff] }
 0x8de   :  { %v9588_v20 = vpop.eup %9587 }
 0x8df   :  { %9591 = vrcp.f32 %v2424_v56  ;;  %v2430_v23 = vadd.f32 1.0, %v9588_v20  ;;  %v9590_v13 = vpop.eup %9589  ;;  %v17573_v56 = vld [vmem:[#allocation43_spill] sm:$0xff]  ;;  %v17574_v20 = vld [vmem:[#allocation33_spill] sm:$0xff] }
 0x8e0   :  { %9593 = vtanh.f32 %v2419_v58  ;;  %v2437_v15 = vadd.f32 1.0, %v9590_v13  ;;  %v17572_v58 = vld [vmem:[#allocation45_spill] sm:$0xff]  ;;  %v17576_v13 = vld [vmem:[#allocation48_spill] sm:$0xff] }
 0x8e1   :  { %9595 = vrcp.f32 %v2430_v23  ;;  %v17575_v23 = vld [vmem:[#allocation31_spill] sm:$0xff] }
 0x8e2   :  { %9597 = vrcp.f32 %v2437_v15  ;;  %v17566_v15 = vld [vmem:[#allocation38_spill] sm:$0xff] }
 0x8ec   :  { %v9592_v0 = vpop.eup %9591 }
 0x8ed   :  { %v9594_v37 = vpop.eup %9593 }
 0x8ee   :  { %v9596_v55 = vpop.eup %9595  ;;  %v2441_v17 = vmul.f32 %v9594_v37, %v9592_v0  ;;  %v17565_v37 = vld [vmem:[#allocation40_spill] sm:$0xff]  ;;  %v17577_v0 = vld [vmem:[#allocation46_spill] sm:$0xff] }
 0x8ef   :  { %v2440_v61 = vmul.f32 0.0, %v9596_v55  ;;  %v9598_v28 = vpop.eup %9597  ;;  %v17578_v55 = vld [vmem:[#allocation49_spill] sm:$0xff] }
 0x8f1   :  { %v12545_v63 = vadd.f32 %v2441_v17, %v2440_v61  ;;  %v17568_v17 = vld [vmem:[#allocation39_spill] sm:$0xff] }
 0x8f2   :  { %v17579_v61 = vld [vmem:[#allocation47_spill] sm:$0xff] }
 0x8f3   :  { %9599 = vtanh.f32 %v12545_v63 }
 0x900   :  { %v9600_v24 = vpop.eup %9599 }
 0x901   :  { %v12548_v14 = vmul.f32 %v9600_v24, %v9598_v28  ;;  %v17580_v28 = vld [vmem:[#allocation8_spill] sm:$0xff]  ;;  %v17581_v24 = vld [vmem:[#allocation9_spill] sm:$0xff] }
 0x903   :  { %17564 = vst [vmem:[#allocation67_spill] sm:$0xff] %v12548_v14  ;;  %2515 = vmatmul.mubr.f32.vlgmr.msra.gmra.mxu0 %v12548_v14  ;;  %2586 = vmatmul.mubr.f32.vlgmr.msra.gmra.mxu1 %v12548_v14  ;;  %v17582_v14 = vld [vmem:[#allocation10_spill] sm:$0xff] }
 0x904   :  { %2626 = vmatpush1.msra.mxu0 %v12015_v21  ;;  %2697 = vmatpush1.msra.mxu1 %v12020_v8 }
 0x905   :  { %2627 = vmatprep.subr.mxu0 %v12027_v1  ;;  %2698 = vmatprep.subr.mxu1 %v12032_v36 }
 0x906   :  { %2628 = vmatpush1.msra.mxu0 %v12039_v7  ;;  %2699 = vmatpush1.msra.mxu1 %v12044_v59 }
 0x907   :  { %2629 = vmatprep.subr.mxu0 %v12051_v2  ;;  %2700 = vmatprep.subr.mxu1 %v12056_v3 }
 0x908   :  { %2630 = vmatpush1.msra.mxu0 %v12063_v18  ;;  %2701 = vmatpush1.msra.mxu1 %v12068_v9 }
 0x909   :  { %2631 = vmatprep.subr.mxu0 %v12075_v62  ;;  %2702 = vmatprep.subr.mxu1 %v12080_v6 }
 0x90a   :  { %2632 = vmatpush1.msra.mxu0 %v12087_v4  ;;  %2703 = vmatpush1.msra.mxu1 %v12092_v27 }
 0x90b   :  { %2633 = vmatprep.subr.mxu0 %v12099_v60  ;;  %2704 = vmatprep.subr.mxu1 %v12104_v5 }
 0x90c   :  { %2634 = vmatpush1.msra.mxu0 %v12111_v26  ;;  %2705 = vmatpush1.msra.mxu1 %v12116_v29 }
 0x90d   :  { %2635 = vmatprep.subr.mxu0 %v12123_v30  ;;  %2706 = vmatprep.subr.mxu1 %v12128_v31 }
 0x90e   :  { %2636 = vmatpush1.msra.mxu0 %v12135_v32  ;;  %2707 = vmatpush1.msra.mxu1 %v12140_v10 }
 0x90f   :  { %2637 = vmatprep.subr.mxu0 %v12147_v34  ;;  %2708 = vmatprep.subr.mxu1 %v12152_v38 }
 0x910   :  { %2638 = vmatpush1.msra.mxu0 %v12159_v39  ;;  %2709 = vmatpush1.msra.mxu1 %v12164_v40 }
 0x911   :  { %2639 = vmatprep.subr.mxu0 %v12171_v41  ;;  %2710 = vmatprep.subr.mxu1 %v12176_v42 }
 0x912   :  { %2640 = vmatpush1.msra.mxu0 %v12183_v43  ;;  %2711 = vmatpush1.msra.mxu1 %v12188_v44 }
 0x913   :  { %2641 = vmatprep.subr.mxu0 %v12195_v46  ;;  %2712 = vmatprep.subr.mxu1 %v12200_v47 }
 0x914   :  { %2642 = vmatpush1.msra.mxu0 %v12207_v48  ;;  %2713 = vmatpush1.msra.mxu1 %v12212_v49 }
 0x915   :  { %2643 = vmatprep.subr.mxu0 %v12219_v50  ;;  %2714 = vmatprep.subr.mxu1 %v12224_v51 }
 0x916   :  { %2644 = vmatpush1.msra.mxu0 %v12231_v52  ;;  %2715 = vmatpush1.msra.mxu1 %v12236_v53 }
 0x917   :  { %2645 = vmatprep.subr.mxu0 %v12243_v12  ;;  %2716 = vmatprep.subr.mxu1 %v12248_v22 }
 0x918   :  { %2646 = vmatpush1.msra.mxu0 %v12255_v57  ;;  %2717 = vmatpush1.msra.mxu1 %v17505_v25 }
 0x919   :  { %2647 = vmatprep.subr.mxu0 %v17506_v16  ;;  %2718 = vmatprep.subr.mxu1 %v17565_v37  ;;  %v17592_v37 = vld [vmem:[#allocation15_spill] sm:$0xff] }
 0x91a   :  { %2648 = vmatpush1.msra.mxu0 %v17566_v15  ;;  %2719 = vmatpush1.msra.mxu1 %v17567_v54  ;;  %v17590_v54 = vld [vmem:[#allocation65_spill] sm:$0xff] }
 0x91b   :  { %2649 = vmatprep.subr.mxu0 %v17568_v17  ;;  %2720 = vmatprep.subr.mxu1 %v17569_v19 }
 0x91c   :  { %2650 = vmatpush1.msra.mxu0 %v17570_v11  ;;  %2721 = vmatpush1.msra.mxu1 %v17571_v45 }
 0x91d   :  { %2651 = vmatprep.subr.mxu0 %v17572_v58  ;;  %2722 = vmatprep.subr.mxu1 %v17573_v56  ;;  %v17583_v58 = vmov 0.0   ;;  %v17584_v56 = vld [vmem:[#allocation11_spill] sm:$0xff] }
 0x91e   :  { %2652 = vmatpush1.msra.mxu0 %v17574_v20  ;;  %2723 = vmatpush1.msra.mxu1 %v17575_v23  ;;  %v17585_v23 = vld [vmem:[#allocation34_spill] sm:$0xff] }
 0x91f   :  { %2653 = vmatprep.subr.mxu0 %v17576_v13  ;;  %2724 = vmatprep.subr.mxu1 %v17577_v0  ;;  %v17586_v13 = vld [vmem:[#allocation37_spill] sm:$0xff] }
 0x920   :  { %2654 = vmatpush1.msra.mxu0 %v17578_v55  ;;  %2725 = vmatpush1.msra.mxu1 %v17579_v61  ;;  %v17587_v0 = vld [vmem:[#allocation57_spill] sm:$0xff]  ;;  %v17588_v55 = vld [vmem:[#allocation14_spill] sm:$0xff] }
 0x921   :  { %2655 = vmatprep.subr.mxu0 %v17580_v28  ;;  %2726 = vmatprep.subr.mxu1 %v17581_v24  ;;  %v2022_v20 = vadd.f32 %v17588_v55, %v17587_v0  ;;  %v17589_v28 = vld [vmem:[#allocation16_spill] sm:$0xff]  ;;  %v2135_v55 = vadd.f32 %v17592_v37, %v12542_v35 }
 0x922   :  { %2656 = vmatpush1.msra.mxu0 %v17582_v14  ;;  %2689 = vmatprep.mubr.f32.mxu0 %v17583_v58  ;;  %v2024_v45 = vadd.f32 %v17589_v28, %v12527_v33 }
 0x923   :  { %2727 = vmatpush1.msra.mxu1 %v17584_v56  ;;  %2760 = vmatprep.mubr.f32.mxu1 %v17583_v58 }
 0x924   :  { %2800 = vmatprep.subr.mxu0 %v17585_v23  ;;  %2871 = vmatprep.subr.mxu1 %v17586_v13  ;;  %v17591_v23 = vld [vmem:[#allocation17_spill] sm:$0xff] }
 0x925   :  { %v2137_v15 = vadd.f32 %v17591_v23, %v17590_v54 }
 0x9c3   :  { %v2516_v61 = vpop.f32.mrf.mxu0  ;;  %v2587_v17 = vpop.f32.mrf.mxu1 }
 0x9c4   :  { %v2592_v24 = vadd.f32 %v2516_v61, %v2022_v20  ;;  %v2594_v0 = vadd.f32 %v2587_v17, %v2135_v55  ;;  %v17613_v55 = vld [vmem:[#allocation10_spill] sm:$0xff] }
 0x9c5   :  { %v2518_v11 = vpop.f32.mrf.mxu0  ;;  %v2589_v58 = vpop.f32.mrf.mxu1 }
 0x9c6   :  { %v9111_v14 = vmul.f32 -1.442695, %v2592_v24  ;;  %v2593_v19 = vadd.f32 %v2518_v11, %v2024_v45  ;;  %v2595_v13 = vadd.f32 %v2589_v58, %v2137_v15  ;;  %v17612_v24 = vld [vmem:[#allocation9_spill] sm:$0xff] }
 0x9c8   :  { %9601 = vpow2.f32 %v9111_v14  ;;  %v9112_v56 = vmul.f32 -1.442695, %v2593_v19  ;;  %v9113_v16 = vmul.f32 -1.442695, %v2595_v13  ;;  %v17610_v13 = vld [vmem:[#allocation47_spill] sm:$0xff] }
 0x9ca   :  { %9603 = vpow2.f32 %v9112_v56 }
 0x9cb   :  { %9605 = vtanh.f32 %v2594_v0  ;;  %v17611_v0 = vld [vmem:[#allocation8_spill] sm:$0xff] }
 0x9cc   :  { %9607 = vpow2.f32 %v9113_v16  ;;  %v17608_v16 = vld [vmem:[#allocation46_spill] sm:$0xff] }
 0x9d5   :  { %v9602_v25 = vpop.eup %9601 }
 0x9d6   :  { %v2599_v28 = vadd.f32 1.0, %v9602_v25 }
 0x9d7   :  { %v9604_v20 = vpop.eup %9603 }
 0x9d8   :  { %9609 = vrcp.f32 %v2599_v28  ;;  %v2605_v14 = vadd.f32 1.0, %v9604_v20  ;;  %v9606_v19 = vpop.eup %9605  ;;  %v17614_v28 = vmov 0.0   ;;  %v17615_v20 = vld [vmem:[#allocation11_spill] sm:$0xff] }
 0x9d9   :  { %v9608_v11 = vpop.eup %9607 }
 0x9da   :  { %9611 = vrcp.f32 %v2605_v14  ;;  %v2612_v23 = vadd.f32 1.0, %v9608_v11  ;;  %v17616_v14 = vld [vmem:[#allocation34_spill] sm:$0xff]  ;;  %v17618_v11 = vld [vmem:[#allocation57_spill] sm:$0xff] }
 0x9dc   :  { %9613 = vrcp.f32 %v2612_v23  ;;  %v17620_v23 = vld [vmem:[#allocation20_spill] sm:$0xff] }
 0x9e5   :  { %v9610_v45 = vpop.eup %9609 }
 0x9e6   :  { %v2616_v56 = vmul.f32 %v9610_v45, %v9606_v19  ;;  %v17617_v19 = vld [vmem:[#allocation37_spill] sm:$0xff]  ;;  %v17619_v45 = vld [vmem:[#allocation18_spill] sm:$0xff] }
 0x9e7   :  { %v9612_v61 = vpop.eup %9611 }
 0x9e8   :  { %v2615_v15 = vmul.f32 %v9612_v61, %v12545_v63  ;;  %v17609_v63 = vld [vmem:[#allocation49_spill] sm:$0xff] }
 0x9e9   :  { %v9614_v25 = vpop.eup %9613 }
 0x9ea   :  { %v12627_v58 = vadd.f32 %v2616_v56, %v2615_v15  ;;  %v2028_v56 = vadd.f32 %v17619_v45, %v17618_v11  ;;  %v2030_v15 = vadd.f32 %v17620_v23, %v12527_v33 }
 0x9ec   :  { %9615 = vtanh.f32 %v12627_v58 }
 0x9f9   :  { %v9616_v37 = vpop.eup %9615 }
 0x9fa   :  { %v12630_v17 = vmul.f32 %v9616_v37, %v9614_v25 }
 0x9fc   :  { %17593 = vst [vmem:[#allocation14_spill] sm:$0xff] %v12630_v17  ;;  %2690 = vmatmul.mubr.f32.vlgmr.msra.gmra.mxu0 %v12630_v17  ;;  %2761 = vmatmul.mubr.f32.vlgmr.msra.gmra.mxu1 %v12630_v17 }
 0x9fd   :  { %2801 = vmatpush1.msra.mxu0 %v12015_v21  ;;  %2872 = vmatpush1.msra.mxu1 %v12020_v8  ;;  %v17594_v21 = vld [vmem:[#allocation35_spill] sm:$0xff]  ;;  %v17595_v8 = vld [vmem:[#allocation26_spill] sm:$0xff] }
 0x9fe   :  { %2802 = vmatprep.subr.mxu0 %v12027_v1  ;;  %2873 = vmatprep.subr.mxu1 %v12032_v36  ;;  %v17596_v1 = vld [vmem:[#allocation40_spill] sm:$0xff]  ;;  %v17597_v36 = vld [vmem:[#allocation38_spill] sm:$0xff] }
 0x9ff   :  { %2803 = vmatpush1.msra.mxu0 %v12039_v7  ;;  %2874 = vmatpush1.msra.mxu1 %v12044_v59  ;;  %v17598_v7 = vld [vmem:[#allocation41_spill] sm:$0xff]  ;;  %v17599_v59 = vld [vmem:[#allocation39_spill] sm:$0xff] }
 0xa00   :  { %2804 = vmatprep.subr.mxu0 %v12051_v2  ;;  %2875 = vmatprep.subr.mxu1 %v12056_v3  ;;  %v17600_v2 = vld [vmem:[#allocation30_spill] sm:$0xff]  ;;  %v17601_v3 = vld [vmem:[#allocation44_spill] sm:$0xff] }
 0xa01   :  { %2805 = vmatpush1.msra.mxu0 %v12063_v18  ;;  %2876 = vmatpush1.msra.mxu1 %v12068_v9  ;;  %v17602_v18 = vld [vmem:[#allocation42_spill] sm:$0xff]  ;;  %v17603_v9 = vld [vmem:[#allocation45_spill] sm:$0xff] }
 0xa02   :  { %2806 = vmatprep.subr.mxu0 %v12075_v62  ;;  %2877 = vmatprep.subr.mxu1 %v12080_v6  ;;  %v17604_v62 = vld [vmem:[#allocation43_spill] sm:$0xff]  ;;  %v17605_v6 = vld [vmem:[#allocation33_spill] sm:$0xff] }
 0xa03   :  { %2807 = vmatpush1.msra.mxu0 %v12087_v4  ;;  %2878 = vmatpush1.msra.mxu1 %v12092_v27  ;;  %v17606_v4 = vld [vmem:[#allocation31_spill] sm:$0xff]  ;;  %v17607_v27 = vld [vmem:[#allocation48_spill] sm:$0xff] }
 0xa04   :  { %2808 = vmatprep.subr.mxu0 %v12099_v60  ;;  %2879 = vmatprep.subr.mxu1 %v12104_v5 }
 0xa05   :  { %2809 = vmatpush1.msra.mxu0 %v12111_v26  ;;  %2880 = vmatpush1.msra.mxu1 %v12116_v29 }
 0xa06   :  { %2810 = vmatprep.subr.mxu0 %v12123_v30  ;;  %2881 = vmatprep.subr.mxu1 %v12128_v31 }
 0xa07   :  { %2811 = vmatpush1.msra.mxu0 %v12135_v32  ;;  %2882 = vmatpush1.msra.mxu1 %v12140_v10 }
 0xa08   :  { %2812 = vmatprep.subr.mxu0 %v12147_v34  ;;  %2883 = vmatprep.subr.mxu1 %v12152_v38 }
 0xa09   :  { %2813 = vmatpush1.msra.mxu0 %v12159_v39  ;;  %2884 = vmatpush1.msra.mxu1 %v12164_v40 }
 0xa0a   :  { %2814 = vmatprep.subr.mxu0 %v12171_v41  ;;  %2885 = vmatprep.subr.mxu1 %v12176_v42 }
 0xa0b   :  { %2815 = vmatpush1.msra.mxu0 %v12183_v43  ;;  %2886 = vmatpush1.msra.mxu1 %v12188_v44 }
 0xa0c   :  { %2816 = vmatprep.subr.mxu0 %v12195_v46  ;;  %2887 = vmatprep.subr.mxu1 %v12200_v47 }
 0xa0d   :  { %2817 = vmatpush1.msra.mxu0 %v12207_v48  ;;  %2888 = vmatpush1.msra.mxu1 %v12212_v49 }
 0xa0e   :  { %2818 = vmatprep.subr.mxu0 %v12219_v50  ;;  %2889 = vmatprep.subr.mxu1 %v12224_v51 }
 0xa0f   :  { %2819 = vmatpush1.msra.mxu0 %v12231_v52  ;;  %2890 = vmatpush1.msra.mxu1 %v12236_v53 }
 0xa10   :  { %2820 = vmatprep.subr.mxu0 %v12243_v12  ;;  %2891 = vmatprep.subr.mxu1 %v12248_v22 }
 0xa11   :  { %2821 = vmatpush1.msra.mxu0 %v12255_v57  ;;  %2892 = vmatpush1.msra.mxu1 %v17594_v21 }
 0xa12   :  { %2822 = vmatprep.subr.mxu0 %v17595_v8  ;;  %2893 = vmatprep.subr.mxu1 %v17596_v1 }
 0xa13   :  { %2823 = vmatpush1.msra.mxu0 %v17597_v36  ;;  %2894 = vmatpush1.msra.mxu1 %v17598_v7 }
 0xa14   :  { %2824 = vmatprep.subr.mxu0 %v17599_v59  ;;  %2895 = vmatprep.subr.mxu1 %v17600_v2 }
 0xa15   :  { %2825 = vmatpush1.msra.mxu0 %v17601_v3  ;;  %2896 = vmatpush1.msra.mxu1 %v17602_v18 }
 0xa16   :  { %2826 = vmatprep.subr.mxu0 %v17603_v9  ;;  %2897 = vmatprep.subr.mxu1 %v17604_v62 }
 0xa17   :  { %2827 = vmatpush1.msra.mxu0 %v17605_v6  ;;  %2898 = vmatpush1.msra.mxu1 %v17606_v4 }
 0xa18   :  { %2828 = vmatprep.subr.mxu0 %v17607_v27  ;;  %2899 = vmatprep.subr.mxu1 %v17608_v16 }
 0xa19   :  { %2829 = vmatpush1.msra.mxu0 %v17609_v63  ;;  %2900 = vmatpush1.msra.mxu1 %v17610_v13  ;;  %v17622_v13 = vld [vmem:[#allocation19_spill] sm:$0xff] }
 0xa1a   :  { %2830 = vmatprep.subr.mxu0 %v17611_v0  ;;  %2901 = vmatprep.subr.mxu1 %v17612_v24  ;;  %v2141_v45 = vadd.f32 %v17622_v13, %v12542_v35 }
 0xa1b   :  { %2831 = vmatpush1.msra.mxu0 %v17613_v55  ;;  %2864 = vmatprep.mubr.f32.mxu0 %v17614_v28 }
 0xa1c   :  { %2902 = vmatpush1.msra.mxu1 %v17615_v20  ;;  %2935 = vmatprep.mubr.f32.mxu1 %v17614_v28 }
 0xa1d   :  { %2975 = vmatprep.subr.mxu0 %v17616_v14  ;;  %3046 = vmatprep.subr.mxu1 %v17617_v19  ;;  %v17621_v14 = vld [vmem:[#allocation21_spill] sm:$0xff] }
 0xa1e   :  { %v2143_v0 = vadd.f32 %v17621_v14, %v17590_v54  ;;  %v12737_v14 = vld [vmem:[%s16772_s6 + $0x1d8] sm:$0xff] }
 0xabc   :  { %v2691_v61 = vpop.f32.mrf.mxu0  ;;  %v2762_v24 = vpop.f32.mrf.mxu1 }
 0xabd   :  { %v2767_v25 = vadd.f32 %v2691_v61, %v2028_v56  ;;  %v2769_v11 = vadd.f32 %v2762_v24, %v2141_v45  ;;  %v12749_v45 = vld [vmem:[%s16772_s6 + $0x1d0] sm:$0xff] }
 0xabe   :  { %v2693_v37 = vpop.f32.mrf.mxu0  ;;  %v2764_v28 = vpop.f32.mrf.mxu1 }
 0xabf   :  { %v9114_v17 = vmul.f32 -1.442695, %v2767_v25  ;;  %v2768_v55 = vadd.f32 %v2693_v37, %v2030_v15  ;;  %v2770_v19 = vadd.f32 %v2764_v28, %v2143_v0 }
 0xac1   :  { %9617 = vpow2.f32 %v9114_v17  ;;  %v9115_v20 = vmul.f32 -1.442695, %v2768_v55  ;;  %v9116_v63 = vmul.f32 -1.442695, %v2770_v19  ;;  %v12743_v19 = vld [vmem:[%s16772_s6 + $0x1c0] sm:$0xff] }
 0xac3   :  { %9619 = vpow2.f32 %v9115_v20 }
 0xac4   :  { %9621 = vtanh.f32 %v2769_v11  ;;  %v12731_v11 = vld [vmem:[%s16772_s6 + $0x1c8] sm:$0xff] }
 0xac5   :  { %9623 = vpow2.f32 %v9116_v63  ;;  %v12719_v63 = vld [vmem:[%s16772_s6 + $0x1e0] sm:$0xff] }
 0xace   :  { %v9618_v16 = vpop.eup %9617 }
 0xacf   :  { %v2774_v23 = vadd.f32 1.0, %v9618_v16 }
 0xad0   :  { %v9620_v56 = vpop.eup %9619 }
 0xad1   :  { %9625 = vrcp.f32 %v2774_v23  ;;  %v2780_v17 = vadd.f32 1.0, %v9620_v56  ;;  %v9622_v55 = vpop.eup %9621  ;;  %v12755_v23 = vld [vmem:[%s16772_s6 + $0x1a8] sm:$0xff]  ;;  %v12761_v56 = vld [vmem:[%s16772_s6 + $0x1b8] sm:$0xff] }
 0xad2   :  { %v9624_v20 = vpop.eup %9623 }
 0xad3   :  { %9627 = vrcp.f32 %v2780_v17  ;;  %v2787_v37 = vadd.f32 1.0, %v9624_v20  ;;  %v12767_v17 = vld [vmem:[%s16772_s6 + $0x1a0] sm:$0xff]  ;;  %v12779_v20 = vld [vmem:[%s16772_s6 + $0x188] sm:$0xff] }
 0xad5   :  { %9629 = vrcp.f32 %v2787_v37 }
 0xade   :  { %v9626_v61 = vpop.eup %9625 }
 0xadf   :  { %v2791_v15 = vmul.f32 %v9626_v61, %v9622_v55  ;;  %v12773_v55 = vld [vmem:[%s16772_s6 + $0x1b0] sm:$0xff]  ;;  %v12785_v61 = vld [vmem:[%s16772_s6 + $0x198] sm:$0xff] }
 0xae0   :  { %v9628_v25 = vpop.eup %9627 }
 0xae1   :  { %v2790_v0 = vmul.f32 %v9628_v25, %v12627_v58  ;;  %v12725_v58 = vld [vmem:[%s16772_s6 + $0x1f0] sm:$0xff] }
 0xae2   :  { %v9630_v16 = vpop.eup %9629  ;;  %v12797_v25 = vld [vmem:[%s16772_s6 + $0x190] sm:$0xff] }
 0xae3   :  { %v12709_v28 = vadd.f32 %v2791_v15, %v2790_v0  ;;  %v12791_v15 = vld [vmem:[%s16772_s6 + $0x180] sm:$0xff]  ;;  %v10258_v0 = vmov 1983009808  }
 0xae5   :  { %9631 = vtanh.f32 %v12709_v28 }
 0xaf2   :  { %v9632_v13 = vpop.eup %9631 }
 0xaf3   :  { %v12712_v24 = vmul.f32 %v9632_v13, %v9630_v16  ;;  %v7289_v16 = vunpack.c.l.s4 %v10258_v0  ;;  %v13040_v0 = vld [vmem:[%s16772_s6 + $0xc8] sm:$0xff] }
 0xaf5   :  { %2865 = vmatmul.mubr.f32.vlgmr.msra.gmra.mxu0 %v12712_v24  ;;  %2936 = vmatmul.mubr.f32.vlgmr.msra.gmra.mxu1 %v12712_v24  ;;  %v7290_v13 = vunpack.c.0.s8 %v7289_v16  ;;  %v13046_v16 = vld [vmem:[%s16772_s6 + $0xd8] sm:$0xff] }
 0xaf6   :  { %2976 = vmatpush1.msra.mxu0 %v12719_v63  ;;  %3047 = vmatpush1.msra.mxu1 %v12725_v58 }
 0xaf7   :  { %2977 = vmatprep.subr.mxu0 %v12731_v11  ;;  %3048 = vmatprep.subr.mxu1 %v12737_v14 }
 0xaf8   :  { %2978 = vmatpush1.msra.mxu0 %v12743_v19  ;;  %3049 = vmatpush1.msra.mxu1 %v12749_v45 }
 0xaf9   :  { %2979 = vmatprep.subr.mxu0 %v12755_v23  ;;  %3050 = vmatprep.subr.mxu1 %v12761_v56 }
 0xafa   :  { %2980 = vmatpush1.msra.mxu0 %v12767_v17  ;;  %3051 = vmatpush1.msra.mxu1 %v12773_v55 }
 0xafb   :  { %2981 = vmatprep.subr.mxu0 %v12779_v20  ;;  %3052 = vmatprep.subr.mxu1 %v12785_v61 }
 0xafc   :  { %2982 = vmatpush1.msra.mxu0 %v12791_v15  ;;  %3053 = vmatpush1.msra.mxu1 %v12797_v25 }
 0xafd   :  { %2983 = vmatprep.subr.mxu0 %v12099_v60  ;;  %3054 = vmatprep.subr.mxu1 %v12104_v5  ;;  %v17623_v60 = vld [vmem:[#allocation46_spill] sm:$0xff]  ;;  %v17624_v5 = vld [vmem:[#allocation49_spill] sm:$0xff] }
 0xafe   :  { %2984 = vmatpush1.msra.mxu0 %v12111_v26  ;;  %3055 = vmatpush1.msra.mxu1 %v12116_v29  ;;  %v17625_v26 = vld [vmem:[#allocation47_spill] sm:$0xff]  ;;  %v17626_v29 = vld [vmem:[#allocation8_spill] sm:$0xff] }
 0xaff   :  { %2985 = vmatprep.subr.mxu0 %v12123_v30  ;;  %3056 = vmatprep.subr.mxu1 %v12128_v31  ;;  %v17627_v30 = vld [vmem:[#allocation9_spill] sm:$0xff]  ;;  %v17628_v31 = vld [vmem:[#allocation10_spill] sm:$0xff] }
 0xb00   :  { %2986 = vmatpush1.msra.mxu0 %v12135_v32  ;;  %3057 = vmatpush1.msra.mxu1 %v12140_v10  ;;  %v17629_v32 = vmov 0.0   ;;  %v17630_v10 = vld [vmem:[#allocation11_spill] sm:$0xff] }
 0xb01   :  { %2987 = vmatprep.subr.mxu0 %v12147_v34  ;;  %3058 = vmatprep.subr.mxu1 %v12152_v38  ;;  %v12853_v34 = vld [vmem:[%s16772_s6 + $0x1e8] sm:$0xff]  ;;  %v12859_v38 = vld [vmem:[%s16772_s6 + $0x1f8] sm:$0xff] }
 0xb02   :  { %2988 = vmatpush1.msra.mxu0 %v12159_v39  ;;  %3059 = vmatpush1.msra.mxu1 %v12164_v40  ;;  %17631 = vst [vmem:[#allocation16_spill] sm:$0xff] %v12853_v34  ;;  %17632 = vst [vmem:[#allocation17_spill] sm:$0xff] %v12859_v38  ;;  %v17633_v39 = vld [vmem:[#allocation57_spill] sm:$0xff]  ;;  %v17634_v40 = vld [vmem:[#allocation22_spill] sm:$0xff] }
 0xb03   :  { %2989 = vmatprep.subr.mxu0 %v12171_v41  ;;  %3060 = vmatprep.subr.mxu1 %v12176_v42  ;;  %v2034_v41 = vadd.f32 %v17634_v40, %v17633_v39  ;;  %v17641_v40 = vld [vmem:[#allocation14_spill] sm:$0xff] }
 0xb04   :  { %2990 = vmatpush1.msra.mxu0 %v12183_v43  ;;  %3061 = vmatpush1.msra.mxu1 %v12188_v44  ;;  %v17635_v43 = vld [vmem:[#allocation24_spill] sm:$0xff] }
 0xb05   :  { %2991 = vmatprep.subr.mxu0 %v12195_v46  ;;  %3062 = vmatprep.subr.mxu1 %v12200_v47  ;;  %v2036_v44 = vadd.f32 %v17635_v43, %v12527_v33 }
 0xb06   :  { %2992 = vmatpush1.msra.mxu0 %v12207_v48  ;;  %3063 = vmatpush1.msra.mxu1 %v12212_v49 }
 0xb07   :  { %2993 = vmatprep.subr.mxu0 %v12219_v50  ;;  %3064 = vmatprep.subr.mxu1 %v12224_v51 }
 0xb08   :  { %2994 = vmatpush1.msra.mxu0 %v12231_v52  ;;  %3065 = vmatpush1.msra.mxu1 %v12236_v53  ;;  %v17636_v53 = vld [vmem:[#allocation25_spill] sm:$0xff] }
 0xb09   :  { %2995 = vmatprep.subr.mxu0 %v12243_v12  ;;  %3066 = vmatprep.subr.mxu1 %v12248_v22  ;;  %v2149_v12 = vadd.f32 %v17636_v53, %v17590_v54  ;;  %v12932_v53 = vld [vmem:[%s16772_s6 + $0x160] sm:$0xff] }
 0xb0a   :  { %2996 = vmatpush1.msra.mxu0 %v12255_v57  ;;  %3067 = vmatpush1.msra.mxu1 %v17594_v21  ;;  %v17637_v57 = vld [vmem:[#allocation23_spill] sm:$0xff] }
 0xb0b   :  { %2997 = vmatprep.subr.mxu0 %v17595_v8  ;;  %3068 = vmatprep.subr.mxu1 %v17596_v1  ;;  %v2147_v21 = vadd.f32 %v17637_v57, %v12542_v35  ;;  %v12950_v57 = vld [vmem:[%s16772_s6 + $0x158] sm:$0xff] }
 0xb0c   :  { %2998 = vmatpush1.msra.mxu0 %v17597_v36  ;;  %3069 = vmatpush1.msra.mxu1 %v17598_v7 }
 0xb0d   :  { %2999 = vmatprep.subr.mxu0 %v17599_v59  ;;  %3070 = vmatprep.subr.mxu1 %v17600_v2 }
 0xb0e   :  { %3000 = vmatpush1.msra.mxu0 %v17601_v3  ;;  %3071 = vmatpush1.msra.mxu1 %v17602_v18 }
 0xb0f   :  { %3001 = vmatprep.subr.mxu0 %v17603_v9  ;;  %3072 = vmatprep.subr.mxu1 %v17604_v62 }
 0xb10   :  { %3002 = vmatpush1.msra.mxu0 %v17605_v6  ;;  %3073 = vmatpush1.msra.mxu1 %v17606_v4 }
 0xb11   :  { %3003 = vmatprep.subr.mxu0 %v17607_v27  ;;  %3074 = vmatprep.subr.mxu1 %v17623_v60 }
 0xb12   :  { %3004 = vmatpush1.msra.mxu0 %v17624_v5  ;;  %3075 = vmatpush1.msra.mxu1 %v17625_v26  ;;  %v17638_v26 = vld [vmem:[#allocation27_spill] sm:$0xff] }
 0xb13   :  { %3005 = vmatprep.subr.mxu0 %v17626_v29  ;;  %3076 = vmatprep.subr.mxu1 %v17627_v30  ;;  %v12875_v29 = vsub.s32 %v7290_v13, %v17638_v26  ;;  %v17640_v30 = vld [vmem:[#allocation67_spill] sm:$0xff]  ;;  %v13052_v13 = vld [vmem:[%s16772_s6 + $0xc0] sm:$0xff]  ;;  %v13166_v26 = vld [vmem:[%s16772_s6 + $0x38] sm:$0xff] }
 0xb14   :  { %3006 = vmatpush1.msra.mxu0 %v17628_v31  ;;  %3039 = vmatprep.mubr.f32.mxu0 %v17629_v32  ;;  %v7430_v31 = vcombine.low %v17640_v30, %v12712_v24  ;;  %17660 = vst [vmem:[#allocation21_spill] sm:$0xff] %v13166_v26 }
 0xb15   :  { %3077 = vmatpush1.msra.mxu1 %v17630_v10  ;;  %3110 = vmatprep.mubr.f32.mxu1 %v17629_v32  ;;  %17639 = vst [vmem:[#allocation15_spill] sm:$0xff] %v12875_v29 }
 0xb16   :  { %3150 = vmatprep.subr.mxu0 %v12853_v34  ;;  %3221 = vmatprep.subr.mxu1 %v12859_v38  ;;  %v12886_v43 = vrot.slane %v7430_v31, %v12875_v29  ;;  %v13076_v31 = vld [vmem:[%s16772_s6 + $0xa0] sm:$0xff] }
 0xb18   :  { %17642 = vst [vmem:[#allocation35_spill] sm:$0xff] %v12886_v43  ;;  %v13154_v43 = vld [vmem:[%s16772_s6 + $0x50] sm:$0xff] }
 0xb19   :  { %17658 = vst [vmem:[#allocation18_spill] sm:$0xff] %v13154_v43 }
 0xbb5   :  { %v2866_v42 = vpop.f32.mrf.mxu0  ;;  %v2937_v50 = vpop.f32.mrf.mxu1 }
 0xbb6   :  { %v2942_v46 = vadd.f32 %v2866_v42, %v2034_v41  ;;  %v2944_v8 = vadd.f32 %v2937_v50, %v2147_v21  ;;  %v12956_v21 = vld [vmem:[%s16772_s6 + $0x140] sm:$0xff]  ;;  %v13112_v50 = vld [vmem:[%s16772_s6 + $0x68] sm:$0xff] }
 0xbb7   :  { %v2868_v47 = vpop.f32.mrf.mxu0  ;;  %v2939_v52 = vpop.f32.mrf.mxu1  ;;  %17651 = vst [vmem:[#allocation45_spill] sm:$0xff] %v13112_v50 }
 0xbb8   :  { %v9117_v48 = vmul.f32 -1.442695, %v2942_v46  ;;  %v2943_v49 = vadd.f32 %v2868_v47, %v2036_v44  ;;  %v2945_v22 = vadd.f32 %v2939_v52, %v2149_v12  ;;  %v12926_v52 = vld [vmem:[%s16772_s6 + $0x178] sm:$0xff]  ;;  %v12938_v12 = vld [vmem:[%s16772_s6 + $0x170] sm:$0xff] }
 0xbb9   :  { %v13130_v47 = vld [vmem:[%s16772_s6 + $0x70] sm:$0xff] }
 0xbba   :  { %9633 = vpow2.f32 %v9117_v48  ;;  %v9118_v51 = vmul.f32 -1.442695, %v2943_v49  ;;  %v9119_v1 = vmul.f32 -1.442695, %v2945_v22  ;;  %v12944_v22 = vld [vmem:[%s16772_s6 + $0x148] sm:$0xff]  ;;  %v13118_v49 = vld [vmem:[%s16772_s6 + $0x78] sm:$0xff] }
 0xbbb   :  { %17652 = vst [vmem:[#allocation43_spill] sm:$0xff] %v13118_v49  ;;  %v13124_v48 = vld [vmem:[%s16772_s6 + $0x60] sm:$0xff]  ;;  %17654 = vst [vmem:[#allocation31_spill] sm:$0xff] %v13130_v47 }
 0xbbc   :  { %9635 = vpow2.f32 %v9118_v51  ;;  %v12920_v51 = vld [vmem:[%s16772_s6 + $0x168] sm:$0xff]  ;;  %17653 = vst [vmem:[#allocation33_spill] sm:$0xff] %v13124_v48 }
 0xbbd   :  { %9637 = vtanh.f32 %v2944_v8  ;;  %v12962_v8 = vld [vmem:[%s16772_s6 + $0x150] sm:$0xff] }
 0xbbe   :  { %9639 = vpow2.f32 %v9119_v1  ;;  %v12968_v1 = vld [vmem:[%s16772_s6 + $0x128] sm:$0xff] }
 0xbc7   :  { %v9634_v36 = vpop.eup %9633 }
 0xbc8   :  { %v2949_v7 = vadd.f32 1.0, %v9634_v36  ;;  %v12974_v36 = vld [vmem:[%s16772_s6 + $0x138] sm:$0xff] }
 0xbc9   :  { %v9636_v59 = vpop.eup %9635 }
 0xbca   :  { %9641 = vrcp.f32 %v2949_v7  ;;  %v2955_v2 = vadd.f32 1.0, %v9636_v59  ;;  %v9638_v3 = vpop.eup %9637  ;;  %v12980_v7 = vld [vmem:[%s16772_s6 + $0x120] sm:$0xff]  ;;  %v12986_v59 = vld [vmem:[%s16772_s6 + $0x130] sm:$0xff] }
 0xbcb   :  { %v9640_v18 = vpop.eup %9639 }
 0xbcc   :  { %9643 = vrcp.f32 %v2955_v2  ;;  %v2962_v4 = vadd.f32 1.0, %v9640_v18  ;;  %v12992_v2 = vld [vmem:[%s16772_s6 + $0x108] sm:$0xff]  ;;  %v13004_v18 = vld [vmem:[%s16772_s6 + $0x100] sm:$0xff] }
 0xbce   :  { %9645 = vrcp.f32 %v2962_v4  ;;  %v13028_v4 = vld [vmem:[%s16772_s6 + $0xe0] sm:$0xff] }
 0xbd7   :  { %v9642_v9 = vpop.eup %9641 }
 0xbd8   :  { %v2966_v62 = vmul.f32 %v9642_v9, %v9638_v3  ;;  %v12998_v3 = vld [vmem:[%s16772_s6 + $0x118] sm:$0xff]  ;;  %v13010_v9 = vld [vmem:[%s16772_s6 + $0x110] sm:$0xff] }
 0xbd9   :  { %v9644_v6 = vpop.eup %9643 }
 0xbda   :  { %v2965_v27 = vmul.f32 %v9644_v6, %v12709_v28  ;;  %v7431_v28 = vcombine.high %v17640_v30, %v12712_v24  ;;  %v13022_v6 = vld [vmem:[%s16772_s6 + $0xf8] sm:$0xff] }
 0xbdb   :  { %v9646_v60 = vpop.eup %9645  ;;  %v13070_v30 = vld [vmem:[%s16772_s6 + $0xb8] sm:$0xff] }
 0xbdc   :  { %v12871_v37 = vadd.f32 %v2966_v62, %v2965_v27  ;;  %v12894_v24 = vrot.slane %v7431_v28, %v12875_v29  ;;  %v13016_v62 = vld [vmem:[%s16772_s6 + $0xe8] sm:$0xff]  ;;  %v13034_v27 = vld [vmem:[%s16772_s6 + $0xf0] sm:$0xff] }
 0xbdd   :  { %v13088_v28 = vld [vmem:[%s16772_s6 + $0x88] sm:$0xff] }
 0xbde   :  { %9647 = vtanh.f32 %v12871_v37  ;;  %17644 = vst [vmem:[#allocation40_spill] sm:$0xff] %v12894_v24  ;;  %17647 = vst [vmem:[#allocation39_spill] sm:$0xff] %v13088_v28  ;;  %v13142_v24 = vld [vmem:[%s16772_s6 + $0x58] sm:$0xff] }
 0xbdf   :  { %17656 = vst [vmem:[#allocation34_spill] sm:$0xff] %v13142_v24 }
 0xbeb   :  { %v9648_v5 = vpop.eup %9647 }
 0xbec   :  { %v2969_v10 = vmul.f32 %v9648_v5, %v9646_v60  ;;  %v13058_v60 = vld [vmem:[%s16772_s6 + $0xd0] sm:$0xff]  ;;  %v13064_v5 = vld [vmem:[%s16772_s6 + $0xa8] sm:$0xff] }
 0xbee   :  { %3040 = vmatmul.mubr.f32.vlgmr.msra.gmra.mxu0 %v2969_v10  ;;  %3111 = vmatmul.mubr.f32.vlgmr.msra.gmra.mxu1 %v2969_v10  ;;  %v7446_v41 = vcombine.low %v17641_v40, %v2969_v10  ;;  %v7447_v42 = vcombine.high %v17641_v40, %v2969_v10  ;;  %v13082_v10 = vld [vmem:[%s16772_s6 + $0xb0] sm:$0xff]  ;;  %v13094_v40 = vld [vmem:[%s16772_s6 + $0x98] sm:$0xff] }
 0xbef   :  { %3151 = vmatpush1.msra.mxu0 %v12719_v63  ;;  %3222 = vmatpush1.msra.mxu1 %v12725_v58  ;;  %17646 = vst [vmem:[#allocation41_spill] sm:$0xff] %v13082_v10  ;;  %17648 = vst [vmem:[#allocation30_spill] sm:$0xff] %v13094_v40 }
 0xbf0   :  { %3152 = vmatprep.subr.mxu0 %v12731_v11  ;;  %3223 = vmatprep.subr.mxu1 %v12737_v14  ;;  %v12891_v44 = vrot.slane %v7446_v41, %v12875_v29  ;;  %v12897_v46 = vrot.slane %v7447_v42, %v12875_v29  ;;  %v13100_v41 = vld [vmem:[%s16772_s6 + $0x80] sm:$0xff]  ;;  %v13106_v42 = vld [vmem:[%s16772_s6 + $0x90] sm:$0xff]  ;;  %v13160_v29 = vld [vmem:[%s16772_s6 + $0x28] sm:$0xff] }
 0xbf1   :  { %3153 = vmatpush1.msra.mxu0 %v12743_v19  ;;  %3224 = vmatpush1.msra.mxu1 %v12749_v45  ;;  %17649 = vst [vmem:[#allocation44_spill] sm:$0xff] %v13100_v41  ;;  %17650 = vst [vmem:[#allocation42_spill] sm:$0xff] %v13106_v42 }
 0xbf2   :  { %17643 = vst [vmem:[#allocation26_spill] sm:$0xff] %v12891_v44  ;;  %17645 = vst [vmem:[#allocation38_spill] sm:$0xff] %v12897_v46  ;;  %3154 = vmatprep.subr.mxu0 %v12755_v23  ;;  %3225 = vmatprep.subr.mxu1 %v12761_v56  ;;  %v13136_v46 = vld [vmem:[%s16772_s6 + $0x48] sm:$0xff]  ;;  %v13148_v44 = vld [vmem:[%s16772_s6 + $0x40] sm:$0xff] }
 0xbf3   :  { %3155 = vmatpush1.msra.mxu0 %v12767_v17  ;;  %3226 = vmatpush1.msra.mxu1 %v12773_v55  ;;  %17655 = vst [vmem:[#allocation48_spill] sm:$0xff] %v13136_v46  ;;  %17657 = vst [vmem:[#allocation37_spill] sm:$0xff] %v13148_v44 }
 0xbf4   :  { %3156 = vmatprep.subr.mxu0 %v12779_v20  ;;  %3227 = vmatprep.subr.mxu1 %v12785_v61  ;;  %17659 = vst [vmem:[#allocation20_spill] sm:$0xff] %v13160_v29 }
 0xbf5   :  { %3157 = vmatpush1.msra.mxu0 %v12791_v15  ;;  %3228 = vmatpush1.msra.mxu1 %v12797_v25 }
 0xbf6   :  { %3158 = vmatprep.subr.mxu0 %v12920_v51  ;;  %3229 = vmatprep.subr.mxu1 %v12926_v52 }
 0xbf7   :  { %3159 = vmatpush1.msra.mxu0 %v12932_v53  ;;  %3230 = vmatpush1.msra.mxu1 %v12938_v12 }
 0xbf8   :  { %3160 = vmatprep.subr.mxu0 %v12944_v22  ;;  %3231 = vmatprep.subr.mxu1 %v12950_v57 }
 0xbf9   :  { %3161 = vmatpush1.msra.mxu0 %v12956_v21  ;;  %3232 = vmatpush1.msra.mxu1 %v12962_v8 }
 0xbfa   :  { %3162 = vmatprep.subr.mxu0 %v12968_v1  ;;  %3233 = vmatprep.subr.mxu1 %v12974_v36 }
 0xbfb   :  { %3163 = vmatpush1.msra.mxu0 %v12980_v7  ;;  %3234 = vmatpush1.msra.mxu1 %v12986_v59 }
 0xbfc   :  { %3164 = vmatprep.subr.mxu0 %v12992_v2  ;;  %3235 = vmatprep.subr.mxu1 %v12998_v3 }
 0xbfd   :  { %3165 = vmatpush1.msra.mxu0 %v13004_v18  ;;  %3236 = vmatpush1.msra.mxu1 %v13010_v9 }
 0xbfe   :  { %3166 = vmatprep.subr.mxu0 %v13016_v62  ;;  %3237 = vmatprep.subr.mxu1 %v13022_v6 }
 0xbff   :  { %3167 = vmatpush1.msra.mxu0 %v13028_v4  ;;  %3238 = vmatpush1.msra.mxu1 %v13034_v27 }
 0xc00   :  { %3168 = vmatprep.subr.mxu0 %v13040_v0  ;;  %3239 = vmatprep.subr.mxu1 %v13046_v16 }
 0xc01   :  { %3169 = vmatpush1.msra.mxu0 %v13052_v13  ;;  %3240 = vmatpush1.msra.mxu1 %v13058_v60 }
 0xc02   :  { %3170 = vmatprep.subr.mxu0 %v13064_v5  ;;  %3241 = vmatprep.subr.mxu1 %v13070_v30 }
 0xc03   :  { %3171 = vmatpush1.msra.mxu0 %v13076_v31  ;;  %3242 = vmatpush1.msra.mxu1 %v13082_v10 }
 0xc04   :  { %3172 = vmatprep.subr.mxu0 %v13088_v28  ;;  %3243 = vmatprep.subr.mxu1 %v13094_v40  ;;  %v17670_v40 = vld [vmem:[#allocation6_spill] sm:$0xff] }
 0xc05   :  { %3173 = vmatpush1.msra.mxu0 %v13100_v41  ;;  %3244 = vmatpush1.msra.mxu1 %v13106_v42 }
 0xc06   :  { %3174 = vmatprep.subr.mxu0 %v13112_v50  ;;  %3245 = vmatprep.subr.mxu1 %v13118_v49 }
 0xc07   :  { %3175 = vmatpush1.msra.mxu0 %v13124_v48  ;;  %3246 = vmatpush1.msra.mxu1 %v13130_v47 }
 0xc08   :  { %3176 = vmatprep.subr.mxu0 %v13136_v46  ;;  %3247 = vmatprep.subr.mxu1 %v13142_v24 }
 0xc09   :  { %3177 = vmatpush1.msra.mxu0 %v13148_v44  ;;  %3248 = vmatpush1.msra.mxu1 %v13154_v43  ;;  %v13172_v44 = vld [vmem:[%s16772_s6 + $0x20] sm:$0xff]  ;;  %v13178_v43 = vld [vmem:[%s16772_s6 + $0x30] sm:$0xff] }
 0xc0a   :  { %3178 = vmatprep.subr.mxu0 %v13160_v29  ;;  %3249 = vmatprep.subr.mxu1 %v13166_v26  ;;  %17661 = vst [vmem:[#allocation19_spill] sm:$0xff] %v13172_v44  ;;  %17662 = vst [vmem:[#allocation46_spill] sm:$0xff] %v13178_v43  ;;  %v13184_v29 = vld [vmem:[%s16772_s6 + $0x8] sm:$0xff]  ;;  %v13190_v26 = vld [vmem:[%s16772_s6 + $0x18] sm:$0xff] }
 0xc0b   :  { %3179 = vmatpush1.msra.mxu0 %v13172_v44  ;;  %3250 = vmatpush1.msra.mxu1 %v13178_v43  ;;  %17663 = vst [vmem:[#allocation49_spill] sm:$0xff] %v13184_v29  ;;  %17664 = vst [vmem:[#allocation47_spill] sm:$0xff] %v13190_v26  ;;  %v13196_v44 = vld [vmem:[%s16772_s6] sm:$0xff] }
 0xc0c   :  { %3180 = vmatprep.subr.mxu0 %v13184_v29  ;;  %3251 = vmatprep.subr.mxu1 %v13190_v26  ;;  %17665 = vst [vmem:[#allocation8_spill] sm:$0xff] %v13196_v44  ;;  %v13203_v29 = vld [vmem:[%s16772_s6 + $0x10] sm:$0xff]  ;;  %v17667_v26 = vld [vmem:[#allocation5_spill] sm:$0xff] }
 0xc0d   :  { %3181 = vmatpush1.msra.mxu0 %v13196_v44  ;;  %3214 = vmatprep.mubr.f32.mxu0 %v17629_v32  ;;  %17666 = vst [vmem:[#allocation9_spill] sm:$0xff] %v13203_v29  ;;  %v2040_v43 = vadd.f32 %v17667_v26, %v17633_v39  ;;  %v17668_v44 = vld [vmem:[#allocation52_spill] sm:$0xff]  ;;  %v2153_v26 = vadd.f32 %v17670_v40, %v12542_v35  ;;  %v17674_v40 = vld [vmem:[#allocation30_spill] sm:$0xff] }
 0xc0e   :  { %3252 = vmatpush1.msra.mxu1 %v13203_v29  ;;  %3285 = vmatprep.mubr.f32.mxu1 %v17629_v32  ;;  %v2042_v46 = vadd.f32 %v17668_v44, %v12527_v33 }
 0xc0f   :  { %3325 = vmatprep.subr.mxu0 %v12853_v34  ;;  %3396 = vmatprep.subr.mxu1 %v12859_v38  ;;  %v17669_v34 = vld [vmem:[#allocation50_spill] sm:$0xff] }
 0xc10   :  { %v2155_v41 = vadd.f32 %v17669_v34, %v17590_v54 }
 0xcae   :  { %v3041_v24 = vpop.f32.mrf.mxu0  ;;  %v3112_v42 = vpop.f32.mrf.mxu1 }
 0xcaf   :  { %v3117_v47 = vadd.f32 %v3041_v24, %v2040_v43  ;;  %v3119_v39 = vadd.f32 %v3112_v42, %v2153_v26  ;;  %v17676_v42 = vld [vmem:[#allocation42_spill] sm:$0xff]  ;;  %v17677_v26 = vld [vmem:[#allocation45_spill] sm:$0xff] }
 0xcb0   :  { %v3043_v48 = vpop.f32.mrf.mxu0  ;;  %v3114_v32 = vpop.f32.mrf.mxu1 }
 0xcb1   :  { %v9120_v49 = vmul.f32 -1.442695, %v3117_v47  ;;  %v3118_v50 = vadd.f32 %v3043_v48, %v2042_v46  ;;  %v3120_v38 = vadd.f32 %v3114_v32, %v2155_v41  ;;  %v17675_v41 = vld [vmem:[#allocation44_spill] sm:$0xff] }
 0xcb3   :  { %9649 = vpow2.f32 %v9120_v49  ;;  %v9121_v29 = vmul.f32 -1.442695, %v3118_v50  ;;  %v9122_v28 = vmul.f32 -1.442695, %v3120_v38 }
 0xcb5   :  { %9651 = vpow2.f32 %v9121_v29 }
 0xcb6   :  { %9653 = vtanh.f32 %v3119_v39 }
 0xcb7   :  { %9655 = vpow2.f32 %v9122_v28  ;;  %v17673_v28 = vld [vmem:[#allocation39_spill] sm:$0xff] }
 0xcc0   :  { %v9650_v10 = vpop.eup %9649 }
 0xcc1   :  { %v3124_v44 = vadd.f32 1.0, %v9650_v10 }
 0xcc2   :  { %v9652_v43 = vpop.eup %9651 }
 0xcc3   :  { %9657 = vrcp.f32 %v3124_v44  ;;  %v3130_v24 = vadd.f32 1.0, %v9652_v43  ;;  %v9654_v46 = vpop.eup %9653  ;;  %v17678_v44 = vld [vmem:[#allocation43_spill] sm:$0xff]  ;;  %v17679_v43 = vld [vmem:[#allocation33_spill] sm:$0xff] }
 0xcc4   :  { %v9656_v29 = vpop.eup %9655 }
 0xcc5   :  { %9659 = vrcp.f32 %v3130_v24  ;;  %v3137_v34 = vadd.f32 1.0, %v9656_v29  ;;  %v17680_v24 = vld [vmem:[#allocation31_spill] sm:$0xff]  ;;  %v17682_v29 = vld [vmem:[#allocation34_spill] sm:$0xff] }
 0xcc7   :  { %9661 = vrcp.f32 %v3137_v34  ;;  %v17686_v34 = vld [vmem:[#allocation21_spill] sm:$0xff] }
 0xcd0   :  { %v9658_v47 = vpop.eup %9657 }
 0xcd1   :  { %v3141_v48 = vmul.f32 %v9658_v47, %v9654_v46  ;;  %v17681_v46 = vld [vmem:[#allocation48_spill] sm:$0xff]  ;;  %v17683_v47 = vld [vmem:[#allocation37_spill] sm:$0xff] }
 0xcd2   :  { %v9660_v49 = vpop.eup %9659 }
 0xcd3   :  { %v3140_v32 = vmul.f32 %v9660_v49, %v12871_v37  ;;  %v17672_v37 = vld [vmem:[#allocation41_spill] sm:$0xff]  ;;  %v17685_v49 = vld [vmem:[#allocation20_spill] sm:$0xff] }
 0xcd4   :  { %v9662_v38 = vpop.eup %9661 }
 0xcd5   :  { %v13218_v50 = vadd.f32 %v3141_v48, %v3140_v32  ;;  %v17684_v48 = vld [vmem:[#allocation18_spill] sm:$0xff]  ;;  %v17687_v32 = vld [vmem:[#allocation19_spill] sm:$0xff] }
 0xcd7   :  { %9663 = vtanh.f32 %v13218_v50 }
 0xce4   :  { %v9664_v39 = vpop.eup %9663 }
 0xce5   :  { %v13221_v10 = vmul.f32 %v9664_v39, %v9662_v38  ;;  %v17688_v38 = vld [vmem:[#allocation46_spill] sm:$0xff]  ;;  %v17689_v39 = vld [vmem:[#allocation49_spill] sm:$0xff] }
 0xce7   :  { %17671 = vst [vmem:[#allocation10_spill] sm:$0xff] %v13221_v10  ;;  %3215 = vmatmul.mubr.f32.vlgmr.msra.gmra.mxu0 %v13221_v10  ;;  %3286 = vmatmul.mubr.f32.vlgmr.msra.gmra.mxu1 %v13221_v10  ;;  %v17690_v10 = vld [vmem:[#allocation47_spill] sm:$0xff] }
 0xce8   :  { %3326 = vmatpush1.msra.mxu0 %v12719_v63  ;;  %3397 = vmatpush1.msra.mxu1 %v12725_v58 }
 0xce9   :  { %3327 = vmatprep.subr.mxu0 %v12731_v11  ;;  %3398 = vmatprep.subr.mxu1 %v12737_v14 }
 0xcea   :  { %3328 = vmatpush1.msra.mxu0 %v12743_v19  ;;  %3399 = vmatpush1.msra.mxu1 %v12749_v45 }
 0xceb   :  { %3329 = vmatprep.subr.mxu0 %v12755_v23  ;;  %3400 = vmatprep.subr.mxu1 %v12761_v56 }
 0xcec   :  { %3330 = vmatpush1.msra.mxu0 %v12767_v17  ;;  %3401 = vmatpush1.msra.mxu1 %v12773_v55 }
 0xced   :  { %3331 = vmatprep.subr.mxu0 %v12779_v20  ;;  %3402 = vmatprep.subr.mxu1 %v12785_v61 }
 0xcee   :  { %3332 = vmatpush1.msra.mxu0 %v12791_v15  ;;  %3403 = vmatpush1.msra.mxu1 %v12797_v25 }
 0xcef   :  { %3333 = vmatprep.subr.mxu0 %v12920_v51  ;;  %3404 = vmatprep.subr.mxu1 %v12926_v52 }
 0xcf0   :  { %3334 = vmatpush1.msra.mxu0 %v12932_v53  ;;  %3405 = vmatpush1.msra.mxu1 %v12938_v12 }
 0xcf1   :  { %3335 = vmatprep.subr.mxu0 %v12944_v22  ;;  %3406 = vmatprep.subr.mxu1 %v12950_v57 }
 0xcf2   :  { %3336 = vmatpush1.msra.mxu0 %v12956_v21  ;;  %3407 = vmatpush1.msra.mxu1 %v12962_v8 }
 0xcf3   :  { %3337 = vmatprep.subr.mxu0 %v12968_v1  ;;  %3408 = vmatprep.subr.mxu1 %v12974_v36 }
 0xcf4   :  { %3338 = vmatpush1.msra.mxu0 %v12980_v7  ;;  %3409 = vmatpush1.msra.mxu1 %v12986_v59 }
 0xcf5   :  { %3339 = vmatprep.subr.mxu0 %v12992_v2  ;;  %3410 = vmatprep.subr.mxu1 %v12998_v3 }
 0xcf6   :  { %3340 = vmatpush1.msra.mxu0 %v13004_v18  ;;  %3411 = vmatpush1.msra.mxu1 %v13010_v9 }
 0xcf7   :  { %3341 = vmatprep.subr.mxu0 %v13016_v62  ;;  %3412 = vmatprep.subr.mxu1 %v13022_v6 }
 0xcf8   :  { %3342 = vmatpush1.msra.mxu0 %v13028_v4  ;;  %3413 = vmatpush1.msra.mxu1 %v13034_v27 }
 0xcf9   :  { %3343 = vmatprep.subr.mxu0 %v13040_v0  ;;  %3414 = vmatprep.subr.mxu1 %v13046_v16 }
 0xcfa   :  { %3344 = vmatpush1.msra.mxu0 %v13052_v13  ;;  %3415 = vmatpush1.msra.mxu1 %v13058_v60 }
 0xcfb   :  { %3345 = vmatprep.subr.mxu0 %v13064_v5  ;;  %3416 = vmatprep.subr.mxu1 %v13070_v30 }
 0xcfc   :  { %3346 = vmatpush1.msra.mxu0 %v13076_v31  ;;  %3417 = vmatpush1.msra.mxu1 %v17672_v37 }
 0xcfd   :  { %3347 = vmatprep.subr.mxu0 %v17673_v28  ;;  %3418 = vmatprep.subr.mxu1 %v17674_v40  ;;  %v17700_v40 = vld [vmem:[#allocation51_spill] sm:$0xff] }
 0xcfe   :  { %3348 = vmatpush1.msra.mxu0 %v17675_v41  ;;  %3419 = vmatpush1.msra.mxu1 %v17676_v42 }
 0xcff   :  { %3349 = vmatprep.subr.mxu0 %v17677_v26  ;;  %3420 = vmatprep.subr.mxu1 %v17678_v44 }
 0xd00   :  { %3350 = vmatpush1.msra.mxu0 %v17679_v43  ;;  %3421 = vmatpush1.msra.mxu1 %v17680_v24  ;;  %v17691_v24 = vld [vmem:[#allocation8_spill] sm:$0xff] }
 0xd01   :  { %3351 = vmatprep.subr.mxu0 %v17681_v46  ;;  %3422 = vmatprep.subr.mxu1 %v17682_v29  ;;  %v17692_v46 = vmov 0.0   ;;  %v17693_v29 = vld [vmem:[#allocation9_spill] sm:$0xff] }
 0xd02   :  { %3352 = vmatpush1.msra.mxu0 %v17683_v47  ;;  %3423 = vmatpush1.msra.mxu1 %v17684_v48  ;;  %v17694_v48 = vld [vmem:[#allocation16_spill] sm:$0xff] }
 0xd03   :  { %3353 = vmatprep.subr.mxu0 %v17685_v49  ;;  %3424 = vmatprep.subr.mxu1 %v17686_v34  ;;  %v17695_v49 = vld [vmem:[#allocation17_spill] sm:$0xff] }
 0xd04   :  { %3354 = vmatpush1.msra.mxu0 %v17687_v32  ;;  %3425 = vmatpush1.msra.mxu1 %v17688_v38  ;;  %v17696_v34 = vld [vmem:[#allocation57_spill] sm:$0xff] }
 0xd05   :  { %3355 = vmatprep.subr.mxu0 %v17689_v39  ;;  %3426 = vmatprep.subr.mxu1 %v17690_v10  ;;  %v17697_v32 = vld [vmem:[#allocation53_spill] sm:$0xff] }
 0xd06   :  { %3356 = vmatpush1.msra.mxu0 %v17691_v24  ;;  %3389 = vmatprep.mubr.f32.mxu0 %v17692_v46  ;;  %v2046_v47 = vadd.f32 %v17697_v32, %v17696_v34  ;;  %v17698_v39 = vld [vmem:[#allocation61_spill] sm:$0xff]  ;;  %v2159_v32 = vadd.f32 %v17700_v40, %v12542_v35 }
 0xd07   :  { %3427 = vmatpush1.msra.mxu1 %v17693_v29  ;;  %3460 = vmatprep.mubr.f32.mxu1 %v17692_v46  ;;  %v2048_v43 = vadd.f32 %v17698_v39, %v12527_v33 }
 0xd08   :  { %3500 = vmatprep.subr.mxu0 %v17694_v48  ;;  %3571 = vmatprep.subr.mxu1 %v17695_v49  ;;  %v17699_v48 = vld [vmem:[#allocation58_spill] sm:$0xff] }
 0xd09   :  { %v2161_v41 = vadd.f32 %v17699_v48, %v17590_v54 }
 0xda7   :  { %v3216_v38 = vpop.f32.mrf.mxu0  ;;  %v3287_v42 = vpop.f32.mrf.mxu1 }
 0xda8   :  { %v3292_v10 = vadd.f32 %v3216_v38, %v2046_v47  ;;  %v3294_v34 = vadd.f32 %v3287_v42, %v2159_v32 }
 0xda9   :  { %v3218_v44 = vpop.f32.mrf.mxu0  ;;  %v3289_v46 = vpop.f32.mrf.mxu1 }
 0xdaa   :  { %v9123_v24 = vmul.f32 -1.442695, %v3292_v10  ;;  %v3293_v26 = vadd.f32 %v3218_v44, %v2048_v43  ;;  %v3295_v49 = vadd.f32 %v3289_v46, %v2161_v41 }
 0xdac   :  { %9665 = vpow2.f32 %v9123_v24  ;;  %v9124_v29 = vmul.f32 -1.442695, %v3293_v26  ;;  %v9125_v28 = vmul.f32 -1.442695, %v3295_v49 }
 0xdae   :  { %9667 = vpow2.f32 %v9124_v29 }
 0xdaf   :  { %9669 = vtanh.f32 %v3294_v34 }
 0xdb0   :  { %9671 = vpow2.f32 %v9125_v28 }
 0xdb9   :  { %v9666_v37 = vpop.eup %9665 }
 0xdba   :  { %v3299_v39 = vadd.f32 1.0, %v9666_v37 }
 0xdbb   :  { %v9668_v47 = vpop.eup %9667 }
 0xdbc   :  { %9673 = vrcp.f32 %v3299_v39  ;;  %v3305_v10 = vadd.f32 1.0, %v9668_v47  ;;  %v9670_v26 = vpop.eup %9669 }
 0xdbd   :  { %v9672_v44 = vpop.eup %9671 }
 0xdbe   :  { %9675 = vrcp.f32 %v3305_v10  ;;  %v3312_v38 = vadd.f32 1.0, %v9672_v44 }
 0xdc0   :  { %9677 = vrcp.f32 %v3312_v38 }
 0xdc9   :  { %v9674_v43 = vpop.eup %9673 }
 0xdca   :  { %v3316_v24 = vmul.f32 %v9674_v43, %v9670_v26 }
 0xdcb   :  { %v9676_v29 = vpop.eup %9675 }
 0xdcc   :  { %v3315_v41 = vmul.f32 %v9676_v29, %v13218_v50 }
 0xdcd   :  { %v9678_v37 = vpop.eup %9677 }
 0xdce   :  { %v13300_v46 = vadd.f32 %v3316_v24, %v3315_v41 }
 0xdd0   :  { %9679 = vtanh.f32 %v13300_v46 }
 0xddd   :  { %v9680_v40 = vpop.eup %9679 }
 0xdde   :  { %v13303_v42 = vmul.f32 %v9680_v40, %v9678_v37 }
 0xde0   :  { %17701 = vst [vmem:[#allocation11_spill] sm:$0xff] %v13303_v42  ;;  %3390 = vmatmul.mubr.f32.vlgmr.msra.gmra.mxu0 %v13303_v42  ;;  %3461 = vmatmul.mubr.f32.vlgmr.msra.gmra.mxu1 %v13303_v42  ;;  %v3678_v42 = vld [vmem:[%s16775_s1 + $0x38] sm:$0xff] }
 0xde1   :  { %3501 = vmatpush1.msra.mxu0 %v12719_v63  ;;  %3572 = vmatpush1.msra.mxu1 %v12725_v58  ;;  %v17702_v63 = vld [vmem:[#allocation41_spill] sm:$0xff]  ;;  %v17703_v58 = vld [vmem:[#allocation39_spill] sm:$0xff] }
 0xde2   :  { %3502 = vmatprep.subr.mxu0 %v12731_v11  ;;  %3573 = vmatprep.subr.mxu1 %v12737_v14  ;;  %v17704_v11 = vld [vmem:[#allocation30_spill] sm:$0xff]  ;;  %v17705_v14 = vld [vmem:[#allocation44_spill] sm:$0xff] }
 0xde3   :  { %3503 = vmatpush1.msra.mxu0 %v12743_v19  ;;  %3574 = vmatpush1.msra.mxu1 %v12749_v45  ;;  %v17706_v19 = vld [vmem:[#allocation42_spill] sm:$0xff]  ;;  %v17707_v45 = vld [vmem:[#allocation45_spill] sm:$0xff] }
 0xde4   :  { %3504 = vmatprep.subr.mxu0 %v12755_v23  ;;  %3575 = vmatprep.subr.mxu1 %v12761_v56  ;;  %v17708_v23 = vld [vmem:[#allocation43_spill] sm:$0xff]  ;;  %v17709_v56 = vld [vmem:[#allocation33_spill] sm:$0xff] }
 0xde5   :  { %3505 = vmatpush1.msra.mxu0 %v12767_v17  ;;  %3576 = vmatpush1.msra.mxu1 %v12773_v55  ;;  %v17710_v17 = vld [vmem:[#allocation31_spill] sm:$0xff]  ;;  %v17711_v55 = vld [vmem:[#allocation48_spill] sm:$0xff] }
 0xde6   :  { %3506 = vmatprep.subr.mxu0 %v12779_v20  ;;  %3577 = vmatprep.subr.mxu1 %v12785_v61  ;;  %v17712_v20 = vld [vmem:[#allocation34_spill] sm:$0xff]  ;;  %v17713_v61 = vld [vmem:[#allocation37_spill] sm:$0xff] }
 0xde7   :  { %3507 = vmatpush1.msra.mxu0 %v12791_v15  ;;  %3578 = vmatpush1.msra.mxu1 %v12797_v25  ;;  %v17714_v15 = vld [vmem:[#allocation18_spill] sm:$0xff]  ;;  %v17715_v25 = vld [vmem:[#allocation20_spill] sm:$0xff] }
 0xde8   :  { %3508 = vmatprep.subr.mxu0 %v12920_v51  ;;  %3579 = vmatprep.subr.mxu1 %v12926_v52  ;;  %v17716_v51 = vld [vmem:[#allocation21_spill] sm:$0xff]  ;;  %v17717_v52 = vld [vmem:[#allocation19_spill] sm:$0xff] }
 0xde9   :  { %3509 = vmatpush1.msra.mxu0 %v12932_v53  ;;  %3580 = vmatpush1.msra.mxu1 %v12938_v12  ;;  %v17718_v53 = vld [vmem:[#allocation46_spill] sm:$0xff]  ;;  %v17719_v12 = vld [vmem:[#allocation49_spill] sm:$0xff] }
 0xdea   :  { %3510 = vmatprep.subr.mxu0 %v12944_v22  ;;  %3581 = vmatprep.subr.mxu1 %v12950_v57  ;;  %v17720_v22 = vld [vmem:[#allocation47_spill] sm:$0xff]  ;;  %v17721_v57 = vld [vmem:[#allocation8_spill] sm:$0xff] }
 0xdeb   :  { %3511 = vmatpush1.msra.mxu0 %v12956_v21  ;;  %3582 = vmatpush1.msra.mxu1 %v12962_v8  ;;  %v17722_v21 = vmov 0.0   ;;  %v17723_v8 = vld [vmem:[#allocation9_spill] sm:$0xff] }
 0xdec   :  { %3512 = vmatprep.subr.mxu0 %v12968_v1  ;;  %3583 = vmatprep.subr.mxu1 %v12974_v36  ;;  %v3684_v1 = vld [vmem:[%s16774_s8 + $0x28] sm:$0xff]  ;;  %v3686_v36 = vld [vmem:[%s16774_s8 + $0x38] sm:$0xff] }
 0xded   :  { %3513 = vmatpush1.msra.mxu0 %v12980_v7  ;;  %3584 = vmatpush1.msra.mxu1 %v12986_v59  ;;  %v17724_v7 = vld [vmem:[#allocation57_spill] sm:$0xff]  ;;  %v17725_v59 = vld [vmem:[#allocation32_spill] sm:$0xff] }
 0xdee   :  { %3514 = vmatprep.subr.mxu0 %v12992_v2  ;;  %3585 = vmatprep.subr.mxu1 %v12998_v3  ;;  %v2052_v2 = vadd.f32 %v17725_v59, %v17724_v7  ;;  %v3673_v59 = vld [vmem:[%s16775_s1 + $0x10] sm:$0xff]  ;;  %v13831_v7 = vld [vmem:[%s16776_s9 + $0x18] sm:$0xff] }
 0xdef   :  { %3515 = vmatpush1.msra.mxu0 %v13004_v18  ;;  %3586 = vmatpush1.msra.mxu1 %v13010_v9  ;;  %v17726_v18 = vld [vmem:[#allocation36_spill] sm:$0xff]  ;;  %17754 = vst [vmem:[#allocation48_spill] sm:$0xff] %v13831_v7 }
 0xdf0   :  { %3516 = vmatprep.subr.mxu0 %v13016_v62  ;;  %3587 = vmatprep.subr.mxu1 %v13022_v6  ;;  %v2054_v9 = vadd.f32 %v17726_v18, %v12527_v33  ;;  %v13539_v18 = vld [vmem:[%s16776_s9 + $0x160] sm:$0xff]  ;;  %v13819_v33 = vld [vmem:[%s16776_s9 + $0x30] sm:$0xff] }
 0xdf1   :  { %3517 = vmatpush1.msra.mxu0 %v13028_v4  ;;  %3588 = vmatpush1.msra.mxu1 %v13034_v27  ;;  %17752 = vst [vmem:[#allocation33_spill] sm:$0xff] %v13819_v33 }
 0xdf2   :  { %3518 = vmatprep.subr.mxu0 %v13040_v0  ;;  %3589 = vmatprep.subr.mxu1 %v13046_v16 }
 0xdf3   :  { %3519 = vmatpush1.msra.mxu0 %v13052_v13  ;;  %3590 = vmatpush1.msra.mxu1 %v13058_v60  ;;  %v17727_v60 = vld [vmem:[#allocation55_spill] sm:$0xff] }
 0xdf4   :  { %3520 = vmatprep.subr.mxu0 %v13064_v5  ;;  %3591 = vmatprep.subr.mxu1 %v13070_v30  ;;  %v2167_v5 = vadd.f32 %v17727_v60, %v17590_v54  ;;  %v13594_v60 = vld [vmem:[%s16776_s9 + $0x120] sm:$0xff] }
 0xdf5   :  { %3521 = vmatpush1.msra.mxu0 %v13076_v31  ;;  %3592 = vmatpush1.msra.mxu1 %v17702_v63  ;;  %v17728_v31 = vld [vmem:[#allocation7_spill] sm:$0xff]  ;;  %v3683_v63 = vld [vmem:[%s16774_s8 + $0x20] sm:$0xff] }
 0xdf6   :  { %3522 = vmatprep.subr.mxu0 %v17703_v58  ;;  %3593 = vmatprep.subr.mxu1 %v17704_v11  ;;  %v2165_v50 = vadd.f32 %v17728_v31, %v12542_v35  ;;  %v3685_v58 = vld [vmem:[%s16774_s8 + $0x30] sm:$0xff]  ;;  %v3682_v11 = vld [vmem:[%s16774_s8 + $0x18] sm:$0xff]  ;;  %v13814_v54 = vld [vmem:[%s16776_s9 + $0x20] sm:$0xff] }
 0xdf7   :  { %3523 = vmatpush1.msra.mxu0 %v17705_v14  ;;  %3594 = vmatpush1.msra.mxu1 %v17706_v19  ;;  %v3679_v14 = vld [vmem:[%s16774_s8] sm:$0xff]  ;;  %v3681_v19 = vld [vmem:[%s16774_s8 + $0x10] sm:$0xff]  ;;  %v13611_v31 = vld [vmem:[%s16776_s9 + $0x118] sm:$0xff]  ;;  %17751 = vst [vmem:[#allocation43_spill] sm:$0xff] %v13814_v54 }
 0xdf8   :  { %3524 = vmatprep.subr.mxu0 %v17707_v45  ;;  %3595 = vmatprep.subr.mxu1 %v17708_v23  ;;  %v3671_v45 = vld [vmem:[%s16775_s1] sm:$0xff]  ;;  %v13418_v23 = vld [vmem:[%s16776_s9 + $0x1e8] sm:$0xff] }
 0xdf9   :  { %3525 = vmatpush1.msra.mxu0 %v17709_v56  ;;  %3596 = vmatpush1.msra.mxu1 %v17710_v17  ;;  %17731 = vst [vmem:[#allocation25_spill] sm:$0xff] %v13418_v23  ;;  %v13423_v56 = vld [vmem:[%s16776_s9 + $0x1f8] sm:$0xff]  ;;  %v13429_v17 = vld [vmem:[%s16776_s9 + $0x1e0] sm:$0xff]  ;;  %v13826_v35 = vld [vmem:[%s16776_s9 + $0x8] sm:$0xff] }
 0xdfa   :  { %3526 = vmatprep.subr.mxu0 %v17711_v55  ;;  %3597 = vmatprep.subr.mxu1 %v17712_v20  ;;  %17732 = vst [vmem:[#allocation23_spill] sm:$0xff] %v13423_v56  ;;  %v13434_v55 = vld [vmem:[%s16776_s9 + $0x1f0] sm:$0xff]  ;;  %v13441_v20 = vld [vmem:[%s16776_s9 + $0x1c8] sm:$0xff]  ;;  %17753 = vst [vmem:[#allocation31_spill] sm:$0xff] %v13826_v35 }
 0xdfb   :  { %3527 = vmatpush1.msra.mxu0 %v17713_v61  ;;  %3598 = vmatpush1.msra.mxu1 %v17714_v15  ;;  %v13446_v61 = vld [vmem:[%s16776_s9 + $0x1d8] sm:$0xff]  ;;  %v13455_v15 = vld [vmem:[%s16776_s9 + $0x1c0] sm:$0xff] }
 0xdfc   :  { %3528 = vmatprep.subr.mxu0 %v17715_v25  ;;  %3599 = vmatprep.subr.mxu1 %v17716_v51  ;;  %v13460_v25 = vld [vmem:[%s16776_s9 + $0x1d0] sm:$0xff]  ;;  %v3672_v51 = vld [vmem:[%s16775_s1 + $0x8] sm:$0xff] }
 0xdfd   :  { %3529 = vmatpush1.msra.mxu0 %v17717_v52  ;;  %3600 = vmatpush1.msra.mxu1 %v17718_v53  ;;  %v13472_v52 = vld [vmem:[%s16776_s9 + $0x1a8] sm:$0xff]  ;;  %v13477_v53 = vld [vmem:[%s16776_s9 + $0x1b8] sm:$0xff] }
 0xdfe   :  { %3530 = vmatprep.subr.mxu0 %v17719_v12  ;;  %3601 = vmatprep.subr.mxu1 %v17720_v22  ;;  %v13484_v12 = vld [vmem:[%s16776_s9 + $0x1a0] sm:$0xff]  ;;  %v13489_v22 = vld [vmem:[%s16776_s9 + $0x1b0] sm:$0xff] }
 0xdff   :  { %3531 = vmatpush1.msra.mxu0 %v17721_v57  ;;  %3564 = vmatprep.mubr.f32.mxu0 %v17722_v21  ;;  %v13496_v57 = vld [vmem:[%s16776_s9 + $0x188] sm:$0xff] }
 0xe00   :  { %3602 = vmatpush1.msra.mxu1 %v17723_v8  ;;  %3635 = vmatprep.mubr.f32.mxu1 %v17722_v21  ;;  %v13501_v8 = vld [vmem:[%s16776_s9 + $0x198] sm:$0xff] }
 0xe01   :  { %3761 = vmatprep.subr.mxu0 %v3684_v1  ;;  %3874 = vmatprep.subr.mxu1 %v3686_v36  ;;  %v13510_v1 = vld [vmem:[%s16776_s9 + $0x180] sm:$0xff]  ;;  %v13515_v36 = vld [vmem:[%s16776_s9 + $0x190] sm:$0xff] }
 0xea0   :  { %v3391_v3 = vpop.f32.mrf.mxu0  ;;  %v3462_v0 = vpop.f32.mrf.mxu1 }
 0xea1   :  { %v3467_v62 = vadd.f32 %v3391_v3, %v2052_v2  ;;  %v3469_v28 = vadd.f32 %v3462_v0, %v2165_v50  ;;  %v13527_v2 = vld [vmem:[%s16776_s9 + $0x168] sm:$0xff]  ;;  %v13532_v3 = vld [vmem:[%s16776_s9 + $0x178] sm:$0xff]  ;;  %v13620_v50 = vld [vmem:[%s16776_s9 + $0x100] sm:$0xff] }
 0xea2   :  { %v3393_v6 = vpop.f32.mrf.mxu0  ;;  %v3464_v13 = vpop.f32.mrf.mxu1  ;;  %v3674_v0 = vld [vmem:[%s16775_s1 + $0x18] sm:$0xff] }
 0xea3   :  { %v9126_v4 = vmul.f32 -1.442695, %v3467_v62  ;;  %v3468_v27 = vadd.f32 %v3393_v6, %v2054_v9  ;;  %v3470_v30 = vadd.f32 %v3464_v13, %v2167_v5  ;;  %v13544_v9 = vld [vmem:[%s16776_s9 + $0x170] sm:$0xff]  ;;  %v13551_v62 = vld [vmem:[%s16776_s9 + $0x148] sm:$0xff]  ;;  %v13556_v6 = vld [vmem:[%s16776_s9 + $0x158] sm:$0xff] }
 0xea4   :  { %v13587_v13 = vld [vmem:[%s16776_s9 + $0x138] sm:$0xff]  ;;  %v13599_v5 = vld [vmem:[%s16776_s9 + $0x130] sm:$0xff] }
 0xea5   :  { %9681 = vpow2.f32 %v9126_v4  ;;  %v9127_v16 = vmul.f32 -1.442695, %v3468_v27  ;;  %v9128_v34 = vmul.f32 -1.442695, %v3470_v30  ;;  %v13565_v4 = vld [vmem:[%s16776_s9 + $0x140] sm:$0xff]  ;;  %v13570_v27 = vld [vmem:[%s16776_s9 + $0x150] sm:$0xff] }
 0xea6   :  { %v13606_v30 = vld [vmem:[%s16776_s9 + $0x108] sm:$0xff] }
 0xea7   :  { %9683 = vpow2.f32 %v9127_v16  ;;  %v13582_v16 = vld [vmem:[%s16776_s9 + $0x128] sm:$0xff] }
 0xea8   :  { %9685 = vtanh.f32 %v3469_v28  ;;  %v13625_v28 = vld [vmem:[%s16776_s9 + $0x110] sm:$0xff] }
 0xea9   :  { %9687 = vpow2.f32 %v9128_v34  ;;  %v3675_v34 = vld [vmem:[%s16775_s1 + $0x20] sm:$0xff] }
 0xeb2   :  { %v9682_v48 = vpop.eup %9681 }
 0xeb3   :  { %v3474_v49 = vadd.f32 1.0, %v9682_v48  ;;  %v13637_v48 = vld [vmem:[%s16776_s9 + $0xe8] sm:$0xff] }
 0xeb4   :  { %v9684_v32 = vpop.eup %9683 }
 0xeb5   :  { %9689 = vrcp.f32 %v3474_v49  ;;  %v3480_v39 = vadd.f32 1.0, %v9684_v32  ;;  %v9686_v47 = vpop.eup %9685  ;;  %v13642_v49 = vld [vmem:[%s16776_s9 + $0xf8] sm:$0xff]  ;;  %v13649_v32 = vld [vmem:[%s16776_s9 + $0xe0] sm:$0xff] }
 0xeb6   :  { %v9688_v10 = vpop.eup %9687 }
 0xeb7   :  { %9691 = vrcp.f32 %v3480_v39  ;;  %v3487_v24 = vadd.f32 1.0, %v9688_v10  ;;  %v13654_v39 = vld [vmem:[%s16776_s9 + $0xf0] sm:$0xff]  ;;  %v13666_v10 = vld [vmem:[%s16776_s9 + $0xd8] sm:$0xff] }
 0xeb9   :  { %9693 = vrcp.f32 %v3487_v24  ;;  %v13692_v24 = vld [vmem:[%s16776_s9 + $0xa8] sm:$0xff] }
 0xeba   :  { %17733 = vst [vmem:[#allocation67_spill] sm:$0xff] %v13692_v24 }
 0xec2   :  { %v9690_v26 = vpop.eup %9689 }
 0xec3   :  { %v3491_v44 = vmul.f32 %v9690_v26, %v9686_v47  ;;  %v13661_v47 = vld [vmem:[%s16776_s9 + $0xc8] sm:$0xff]  ;;  %v13675_v26 = vld [vmem:[%s16776_s9 + $0xc0] sm:$0xff] }
 0xec4   :  { %v9692_v43 = vpop.eup %9691 }
 0xec5   :  { %v3490_v29 = vmul.f32 %v9692_v43, %v13300_v46  ;;  %v3680_v46 = vld [vmem:[%s16774_s8 + $0x8] sm:$0xff] }
 0xec6   :  { %v9694_v41 = vpop.eup %9693  ;;  %v3676_v43 = vld [vmem:[%s16775_s1 + $0x28] sm:$0xff] }
 0xec7   :  { %v13386_v38 = vadd.f32 %v3491_v44, %v3490_v29  ;;  %v13680_v44 = vld [vmem:[%s16776_s9 + $0xd0] sm:$0xff]  ;;  %v13697_v29 = vld [vmem:[%s16776_s9 + $0xb8] sm:$0xff] }
 0xec8   :  { %17734 = vst [vmem:[#allocation14_spill] sm:$0xff] %v13697_v29 }
 0xec9   :  { %17729 = vst [vmem:[#allocation22_spill] sm:$0xff] %v13386_v38  ;;  %9695 = vtanh.f32 %v13386_v38  ;;  %v13807_v38 = vld [vmem:[%s16776_s9 + $0x38] sm:$0xff] }
 0xeca   :  { %17750 = vst [vmem:[#allocation45_spill] sm:$0xff] %v13807_v38 }
 0xed6   :  { %v9696_v37 = vpop.eup %9695 }
 0xed7   :  { %v13389_v40 = vmul.f32 %v9696_v37, %v9694_v41  ;;  %v13704_v41 = vld [vmem:[%s16776_s9 + $0xa0] sm:$0xff]  ;;  %v13709_v37 = vld [vmem:[%s16776_s9 + $0xb0] sm:$0xff] }
 0xed8   :  { %17735 = vst [vmem:[#allocation5_spill] sm:$0xff] %v13704_v41  ;;  %17736 = vst [vmem:[#allocation52_spill] sm:$0xff] %v13709_v37 }
 0xed9   :  { %17730 = vst [vmem:[#allocation24_spill] sm:$0xff] %v13389_v40  ;;  %3565 = vmatmul.mubr.f32.vlgmr.msra.gmra.mxu0 %v13389_v40  ;;  %3636 = vmatmul.mubr.f32.vlgmr.msra.gmra.mxu1 %v13389_v40  ;;  %v13802_v40 = vld [vmem:[%s16776_s9 + $0x28] sm:$0xff] }
 0xeda   :  { %3762 = vmatpush1.msra.mxu0 %v3683_v63  ;;  %3875 = vmatpush1.msra.mxu1 %v3685_v58  ;;  %v13716_v63 = vld [vmem:[%s16776_s9 + $0x88] sm:$0xff]  ;;  %v13721_v58 = vld [vmem:[%s16776_s9 + $0x98] sm:$0xff]  ;;  %17749 = vst [vmem:[#allocation42_spill] sm:$0xff] %v13802_v40 }
 0xedb   :  { %3763 = vmatprep.subr.mxu0 %v3680_v46  ;;  %3876 = vmatprep.subr.mxu1 %v3682_v11  ;;  %17737 = vst [vmem:[#allocation50_spill] sm:$0xff] %v13716_v63  ;;  %17738 = vst [vmem:[#allocation6_spill] sm:$0xff] %v13721_v58  ;;  %v13730_v46 = vld [vmem:[%s16776_s9 + $0x80] sm:$0xff]  ;;  %v13735_v11 = vld [vmem:[%s16776_s9 + $0x90] sm:$0xff] }
 0xedc   :  { %3764 = vmatpush1.msra.mxu0 %v3679_v14  ;;  %3797 = vmatprep.mubr.f32.mxu0 %v17722_v21  ;;  %17739 = vst [vmem:[#allocation16_spill] sm:$0xff] %v13730_v46  ;;  %17740 = vst [vmem:[#allocation17_spill] sm:$0xff] %v13735_v11  ;;  %v3677_v14 = vld [vmem:[%s16775_s1 + $0x30] sm:$0xff] }
 0xedd   :  { %3877 = vmatpush1.msra.mxu1 %v3681_v19  ;;  %3910 = vmatprep.mubr.f32.mxu1 %v17722_v21  ;;  %v13747_v19 = vld [vmem:[%s16776_s9 + $0x68] sm:$0xff] }
 0xede   :  { %9132 = vmatmul.mubr.msk.f32.vlgmr.msra.gmra.mxu0 %vm94_vm0, %v3671_v45  ;;  %9140 = vmatmul.mubr.msk.f32.vlgmr.msra.gmra.mxu1 %vm94_vm0, %v3671_v45  ;;  %17741 = vst [vmem:[#allocation53_spill] sm:$0xff] %v13747_v19  ;;  %v13752_v45 = vld [vmem:[%s16776_s9 + $0x78] sm:$0xff] }
 0xedf   :  { %4059 = vmatprep.subr.mxu0 %v13418_v23  ;;  %4130 = vmatprep.subr.mxu1 %v13423_v56  ;;  %17742 = vst [vmem:[#allocation61_spill] sm:$0xff] %v13752_v45 }
 0xee0   :  { %4060 = vmatpush1.msra.mxu0 %v13429_v17  ;;  %4131 = vmatpush1.msra.mxu1 %v13434_v55 }
 0xee1   :  { %4061 = vmatprep.subr.mxu0 %v13441_v20  ;;  %4132 = vmatprep.subr.mxu1 %v13446_v61 }
 0xee2   :  { %3803 = vmatprep.mubr.f32.mxu0 %v17722_v21  ;;  %3916 = vmatprep.mubr.f32.mxu1 %v17722_v21 }
 0xee3   :  { %4062 = vmatpush1.msra.mxu0 %v13455_v15  ;;  %4133 = vmatpush1.msra.mxu1 %v13460_v25 }
 0xee4   :  { %9133 = vmatmul.mubr.msk.f32.gmra.mxu0 %vm94_vm0, %v3672_v51  ;;  %9141 = vmatmul.mubr.msk.f32.gmra.mxu1 %vm94_vm0, %v3672_v51  ;;  %v13759_v51 = vld [vmem:[%s16776_s9 + $0x60] sm:$0xff] }
 0xee5   :  { %4063 = vmatprep.subr.mxu0 %v13472_v52  ;;  %4134 = vmatprep.subr.mxu1 %v13477_v53  ;;  %17743 = vst [vmem:[#allocation58_spill] sm:$0xff] %v13759_v51 }
 0xee6   :  { %4064 = vmatpush1.msra.mxu0 %v13484_v12  ;;  %4135 = vmatpush1.msra.mxu1 %v13489_v22 }
 0xee7   :  { %4065 = vmatprep.subr.mxu0 %v13496_v57  ;;  %4136 = vmatprep.subr.mxu1 %v13501_v8 }
 0xee8   :  { %3809 = vmatprep.mubr.f32.mxu0 %v17722_v21  ;;  %3922 = vmatprep.mubr.f32.mxu1 %v17722_v21 }
 0xee9   :  { %4066 = vmatpush1.msra.mxu0 %v13510_v1  ;;  %4137 = vmatpush1.msra.mxu1 %v13515_v36 }
 0xeea   :  { %9134 = vmatmul.mubr.msk.f32.gmra.mxu0 %vm94_vm0, %v3673_v59  ;;  %9142 = vmatmul.mubr.msk.f32.gmra.mxu1 %vm94_vm0, %v3673_v59  ;;  %v13764_v59 = vld [vmem:[%s16776_s9 + $0x70] sm:$0xff] }
 0xeeb   :  { %4067 = vmatprep.subr.mxu0 %v13527_v2  ;;  %4138 = vmatprep.subr.mxu1 %v13532_v3  ;;  %17744 = vst [vmem:[#allocation51_spill] sm:$0xff] %v13764_v59 }
 0xeec   :  { %4068 = vmatpush1.msra.mxu0 %v13539_v18  ;;  %4139 = vmatpush1.msra.mxu1 %v13544_v9 }
 0xeed   :  { %4069 = vmatprep.subr.mxu0 %v13551_v62  ;;  %4140 = vmatprep.subr.mxu1 %v13556_v6 }
 0xeee   :  { %3815 = vmatprep.mubr.f32.mxu0 %v17722_v21  ;;  %3928 = vmatprep.mubr.f32.mxu1 %v17722_v21 }
 0xeef   :  { %4070 = vmatpush1.msra.mxu0 %v13565_v4  ;;  %4141 = vmatpush1.msra.mxu1 %v13570_v27 }
 0xef0   :  { %9135 = vmatmul.mubr.msk.f32.gmra.mxu0 %vm94_vm0, %v3674_v0  ;;  %9143 = vmatmul.mubr.msk.f32.gmra.mxu1 %vm94_vm0, %v3674_v0  ;;  %v13771_v0 = vld [vmem:[%s16776_s9 + $0x48] sm:$0xff] }
 0xef1   :  { %4071 = vmatprep.subr.mxu0 %v13582_v16  ;;  %4142 = vmatprep.subr.mxu1 %v13587_v13  ;;  %17745 = vst [vmem:[#allocation41_spill] sm:$0xff] %v13771_v0 }
 0xef2   :  { %4072 = vmatpush1.msra.mxu0 %v13594_v60  ;;  %4143 = vmatpush1.msra.mxu1 %v13599_v5 }
 0xef3   :  { %4073 = vmatprep.subr.mxu0 %v13606_v30  ;;  %4144 = vmatprep.subr.mxu1 %v13611_v31 }
 0xef4   :  { %3821 = vmatprep.mubr.f32.mxu0 %v17722_v21  ;;  %3934 = vmatprep.mubr.f32.mxu1 %v17722_v21 }
 0xef5   :  { %4074 = vmatpush1.msra.mxu0 %v13620_v50  ;;  %4145 = vmatpush1.msra.mxu1 %v13625_v28 }
 0xef6   :  { %9136 = vmatmul.mubr.msk.f32.gmra.mxu0 %vm94_vm0, %v3675_v34  ;;  %9144 = vmatmul.mubr.msk.f32.gmra.mxu1 %vm94_vm0, %v3675_v34  ;;  %v13776_v34 = vld [vmem:[%s16776_s9 + $0x58] sm:$0xff] }
 0xef7   :  { %4075 = vmatprep.subr.mxu0 %v13637_v48  ;;  %4146 = vmatprep.subr.mxu1 %v13642_v49  ;;  %17746 = vst [vmem:[#allocation39_spill] sm:$0xff] %v13776_v34 }
 0xef8   :  { %4076 = vmatpush1.msra.mxu0 %v13649_v32  ;;  %4147 = vmatpush1.msra.mxu1 %v13654_v39 }
 0xef9   :  { %4077 = vmatprep.subr.mxu0 %v13661_v47  ;;  %4148 = vmatprep.subr.mxu1 %v13666_v10 }
 0xefa   :  { %3827 = vmatprep.mubr.f32.mxu0 %v17722_v21  ;;  %3940 = vmatprep.mubr.f32.mxu1 %v17722_v21 }
 0xefb   :  { %4078 = vmatpush1.msra.mxu0 %v13675_v26  ;;  %4149 = vmatpush1.msra.mxu1 %v13680_v44 }
 0xefc   :  { %9137 = vmatmul.mubr.msk.f32.gmra.mxu0 %vm94_vm0, %v3676_v43  ;;  %9145 = vmatmul.mubr.msk.f32.gmra.mxu1 %vm94_vm0, %v3676_v43  ;;  %v13785_v43 = vld [vmem:[%s16776_s9 + $0x40] sm:$0xff] }
 0xefd   :  { %4079 = vmatprep.subr.mxu0 %v13692_v24  ;;  %4150 = vmatprep.subr.mxu1 %v13697_v29  ;;  %17747 = vst [vmem:[#allocation30_spill] sm:$0xff] %v13785_v43 }
 0xefe   :  { %4080 = vmatpush1.msra.mxu0 %v13704_v41  ;;  %4151 = vmatpush1.msra.mxu1 %v13709_v37 }
 0xeff   :  { %4081 = vmatprep.subr.mxu0 %v13716_v63  ;;  %4152 = vmatprep.subr.mxu1 %v13721_v58 }
 0xf00   :  { %3833 = vmatprep.mubr.f32.mxu0 %v17722_v21  ;;  %3946 = vmatprep.mubr.f32.mxu1 %v17722_v21 }
 0xf01   :  { %4082 = vmatpush1.msra.mxu0 %v13730_v46  ;;  %4153 = vmatpush1.msra.mxu1 %v13735_v11 }
 0xf02   :  { %9138 = vmatmul.mubr.msk.f32.gmra.mxu0 %vm94_vm0, %v3677_v14  ;;  %9146 = vmatmul.mubr.msk.f32.gmra.mxu1 %vm94_vm0, %v3677_v14  ;;  %v13790_v14 = vld [vmem:[%s16776_s9 + $0x50] sm:$0xff] }
 0xf03   :  { %4083 = vmatprep.subr.mxu0 %v13747_v19  ;;  %4154 = vmatprep.subr.mxu1 %v13752_v45  ;;  %17748 = vst [vmem:[#allocation44_spill] sm:$0xff] %v13790_v14 }
 0xf04   :  { %4084 = vmatpush1.msra.mxu0 %v13759_v51  ;;  %4155 = vmatpush1.msra.mxu1 %v13764_v59 }
 0xf05   :  { %4085 = vmatprep.subr.mxu0 %v13771_v0  ;;  %4156 = vmatprep.subr.mxu1 %v13776_v34 }
 0xf06   :  { %3839 = vmatprep.mubr.f32.mxu0 %v17722_v21  ;;  %3952 = vmatprep.mubr.f32.mxu1 %v17722_v21 }
 0xf07   :  { %4086 = vmatpush1.msra.mxu0 %v13785_v43  ;;  %4157 = vmatpush1.msra.mxu1 %v13790_v14  ;;  %v13838_v14 = vld [vmem:[%s16776_s9] sm:$0xff] }
 0xf08   :  { %9139 = vmatmul.mubr.msk.f32.gmra.mxu0 %vm94_vm0, %v3678_v42  ;;  %9147 = vmatmul.mubr.msk.f32.gmra.mxu1 %vm94_vm0, %v3678_v42  ;;  %17755 = vst [vmem:[#allocation34_spill] sm:$0xff] %v13838_v14  ;;  %v13845_v42 = vld [vmem:[%s16776_s9 + $0x10] sm:$0xff] }
 0xf09   :  { %4087 = vmatprep.subr.mxu0 %v13802_v40  ;;  %4158 = vmatprep.subr.mxu1 %v13807_v38  ;;  %17756 = vst [vmem:[#allocation37_spill] sm:$0xff] %v13845_v42 }
 0xf0a   :  { %4088 = vmatpush1.msra.mxu0 %v13814_v54  ;;  %4159 = vmatpush1.msra.mxu1 %v13819_v33  ;;  %v17757_v54 = vld [vmem:[#allocation13_spill] sm:$0xff] }
 0xf0b   :  { %4089 = vmatprep.subr.mxu0 %v13826_v35  ;;  %4160 = vmatprep.subr.mxu1 %v13831_v7 }
 0xf0c   :  { %4090 = vmatpush1.msra.mxu0 %v13838_v14  ;;  %4123 = vmatprep.mubr.f32.mxu0 %v17722_v21 }
 0xf0d   :  { %4161 = vmatpush1.msra.mxu1 %v13845_v42  ;;  %4194 = vmatprep.mubr.f32.mxu1 %v17722_v21 }
 0xf0e   :  { %4124 = vmatmul.mubr.f32.vlgmr.msra.gmra.mxu0 %v17757_v54  ;;  %4195 = vmatmul.mubr.f32.vlgmr.msra.gmra.mxu1 %v17757_v54  ;;  %v17758_v54 = vld [vmem:[#allocation44_spill] sm:$0xff] }
 0xf0f   :  { %4234 = vmatprep.subr.mxu0 %v13418_v23  ;;  %4305 = vmatprep.subr.mxu1 %v13423_v56 }
 0xf10   :  { %4235 = vmatpush1.msra.mxu0 %v13429_v17  ;;  %4306 = vmatpush1.msra.mxu1 %v13434_v55 }
 0xf11   :  { %4236 = vmatprep.subr.mxu0 %v13441_v20  ;;  %4307 = vmatprep.subr.mxu1 %v13446_v61 }
 0xf12   :  { %4237 = vmatpush1.msra.mxu0 %v13455_v15  ;;  %4308 = vmatpush1.msra.mxu1 %v13460_v25 }
 0xf13   :  { %4238 = vmatprep.subr.mxu0 %v13472_v52  ;;  %4309 = vmatprep.subr.mxu1 %v13477_v53 }
 0xf14   :  { %4239 = vmatpush1.msra.mxu0 %v13484_v12  ;;  %4310 = vmatpush1.msra.mxu1 %v13489_v22 }
 0xf15   :  { %4240 = vmatprep.subr.mxu0 %v13496_v57  ;;  %4311 = vmatprep.subr.mxu1 %v13501_v8 }
 0xf16   :  { %4241 = vmatpush1.msra.mxu0 %v13510_v1  ;;  %4312 = vmatpush1.msra.mxu1 %v13515_v36 }
 0xf17   :  { %4242 = vmatprep.subr.mxu0 %v13527_v2  ;;  %4313 = vmatprep.subr.mxu1 %v13532_v3 }
 0xf18   :  { %4243 = vmatpush1.msra.mxu0 %v13539_v18  ;;  %4314 = vmatpush1.msra.mxu1 %v13544_v9 }
 0xf19   :  { %4244 = vmatprep.subr.mxu0 %v13551_v62  ;;  %4315 = vmatprep.subr.mxu1 %v13556_v6 }
 0xf1a   :  { %4245 = vmatpush1.msra.mxu0 %v13565_v4  ;;  %4316 = vmatpush1.msra.mxu1 %v13570_v27 }
 0xf1b   :  { %4246 = vmatprep.subr.mxu0 %v13582_v16  ;;  %4317 = vmatprep.subr.mxu1 %v13587_v13 }
 0xf1c   :  { %4247 = vmatpush1.msra.mxu0 %v13594_v60  ;;  %4318 = vmatpush1.msra.mxu1 %v13599_v5 }
 0xf1d   :  { %4248 = vmatprep.subr.mxu0 %v13606_v30  ;;  %4319 = vmatprep.subr.mxu1 %v13611_v31 }
 0xf1e   :  { %4249 = vmatpush1.msra.mxu0 %v13620_v50  ;;  %4320 = vmatpush1.msra.mxu1 %v13625_v28 }
 0xf1f   :  { %4250 = vmatprep.subr.mxu0 %v13637_v48  ;;  %4321 = vmatprep.subr.mxu1 %v13642_v49 }
 0xf20   :  { %4251 = vmatpush1.msra.mxu0 %v13649_v32  ;;  %4322 = vmatpush1.msra.mxu1 %v13654_v39 }
 0xf21   :  { %4252 = vmatprep.subr.mxu0 %v13661_v47  ;;  %4323 = vmatprep.subr.mxu1 %v13666_v10 }
 0xf22   :  { %4253 = vmatpush1.msra.mxu0 %v13675_v26  ;;  %4324 = vmatpush1.msra.mxu1 %v13680_v44 }
 0xf23   :  { %4254 = vmatprep.subr.mxu0 %v13692_v24  ;;  %4325 = vmatprep.subr.mxu1 %v13697_v29 }
 0xf24   :  { %4255 = vmatpush1.msra.mxu0 %v13704_v41  ;;  %4326 = vmatpush1.msra.mxu1 %v13709_v37 }
 0xf25   :  { %4256 = vmatprep.subr.mxu0 %v13716_v63  ;;  %4327 = vmatprep.subr.mxu1 %v13721_v58 }
 0xf26   :  { %4257 = vmatpush1.msra.mxu0 %v13730_v46  ;;  %4328 = vmatpush1.msra.mxu1 %v13735_v11  ;;  %v17759_v11 = vld [vmem:[#allocation43_spill] sm:$0xff] }
 0xf27   :  { %4258 = vmatprep.subr.mxu0 %v13747_v19  ;;  %4329 = vmatprep.subr.mxu1 %v13752_v45 }
 0xf28   :  { %4259 = vmatpush1.msra.mxu0 %v13759_v51  ;;  %4330 = vmatpush1.msra.mxu1 %v13764_v59  ;;  %v17766_v59 = vld [vmem:[#allocation65_spill] sm:$0xff]  ;;  %v17767_v51 = vld [vmem:[#allocation64_spill] sm:$0xff] }
 0xf29   :  { %4260 = vmatprep.subr.mxu0 %v13771_v0  ;;  %4331 = vmatprep.subr.mxu1 %v13776_v34  ;;  %v17764_v34 = vld [vmem:[#allocation56_spill] sm:$0xff] }
 0xf2a   :  { %4261 = vmatpush1.msra.mxu0 %v13785_v43  ;;  %4332 = vmatpush1.msra.mxu1 %v17758_v54  ;;  %v17763_v54 = vld [vmem:[#allocation62_spill] sm:$0xff] }
 0xf2b   :  { %4262 = vmatprep.subr.mxu0 %v13802_v40  ;;  %4333 = vmatprep.subr.mxu1 %v13807_v38  ;;  %v17760_v38 = vld [vmem:[#allocation57_spill] sm:$0xff] }
 0xf2c   :  { %4263 = vmatpush1.msra.mxu0 %v17759_v11  ;;  %4334 = vmatpush1.msra.mxu1 %v13819_v33  ;;  %v17761_v11 = vld [vmem:[#allocation59_spill] sm:$0xff]  ;;  %v17762_v33 = vld [vmem:[#allocation66_spill] sm:$0xff] }
 0xf2d   :  { %4264 = vmatprep.subr.mxu0 %v13826_v35  ;;  %4335 = vmatprep.subr.mxu1 %v13831_v7  ;;  %v2058_v40 = vadd.f32 %v17761_v11, %v17760_v38  ;;  %v2171_v35 = vadd.f32 %v17763_v54, %v17762_v33 }
 0xf2e   :  { %4265 = vmatpush1.msra.mxu0 %v13838_v14  ;;  %4298 = vmatprep.mubr.f32.mxu0 %v17722_v21  ;;  %v17765_v14 = vld [vmem:[#allocation63_spill] sm:$0xff] }
 0xf2f   :  { %4336 = vmatpush1.msra.mxu1 %v13845_v42  ;;  %4369 = vmatprep.mubr.f32.mxu1 %v17722_v21  ;;  %v2060_v0 = vadd.f32 %v17765_v14, %v17764_v34  ;;  %v2173_v42 = vadd.f32 %v17767_v51, %v17766_v59  ;;  %v3687_v34 = vld [vmem:[%s16777_s10] sm:$0xf]  ;;  %v17771_v59 = vld [vmem:[#allocation60_spill] sm:$0xff] }
 0xf30   :  { %4410 = vmatprep.subr.mxu0 %v13418_v23  ;;  %4481 = vmatprep.subr.mxu1 %v13423_v56 }
 0xf99   :  { %v3566_v43 = vpop.f32.mrf.mxu0  ;;  %v3637_v7 = vpop.f32.mrf.mxu1 }
 0xf9a   :  { %v3642_v45 = vadd.f32 %v3566_v43, %v2058_v40  ;;  %v3644_v21 = vadd.f32 %v3637_v7, %v2171_v35  ;;  %v17768_v35 = vld [vmem:[#allocation28_spill] sm:$0xff] }
 0xf9b   :  { %v3568_v19 = vpop.f32.mrf.mxu0  ;;  %v3639_v23 = vpop.f32.mrf.mxu1  ;;  %v13943_v7 = vrot.slane %v3687_v34, %v17768_v35 }
 0xf9c   :  { %v9129_v46 = vmul.f32 -1.442695, %v3642_v45  ;;  %v3643_v56 = vadd.f32 %v3568_v19, %v2060_v0  ;;  %v3645_v58 = vadd.f32 %v3639_v23, %v2173_v42  ;;  %v17769_v19 = vld [vmem:[#allocation29_spill] sm:$0xff]  ;;  %v17770_v45 = vld [vmem:[#allocation54_spill] sm:$0xff]  ;;  %v13952_v0 = vrot.slane %v3687_v34, %v17771_v59 }
 0xf9d   :  { %v13946_v23 = vrot.slane %v3687_v34, %v17769_v19  ;;  %v13949_v51 = vrot.slane %v3687_v34, %v17770_v45 }
 0xf9e   :  { %9697 = vpow2.f32 %v9129_v46  ;;  %v9130_v38 = vmul.f32 -1.442695, %v3643_v56  ;;  %v13931_v11 = vpop.f32.mrf.mxu0  ;;  %v13933_v33 = vpop.f32.mrf.mxu1  ;;  %v9131_v63 = vmul.f32 -1.442695, %v3645_v58 }
 0xfa0   :  { %9699 = vpow2.f32 %v9130_v38  ;;  %v13938_v14 = vpop.f32.mrf.mxu0  ;;  %v13940_v40 = vpop.f32.mrf.mxu1 }
 0xfa1   :  { %9701 = vtanh.f32 %v3644_v21 }
 0xfa2   :  { %9703 = vpow2.f32 %v9131_v63 }
 0xfa4   :  { %v3805_v56 = vpop.f32.mrf.mxu0  ;;  %v3918_v46 = vpop.f32.mrf.mxu1 }
 0xfa5   :  { %v13955_v43 = vadd.f32 %v3805_v56, %v13943_v7  ;;  %v13958_v42 = vadd.f32 %v3918_v46, %v13946_v23 }
 0xfa6   :  { %v3807_v54 = vpop.f32.mrf.mxu0  ;;  %v3920_v38 = vpop.f32.mrf.mxu1 }
 0xfa7   :  { %17772 = vst [vmem:[#allocation18_spill] sm:$0xff] %v13955_v43  ;;  %17773 = vst [vmem:[#allocation20_spill] sm:$0xff] %v13958_v42  ;;  %v13961_v35 = vadd.f32 %v3807_v54, %v13949_v51  ;;  %v13964_v19 = vadd.f32 %v3920_v38, %v13952_v0 }
 0xfa9   :  { %17774 = vst [vmem:[#allocation21_spill] sm:$0xff] %v13961_v35  ;;  %17775 = vst [vmem:[#allocation19_spill] sm:$0xff] %v13964_v19 }
 0xfaa   :  { %v3811_v45 = vpop.f32.mrf.mxu0  ;;  %v3924_v37 = vpop.f32.mrf.mxu1 }
 0xfab   :  { %v9698_v41 = vpop.eup %9697  ;;  %v13967_v34 = vadd.f32 %v3811_v45, %v13943_v7  ;;  %v13970_v56 = vadd.f32 %v3924_v37, %v13946_v23 }
 0xfac   :  { %v3649_v46 = vadd.f32 1.0, %v9698_v41  ;;  %v3813_v59 = vpop.f32.mrf.mxu0  ;;  %v3926_v42 = vpop.f32.mrf.mxu1 }
 0xfad   :  { %17776 = vst [vmem:[#allocation46_spill] sm:$0xff] %v13967_v34  ;;  %17777 = vst [vmem:[#allocation49_spill] sm:$0xff] %v13970_v56  ;;  %v9700_v43 = vpop.eup %9699  ;;  %v13973_v54 = vadd.f32 %v3813_v59, %v13949_v51  ;;  %v13976_v58 = vadd.f32 %v3926_v42, %v13952_v0 }
 0xfae   :  { %9705 = vrcp.f32 %v3649_v46  ;;  %v3655_v38 = vadd.f32 1.0, %v9700_v43 }
 0xfaf   :  { %17778 = vst [vmem:[#allocation47_spill] sm:$0xff] %v13973_v54  ;;  %17779 = vst [vmem:[#allocation8_spill] sm:$0xff] %v13976_v58 }
 0xfb0   :  { %9707 = vrcp.f32 %v3655_v38  ;;  %v3817_v45 = vpop.f32.mrf.mxu0  ;;  %v3930_v34 = vpop.f32.mrf.mxu1 }
 0xfb1   :  { %v13979_v37 = vadd.f32 %v3817_v45, %v13943_v7  ;;  %v13982_v21 = vadd.f32 %v3930_v34, %v13946_v23  ;;  %v9702_v34 = vpop.eup %9701 }
 0xfb2   :  { %v3819_v41 = vpop.f32.mrf.mxu0  ;;  %v3932_v56 = vpop.f32.mrf.mxu1 }
 0xfb3   :  { %17780 = vst [vmem:[#allocation9_spill] sm:$0xff] %v13979_v37  ;;  %17781 = vst [vmem:[#allocation32_spill] sm:$0xff] %v13982_v21  ;;  %v13985_v63 = vadd.f32 %v3819_v41, %v13949_v51  ;;  %v13988_v59 = vadd.f32 %v3932_v56, %v13952_v0 }
 0xfb5   :  { %17782 = vst [vmem:[#allocation36_spill] sm:$0xff] %v13985_v63  ;;  %17783 = vst [vmem:[#allocation55_spill] sm:$0xff] %v13988_v59  ;;  %v9704_v63 = vpop.eup %9703 }
 0xfb6   :  { %v3823_v42 = vpop.f32.mrf.mxu0  ;;  %v3936_v46 = vpop.f32.mrf.mxu1 }
 0xfb7   :  { %v13991_v43 = vadd.f32 %v3823_v42, %v13943_v7  ;;  %v13994_v38 = vadd.f32 %v3936_v46, %v13946_v23  ;;  %v3662_v42 = vadd.f32 1.0, %v9704_v63 }
 0xfb8   :  { %v3825_v45 = vpop.f32.mrf.mxu0  ;;  %v3938_v37 = vpop.f32.mrf.mxu1 }
 0xfb9   :  { %17784 = vst [vmem:[#allocation7_spill] sm:$0xff] %v13991_v43  ;;  %17785 = vst [vmem:[#allocation13_spill] sm:$0xff] %v13994_v38  ;;  %v13997_v21 = vadd.f32 %v3825_v45, %v13949_v51  ;;  %v14000_v41 = vadd.f32 %v3938_v37, %v13952_v0  ;;  %v17790_v38 = vld [vmem:[#allocation22_spill] sm:$0xff]  ;;  %9709 = vrcp.f32 %v3662_v42 }
 0xfbb   :  { %17786 = vst [vmem:[#allocation57_spill] sm:$0xff] %v13997_v21  ;;  %17787 = vst [vmem:[#allocation59_spill] sm:$0xff] %v14000_v41  ;;  %v9706_v56 = vpop.eup %9705 }
 0xfbc   :  { %v3666_v59 = vmul.f32 %v9706_v56, %v9702_v34  ;;  %v3829_v58 = vpop.f32.mrf.mxu0  ;;  %v3942_v54 = vpop.f32.mrf.mxu1 }
 0xfbd   :  { %v9708_v19 = vpop.eup %9707  ;;  %v14003_v43 = vadd.f32 %v3829_v58, %v13943_v7  ;;  %v14006_v46 = vadd.f32 %v3942_v54, %v13946_v23 }
 0xfbe   :  { %v3665_v35 = vmul.f32 %v9708_v19, %v17790_v38  ;;  %v3831_v45 = vpop.f32.mrf.mxu0  ;;  %v3944_v21 = vpop.f32.mrf.mxu1 }
 0xfbf   :  { %17788 = vst [vmem:[#allocation66_spill] sm:$0xff] %v14003_v43  ;;  %17789 = vst [vmem:[#allocation62_spill] sm:$0xff] %v14006_v46  ;;  %v14010_v37 = vadd.f32 %v3831_v45, %v13949_v51  ;;  %v14013_v41 = vadd.f32 %v3944_v21, %v13952_v0 }
 0xfc0   :  { %v14015_v34 = vadd.f32 %v3666_v59, %v3665_v35 }
 0xfc1   :  { %17791 = vst [vmem:[#allocation56_spill] sm:$0xff] %v14010_v37  ;;  %17792 = vst [vmem:[#allocation63_spill] sm:$0xff] %v14013_v41 }
 0xfc2   :  { %17793 = vst [vmem:[#allocation65_spill] sm:$0xff] %v14015_v34  ;;  %9711 = vtanh.f32 %v14015_v34  ;;  %v3835_v58 = vpop.f32.mrf.mxu0  ;;  %v3948_v63 = vpop.f32.mrf.mxu1 }
 0xfc3   :  { %v14019_v54 = vadd.f32 %v3835_v58, %v13943_v7  ;;  %v14022_v19 = vadd.f32 %v3948_v63, %v13946_v23  ;;  %v10259_v63 = vmov 1934713408  }
 0xfc4   :  { %v3837_v38 = vpop.f32.mrf.mxu0  ;;  %v3950_v56 = vpop.f32.mrf.mxu1 }
 0xfc5   :  { %17794 = vst [vmem:[#allocation64_spill] sm:$0xff] %v14019_v54  ;;  %17795 = vst [vmem:[#allocation22_spill] sm:$0xff] %v14022_v19  ;;  %v14025_v45 = vadd.f32 %v3837_v38, %v13949_v51  ;;  %v14028_v21 = vadd.f32 %v3950_v56, %v13952_v0  ;;  %v7353_v19 = vunpack.c.l.s4 %v10259_v63  ;;  %v3800_v56 = vadd.f32 %v13931_v11, %v13943_v7  ;;  %v17803_v63 = vld [vmem:[#allocation24_spill] sm:$0xff] }
 0xfc7   :  { %17796 = vst [vmem:[#allocation68_spill] sm:$0xff] %v14025_v45  ;;  %17797 = vst [vmem:[#allocation69_spill] sm:$0xff] %v14028_v21  ;;  %v9710_v21 = vpop.eup %9709 }
 0xfc8   :  { %v3841_v35 = vpop.f32.mrf.mxu0  ;;  %v3954_v59 = vpop.f32.mrf.mxu1 }
 0xfc9   :  { %v14031_v42 = vadd.f32 %v3841_v35, %v13943_v7  ;;  %v14034_v34 = vadd.f32 %v3954_v59, %v13946_v23  ;;  %v3802_v59 = vadd.f32 %v13938_v14, %v13949_v51  ;;  %v17805_v7 = vld [vmem:[#allocation11_spill] sm:$0xff] }
 0xfca   :  { %v3843_v58 = vpop.f32.mrf.mxu0  ;;  %v3956_v54 = vpop.f32.mrf.mxu1  ;;  %v17806_v14 = vld [vmem:[#allocation27_spill] sm:$0xff] }
 0xfcb   :  { %17798 = vst [vmem:[#allocation70_spill] sm:$0xff] %v14031_v42  ;;  %17799 = vst [vmem:[#allocation71_spill] sm:$0xff] %v14034_v34  ;;  %v14037_v46 = vadd.f32 %v3843_v58, %v13949_v51  ;;  %v14040_v38 = vadd.f32 %v3956_v54, %v13952_v0  ;;  %v7354_v42 = vunpack.c.0.s8 %v7353_v19  ;;  %v17804_v58 = vld [vmem:[#allocation10_spill] sm:$0xff] }
 0xfcc   :  { %v7463_v54 = vcombine.high %v17804_v58, %v17803_v63 }
 0xfcd   :  { %17800 = vst [vmem:[#allocation72_spill] sm:$0xff] %v14037_v46  ;;  %17801 = vst [vmem:[#allocation73_spill] sm:$0xff] %v14040_v38  ;;  %v7462_v46 = vcombine.low %v17804_v58, %v17803_v63  ;;  %v14057_v51 = vsub.s32 %v7354_v42, %v17806_v14  ;;  %v17809_v42 = vld [vmem:[#allocation35_spill] sm:$0xff] }
 0xfce   :  { %v4125_v45 = vpop.f32.mrf.mxu0  ;;  %v4196_v11 = vpop.f32.mrf.mxu1 }
 0xfcf   :  { %v9712_v35 = vpop.eup %9711  ;;  %v4201_v34 = vadd.f32 %v4125_v45, %v3800_v56  ;;  %17807 = vst [vmem:[#allocation24_spill] sm:$0xff] %v14057_v51 }
 0xfd0   :  { %v4127_v41 = vpop.f32.mrf.mxu0  ;;  %v14046_v37 = vmul.f32 %v9712_v35, %v9710_v21  ;;  %v17808_v21 = vld [vmem:[#allocation15_spill] sm:$0xff] }
 0xfd1   :  { %v9148_v38 = vmul.f32 -1.442695, %v4201_v34  ;;  %v4202_v43 = vadd.f32 %v4127_v41, %v3802_v59  ;;  %v7470_v56 = vrot.slane %v7462_v46, %v17808_v21  ;;  %v7477_v63 = vrot.slane %v7463_v54, %v17808_v21  ;;  %v4198_v34 = vpop.f32.mrf.mxu1 }
 0xfd2   :  { %17802 = vst [vmem:[#allocation74_spill] sm:$0xff] %v14046_v37  ;;  %v7478_v29 = vcombine.low %v17805_v7, %v14046_v37  ;;  %v7479_v19 = vcombine.high %v17805_v7, %v14046_v37  ;;  %v3915_v7 = vadd.f32 %v13940_v40, %v13952_v0  ;;  %v17813_v40 = vld [vmem:[#allocation40_spill] sm:$0xff]  ;;  %v17814_v0 = vld [vmem:[#allocation38_spill] sm:$0xff] }
 0xfd3   :  { %9713 = vpow2.f32 %v9148_v38  ;;  %v9149_v45 = vmul.f32 -1.442695, %v4202_v43  ;;  %v17810_v38 = vld [vmem:[#allocation26_spill] sm:$0xff] }
 0xfd4   :  { %v7486_v35 = vrot.slane %v7478_v29, %v17808_v21  ;;  %v7493_v41 = vrot.slane %v7479_v19, %v17808_v21  ;;  %v17811_v43 = vcombine.low %v17809_v42, %v17810_v38  ;;  %v17812_v54 = vcombine.high %v17809_v42, %v17810_v38 }
 0xfd5   :  { %9715 = vpow2.f32 %v9149_v45  ;;  %v17815_v21 = vcombine.low %v17813_v40, %v17814_v0 }
 0xfd6   :  { %v7526_v59 = vcombine.low %v7470_v56, %v7486_v35  ;;  %v7527_v58 = vcombine.high %v7470_v56, %v7486_v35  ;;  %v7542_v24 = vcombine.low %v7477_v63, %v7493_v41  ;;  %v7502_v14 = vrot.slane %v17811_v43, %v14057_v51 }
 0xfd7   :  { %v7543_v46 = vcombine.high %v7477_v63, %v7493_v41  ;;  %v7509_v19 = vrot.slane %v17812_v54, %v14057_v51  ;;  %v4204_v35 = vadd.f32 %v4198_v34, %v3915_v7  ;;  %v7518_v37 = vrot.slane %v17815_v21, %v14057_v51 }
 0xfd8   :  { %v7534_v29 = vrot.slane %v7526_v59, %v14057_v51  ;;  %v7541_v45 = vrot.slane %v7527_v58, %v14057_v51  ;;  %v7550_v56 = vrot.slane %v7542_v24, %v14057_v51  ;;  %v17816_v63 = vcombine.high %v17813_v40, %v17814_v0 }
 0xfd9   :  { %v7557_v59 = vrot.slane %v7543_v46, %v14057_v51  ;;  %v3913_v54 = vadd.f32 %v13933_v33, %v13946_v23  ;;  %v9150_v46 = vmul.f32 -1.442695, %v4204_v35  ;;  %v17829_v35 = vld [vmem:[#allocation5_spill] sm:$0xff] }
 0xfda   :  { %v7525_v41 = vrot.slane %v17816_v63, %v14057_v51  ;;  %v14085_v43 = vcombine.low %v7502_v14, %v7534_v29  ;;  %v14087_v42 = vcombine.high %v7502_v14, %v7534_v29  ;;  %v14089_v58 = vcombine.low %v7509_v19, %v7541_v45 }
 0xfdb   :  { %v14091_v24 = vcombine.high %v7509_v19, %v7541_v45  ;;  %v14093_v34 = vcombine.low %v7518_v37, %v7550_v56  ;;  %v14095_v7 = vcombine.high %v7518_v37, %v7550_v56  ;;  %v4203_v0 = vadd.f32 %v4196_v11, %v3913_v54  ;;  %v17832_v54 = vld [vmem:[#allocation6_spill] sm:$0xff] }
 0xfdc   :  { %17817 = vst [vmem:[#allocation10_spill] sm:$0xff] %v14085_v43  ;;  %17818 = vst [vmem:[#allocation11_spill] sm:$0xff] %v14087_v42  ;;  %v14097_v21 = vcombine.low %v7525_v41, %v7557_v59  ;;  %v14099_v38 = vcombine.high %v7525_v41, %v7557_v59  ;;  %9717 = vpow2.f32 %v9150_v46  ;;  %v17825_v59 = vld [vmem:[#allocation12_spill] sm:$0xff]  ;;  %v17850_v51 = vmov 0.0   ;;  %v17851_v42 = vld [vmem:[#allocation37_spill] sm:$0xff] }
 0xfdd   :  { %17819 = vst [vmem:[#allocation27_spill] sm:$0xff] %v14089_v58  ;;  %17820 = vst [vmem:[#allocation35_spill] sm:$0xff] %v14091_v24  ;;  %v17833_v46 = vld [vmem:[#allocation16_spill] sm:$0xff]  ;;  %v17849_v58 = vld [vmem:[#allocation34_spill] sm:$0xff] }
 0xfde   :  { %17821 = vst [vmem:[#allocation26_spill] sm:$0xff] %v14093_v34  ;;  %17822 = vst [vmem:[#allocation40_spill] sm:$0xff] %v14095_v7  ;;  %v17847_v34 = vld [vmem:[#allocation31_spill] sm:$0xff]  ;;  %v17848_v24 = vld [vmem:[#allocation48_spill] sm:$0xff] }
 0xfdf   :  { %17823 = vst [vmem:[#allocation38_spill] sm:$0xff] %v14097_v21  ;;  %17824 = vst [vmem:[#allocation75_spill] sm:$0xff] %v14099_v38  ;;  %v17852_v43 = vld [vmem:[#allocation25_spill] sm:$0xff] }
 0xfe0   :  { %v9714_v40 = vpop.eup %9713 }
 0xfe1   :  { %v4208_v14 = vadd.f32 1.0, %v9714_v40  ;;  %v17834_v40 = vld [vmem:[#allocation17_spill] sm:$0xff] }
 0xfe2   :  { %v9716_v29 = vpop.eup %9715 }
 0xfe3   :  { %9719 = vrcp.f32 %v4208_v14  ;;  %v4214_v19 = vadd.f32 1.0, %v9716_v29  ;;  %v17836_v14 = vld [vmem:[#allocation61_spill] sm:$0xff]  ;;  %v17837_v29 = vld [vmem:[#allocation58_spill] sm:$0xff] }
 0xfe4   :  { %9721 = vtanh.f32 %v4203_v0  ;;  %v17835_v0 = vld [vmem:[#allocation53_spill] sm:$0xff] }
 0xfe5   :  { %9723 = vrcp.f32 %v4214_v19  ;;  %v17838_v19 = vld [vmem:[#allocation51_spill] sm:$0xff] }
 0xfe9   :  { %v9718_v45 = vpop.eup %9717 }
 0xfea   :  { %v4221_v21 = vadd.f32 1.0, %v9718_v45  ;;  %v17839_v45 = vld [vmem:[#allocation41_spill] sm:$0xff] }
 0xfec   :  { %9725 = vrcp.f32 %v4221_v21  ;;  %v17830_v21 = vld [vmem:[#allocation52_spill] sm:$0xff] }
 0xff0   :  { %v9720_v37 = vpop.eup %9719 }
 0xff1   :  { %v9722_v56 = vpop.eup %9721 }
 0xff2   :  { %v9724_v63 = vpop.eup %9723  ;;  %v4225_v41 = vmul.f32 %v9722_v56, %v9720_v37  ;;  %v17840_v37 = vld [vmem:[#allocation39_spill] sm:$0xff]  ;;  %v17841_v56 = vld [vmem:[#allocation30_spill] sm:$0xff] }
 0xff3   :  { %v4224_v38 = vmul.f32 %v9724_v63, %v17825_v59  ;;  %v17842_v63 = vld [vmem:[#allocation44_spill] sm:$0xff]  ;;  %v17844_v59 = vld [vmem:[#allocation45_spill] sm:$0xff] }
 0xff5   :  { %v14104_v7 = vadd.f32 %v4225_v41, %v4224_v38  ;;  %v17831_v38 = vld [vmem:[#allocation50_spill] sm:$0xff] }
 0xff6   :  { %v17843_v41 = vld [vmem:[#allocation42_spill] sm:$0xff] }
 0xff7   :  { %9727 = vtanh.f32 %v14104_v7 }
 0xff9   :  { %v9726_v33 = vpop.eup %9725 }
0x1004   :  { %v9728_v23 = vpop.eup %9727 }
0x1005   :  { %v14107_v11 = vmul.f32 %v9728_v23, %v9726_v33  ;;  %v17845_v33 = vld [vmem:[#allocation43_spill] sm:$0xff]  ;;  %v17846_v23 = vld [vmem:[#allocation33_spill] sm:$0xff] }
0x1007   :  { %17826 = vst [vmem:[#allocation12_spill] sm:$0xff] %v14107_v11  ;;  %4299 = vmatmul.mubr.f32.vlgmr.msra.gmra.mxu0 %v14107_v11  ;;  %4370 = vmatmul.mubr.f32.vlgmr.msra.gmra.mxu1 %v14107_v11  ;;  %v17853_v11 = vld [vmem:[#allocation23_spill] sm:$0xff] }
0x1008   :  { %4411 = vmatpush1.msra.mxu0 %v13429_v17  ;;  %4482 = vmatpush1.msra.mxu1 %v13434_v55  ;;  %v17827_v17 = vld [vmem:[#allocation67_spill] sm:$0xff]  ;;  %v17828_v55 = vld [vmem:[#allocation14_spill] sm:$0xff] }
0x1009   :  { %4412 = vmatprep.subr.mxu0 %v13441_v20  ;;  %4483 = vmatprep.subr.mxu1 %v13446_v61 }
0x100a   :  { %4413 = vmatpush1.msra.mxu0 %v13455_v15  ;;  %4484 = vmatpush1.msra.mxu1 %v13460_v25 }
0x100b   :  { %4414 = vmatprep.subr.mxu0 %v13472_v52  ;;  %4485 = vmatprep.subr.mxu1 %v13477_v53 }
0x100c   :  { %4415 = vmatpush1.msra.mxu0 %v13484_v12  ;;  %4486 = vmatpush1.msra.mxu1 %v13489_v22 }
0x100d   :  { %4416 = vmatprep.subr.mxu0 %v13496_v57  ;;  %4487 = vmatprep.subr.mxu1 %v13501_v8 }
0x100e   :  { %4417 = vmatpush1.msra.mxu0 %v13510_v1  ;;  %4488 = vmatpush1.msra.mxu1 %v13515_v36 }
0x100f   :  { %4418 = vmatprep.subr.mxu0 %v13527_v2  ;;  %4489 = vmatprep.subr.mxu1 %v13532_v3 }
0x1010   :  { %4419 = vmatpush1.msra.mxu0 %v13539_v18  ;;  %4490 = vmatpush1.msra.mxu1 %v13544_v9 }
0x1011   :  { %4420 = vmatprep.subr.mxu0 %v13551_v62  ;;  %4491 = vmatprep.subr.mxu1 %v13556_v6 }
0x1012   :  { %4421 = vmatpush1.msra.mxu0 %v13565_v4  ;;  %4492 = vmatpush1.msra.mxu1 %v13570_v27 }
0x1013   :  { %4422 = vmatprep.subr.mxu0 %v13582_v16  ;;  %4493 = vmatprep.subr.mxu1 %v13587_v13 }
0x1014   :  { %4423 = vmatpush1.msra.mxu0 %v13594_v60  ;;  %4494 = vmatpush1.msra.mxu1 %v13599_v5 }
0x1015   :  { %4424 = vmatprep.subr.mxu0 %v13606_v30  ;;  %4495 = vmatprep.subr.mxu1 %v13611_v31 }
0x1016   :  { %4425 = vmatpush1.msra.mxu0 %v13620_v50  ;;  %4496 = vmatpush1.msra.mxu1 %v13625_v28 }
0x1017   :  { %4426 = vmatprep.subr.mxu0 %v13637_v48  ;;  %4497 = vmatprep.subr.mxu1 %v13642_v49 }
0x1018   :  { %4427 = vmatpush1.msra.mxu0 %v13649_v32  ;;  %4498 = vmatpush1.msra.mxu1 %v13654_v39 }
0x1019   :  { %4428 = vmatprep.subr.mxu0 %v13661_v47  ;;  %4499 = vmatprep.subr.mxu1 %v13666_v10 }
0x101a   :  { %4429 = vmatpush1.msra.mxu0 %v13675_v26  ;;  %4500 = vmatpush1.msra.mxu1 %v13680_v44 }
0x101b   :  { %4430 = vmatprep.subr.mxu0 %v17827_v17  ;;  %4501 = vmatprep.subr.mxu1 %v17828_v55 }
0x101c   :  { %4431 = vmatpush1.msra.mxu0 %v17829_v35  ;;  %4502 = vmatpush1.msra.mxu1 %v17830_v21 }
0x101d   :  { %4432 = vmatprep.subr.mxu0 %v17831_v38  ;;  %4503 = vmatprep.subr.mxu1 %v17832_v54 }
0x101e   :  { %4433 = vmatpush1.msra.mxu0 %v17833_v46  ;;  %4504 = vmatpush1.msra.mxu1 %v17834_v40 }
0x101f   :  { %4434 = vmatprep.subr.mxu0 %v17835_v0  ;;  %4505 = vmatprep.subr.mxu1 %v17836_v14 }
0x1020   :  { %4435 = vmatpush1.msra.mxu0 %v17837_v29  ;;  %4506 = vmatpush1.msra.mxu1 %v17838_v19  ;;  %v17857_v19 = vld [vmem:[#allocation20_spill] sm:$0xff] }
0x1021   :  { %4436 = vmatprep.subr.mxu0 %v17839_v45  ;;  %4507 = vmatprep.subr.mxu1 %v17840_v37  ;;  %v17856_v45 = vld [vmem:[#allocation19_spill] sm:$0xff] }
0x1022   :  { %4437 = vmatpush1.msra.mxu0 %v17841_v56  ;;  %4508 = vmatpush1.msra.mxu1 %v17842_v63 }
0x1023   :  { %4438 = vmatprep.subr.mxu0 %v17843_v41  ;;  %4509 = vmatprep.subr.mxu1 %v17844_v59 }
0x1024   :  { %4439 = vmatpush1.msra.mxu0 %v17845_v33  ;;  %4510 = vmatpush1.msra.mxu1 %v17846_v23  ;;  %v17854_v33 = vld [vmem:[#allocation18_spill] sm:$0xff] }
0x1025   :  { %4440 = vmatprep.subr.mxu0 %v17847_v34  ;;  %4511 = vmatprep.subr.mxu1 %v17848_v24  ;;  %v17855_v34 = vld [vmem:[#allocation21_spill] sm:$0xff] }
0x1026   :  { %4441 = vmatpush1.msra.mxu0 %v17849_v58  ;;  %4474 = vmatprep.mubr.f32.mxu0 %v17850_v51 }
0x1027   :  { %4512 = vmatpush1.msra.mxu1 %v17851_v42  ;;  %4545 = vmatprep.mubr.f32.mxu1 %v17850_v51 }
0x1028   :  { %4586 = vmatprep.subr.mxu0 %v17852_v43  ;;  %4657 = vmatprep.subr.mxu1 %v17853_v11 }
0x10c7   :  { %v4300_v59 = vpop.f32.mrf.mxu0  ;;  %v4371_v24 = vpop.f32.mrf.mxu1 }
0x10c8   :  { %v4376_v41 = vadd.f32 %v4300_v59, %v17854_v33  ;;  %v4378_v51 = vadd.f32 %v4371_v24, %v17857_v19 }
0x10c9   :  { %v4302_v23 = vpop.f32.mrf.mxu0  ;;  %v4373_v37 = vpop.f32.mrf.mxu1 }
0x10ca   :  { %v9151_v63 = vmul.f32 -1.442695, %v4376_v41  ;;  %v4377_v56 = vadd.f32 %v4302_v23, %v17855_v34  ;;  %v4379_v42 = vadd.f32 %v4373_v37, %v17856_v45 }
0x10cc   :  { %9729 = vpow2.f32 %v9151_v63  ;;  %v9152_v58 = vmul.f32 -1.442695, %v4377_v56  ;;  %v9153_v29 = vmul.f32 -1.442695, %v4379_v42 }
0x10ce   :  { %9731 = vpow2.f32 %v9152_v58 }
0x10cf   :  { %9733 = vtanh.f32 %v4378_v51 }
0x10d0   :  { %9735 = vpow2.f32 %v9153_v29 }
0x10d9   :  { %v9730_v43 = vpop.eup %9729 }
0x10da   :  { %v4383_v14 = vadd.f32 1.0, %v9730_v43  ;;  %v14292_v43 = vld [vmem:[%s16776_s9 + $0x1c8] sm:$0xff] }
0x10db   :  { %v9732_v11 = vpop.eup %9731 }
0x10dc   :  { %9737 = vrcp.f32 %v4383_v14  ;;  %v4389_v59 = vadd.f32 1.0, %v9732_v11  ;;  %v9734_v41 = vpop.eup %9733  ;;  %v14192_v14 = vld [vmem:[%s16776_s9 + $0x1e0] sm:$0xff]  ;;  %v14298_v11 = vld [vmem:[%s16776_s9 + $0x1d8] sm:$0xff] }
0x10dd   :  { %v9736_v34 = vpop.eup %9735 }
0x10de   :  { %9739 = vrcp.f32 %v4389_v59  ;;  %v4396_v58 = vadd.f32 1.0, %v9736_v34  ;;  %v14304_v59 = vld [vmem:[%s16776_s9 + $0x1c0] sm:$0xff]  ;;  %v14316_v34 = vld [vmem:[%s16776_s9 + $0x1a8] sm:$0xff] }
0x10e0   :  { %9741 = vrcp.f32 %v4396_v58  ;;  %v14340_v58 = vld [vmem:[%s16776_s9 + $0x188] sm:$0xff] }
0x10e9   :  { %v9738_v63 = vpop.eup %9737 }
0x10ea   :  { %v4400_v33 = vmul.f32 %v9738_v63, %v9734_v41  ;;  %v14310_v41 = vld [vmem:[%s16776_s9 + $0x1d0] sm:$0xff]  ;;  %v14322_v63 = vld [vmem:[%s16776_s9 + $0x1b8] sm:$0xff] }
0x10eb   :  { %v9740_v56 = vpop.eup %9739 }
0x10ec   :  { %v4399_v23 = vmul.f32 %v9740_v56, %v14104_v7  ;;  %v14198_v7 = vld [vmem:[%s16776_s9 + $0x1f0] sm:$0xff] }
0x10ed   :  { %v9742_v42 = vpop.eup %9741  ;;  %v14334_v56 = vld [vmem:[%s16776_s9 + $0x1b0] sm:$0xff] }
0x10ee   :  { %v14182_v45 = vadd.f32 %v4400_v33, %v4399_v23  ;;  %v14328_v33 = vld [vmem:[%s16776_s9 + $0x1a0] sm:$0xff]  ;;  %v14346_v23 = vld [vmem:[%s16776_s9 + $0x198] sm:$0xff] }
0x10f0   :  { %9743 = vtanh.f32 %v14182_v45 }
0x10fd   :  { %v9744_v51 = vpop.eup %9743 }
0x10fe   :  { %v14185_v24 = vmul.f32 %v9744_v51, %v9742_v42  ;;  %v14358_v42 = vld [vmem:[%s16776_s9 + $0x190] sm:$0xff]  ;;  %v14364_v51 = vld [vmem:[%s16776_s9 + $0x168] sm:$0xff] }
0x1100   :  { %17858 = vst [vmem:[#allocation67_spill] sm:$0xff] %v14185_v24  ;;  %4475 = vmatmul.mubr.f32.vlgmr.msra.gmra.mxu0 %v14185_v24  ;;  %4546 = vmatmul.mubr.f32.vlgmr.msra.gmra.mxu1 %v14185_v24  ;;  %v14634_v24 = vld [vmem:[%s16776_s9 + $0x18] sm:$0xff] }
0x1101   :  { %4587 = vmatpush1.msra.mxu0 %v14192_v14  ;;  %4658 = vmatpush1.msra.mxu1 %v14198_v7 }
0x1102   :  { %4588 = vmatprep.subr.mxu0 %v13441_v20  ;;  %4659 = vmatprep.subr.mxu1 %v13446_v61  ;;  %v17859_v20 = vld [vmem:[#allocation61_spill] sm:$0xff]  ;;  %v17860_v61 = vld [vmem:[#allocation58_spill] sm:$0xff] }
0x1103   :  { %4589 = vmatpush1.msra.mxu0 %v13455_v15  ;;  %4660 = vmatpush1.msra.mxu1 %v13460_v25  ;;  %v17861_v15 = vld [vmem:[#allocation51_spill] sm:$0xff]  ;;  %v17862_v25 = vld [vmem:[#allocation41_spill] sm:$0xff] }
0x1104   :  { %4590 = vmatprep.subr.mxu0 %v13472_v52  ;;  %4661 = vmatprep.subr.mxu1 %v13477_v53  ;;  %v17863_v52 = vld [vmem:[#allocation39_spill] sm:$0xff]  ;;  %v17864_v53 = vld [vmem:[#allocation30_spill] sm:$0xff]  ;;  %17896 = vst [vmem:[#allocation41_spill] sm:$0xff] %v14634_v24 }
0x1105   :  { %4591 = vmatpush1.msra.mxu0 %v13484_v12  ;;  %4662 = vmatpush1.msra.mxu1 %v13489_v22  ;;  %v17865_v12 = vld [vmem:[#allocation44_spill] sm:$0xff]  ;;  %v17866_v22 = vld [vmem:[#allocation42_spill] sm:$0xff] }
0x1106   :  { %4592 = vmatprep.subr.mxu0 %v13496_v57  ;;  %4663 = vmatprep.subr.mxu1 %v13501_v8  ;;  %v17867_v57 = vld [vmem:[#allocation45_spill] sm:$0xff]  ;;  %v17868_v8 = vld [vmem:[#allocation43_spill] sm:$0xff] }
0x1107   :  { %4593 = vmatpush1.msra.mxu0 %v13510_v1  ;;  %4664 = vmatpush1.msra.mxu1 %v13515_v36  ;;  %v17869_v1 = vld [vmem:[#allocation33_spill] sm:$0xff]  ;;  %v17870_v36 = vld [vmem:[#allocation31_spill] sm:$0xff] }
0x1108   :  { %4594 = vmatprep.subr.mxu0 %v13527_v2  ;;  %4665 = vmatprep.subr.mxu1 %v13532_v3  ;;  %v17871_v2 = vld [vmem:[#allocation48_spill] sm:$0xff]  ;;  %v17872_v3 = vld [vmem:[#allocation34_spill] sm:$0xff] }
0x1109   :  { %4595 = vmatpush1.msra.mxu0 %v13539_v18  ;;  %4666 = vmatpush1.msra.mxu1 %v13544_v9  ;;  %v17873_v18 = vmov 0.0   ;;  %v17874_v9 = vld [vmem:[#allocation37_spill] sm:$0xff] }
0x110a   :  { %4596 = vmatprep.subr.mxu0 %v13551_v62  ;;  %4667 = vmatprep.subr.mxu1 %v13556_v6  ;;  %v14266_v62 = vld [vmem:[%s16776_s9 + $0x1e8] sm:$0xff]  ;;  %v14272_v6 = vld [vmem:[%s16776_s9 + $0x1f8] sm:$0xff] }
0x110b   :  { %4597 = vmatpush1.msra.mxu0 %v13565_v4  ;;  %4668 = vmatpush1.msra.mxu1 %v13570_v27  ;;  %17875 = vst [vmem:[#allocation14_spill] sm:$0xff] %v14266_v62  ;;  %17876 = vst [vmem:[#allocation5_spill] sm:$0xff] %v14272_v6  ;;  %v17877_v27 = vld [vmem:[#allocation46_spill] sm:$0xff] }
0x110c   :  { %4598 = vmatprep.subr.mxu0 %v13582_v16  ;;  %4669 = vmatprep.subr.mxu1 %v13587_v13 }
0x110d   :  { %4599 = vmatpush1.msra.mxu0 %v13594_v60  ;;  %4670 = vmatpush1.msra.mxu1 %v13599_v5  ;;  %v17878_v5 = vld [vmem:[#allocation47_spill] sm:$0xff] }
0x110e   :  { %4600 = vmatprep.subr.mxu0 %v13606_v30  ;;  %4671 = vmatprep.subr.mxu1 %v13611_v31 }
0x110f   :  { %4601 = vmatpush1.msra.mxu0 %v13620_v50  ;;  %4672 = vmatpush1.msra.mxu1 %v13625_v28 }
0x1110   :  { %4602 = vmatprep.subr.mxu0 %v13637_v48  ;;  %4673 = vmatprep.subr.mxu1 %v13642_v49  ;;  %v17879_v48 = vld [vmem:[#allocation8_spill] sm:$0xff] }
0x1111   :  { %4603 = vmatpush1.msra.mxu0 %v13649_v32  ;;  %4674 = vmatpush1.msra.mxu1 %v13654_v39  ;;  %v17880_v32 = vld [vmem:[#allocation49_spill] sm:$0xff] }
0x1112   :  { %4604 = vmatprep.subr.mxu0 %v13661_v47  ;;  %4675 = vmatprep.subr.mxu1 %v13666_v10 }
0x1113   :  { %4605 = vmatpush1.msra.mxu0 %v13675_v26  ;;  %4676 = vmatpush1.msra.mxu1 %v13680_v44 }
0x1114   :  { %4606 = vmatprep.subr.mxu0 %v17827_v17  ;;  %4677 = vmatprep.subr.mxu1 %v17828_v55 }
0x1115   :  { %4607 = vmatpush1.msra.mxu0 %v17829_v35  ;;  %4678 = vmatpush1.msra.mxu1 %v17830_v21 }
0x1116   :  { %4608 = vmatprep.subr.mxu0 %v17831_v38  ;;  %4679 = vmatprep.subr.mxu1 %v17832_v54 }
0x1117   :  { %4609 = vmatpush1.msra.mxu0 %v17833_v46  ;;  %4680 = vmatpush1.msra.mxu1 %v17834_v40 }
0x1118   :  { %4610 = vmatprep.subr.mxu0 %v17835_v0  ;;  %4681 = vmatprep.subr.mxu1 %v17859_v20  ;;  %v14370_v20 = vld [vmem:[%s16776_s9 + $0x178] sm:$0xff] }
0x1119   :  { %4611 = vmatpush1.msra.mxu0 %v17860_v61  ;;  %4682 = vmatpush1.msra.mxu1 %v17861_v15  ;;  %v14376_v61 = vld [vmem:[%s16776_s9 + $0x160] sm:$0xff]  ;;  %v14382_v15 = vld [vmem:[%s16776_s9 + $0x170] sm:$0xff] }
0x111a   :  { %4612 = vmatprep.subr.mxu0 %v17862_v25  ;;  %4683 = vmatprep.subr.mxu1 %v17863_v52  ;;  %v14388_v25 = vld [vmem:[%s16776_s9 + $0x148] sm:$0xff]  ;;  %v14394_v52 = vld [vmem:[%s16776_s9 + $0x158] sm:$0xff] }
0x111b   :  { %4613 = vmatpush1.msra.mxu0 %v17864_v53  ;;  %4684 = vmatpush1.msra.mxu1 %v17865_v12  ;;  %v14400_v53 = vld [vmem:[%s16776_s9 + $0x140] sm:$0xff]  ;;  %v14406_v12 = vld [vmem:[%s16776_s9 + $0x150] sm:$0xff] }
0x111c   :  { %4614 = vmatprep.subr.mxu0 %v17866_v22  ;;  %4685 = vmatprep.subr.mxu1 %v17867_v57  ;;  %v14412_v22 = vld [vmem:[%s16776_s9 + $0x128] sm:$0xff]  ;;  %v14418_v57 = vld [vmem:[%s16776_s9 + $0x138] sm:$0xff] }
0x111d   :  { %4615 = vmatpush1.msra.mxu0 %v17868_v8  ;;  %4686 = vmatpush1.msra.mxu1 %v17869_v1  ;;  %v14424_v8 = vld [vmem:[%s16776_s9 + $0x120] sm:$0xff]  ;;  %v14430_v1 = vld [vmem:[%s16776_s9 + $0x130] sm:$0xff] }
0x111e   :  { %4616 = vmatprep.subr.mxu0 %v17870_v36  ;;  %4687 = vmatprep.subr.mxu1 %v17871_v2  ;;  %v14436_v36 = vld [vmem:[%s16776_s9 + $0x108] sm:$0xff]  ;;  %v14442_v2 = vld [vmem:[%s16776_s9 + $0x118] sm:$0xff] }
0x111f   :  { %4617 = vmatpush1.msra.mxu0 %v17872_v3  ;;  %4650 = vmatprep.mubr.f32.mxu0 %v17873_v18  ;;  %v14448_v3 = vld [vmem:[%s16776_s9 + $0x100] sm:$0xff] }
0x1120   :  { %4688 = vmatpush1.msra.mxu1 %v17874_v9  ;;  %4721 = vmatprep.mubr.f32.mxu1 %v17873_v18  ;;  %v14454_v9 = vld [vmem:[%s16776_s9 + $0x110] sm:$0xff] }
0x1121   :  { %4762 = vmatprep.subr.mxu0 %v14266_v62  ;;  %4833 = vmatprep.subr.mxu1 %v14272_v6 }
0x11c0   :  { %v4476_v4 = vpop.f32.mrf.mxu0  ;;  %v4547_v31 = vpop.f32.mrf.mxu1 }
0x11c1   :  { %v4552_v16 = vadd.f32 %v4476_v4, %v17877_v27  ;;  %v4554_v39 = vadd.f32 %v4547_v31, %v17880_v32  ;;  %v14460_v4 = vld [vmem:[%s16776_s9 + $0xe8] sm:$0xff]  ;;  %v14466_v27 = vld [vmem:[%s16776_s9 + $0xf8] sm:$0xff]  ;;  %v14502_v31 = vld [vmem:[%s16776_s9 + $0xd0] sm:$0xff] }
0x11c2   :  { %v4478_v13 = vpop.f32.mrf.mxu0  ;;  %v4549_v28 = vpop.f32.mrf.mxu1  ;;  %v14532_v32 = vld [vmem:[%s16776_s9 + $0x88] sm:$0xff] }
0x11c3   :  { %v9154_v60 = vmul.f32 -1.442695, %v4552_v16  ;;  %v4553_v30 = vadd.f32 %v4478_v13, %v17878_v5  ;;  %v4555_v49 = vadd.f32 %v4549_v28, %v17879_v48  ;;  %v14472_v16 = vld [vmem:[%s16776_s9 + $0xe0] sm:$0xff]  ;;  %v14478_v13 = vld [vmem:[%s16776_s9 + $0xf0] sm:$0xff]  ;;  %v14490_v5 = vld [vmem:[%s16776_s9 + $0xd8] sm:$0xff] }
0x11c4   :  { %v14514_v28 = vld [vmem:[%s16776_s9 + $0xb8] sm:$0xff]  ;;  %v14520_v48 = vld [vmem:[%s16776_s9 + $0xa0] sm:$0xff] }
0x11c5   :  { %9745 = vpow2.f32 %v9154_v60  ;;  %v9155_v50 = vmul.f32 -1.442695, %v4553_v30  ;;  %v9156_v47 = vmul.f32 -1.442695, %v4555_v49  ;;  %v14484_v60 = vld [vmem:[%s16776_s9 + $0xc8] sm:$0xff]  ;;  %v14496_v30 = vld [vmem:[%s16776_s9 + $0xc0] sm:$0xff] }
0x11c6   :  { %v14526_v49 = vld [vmem:[%s16776_s9 + $0xb0] sm:$0xff] }
0x11c7   :  { %9747 = vpow2.f32 %v9155_v50  ;;  %v14508_v50 = vld [vmem:[%s16776_s9 + $0xa8] sm:$0xff] }
0x11c8   :  { %9749 = vtanh.f32 %v4554_v39  ;;  %v14538_v39 = vld [vmem:[%s16776_s9 + $0x98] sm:$0xff] }
0x11c9   :  { %9751 = vpow2.f32 %v9156_v47  ;;  %v14544_v47 = vld [vmem:[%s16776_s9 + $0x80] sm:$0xff] }
0x11d2   :  { %v9746_v10 = vpop.eup %9745 }
0x11d3   :  { %v4559_v26 = vadd.f32 1.0, %v9746_v10  ;;  %v14550_v10 = vld [vmem:[%s16776_s9 + $0x90] sm:$0xff] }
0x11d4   :  { %v9748_v44 = vpop.eup %9747  ;;  %17882 = vst [vmem:[#allocation50_spill] sm:$0xff] %v14550_v10 }
0x11d5   :  { %9753 = vrcp.f32 %v4559_v26  ;;  %v4565_v17 = vadd.f32 1.0, %v9748_v44  ;;  %v9750_v55 = vpop.eup %9749  ;;  %v14556_v26 = vld [vmem:[%s16776_s9 + $0x68] sm:$0xff]  ;;  %v14562_v44 = vld [vmem:[%s16776_s9 + $0x78] sm:$0xff] }
0x11d6   :  { %v9752_v35 = vpop.eup %9751  ;;  %17883 = vst [vmem:[#allocation6_spill] sm:$0xff] %v14556_v26  ;;  %17884 = vst [vmem:[#allocation16_spill] sm:$0xff] %v14562_v44 }
0x11d7   :  { %9755 = vrcp.f32 %v4565_v17  ;;  %v4572_v46 = vadd.f32 1.0, %v9752_v35  ;;  %v14568_v17 = vld [vmem:[%s16776_s9 + $0x60] sm:$0xff]  ;;  %v14580_v35 = vld [vmem:[%s16776_s9 + $0x48] sm:$0xff] }
0x11d8   :  { %17885 = vst [vmem:[#allocation17_spill] sm:$0xff] %v14568_v17  ;;  %17887 = vst [vmem:[#allocation25_spill] sm:$0xff] %v14580_v35 }
0x11d9   :  { %9757 = vrcp.f32 %v4572_v46  ;;  %v14604_v46 = vld [vmem:[%s16776_s9 + $0x28] sm:$0xff] }
0x11da   :  { %17891 = vst [vmem:[#allocation19_spill] sm:$0xff] %v14604_v46 }
0x11e2   :  { %v9754_v21 = vpop.eup %9753 }
0x11e3   :  { %v4576_v38 = vmul.f32 %v9754_v21, %v9750_v55  ;;  %v14574_v55 = vld [vmem:[%s16776_s9 + $0x70] sm:$0xff]  ;;  %v14586_v21 = vld [vmem:[%s16776_s9 + $0x58] sm:$0xff] }
0x11e4   :  { %v9756_v54 = vpop.eup %9755  ;;  %17886 = vst [vmem:[#allocation53_spill] sm:$0xff] %v14574_v55  ;;  %17888 = vst [vmem:[#allocation23_spill] sm:$0xff] %v14586_v21 }
0x11e5   :  { %v4575_v40 = vmul.f32 %v9756_v54, %v14182_v45  ;;  %v14352_v45 = vld [vmem:[%s16776_s9 + $0x180] sm:$0xff]  ;;  %v14598_v54 = vld [vmem:[%s16776_s9 + $0x50] sm:$0xff] }
0x11e6   :  { %v9758_v29 = vpop.eup %9757  ;;  %17890 = vst [vmem:[#allocation21_spill] sm:$0xff] %v14598_v54 }
0x11e7   :  { %v14280_v0 = vadd.f32 %v4576_v38, %v4575_v40  ;;  %v14592_v38 = vld [vmem:[%s16776_s9 + $0x40] sm:$0xff]  ;;  %v14610_v40 = vld [vmem:[%s16776_s9 + $0x38] sm:$0xff] }
0x11e8   :  { %17889 = vst [vmem:[#allocation18_spill] sm:$0xff] %v14592_v38  ;;  %17892 = vst [vmem:[#allocation20_spill] sm:$0xff] %v14610_v40 }
0x11e9   :  { %9759 = vtanh.f32 %v14280_v0 }
0x11f6   :  { %v9760_v19 = vpop.eup %9759 }
0x11f7   :  { %v14283_v37 = vmul.f32 %v9760_v19, %v9758_v29  ;;  %v14616_v29 = vld [vmem:[%s16776_s9 + $0x20] sm:$0xff]  ;;  %v14622_v19 = vld [vmem:[%s16776_s9 + $0x30] sm:$0xff] }
0x11f8   :  { %17893 = vst [vmem:[#allocation61_spill] sm:$0xff] %v14616_v29  ;;  %17894 = vst [vmem:[#allocation58_spill] sm:$0xff] %v14622_v19 }
0x11f9   :  { %17881 = vst [vmem:[#allocation52_spill] sm:$0xff] %v14283_v37  ;;  %4651 = vmatmul.mubr.f32.vlgmr.msra.gmra.mxu0 %v14283_v37  ;;  %4722 = vmatmul.mubr.f32.vlgmr.msra.gmra.mxu1 %v14283_v37  ;;  %v14628_v37 = vld [vmem:[%s16776_s9 + $0x8] sm:$0xff] }
0x11fa   :  { %4763 = vmatpush1.msra.mxu0 %v14192_v14  ;;  %4834 = vmatpush1.msra.mxu1 %v14198_v7  ;;  %17895 = vst [vmem:[#allocation51_spill] sm:$0xff] %v14628_v37 }
0x11fb   :  { %4764 = vmatprep.subr.mxu0 %v14292_v43  ;;  %4835 = vmatprep.subr.mxu1 %v14298_v11 }
0x11fc   :  { %4765 = vmatpush1.msra.mxu0 %v14304_v59  ;;  %4836 = vmatpush1.msra.mxu1 %v14310_v41 }
0x11fd   :  { %4766 = vmatprep.subr.mxu0 %v14316_v34  ;;  %4837 = vmatprep.subr.mxu1 %v14322_v63 }
0x11fe   :  { %4767 = vmatpush1.msra.mxu0 %v14328_v33  ;;  %4838 = vmatpush1.msra.mxu1 %v14334_v56 }
0x11ff   :  { %4768 = vmatprep.subr.mxu0 %v14340_v58  ;;  %4839 = vmatprep.subr.mxu1 %v14346_v23 }
0x1200   :  { %4769 = vmatpush1.msra.mxu0 %v14352_v45  ;;  %4840 = vmatpush1.msra.mxu1 %v14358_v42 }
0x1201   :  { %4770 = vmatprep.subr.mxu0 %v14364_v51  ;;  %4841 = vmatprep.subr.mxu1 %v14370_v20 }
0x1202   :  { %4771 = vmatpush1.msra.mxu0 %v14376_v61  ;;  %4842 = vmatpush1.msra.mxu1 %v14382_v15 }
0x1203   :  { %4772 = vmatprep.subr.mxu0 %v14388_v25  ;;  %4843 = vmatprep.subr.mxu1 %v14394_v52 }
0x1204   :  { %4773 = vmatpush1.msra.mxu0 %v14400_v53  ;;  %4844 = vmatpush1.msra.mxu1 %v14406_v12 }
0x1205   :  { %4774 = vmatprep.subr.mxu0 %v14412_v22  ;;  %4845 = vmatprep.subr.mxu1 %v14418_v57 }
0x1206   :  { %4775 = vmatpush1.msra.mxu0 %v14424_v8  ;;  %4846 = vmatpush1.msra.mxu1 %v14430_v1 }
0x1207   :  { %4776 = vmatprep.subr.mxu0 %v14436_v36  ;;  %4847 = vmatprep.subr.mxu1 %v14442_v2 }
0x1208   :  { %4777 = vmatpush1.msra.mxu0 %v14448_v3  ;;  %4848 = vmatpush1.msra.mxu1 %v14454_v9 }
0x1209   :  { %4778 = vmatprep.subr.mxu0 %v14460_v4  ;;  %4849 = vmatprep.subr.mxu1 %v14466_v27 }
0x120a   :  { %4779 = vmatpush1.msra.mxu0 %v14472_v16  ;;  %4850 = vmatpush1.msra.mxu1 %v14478_v13 }
0x120b   :  { %4780 = vmatprep.subr.mxu0 %v14484_v60  ;;  %4851 = vmatprep.subr.mxu1 %v14490_v5 }
0x120c   :  { %4781 = vmatpush1.msra.mxu0 %v14496_v30  ;;  %4852 = vmatpush1.msra.mxu1 %v14502_v31 }
0x120d   :  { %4782 = vmatprep.subr.mxu0 %v14508_v50  ;;  %4853 = vmatprep.subr.mxu1 %v14514_v28 }
0x120e   :  { %4783 = vmatpush1.msra.mxu0 %v14520_v48  ;;  %4854 = vmatpush1.msra.mxu1 %v14526_v49 }
0x120f   :  { %4784 = vmatprep.subr.mxu0 %v14532_v32  ;;  %4855 = vmatprep.subr.mxu1 %v14538_v39 }
0x1210   :  { %4785 = vmatpush1.msra.mxu0 %v14544_v47  ;;  %4856 = vmatpush1.msra.mxu1 %v14550_v10 }
0x1211   :  { %4786 = vmatprep.subr.mxu0 %v14556_v26  ;;  %4857 = vmatprep.subr.mxu1 %v14562_v44  ;;  %v17902_v44 = vld [vmem:[#allocation32_spill] sm:$0xff] }
0x1212   :  { %4787 = vmatpush1.msra.mxu0 %v14568_v17  ;;  %4858 = vmatpush1.msra.mxu1 %v14574_v55  ;;  %v17901_v17 = vld [vmem:[#allocation55_spill] sm:$0xff] }
0x1213   :  { %4788 = vmatprep.subr.mxu0 %v14580_v35  ;;  %4859 = vmatprep.subr.mxu1 %v14586_v21 }
0x1214   :  { %4789 = vmatpush1.msra.mxu0 %v14592_v38  ;;  %4860 = vmatpush1.msra.mxu1 %v14598_v54  ;;  %v17900_v54 = vld [vmem:[#allocation36_spill] sm:$0xff] }
0x1215   :  { %4790 = vmatprep.subr.mxu0 %v14604_v46  ;;  %4861 = vmatprep.subr.mxu1 %v14610_v40 }
0x1216   :  { %4791 = vmatpush1.msra.mxu0 %v14616_v29  ;;  %4862 = vmatpush1.msra.mxu1 %v14622_v19  ;;  %v14640_v29 = vld [vmem:[%s16776_s9] sm:$0xff] }
0x1217   :  { %4792 = vmatprep.subr.mxu0 %v14628_v37  ;;  %4863 = vmatprep.subr.mxu1 %v14634_v24  ;;  %17897 = vst [vmem:[#allocation39_spill] sm:$0xff] %v14640_v29  ;;  %v14647_v37 = vld [vmem:[%s16776_s9 + $0x10] sm:$0xff]  ;;  %v17899_v19 = vld [vmem:[#allocation9_spill] sm:$0xff] }
0x1218   :  { %4793 = vmatpush1.msra.mxu0 %v14640_v29  ;;  %4826 = vmatprep.mubr.f32.mxu0 %v17873_v18  ;;  %17898 = vst [vmem:[#allocation30_spill] sm:$0xff] %v14647_v37 }
0x1219   :  { %4864 = vmatpush1.msra.mxu1 %v14647_v37  ;;  %4897 = vmatprep.mubr.f32.mxu1 %v17873_v18 }
0x121a   :  { %4938 = vmatprep.subr.mxu0 %v14266_v62  ;;  %5009 = vmatprep.subr.mxu1 %v14272_v6 }
0x12b9   :  { %v4652_v24 = vpop.f32.mrf.mxu0  ;;  %v4723_v21 = vpop.f32.mrf.mxu1 }
0x12ba   :  { %v4728_v40 = vadd.f32 %v4652_v24, %v17899_v19  ;;  %v4730_v18 = vadd.f32 %v4723_v21, %v17902_v44  ;;  %v17908_v44 = vld [vmem:[#allocation53_spill] sm:$0xff]  ;;  %v17910_v21 = vld [vmem:[#allocation23_spill] sm:$0xff] }
0x12bb   :  { %v4654_v46 = vpop.f32.mrf.mxu0  ;;  %v4725_v55 = vpop.f32.mrf.mxu1 }
0x12bc   :  { %v9157_v29 = vmul.f32 -1.442695, %v4728_v40  ;;  %v4729_v38 = vadd.f32 %v4654_v46, %v17900_v54  ;;  %v4731_v37 = vadd.f32 %v4725_v55, %v17901_v17  ;;  %v17909_v55 = vld [vmem:[#allocation25_spill] sm:$0xff] }
0x12be   :  { %9761 = vpow2.f32 %v9157_v29  ;;  %v9158_v35 = vmul.f32 -1.442695, %v4729_v38  ;;  %v9159_v26 = vmul.f32 -1.442695, %v4731_v37 }
0x12c0   :  { %9763 = vpow2.f32 %v9158_v35 }
0x12c1   :  { %9765 = vtanh.f32 %v4730_v18 }
0x12c2   :  { %9767 = vpow2.f32 %v9159_v26  ;;  %v17907_v26 = vld [vmem:[#allocation17_spill] sm:$0xff] }
0x12cb   :  { %v9762_v62 = vpop.eup %9761 }
0x12cc   :  { %v4735_v10 = vadd.f32 1.0, %v9762_v62 }
0x12cd   :  { %v9764_v6 = vpop.eup %9763 }
0x12ce   :  { %9769 = vrcp.f32 %v4735_v10  ;;  %v4741_v24 = vadd.f32 1.0, %v9764_v6  ;;  %v9766_v40 = vpop.eup %9765  ;;  %v17904_v6 = vld [vmem:[#allocation50_spill] sm:$0xff]  ;;  %v17906_v10 = vld [vmem:[#allocation16_spill] sm:$0xff] }
0x12cf   :  { %v9768_v54 = vpop.eup %9767 }
0x12d0   :  { %9771 = vrcp.f32 %v4741_v24  ;;  %v4748_v35 = vadd.f32 1.0, %v9768_v54  ;;  %v17911_v24 = vld [vmem:[#allocation18_spill] sm:$0xff]  ;;  %v17913_v54 = vld [vmem:[#allocation19_spill] sm:$0xff] }
0x12d2   :  { %9773 = vrcp.f32 %v4748_v35  ;;  %v17917_v35 = vld [vmem:[#allocation51_spill] sm:$0xff] }
0x12db   :  { %v9770_v46 = vpop.eup %9769 }
0x12dc   :  { %v4752_v29 = vmul.f32 %v9770_v46, %v9766_v40  ;;  %v17912_v40 = vld [vmem:[#allocation21_spill] sm:$0xff]  ;;  %v17914_v46 = vld [vmem:[#allocation20_spill] sm:$0xff] }
0x12dd   :  { %v9772_v38 = vpop.eup %9771 }
0x12de   :  { %v4751_v19 = vmul.f32 %v9772_v38, %v14280_v0  ;;  %v17905_v0 = vld [vmem:[#allocation6_spill] sm:$0xff] }
0x12df   :  { %v9774_v62 = vpop.eup %9773  ;;  %v17916_v38 = vld [vmem:[#allocation58_spill] sm:$0xff] }
0x12e0   :  { %v14658_v17 = vadd.f32 %v4752_v29, %v4751_v19  ;;  %v17915_v29 = vld [vmem:[#allocation61_spill] sm:$0xff] }
0x12e1   :  { %v17918_v19 = vld [vmem:[#allocation41_spill] sm:$0xff] }
0x12e2   :  { %9775 = vtanh.f32 %v14658_v17 }
0x12ef   :  { %v9776_v18 = vpop.eup %9775 }
0x12f0   :  { %v14661_v37 = vmul.f32 %v9776_v18, %v9774_v62  ;;  %v17919_v62 = vld [vmem:[#allocation39_spill] sm:$0xff]  ;;  %v17920_v18 = vmov 0.0  }
0x12f2   :  { %17903 = vst [vmem:[#allocation44_spill] sm:$0xff] %v14661_v37  ;;  %4827 = vmatmul.mubr.f32.vlgmr.msra.gmra.mxu0 %v14661_v37  ;;  %4898 = vmatmul.mubr.f32.vlgmr.msra.gmra.mxu1 %v14661_v37  ;;  %v17921_v37 = vld [vmem:[#allocation30_spill] sm:$0xff] }
0x12f3   :  { %4939 = vmatpush1.msra.mxu0 %v14192_v14  ;;  %5010 = vmatpush1.msra.mxu1 %v14198_v7 }
0x12f4   :  { %4940 = vmatprep.subr.mxu0 %v14292_v43  ;;  %5011 = vmatprep.subr.mxu1 %v14298_v11 }
0x12f5   :  { %4941 = vmatpush1.msra.mxu0 %v14304_v59  ;;  %5012 = vmatpush1.msra.mxu1 %v14310_v41 }
0x12f6   :  { %4942 = vmatprep.subr.mxu0 %v14316_v34  ;;  %5013 = vmatprep.subr.mxu1 %v14322_v63 }
0x12f7   :  { %4943 = vmatpush1.msra.mxu0 %v14328_v33  ;;  %5014 = vmatpush1.msra.mxu1 %v14334_v56 }
0x12f8   :  { %4944 = vmatprep.subr.mxu0 %v14340_v58  ;;  %5015 = vmatprep.subr.mxu1 %v14346_v23 }
0x12f9   :  { %4945 = vmatpush1.msra.mxu0 %v14352_v45  ;;  %5016 = vmatpush1.msra.mxu1 %v14358_v42 }
0x12fa   :  { %4946 = vmatprep.subr.mxu0 %v14364_v51  ;;  %5017 = vmatprep.subr.mxu1 %v14370_v20 }
0x12fb   :  { %4947 = vmatpush1.msra.mxu0 %v14376_v61  ;;  %5018 = vmatpush1.msra.mxu1 %v14382_v15 }
0x12fc   :  { %4948 = vmatprep.subr.mxu0 %v14388_v25  ;;  %5019 = vmatprep.subr.mxu1 %v14394_v52 }
0x12fd   :  { %4949 = vmatpush1.msra.mxu0 %v14400_v53  ;;  %5020 = vmatpush1.msra.mxu1 %v14406_v12 }
0x12fe   :  { %4950 = vmatprep.subr.mxu0 %v14412_v22  ;;  %5021 = vmatprep.subr.mxu1 %v14418_v57 }
0x12ff   :  { %4951 = vmatpush1.msra.mxu0 %v14424_v8  ;;  %5022 = vmatpush1.msra.mxu1 %v14430_v1 }
0x1300   :  { %4952 = vmatprep.subr.mxu0 %v14436_v36  ;;  %5023 = vmatprep.subr.mxu1 %v14442_v2 }
0x1301   :  { %4953 = vmatpush1.msra.mxu0 %v14448_v3  ;;  %5024 = vmatpush1.msra.mxu1 %v14454_v9 }
0x1302   :  { %4954 = vmatprep.subr.mxu0 %v14460_v4  ;;  %5025 = vmatprep.subr.mxu1 %v14466_v27 }
0x1303   :  { %4955 = vmatpush1.msra.mxu0 %v14472_v16  ;;  %5026 = vmatpush1.msra.mxu1 %v14478_v13 }
0x1304   :  { %4956 = vmatprep.subr.mxu0 %v14484_v60  ;;  %5027 = vmatprep.subr.mxu1 %v14490_v5 }
0x1305   :  { %4957 = vmatpush1.msra.mxu0 %v14496_v30  ;;  %5028 = vmatpush1.msra.mxu1 %v14502_v31 }
0x1306   :  { %4958 = vmatprep.subr.mxu0 %v14508_v50  ;;  %5029 = vmatprep.subr.mxu1 %v14514_v28 }
0x1307   :  { %4959 = vmatpush1.msra.mxu0 %v14520_v48  ;;  %5030 = vmatpush1.msra.mxu1 %v14526_v49 }
0x1308   :  { %4960 = vmatprep.subr.mxu0 %v14532_v32  ;;  %5031 = vmatprep.subr.mxu1 %v14538_v39 }
0x1309   :  { %4961 = vmatpush1.msra.mxu0 %v14544_v47  ;;  %5032 = vmatpush1.msra.mxu1 %v17904_v6 }
0x130a   :  { %4962 = vmatprep.subr.mxu0 %v17905_v0  ;;  %5033 = vmatprep.subr.mxu1 %v17906_v10  ;;  %v17927_v10 = vld [vmem:[#allocation13_spill] sm:$0xff] }
0x130b   :  { %4963 = vmatpush1.msra.mxu0 %v17907_v26  ;;  %5034 = vmatpush1.msra.mxu1 %v17908_v44  ;;  %v17926_v26 = vld [vmem:[#allocation59_spill] sm:$0xff] }
0x130c   :  { %4964 = vmatprep.subr.mxu0 %v17909_v55  ;;  %5035 = vmatprep.subr.mxu1 %v17910_v21 }
0x130d   :  { %4965 = vmatpush1.msra.mxu0 %v17911_v24  ;;  %5036 = vmatpush1.msra.mxu1 %v17912_v40  ;;  %v17922_v40 = vld [vmem:[#allocation14_spill] sm:$0xff] }
0x130e   :  { %4966 = vmatprep.subr.mxu0 %v17913_v54  ;;  %5037 = vmatprep.subr.mxu1 %v17914_v46  ;;  %v17923_v54 = vld [vmem:[#allocation5_spill] sm:$0xff] }
0x130f   :  { %4967 = vmatpush1.msra.mxu0 %v17915_v29  ;;  %5038 = vmatpush1.msra.mxu1 %v17916_v38  ;;  %v17924_v29 = vld [vmem:[#allocation7_spill] sm:$0xff] }
0x1310   :  { %4968 = vmatprep.subr.mxu0 %v17917_v35  ;;  %5039 = vmatprep.subr.mxu1 %v17918_v19  ;;  %v17925_v35 = vld [vmem:[#allocation57_spill] sm:$0xff] }
0x1311   :  { %4969 = vmatpush1.msra.mxu0 %v17919_v62  ;;  %5002 = vmatprep.mubr.f32.mxu0 %v17920_v18 }
0x1312   :  { %5040 = vmatpush1.msra.mxu1 %v17921_v37  ;;  %5073 = vmatprep.mubr.f32.mxu1 %v17920_v18 }
0x1313   :  { %5114 = vmatprep.subr.mxu0 %v17922_v40  ;;  %5185 = vmatprep.subr.mxu1 %v17923_v54 }
0x13b2   :  { %v4828_v46 = vpop.f32.mrf.mxu0  ;;  %v4899_v19 = vpop.f32.mrf.mxu1 }
0x13b3   :  { %v4904_v24 = vadd.f32 %v4828_v46, %v17924_v29  ;;  %v4906_v18 = vadd.f32 %v4899_v19, %v17927_v10  ;;  %v17934_v19 = vld [vmem:[#allocation25_spill] sm:$0xff] }
0x13b4   :  { %v4830_v38 = vpop.f32.mrf.mxu0  ;;  %v4901_v44 = vpop.f32.mrf.mxu1 }
0x13b5   :  { %v9160_v21 = vmul.f32 -1.442695, %v4904_v24  ;;  %v4905_v55 = vadd.f32 %v4830_v38, %v17925_v35  ;;  %v4907_v37 = vadd.f32 %v4901_v44, %v17926_v26 }
0x13b7   :  { %9777 = vpow2.f32 %v9160_v21  ;;  %v9161_v62 = vmul.f32 -1.442695, %v4905_v55  ;;  %v9162_v0 = vmul.f32 -1.442695, %v4907_v37 }
0x13b9   :  { %9779 = vpow2.f32 %v9161_v62 }
0x13ba   :  { %9781 = vtanh.f32 %v4906_v18  ;;  %v17935_v18 = vld [vmem:[#allocation23_spill] sm:$0xff] }
0x13bb   :  { %9783 = vpow2.f32 %v9162_v0  ;;  %v17931_v0 = vld [vmem:[#allocation16_spill] sm:$0xff] }
0x13c4   :  { %v9778_v40 = vpop.eup %9777 }
0x13c5   :  { %v4911_v6 = vadd.f32 1.0, %v9778_v40  ;;  %v17932_v40 = vld [vmem:[#allocation17_spill] sm:$0xff] }
0x13c6   :  { %v9780_v54 = vpop.eup %9779 }
0x13c7   :  { %9785 = vrcp.f32 %v4911_v6  ;;  %v4917_v46 = vadd.f32 1.0, %v9780_v54  ;;  %v9782_v24 = vpop.eup %9781  ;;  %v17930_v6 = vld [vmem:[#allocation6_spill] sm:$0xff]  ;;  %v17933_v54 = vld [vmem:[#allocation53_spill] sm:$0xff] }
0x13c8   :  { %v9784_v29 = vpop.eup %9783 }
0x13c9   :  { %9787 = vrcp.f32 %v4917_v46  ;;  %v4924_v35 = vadd.f32 1.0, %v9784_v29  ;;  %v17936_v46 = vld [vmem:[#allocation18_spill] sm:$0xff]  ;;  %v17938_v29 = vld [vmem:[#allocation19_spill] sm:$0xff] }
0x13cb   :  { %9789 = vrcp.f32 %v4924_v35  ;;  %v17942_v35 = vld [vmem:[#allocation51_spill] sm:$0xff] }
0x13d4   :  { %v9786_v21 = vpop.eup %9785 }
0x13d5   :  { %v4928_v38 = vmul.f32 %v9786_v21, %v9782_v24  ;;  %v17937_v24 = vld [vmem:[#allocation21_spill] sm:$0xff]  ;;  %v17939_v21 = vld [vmem:[#allocation20_spill] sm:$0xff] }
0x13d6   :  { %v9788_v55 = vpop.eup %9787 }
0x13d7   :  { %v4927_v62 = vmul.f32 %v9788_v55, %v14658_v17  ;;  %v17929_v17 = vld [vmem:[#allocation50_spill] sm:$0xff] }
0x13d8   :  { %v9790_v37 = vpop.eup %9789  ;;  %v17941_v55 = vld [vmem:[#allocation58_spill] sm:$0xff] }
0x13d9   :  { %v14736_v26 = vadd.f32 %v4928_v38, %v4927_v62  ;;  %v17940_v38 = vld [vmem:[#allocation61_spill] sm:$0xff] }
0x13da   :  { %v17943_v62 = vld [vmem:[#allocation41_spill] sm:$0xff] }
0x13db   :  { %9791 = vtanh.f32 %v14736_v26 }
0x13e8   :  { %v9792_v10 = vpop.eup %9791 }
0x13e9   :  { %v14739_v44 = vmul.f32 %v9792_v10, %v9790_v37  ;;  %v17944_v37 = vld [vmem:[#allocation39_spill] sm:$0xff]  ;;  %v17945_v10 = vmov 0.0  }
0x13eb   :  { %17928 = vst [vmem:[#allocation42_spill] sm:$0xff] %v14739_v44  ;;  %5003 = vmatmul.mubr.f32.vlgmr.msra.gmra.mxu0 %v14739_v44  ;;  %5074 = vmatmul.mubr.f32.vlgmr.msra.gmra.mxu1 %v14739_v44  ;;  %v17946_v44 = vld [vmem:[#allocation30_spill] sm:$0xff] }
0x13ec   :  { %5115 = vmatpush1.msra.mxu0 %v14192_v14  ;;  %5186 = vmatpush1.msra.mxu1 %v14198_v7 }
0x13ed   :  { %5116 = vmatprep.subr.mxu0 %v14292_v43  ;;  %5187 = vmatprep.subr.mxu1 %v14298_v11 }
0x13ee   :  { %5117 = vmatpush1.msra.mxu0 %v14304_v59  ;;  %5188 = vmatpush1.msra.mxu1 %v14310_v41 }
0x13ef   :  { %5118 = vmatprep.subr.mxu0 %v14316_v34  ;;  %5189 = vmatprep.subr.mxu1 %v14322_v63 }
0x13f0   :  { %5119 = vmatpush1.msra.mxu0 %v14328_v33  ;;  %5190 = vmatpush1.msra.mxu1 %v14334_v56 }
0x13f1   :  { %5120 = vmatprep.subr.mxu0 %v14340_v58  ;;  %5191 = vmatprep.subr.mxu1 %v14346_v23 }
0x13f2   :  { %5121 = vmatpush1.msra.mxu0 %v14352_v45  ;;  %5192 = vmatpush1.msra.mxu1 %v14358_v42 }
0x13f3   :  { %5122 = vmatprep.subr.mxu0 %v14364_v51  ;;  %5193 = vmatprep.subr.mxu1 %v14370_v20 }
0x13f4   :  { %5123 = vmatpush1.msra.mxu0 %v14376_v61  ;;  %5194 = vmatpush1.msra.mxu1 %v14382_v15 }
0x13f5   :  { %5124 = vmatprep.subr.mxu0 %v14388_v25  ;;  %5195 = vmatprep.subr.mxu1 %v14394_v52 }
0x13f6   :  { %5125 = vmatpush1.msra.mxu0 %v14400_v53  ;;  %5196 = vmatpush1.msra.mxu1 %v14406_v12 }
0x13f7   :  { %5126 = vmatprep.subr.mxu0 %v14412_v22  ;;  %5197 = vmatprep.subr.mxu1 %v14418_v57 }
0x13f8   :  { %5127 = vmatpush1.msra.mxu0 %v14424_v8  ;;  %5198 = vmatpush1.msra.mxu1 %v14430_v1 }
0x13f9   :  { %5128 = vmatprep.subr.mxu0 %v14436_v36  ;;  %5199 = vmatprep.subr.mxu1 %v14442_v2 }
0x13fa   :  { %5129 = vmatpush1.msra.mxu0 %v14448_v3  ;;  %5200 = vmatpush1.msra.mxu1 %v14454_v9 }
0x13fb   :  { %5130 = vmatprep.subr.mxu0 %v14460_v4  ;;  %5201 = vmatprep.subr.mxu1 %v14466_v27 }
0x13fc   :  { %5131 = vmatpush1.msra.mxu0 %v14472_v16  ;;  %5202 = vmatpush1.msra.mxu1 %v14478_v13 }
0x13fd   :  { %5132 = vmatprep.subr.mxu0 %v14484_v60  ;;  %5203 = vmatprep.subr.mxu1 %v14490_v5 }
0x13fe   :  { %5133 = vmatpush1.msra.mxu0 %v14496_v30  ;;  %5204 = vmatpush1.msra.mxu1 %v14502_v31 }
0x13ff   :  { %5134 = vmatprep.subr.mxu0 %v14508_v50  ;;  %5205 = vmatprep.subr.mxu1 %v14514_v28 }
0x1400   :  { %5135 = vmatpush1.msra.mxu0 %v14520_v48  ;;  %5206 = vmatpush1.msra.mxu1 %v14526_v49 }
0x1401   :  { %5136 = vmatprep.subr.mxu0 %v14532_v32  ;;  %5207 = vmatprep.subr.mxu1 %v14538_v39 }
0x1402   :  { %5137 = vmatpush1.msra.mxu0 %v14544_v47  ;;  %5208 = vmatpush1.msra.mxu1 %v17929_v17 }
0x1403   :  { %5138 = vmatprep.subr.mxu0 %v17930_v6  ;;  %5209 = vmatprep.subr.mxu1 %v17931_v0  ;;  %v17952_v0 = vld [vmem:[#allocation62_spill] sm:$0xff] }
0x1404   :  { %5139 = vmatpush1.msra.mxu0 %v17932_v40  ;;  %5210 = vmatpush1.msra.mxu1 %v17933_v54  ;;  %v17951_v40 = vld [vmem:[#allocation63_spill] sm:$0xff] }
0x1405   :  { %5140 = vmatprep.subr.mxu0 %v17934_v19  ;;  %5211 = vmatprep.subr.mxu1 %v17935_v18 }
0x1406   :  { %5141 = vmatpush1.msra.mxu0 %v17936_v46  ;;  %5212 = vmatpush1.msra.mxu1 %v17937_v24  ;;  %v17947_v24 = vld [vmem:[#allocation14_spill] sm:$0xff] }
0x1407   :  { %5142 = vmatprep.subr.mxu0 %v17938_v29  ;;  %5213 = vmatprep.subr.mxu1 %v17939_v21  ;;  %v17948_v29 = vld [vmem:[#allocation5_spill] sm:$0xff] }
0x1408   :  { %5143 = vmatpush1.msra.mxu0 %v17940_v38  ;;  %5214 = vmatpush1.msra.mxu1 %v17941_v55  ;;  %v17949_v38 = vld [vmem:[#allocation66_spill] sm:$0xff] }
0x1409   :  { %5144 = vmatprep.subr.mxu0 %v17942_v35  ;;  %5215 = vmatprep.subr.mxu1 %v17943_v62  ;;  %v17950_v35 = vld [vmem:[#allocation56_spill] sm:$0xff] }
0x140a   :  { %5145 = vmatpush1.msra.mxu0 %v17944_v37  ;;  %5178 = vmatprep.mubr.f32.mxu0 %v17945_v10 }
0x140b   :  { %5216 = vmatpush1.msra.mxu1 %v17946_v44  ;;  %5249 = vmatprep.mubr.f32.mxu1 %v17945_v10 }
0x140c   :  { %5290 = vmatprep.subr.mxu0 %v17947_v24  ;;  %5361 = vmatprep.subr.mxu1 %v17948_v29 }
0x14ab   :  { %v5004_v21 = vpop.f32.mrf.mxu0  ;;  %v5075_v62 = vpop.f32.mrf.mxu1 }
0x14ac   :  { %v5080_v46 = vadd.f32 %v5004_v21, %v17949_v38  ;;  %v5082_v10 = vadd.f32 %v5075_v62, %v17952_v0 }
0x14ad   :  { %v5006_v55 = vpop.f32.mrf.mxu0  ;;  %v5077_v54 = vpop.f32.mrf.mxu1 }
0x14ae   :  { %v9163_v18 = vmul.f32 -1.442695, %v5080_v46  ;;  %v5081_v19 = vadd.f32 %v5006_v55, %v17950_v35  ;;  %v5083_v44 = vadd.f32 %v5077_v54, %v17951_v40 }
0x14b0   :  { %9793 = vpow2.f32 %v9163_v18  ;;  %v9164_v37 = vmul.f32 -1.442695, %v5081_v19  ;;  %v9165_v6 = vmul.f32 -1.442695, %v5083_v44 }
0x14b2   :  { %9795 = vpow2.f32 %v9164_v37 }
0x14b3   :  { %9797 = vtanh.f32 %v5082_v10 }
0x14b4   :  { %9799 = vpow2.f32 %v9165_v6 }
0x14bd   :  { %v9794_v24 = vpop.eup %9793 }
0x14be   :  { %v5087_v17 = vadd.f32 1.0, %v9794_v24  ;;  %v5530_v24 = vld [vmem:[%s16778_s11 + $0x1e0] sm:$0xff] }
0x14bf   :  { %v9796_v29 = vpop.eup %9795 }
0x14c0   :  { %9801 = vrcp.f32 %v5087_v17  ;;  %v5093_v21 = vadd.f32 1.0, %v9796_v29  ;;  %v9798_v46 = vpop.eup %9797  ;;  %v5532_v29 = vld [vmem:[%s16778_s11 + $0x1f0] sm:$0xff] }
0x14c1   :  { %v9800_v38 = vpop.eup %9799 }
0x14c2   :  { %9803 = vrcp.f32 %v5093_v21  ;;  %v5100_v35 = vadd.f32 1.0, %v9800_v38  ;;  %v5527_v21 = vld [vmem:[%s16778_s11 + $0x1c8] sm:$0xff]  ;;  %v5526_v38 = vld [vmem:[%s16778_s11 + $0x1c0] sm:$0xff] }
0x14c4   :  { %9805 = vrcp.f32 %v5100_v35  ;;  %v5522_v35 = vld [vmem:[%s16778_s11 + $0x1a0] sm:$0xff] }
0x14cd   :  { %v9802_v18 = vpop.eup %9801 }
0x14ce   :  { %v5104_v55 = vmul.f32 %v9802_v18, %v9798_v46  ;;  %v5529_v46 = vld [vmem:[%s16778_s11 + $0x1d8] sm:$0xff]  ;;  %v5528_v18 = vld [vmem:[%s16778_s11 + $0x1d0] sm:$0xff] }
0x14cf   :  { %v9804_v19 = vpop.eup %9803 }
0x14d0   :  { %v5103_v37 = vmul.f32 %v9804_v19, %v14736_v26  ;;  %v5525_v19 = vld [vmem:[%s16778_s11 + $0x1b8] sm:$0xff] }
0x14d1   :  { %v9806_v44 = vpop.eup %9805 }
0x14d2   :  { %v14814_v40 = vadd.f32 %v5104_v55, %v5103_v37  ;;  %v5523_v55 = vld [vmem:[%s16778_s11 + $0x1a8] sm:$0xff]  ;;  %v5524_v37 = vld [vmem:[%s16778_s11 + $0x1b0] sm:$0xff] }
0x14d4   :  { %9807 = vtanh.f32 %v14814_v40 }
0x14e1   :  { %v9808_v0 = vpop.eup %9807 }
0x14e2   :  { %v14817_v54 = vmul.f32 %v9808_v0, %v9806_v44  ;;  %v5521_v44 = vld [vmem:[%s16778_s11 + $0x198] sm:$0xff]  ;;  %v5518_v0 = vld [vmem:[%s16778_s11 + $0x180] sm:$0xff] }
0x14e4   :  { %5179 = vmatmul.mubr.f32.vlgmr.msra.gmra.mxu0 %v14817_v54  ;;  %5250 = vmatmul.mubr.f32.vlgmr.msra.gmra.mxu1 %v14817_v54 }
0x14e5   :  { %5291 = vmatpush1.msra.mxu0 %v14192_v14  ;;  %5362 = vmatpush1.msra.mxu1 %v14198_v7  ;;  %v17953_v14 = vld [vmem:[#allocation50_spill] sm:$0xff] }
0x14e6   :  { %5292 = vmatprep.subr.mxu0 %v14292_v43  ;;  %5363 = vmatprep.subr.mxu1 %v14298_v11  ;;  %v17954_v7 = vld [vmem:[#allocation6_spill] sm:$0xff]  ;;  %v17955_v43 = vld [vmem:[#allocation16_spill] sm:$0xff]  ;;  %v17956_v11 = vld [vmem:[#allocation17_spill] sm:$0xff] }
0x14e7   :  { %5293 = vmatpush1.msra.mxu0 %v14304_v59  ;;  %5364 = vmatpush1.msra.mxu1 %v14310_v41  ;;  %v17957_v59 = vld [vmem:[#allocation53_spill] sm:$0xff] }
0x14e8   :  { %5294 = vmatprep.subr.mxu0 %v14316_v34  ;;  %5365 = vmatprep.subr.mxu1 %v14322_v63  ;;  %v17958_v41 = vld [vmem:[#allocation25_spill] sm:$0xff]  ;;  %v17959_v34 = vld [vmem:[#allocation23_spill] sm:$0xff]  ;;  %v17960_v63 = vld [vmem:[#allocation18_spill] sm:$0xff] }
0x14e9   :  { %5295 = vmatpush1.msra.mxu0 %v14328_v33  ;;  %5366 = vmatpush1.msra.mxu1 %v14334_v56  ;;  %v17961_v33 = vld [vmem:[#allocation21_spill] sm:$0xff]  ;;  %v17962_v56 = vld [vmem:[#allocation19_spill] sm:$0xff] }
0x14ea   :  { %5296 = vmatprep.subr.mxu0 %v14340_v58  ;;  %5367 = vmatprep.subr.mxu1 %v14346_v23  ;;  %v17963_v58 = vld [vmem:[#allocation20_spill] sm:$0xff]  ;;  %v17964_v23 = vld [vmem:[#allocation61_spill] sm:$0xff] }
0x14eb   :  { %5297 = vmatpush1.msra.mxu0 %v14352_v45  ;;  %5368 = vmatpush1.msra.mxu1 %v14358_v42  ;;  %v17965_v45 = vld [vmem:[#allocation58_spill] sm:$0xff]  ;;  %v17966_v42 = vld [vmem:[#allocation51_spill] sm:$0xff] }
0x14ec   :  { %5298 = vmatprep.subr.mxu0 %v14364_v51  ;;  %5369 = vmatprep.subr.mxu1 %v14370_v20  ;;  %v17967_v51 = vld [vmem:[#allocation41_spill] sm:$0xff]  ;;  %v17968_v20 = vld [vmem:[#allocation39_spill] sm:$0xff] }
0x14ed   :  { %5299 = vmatpush1.msra.mxu0 %v14376_v61  ;;  %5370 = vmatpush1.msra.mxu1 %v14382_v15  ;;  %v17969_v61 = vld [vmem:[#allocation30_spill] sm:$0xff]  ;;  %v17970_v15 = vmov 0.0  }
0x14ee   :  { %5300 = vmatprep.subr.mxu0 %v14388_v25  ;;  %5371 = vmatprep.subr.mxu1 %v14394_v52  ;;  %v5531_v25 = vld [vmem:[%s16778_s11 + $0x1e8] sm:$0xff]  ;;  %v5533_v52 = vld [vmem:[%s16778_s11 + $0x1f8] sm:$0xff] }
0x14ef   :  { %5301 = vmatpush1.msra.mxu0 %v14400_v53  ;;  %5372 = vmatpush1.msra.mxu1 %v14406_v12  ;;  %v17971_v12 = vld [vmem:[#allocation64_spill] sm:$0xff] }
0x14f0   :  { %5302 = vmatprep.subr.mxu0 %v14412_v22  ;;  %5373 = vmatprep.subr.mxu1 %v14418_v57 }
0x14f1   :  { %5303 = vmatpush1.msra.mxu0 %v14424_v8  ;;  %5374 = vmatpush1.msra.mxu1 %v14430_v1  ;;  %v17972_v1 = vld [vmem:[#allocation68_spill] sm:$0xff] }
0x14f2   :  { %5304 = vmatprep.subr.mxu0 %v14436_v36  ;;  %5375 = vmatprep.subr.mxu1 %v14442_v2 }
0x14f3   :  { %5305 = vmatpush1.msra.mxu0 %v14448_v3  ;;  %5376 = vmatpush1.msra.mxu1 %v14454_v9 }
0x14f4   :  { %5306 = vmatprep.subr.mxu0 %v14460_v4  ;;  %5377 = vmatprep.subr.mxu1 %v14466_v27  ;;  %v17973_v4 = vld [vmem:[#allocation69_spill] sm:$0xff] }
0x14f5   :  { %5307 = vmatpush1.msra.mxu0 %v14472_v16  ;;  %5378 = vmatpush1.msra.mxu1 %v14478_v13  ;;  %v17974_v16 = vld [vmem:[#allocation22_spill] sm:$0xff] }
0x14f6   :  { %5308 = vmatprep.subr.mxu0 %v14484_v60  ;;  %5379 = vmatprep.subr.mxu1 %v14490_v5 }
0x14f7   :  { %5309 = vmatpush1.msra.mxu0 %v14496_v30  ;;  %5380 = vmatpush1.msra.mxu1 %v14502_v31 }
0x14f8   :  { %5310 = vmatprep.subr.mxu0 %v14508_v50  ;;  %5381 = vmatprep.subr.mxu1 %v14514_v28 }
0x14f9   :  { %5311 = vmatpush1.msra.mxu0 %v14520_v48  ;;  %5382 = vmatpush1.msra.mxu1 %v14526_v49 }
0x14fa   :  { %5312 = vmatprep.subr.mxu0 %v14532_v32  ;;  %5383 = vmatprep.subr.mxu1 %v14538_v39 }
0x14fb   :  { %5313 = vmatpush1.msra.mxu0 %v14544_v47  ;;  %5384 = vmatpush1.msra.mxu1 %v17953_v14  ;;  %v5520_v14 = vld [vmem:[%s16778_s11 + $0x190] sm:$0xff] }
0x14fc   :  { %5314 = vmatprep.subr.mxu0 %v17954_v7  ;;  %5385 = vmatprep.subr.mxu1 %v17955_v43  ;;  %v5515_v7 = vld [vmem:[%s16778_s11 + $0x168] sm:$0xff]  ;;  %v5517_v43 = vld [vmem:[%s16778_s11 + $0x178] sm:$0xff] }
0x14fd   :  { %5315 = vmatpush1.msra.mxu0 %v17956_v11  ;;  %5386 = vmatpush1.msra.mxu1 %v17957_v59  ;;  %v5514_v11 = vld [vmem:[%s16778_s11 + $0x160] sm:$0xff]  ;;  %v5516_v59 = vld [vmem:[%s16778_s11 + $0x170] sm:$0xff] }
0x14fe   :  { %5316 = vmatprep.subr.mxu0 %v17958_v41  ;;  %5387 = vmatprep.subr.mxu1 %v17959_v34  ;;  %v5511_v41 = vld [vmem:[%s16778_s11 + $0x148] sm:$0xff]  ;;  %v5513_v34 = vld [vmem:[%s16778_s11 + $0x158] sm:$0xff] }
0x14ff   :  { %5317 = vmatpush1.msra.mxu0 %v17960_v63  ;;  %5388 = vmatpush1.msra.mxu1 %v17961_v33  ;;  %v5510_v63 = vld [vmem:[%s16778_s11 + $0x140] sm:$0xff]  ;;  %v5512_v33 = vld [vmem:[%s16778_s11 + $0x150] sm:$0xff] }
0x1500   :  { %5318 = vmatprep.subr.mxu0 %v17962_v56  ;;  %5389 = vmatprep.subr.mxu1 %v17963_v58  ;;  %v5507_v56 = vld [vmem:[%s16778_s11 + $0x128] sm:$0xff]  ;;  %v5509_v58 = vld [vmem:[%s16778_s11 + $0x138] sm:$0xff] }
0x1501   :  { %5319 = vmatpush1.msra.mxu0 %v17964_v23  ;;  %5390 = vmatpush1.msra.mxu1 %v17965_v45  ;;  %v5506_v23 = vld [vmem:[%s16778_s11 + $0x120] sm:$0xff]  ;;  %v5508_v45 = vld [vmem:[%s16778_s11 + $0x130] sm:$0xff] }
0x1502   :  { %5320 = vmatprep.subr.mxu0 %v17966_v42  ;;  %5391 = vmatprep.subr.mxu1 %v17967_v51  ;;  %v5503_v42 = vld [vmem:[%s16778_s11 + $0x108] sm:$0xff]  ;;  %v5505_v51 = vld [vmem:[%s16778_s11 + $0x118] sm:$0xff] }
0x1503   :  { %5321 = vmatpush1.msra.mxu0 %v17968_v20  ;;  %5392 = vmatpush1.msra.mxu1 %v17969_v61  ;;  %v5502_v20 = vld [vmem:[%s16778_s11 + $0x100] sm:$0xff]  ;;  %v5504_v61 = vld [vmem:[%s16778_s11 + $0x110] sm:$0xff] }
0x1504   :  { %5354 = vmatprep.mubr.f32.mxu0 %v17970_v15  ;;  %5425 = vmatprep.mubr.f32.mxu1 %v17970_v15 }
0x1505   :  { %5556 = vmatprep.subr.mxu0 %v5531_v25  ;;  %5669 = vmatprep.subr.mxu1 %v5533_v52  ;;  %v5499_v25 = vld [vmem:[%s16778_s11 + $0xe8] sm:$0xff]  ;;  %v5501_v52 = vld [vmem:[%s16778_s11 + $0xf8] sm:$0xff] }
0x15a4   :  { %v5180_v53 = vpop.f32.mrf.mxu0  ;;  %v5251_v2 = vpop.f32.mrf.mxu1 }
0x15a5   :  { %v5256_v22 = vadd.f32 %v5180_v53, %v17971_v12  ;;  %v5258_v13 = vadd.f32 %v5251_v2, %v17974_v16  ;;  %v5498_v53 = vld [vmem:[%s16778_s11 + $0xe0] sm:$0xff]  ;;  %v5500_v12 = vld [vmem:[%s16778_s11 + $0xf0] sm:$0xff]  ;;  %v5493_v2 = vld [vmem:[%s16778_s11 + $0xb8] sm:$0xff] }
0x15a6   :  { %v5182_v57 = vpop.f32.mrf.mxu0  ;;  %v5253_v9 = vpop.f32.mrf.mxu1  ;;  %v5486_v16 = vld [vmem:[%s16778_s11 + $0x80] sm:$0xff] }
0x15a7   :  { %v9166_v8 = vmul.f32 -1.442695, %v5256_v22  ;;  %v5257_v36 = vadd.f32 %v5182_v57, %v17972_v1  ;;  %v5259_v27 = vadd.f32 %v5253_v9, %v17973_v4  ;;  %v5495_v22 = vld [vmem:[%s16778_s11 + $0xc8] sm:$0xff]  ;;  %v5497_v57 = vld [vmem:[%s16778_s11 + $0xd8] sm:$0xff]  ;;  %v5496_v1 = vld [vmem:[%s16778_s11 + $0xd0] sm:$0xff] }
0x15a8   :  { %v5492_v9 = vld [vmem:[%s16778_s11 + $0xb0] sm:$0xff]  ;;  %v5487_v4 = vld [vmem:[%s16778_s11 + $0x88] sm:$0xff] }
0x15a9   :  { %9809 = vpow2.f32 %v9166_v8  ;;  %v9167_v3 = vmul.f32 -1.442695, %v5257_v36  ;;  %v9168_v60 = vmul.f32 -1.442695, %v5259_v27  ;;  %v5494_v8 = vld [vmem:[%s16778_s11 + $0xc0] sm:$0xff]  ;;  %v5491_v36 = vld [vmem:[%s16778_s11 + $0xa8] sm:$0xff] }
0x15aa   :  { %v5489_v27 = vld [vmem:[%s16778_s11 + $0x98] sm:$0xff] }
0x15ab   :  { %9811 = vpow2.f32 %v9167_v3  ;;  %v5490_v3 = vld [vmem:[%s16778_s11 + $0xa0] sm:$0xff] }
0x15ac   :  { %9813 = vtanh.f32 %v5258_v13  ;;  %v5488_v13 = vld [vmem:[%s16778_s11 + $0x90] sm:$0xff] }
0x15ad   :  { %9815 = vpow2.f32 %v9168_v60  ;;  %v5483_v60 = vld [vmem:[%s16778_s11 + $0x68] sm:$0xff] }
0x15b6   :  { %v9810_v5 = vpop.eup %9809 }
0x15b7   :  { %v5263_v30 = vadd.f32 1.0, %v9810_v5  ;;  %v5485_v5 = vld [vmem:[%s16778_s11 + $0x78] sm:$0xff] }
0x15b8   :  { %v9812_v31 = vpop.eup %9811 }
0x15b9   :  { %9817 = vrcp.f32 %v5263_v30  ;;  %v5269_v50 = vadd.f32 1.0, %v9812_v31  ;;  %v9814_v28 = vpop.eup %9813  ;;  %v5482_v30 = vld [vmem:[%s16778_s11 + $0x60] sm:$0xff]  ;;  %v5484_v31 = vld [vmem:[%s16778_s11 + $0x70] sm:$0xff] }
0x15ba   :  { %v9816_v48 = vpop.eup %9815 }
0x15bb   :  { %9819 = vrcp.f32 %v5269_v50  ;;  %v5276_v47 = vadd.f32 1.0, %v9816_v48  ;;  %v5479_v50 = vld [vmem:[%s16778_s11 + $0x48] sm:$0xff]  ;;  %v5478_v48 = vld [vmem:[%s16778_s11 + $0x40] sm:$0xff] }
0x15bd   :  { %9821 = vrcp.f32 %v5276_v47  ;;  %v5474_v47 = vld [vmem:[%s16778_s11 + $0x20] sm:$0xff] }
0x15c6   :  { %v9818_v49 = vpop.eup %9817 }
0x15c7   :  { %v5280_v32 = vmul.f32 %v9818_v49, %v9814_v28  ;;  %v5481_v28 = vld [vmem:[%s16778_s11 + $0x58] sm:$0xff]  ;;  %v5480_v49 = vld [vmem:[%s16778_s11 + $0x50] sm:$0xff] }
0x15c8   :  { %v9820_v39 = vpop.eup %9819 }
0x15c9   :  { %v5279_v26 = vmul.f32 %v9820_v39, %v14814_v40  ;;  %v5519_v40 = vld [vmem:[%s16778_s11 + $0x188] sm:$0xff]  ;;  %v5477_v39 = vld [vmem:[%s16778_s11 + $0x38] sm:$0xff] }
0x15ca   :  { %v9822_v6 = vpop.eup %9821 }
0x15cb   :  { %v14896_v17 = vadd.f32 %v5280_v32, %v5279_v26  ;;  %v5475_v32 = vld [vmem:[%s16778_s11 + $0x28] sm:$0xff]  ;;  %v5476_v26 = vld [vmem:[%s16778_s11 + $0x30] sm:$0xff] }
0x15cd   :  { %9823 = vtanh.f32 %v14896_v17 }
0x15da   :  { %v9824_v62 = vpop.eup %9823 }
0x15db   :  { %v14899_v10 = vmul.f32 %v9824_v62, %v9822_v6  ;;  %v5471_v6 = vld [vmem:[%s16778_s11 + $0x8] sm:$0xff]  ;;  %v5473_v62 = vld [vmem:[%s16778_s11 + $0x18] sm:$0xff] }
0x15dd   :  { %5355 = vmatmul.mubr.f32.vlgmr.msra.gmra.mxu0 %v14899_v10  ;;  %5426 = vmatmul.mubr.f32.vlgmr.msra.gmra.mxu1 %v14899_v10 }
0x15de   :  { %5557 = vmatpush1.msra.mxu0 %v5530_v24  ;;  %5670 = vmatpush1.msra.mxu1 %v5532_v29  ;;  %v5470_v24 = vld [vmem:[%s16778_s11] sm:$0xff]  ;;  %v5472_v29 = vld [vmem:[%s16778_s11 + $0x10] sm:$0xff] }
0x15df   :  { %5558 = vmatprep.subr.mxu0 %v5527_v21  ;;  %5671 = vmatprep.subr.mxu1 %v5529_v46  ;;  %v17975_v21 = vld [vmem:[#allocation12_spill] sm:$0xff]  ;;  %v17976_v46 = vld [vmem:[#allocation67_spill] sm:$0xff] }
0x15e0   :  { %5559 = vmatpush1.msra.mxu0 %v5526_v38  ;;  %5672 = vmatpush1.msra.mxu1 %v5528_v18  ;;  %v17977_v38 = vld [vmem:[#allocation52_spill] sm:$0xff] }
0x15e1   :  { %5560 = vmatprep.subr.mxu0 %v5523_v55  ;;  %5673 = vmatprep.subr.mxu1 %v5525_v19  ;;  %v17978_v18 = vld [vmem:[#allocation44_spill] sm:$0xff]  ;;  %v17979_v55 = vld [vmem:[#allocation42_spill] sm:$0xff] }
0x15e2   :  { %5561 = vmatpush1.msra.mxu0 %v5522_v35  ;;  %5674 = vmatpush1.msra.mxu1 %v5524_v37  ;;  %v15122_v19 = vld [vmem:[%s16779_s12 + $0x1e8] sm:$0xff]  ;;  %v15139_v35 = vld [vmem:[%s16779_s12 + $0x1f0] sm:$0xff] }
0x15e3   :  { %5562 = vmatprep.subr.mxu0 %v5519_v40  ;;  %5675 = vmatprep.subr.mxu1 %v5521_v44  ;;  %17980 = vst [vmem:[#allocation45_spill] sm:$0xff] %v15122_v19  ;;  %v15146_v37 = vld [vmem:[%s16779_s12 + $0x1c8] sm:$0xff]  ;;  %v15151_v40 = vld [vmem:[%s16779_s12 + $0x1d8] sm:$0xff]  ;;  %v15158_v44 = vld [vmem:[%s16779_s12 + $0x1c0] sm:$0xff] }
0x15e4   :  { %5563 = vmatpush1.msra.mxu0 %v5518_v0  ;;  %5676 = vmatpush1.msra.mxu1 %v5520_v14  ;;  %v15163_v0 = vld [vmem:[%s16779_s12 + $0x1d0] sm:$0xff]  ;;  %v15170_v14 = vld [vmem:[%s16779_s12 + $0x1a8] sm:$0xff] }
0x15e5   :  { %5564 = vmatprep.subr.mxu0 %v5515_v7  ;;  %5677 = vmatprep.subr.mxu1 %v5517_v43  ;;  %v15175_v7 = vld [vmem:[%s16779_s12 + $0x1b8] sm:$0xff]  ;;  %v15182_v43 = vld [vmem:[%s16779_s12 + $0x1a0] sm:$0xff] }
0x15e6   :  { %5565 = vmatpush1.msra.mxu0 %v5514_v11  ;;  %5678 = vmatpush1.msra.mxu1 %v5516_v59  ;;  %v15187_v11 = vld [vmem:[%s16779_s12 + $0x1b0] sm:$0xff]  ;;  %v15194_v59 = vld [vmem:[%s16779_s12 + $0x188] sm:$0xff] }
0x15e7   :  { %5566 = vmatprep.subr.mxu0 %v5511_v41  ;;  %5679 = vmatprep.subr.mxu1 %v5513_v34  ;;  %v15199_v41 = vld [vmem:[%s16779_s12 + $0x198] sm:$0xff]  ;;  %v15206_v34 = vld [vmem:[%s16779_s12 + $0x180] sm:$0xff] }
0x15e8   :  { %5567 = vmatpush1.msra.mxu0 %v5510_v63  ;;  %5680 = vmatpush1.msra.mxu1 %v5512_v33  ;;  %v15211_v63 = vld [vmem:[%s16779_s12 + $0x190] sm:$0xff]  ;;  %v15218_v33 = vld [vmem:[%s16779_s12 + $0x168] sm:$0xff] }
0x15e9   :  { %5568 = vmatprep.subr.mxu0 %v5507_v56  ;;  %5681 = vmatprep.subr.mxu1 %v5509_v58  ;;  %v15223_v56 = vld [vmem:[%s16779_s12 + $0x178] sm:$0xff]  ;;  %v15230_v58 = vld [vmem:[%s16779_s12 + $0x160] sm:$0xff] }
0x15ea   :  { %5569 = vmatpush1.msra.mxu0 %v5506_v23  ;;  %5682 = vmatpush1.msra.mxu1 %v5508_v45  ;;  %v15235_v23 = vld [vmem:[%s16779_s12 + $0x170] sm:$0xff]  ;;  %v15242_v45 = vld [vmem:[%s16779_s12 + $0x148] sm:$0xff] }
0x15eb   :  { %5570 = vmatprep.subr.mxu0 %v5503_v42  ;;  %5683 = vmatprep.subr.mxu1 %v5505_v51  ;;  %v15247_v42 = vld [vmem:[%s16779_s12 + $0x158] sm:$0xff]  ;;  %v15254_v51 = vld [vmem:[%s16779_s12 + $0x140] sm:$0xff] }
0x15ec   :  { %5571 = vmatpush1.msra.mxu0 %v5502_v20  ;;  %5684 = vmatpush1.msra.mxu1 %v5504_v61  ;;  %v15259_v20 = vld [vmem:[%s16779_s12 + $0x150] sm:$0xff]  ;;  %v15266_v61 = vld [vmem:[%s16779_s12 + $0x128] sm:$0xff] }
0x15ed   :  { %5572 = vmatprep.subr.mxu0 %v5499_v25  ;;  %5685 = vmatprep.subr.mxu1 %v5501_v52  ;;  %v15271_v25 = vld [vmem:[%s16779_s12 + $0x138] sm:$0xff]  ;;  %v15278_v52 = vld [vmem:[%s16779_s12 + $0x120] sm:$0xff] }
0x15ee   :  { %5573 = vmatpush1.msra.mxu0 %v5498_v53  ;;  %5686 = vmatpush1.msra.mxu1 %v5500_v12  ;;  %v15283_v53 = vld [vmem:[%s16779_s12 + $0x130] sm:$0xff]  ;;  %v15290_v12 = vld [vmem:[%s16779_s12 + $0x108] sm:$0xff] }
0x15ef   :  { %5574 = vmatprep.subr.mxu0 %v5495_v22  ;;  %5687 = vmatprep.subr.mxu1 %v5497_v57  ;;  %v15295_v22 = vld [vmem:[%s16779_s12 + $0x118] sm:$0xff]  ;;  %v15302_v57 = vld [vmem:[%s16779_s12 + $0x100] sm:$0xff] }
0x15f0   :  { %5575 = vmatpush1.msra.mxu0 %v5494_v8  ;;  %5688 = vmatpush1.msra.mxu1 %v5496_v1  ;;  %v15307_v8 = vld [vmem:[%s16779_s12 + $0x110] sm:$0xff]  ;;  %v15314_v1 = vld [vmem:[%s16779_s12 + $0xe8] sm:$0xff] }
0x15f1   :  { %5576 = vmatprep.subr.mxu0 %v5491_v36  ;;  %5689 = vmatprep.subr.mxu1 %v5493_v2  ;;  %v15319_v36 = vld [vmem:[%s16779_s12 + $0xf8] sm:$0xff]  ;;  %v15326_v2 = vld [vmem:[%s16779_s12 + $0xe0] sm:$0xff] }
0x15f2   :  { %5577 = vmatpush1.msra.mxu0 %v5490_v3  ;;  %5690 = vmatpush1.msra.mxu1 %v5492_v9  ;;  %v15331_v3 = vld [vmem:[%s16779_s12 + $0xf0] sm:$0xff]  ;;  %v15338_v9 = vld [vmem:[%s16779_s12 + $0xc8] sm:$0xff] }
0x15f3   :  { %5578 = vmatprep.subr.mxu0 %v5487_v4  ;;  %5691 = vmatprep.subr.mxu1 %v5489_v27  ;;  %v15343_v4 = vld [vmem:[%s16779_s12 + $0xd8] sm:$0xff]  ;;  %v15350_v27 = vld [vmem:[%s16779_s12 + $0xc0] sm:$0xff] }
0x15f4   :  { %5579 = vmatpush1.msra.mxu0 %v5486_v16  ;;  %5692 = vmatpush1.msra.mxu1 %v5488_v13  ;;  %v15355_v16 = vld [vmem:[%s16779_s12 + $0xd0] sm:$0xff]  ;;  %v15362_v13 = vld [vmem:[%s16779_s12 + $0xa8] sm:$0xff] }
0x15f5   :  { %5580 = vmatprep.subr.mxu0 %v5483_v60  ;;  %5693 = vmatprep.subr.mxu1 %v5485_v5  ;;  %v15367_v60 = vld [vmem:[%s16779_s12 + $0xb8] sm:$0xff]  ;;  %v15374_v5 = vld [vmem:[%s16779_s12 + $0xa0] sm:$0xff] }
0x15f6   :  { %5581 = vmatpush1.msra.mxu0 %v5482_v30  ;;  %5694 = vmatpush1.msra.mxu1 %v5484_v31  ;;  %v15379_v30 = vld [vmem:[%s16779_s12 + $0xb0] sm:$0xff]  ;;  %v15386_v31 = vld [vmem:[%s16779_s12 + $0x88] sm:$0xff] }
0x15f7   :  { %5582 = vmatprep.subr.mxu0 %v5479_v50  ;;  %5695 = vmatprep.subr.mxu1 %v5481_v28  ;;  %17982 = vst [vmem:[#allocation33_spill] sm:$0xff] %v15379_v30  ;;  %17983 = vst [vmem:[#allocation31_spill] sm:$0xff] %v15386_v31  ;;  %v15391_v50 = vld [vmem:[%s16779_s12 + $0x98] sm:$0xff]  ;;  %v15398_v28 = vld [vmem:[%s16779_s12 + $0x80] sm:$0xff] }
0x15f8   :  { %5583 = vmatpush1.msra.mxu0 %v5478_v48  ;;  %5696 = vmatpush1.msra.mxu1 %v5480_v49  ;;  %17984 = vst [vmem:[#allocation48_spill] sm:$0xff] %v15391_v50  ;;  %17985 = vst [vmem:[#allocation34_spill] sm:$0xff] %v15398_v28  ;;  %v15403_v48 = vld [vmem:[%s16779_s12 + $0x90] sm:$0xff]  ;;  %v15410_v49 = vld [vmem:[%s16779_s12 + $0x68] sm:$0xff] }
0x15f9   :  { %5584 = vmatprep.subr.mxu0 %v5475_v32  ;;  %5697 = vmatprep.subr.mxu1 %v5477_v39  ;;  %17986 = vst [vmem:[#allocation37_spill] sm:$0xff] %v15403_v48  ;;  %17987 = vst [vmem:[#allocation46_spill] sm:$0xff] %v15410_v49  ;;  %v15415_v32 = vld [vmem:[%s16779_s12 + $0x78] sm:$0xff]  ;;  %v15422_v39 = vld [vmem:[%s16779_s12 + $0x60] sm:$0xff] }
0x15fa   :  { %5585 = vmatpush1.msra.mxu0 %v5474_v47  ;;  %5698 = vmatpush1.msra.mxu1 %v5476_v26  ;;  %17988 = vst [vmem:[#allocation47_spill] sm:$0xff] %v15415_v32  ;;  %17989 = vst [vmem:[#allocation8_spill] sm:$0xff] %v15422_v39  ;;  %v15427_v47 = vld [vmem:[%s16779_s12 + $0x70] sm:$0xff]  ;;  %v15434_v26 = vld [vmem:[%s16779_s12 + $0x48] sm:$0xff] }
0x15fb   :  { %5586 = vmatprep.subr.mxu0 %v5471_v6  ;;  %5699 = vmatprep.subr.mxu1 %v5473_v62  ;;  %17990 = vst [vmem:[#allocation49_spill] sm:$0xff] %v15427_v47  ;;  %17991 = vst [vmem:[#allocation9_spill] sm:$0xff] %v15434_v26  ;;  %v15439_v6 = vld [vmem:[%s16779_s12 + $0x58] sm:$0xff]  ;;  %v15446_v62 = vld [vmem:[%s16779_s12 + $0x40] sm:$0xff] }
0x15fc   :  { %5587 = vmatpush1.msra.mxu0 %v5470_v24  ;;  %5620 = vmatprep.mubr.f32.mxu0 %v17970_v15  ;;  %17992 = vst [vmem:[#allocation36_spill] sm:$0xff] %v15439_v6  ;;  %17993 = vst [vmem:[#allocation55_spill] sm:$0xff] %v15446_v62  ;;  %v15451_v24 = vld [vmem:[%s16779_s12 + $0x50] sm:$0xff] }
0x15fd   :  { %5700 = vmatpush1.msra.mxu1 %v5472_v29  ;;  %5733 = vmatprep.mubr.f32.mxu1 %v17970_v15  ;;  %17994 = vst [vmem:[#allocation32_spill] sm:$0xff] %v15451_v24  ;;  %v15458_v29 = vld [vmem:[%s16779_s12 + $0x28] sm:$0xff] }
0x15fe   :  { %5621 = vmatmul.mubr.f32.vlgmr.msra.gmra.mxu0 %v17975_v21  ;;  %5734 = vmatmul.mubr.f32.vlgmr.msra.gmra.mxu1 %v17975_v21  ;;  %17995 = vst [vmem:[#allocation7_spill] sm:$0xff] %v15458_v29  ;;  %v15463_v21 = vld [vmem:[%s16779_s12 + $0x38] sm:$0xff] }
0x15ff   :  { %5626 = vmatprep.mubr.f32.mxu0 %v17970_v15  ;;  %5739 = vmatprep.mubr.f32.mxu1 %v17970_v15  ;;  %17996 = vst [vmem:[#allocation57_spill] sm:$0xff] %v15463_v21 }
0x1600   :  { %5882 = vmatprep.subr.mxu0 %v15122_v19 }
0x1602   :  { %5627 = vmatmul.mubr.f32.gmra.mxu0 %v17976_v46  ;;  %5740 = vmatmul.mubr.f32.gmra.mxu1 %v17976_v46  ;;  %v15470_v46 = vld [vmem:[%s16779_s12 + $0x20] sm:$0xff] }
0x1603   :  { %5632 = vmatprep.mubr.f32.mxu0 %v17970_v15  ;;  %5745 = vmatprep.mubr.f32.mxu1 %v17970_v15  ;;  %17997 = vst [vmem:[#allocation59_spill] sm:$0xff] %v15470_v46 }
0x1606   :  { %5633 = vmatmul.mubr.f32.gmra.mxu0 %v17977_v38  ;;  %5746 = vmatmul.mubr.f32.gmra.mxu1 %v17977_v38  ;;  %v15475_v38 = vld [vmem:[%s16779_s12 + $0x30] sm:$0xff] }
0x1607   :  { %5638 = vmatprep.mubr.f32.mxu0 %v17970_v15  ;;  %5751 = vmatprep.mubr.f32.mxu1 %v17970_v15  ;;  %17998 = vst [vmem:[#allocation13_spill] sm:$0xff] %v15475_v38 }
0x160a   :  { %5639 = vmatmul.mubr.f32.gmra.mxu0 %v17978_v18  ;;  %5752 = vmatmul.mubr.f32.gmra.mxu1 %v17978_v18  ;;  %v15482_v18 = vld [vmem:[%s16779_s12 + $0x8] sm:$0xff] }
0x160b   :  { %5644 = vmatprep.mubr.f32.mxu0 %v17970_v15  ;;  %5757 = vmatprep.mubr.f32.mxu1 %v17970_v15  ;;  %17999 = vst [vmem:[#allocation14_spill] sm:$0xff] %v15482_v18 }
0x160e   :  { %5645 = vmatmul.mubr.f32.gmra.mxu0 %v17979_v55  ;;  %5758 = vmatmul.mubr.f32.gmra.mxu1 %v17979_v55  ;;  %v15487_v55 = vld [vmem:[%s16779_s12 + $0x18] sm:$0xff] }
0x160f   :  { %5650 = vmatprep.mubr.f32.mxu0 %v17970_v15  ;;  %5763 = vmatprep.mubr.f32.mxu1 %v17970_v15  ;;  %18000 = vst [vmem:[#allocation5_spill] sm:$0xff] %v15487_v55 }
0x1612   :  { %5651 = vmatmul.mubr.f32.gmra.mxu0 %v14817_v54  ;;  %5764 = vmatmul.mubr.f32.gmra.mxu1 %v14817_v54  ;;  %v15127_v54 = vld [vmem:[%s16779_s12 + $0x1f8] sm:$0xff] }
0x1613   :  { %5656 = vmatprep.mubr.f32.mxu0 %v17970_v15  ;;  %5769 = vmatprep.mubr.f32.mxu1 %v17970_v15  ;;  %17981 = vst [vmem:[#allocation43_spill] sm:$0xff] %v15127_v54 }
0x1614   :  { %5953 = vmatprep.subr.mxu1 %v15127_v54 }
0x1615   :  { %5954 = vmatpush1.msra.mxu1 %v15139_v35 }
0x1616   :  { %5657 = vmatmul.mubr.f32.gmra.mxu0 %v14899_v10  ;;  %5770 = vmatmul.mubr.f32.gmra.mxu1 %v14899_v10  ;;  %v15134_v10 = vld [vmem:[%s16779_s12 + $0x1e0] sm:$0xff] }
0x1617   :  { %5662 = vmatprep.mubr.f32.mxu0 %v17970_v15  ;;  %5775 = vmatprep.mubr.f32.mxu1 %v17970_v15 }
0x1618   :  { %5883 = vmatpush1.msra.mxu0 %v15134_v10  ;;  %5955 = vmatprep.subr.mxu1 %v15151_v40 }
0x1619   :  { %5884 = vmatprep.subr.mxu0 %v15146_v37  ;;  %5956 = vmatpush1.msra.mxu1 %v15163_v0 }
0x161a   :  { %5885 = vmatpush1.msra.mxu0 %v15158_v44  ;;  %5957 = vmatprep.subr.mxu1 %v15175_v7 }
0x161b   :  { %5886 = vmatprep.subr.mxu0 %v15170_v14  ;;  %5958 = vmatpush1.msra.mxu1 %v15187_v11 }
0x161c   :  { %5887 = vmatpush1.msra.mxu0 %v15182_v43  ;;  %5959 = vmatprep.subr.mxu1 %v15199_v41 }
0x161d   :  { %5888 = vmatprep.subr.mxu0 %v15194_v59  ;;  %5960 = vmatpush1.msra.mxu1 %v15211_v63 }
0x161e   :  { %5889 = vmatpush1.msra.mxu0 %v15206_v34  ;;  %5961 = vmatprep.subr.mxu1 %v15223_v56 }
0x161f   :  { %5890 = vmatprep.subr.mxu0 %v15218_v33  ;;  %5962 = vmatpush1.msra.mxu1 %v15235_v23 }
0x1620   :  { %5891 = vmatpush1.msra.mxu0 %v15230_v58  ;;  %5963 = vmatprep.subr.mxu1 %v15247_v42 }
0x1621   :  { %5892 = vmatprep.subr.mxu0 %v15242_v45  ;;  %5964 = vmatpush1.msra.mxu1 %v15259_v20 }
0x1622   :  { %5893 = vmatpush1.msra.mxu0 %v15254_v51  ;;  %5965 = vmatprep.subr.mxu1 %v15271_v25 }
0x1623   :  { %5894 = vmatprep.subr.mxu0 %v15266_v61  ;;  %5966 = vmatpush1.msra.mxu1 %v15283_v53 }
0x1624   :  { %5895 = vmatpush1.msra.mxu0 %v15278_v52  ;;  %5967 = vmatprep.subr.mxu1 %v15295_v22 }
0x1625   :  { %5896 = vmatprep.subr.mxu0 %v15290_v12  ;;  %5968 = vmatpush1.msra.mxu1 %v15307_v8 }
0x1626   :  { %5897 = vmatpush1.msra.mxu0 %v15302_v57  ;;  %5969 = vmatprep.subr.mxu1 %v15319_v36 }
0x1627   :  { %5898 = vmatprep.subr.mxu0 %v15314_v1  ;;  %5970 = vmatpush1.msra.mxu1 %v15331_v3 }
0x1628   :  { %5899 = vmatpush1.msra.mxu0 %v15326_v2  ;;  %5971 = vmatprep.subr.mxu1 %v15343_v4 }
0x1629   :  { %5900 = vmatprep.subr.mxu0 %v15338_v9  ;;  %5972 = vmatpush1.msra.mxu1 %v15355_v16 }
0x162a   :  { %5901 = vmatpush1.msra.mxu0 %v15350_v27  ;;  %5973 = vmatprep.subr.mxu1 %v15367_v60 }
0x162b   :  { %5902 = vmatprep.subr.mxu0 %v15362_v13  ;;  %5974 = vmatpush1.msra.mxu1 %v15379_v30 }
0x162c   :  { %5903 = vmatpush1.msra.mxu0 %v15374_v5  ;;  %5975 = vmatprep.subr.mxu1 %v15391_v50 }
0x162d   :  { %5904 = vmatprep.subr.mxu0 %v15386_v31  ;;  %5976 = vmatpush1.msra.mxu1 %v15403_v48 }
0x162e   :  { %5905 = vmatpush1.msra.mxu0 %v15398_v28  ;;  %5977 = vmatprep.subr.mxu1 %v15415_v32  ;;  %v18005_v32 = vld [vmem:[#allocation73_spill] sm:$0xff] }
0x162f   :  { %5906 = vmatprep.subr.mxu0 %v15410_v49  ;;  %5978 = vmatpush1.msra.mxu1 %v15427_v47  ;;  %v18006_v49 = vld [vmem:[#allocation71_spill] sm:$0xff] }
0x1630   :  { %5907 = vmatpush1.msra.mxu0 %v15422_v39  ;;  %5979 = vmatprep.subr.mxu1 %v15439_v6  ;;  %v18004_v6 = vld [vmem:[#allocation72_spill] sm:$0xff] }
0x1631   :  { %5908 = vmatprep.subr.mxu0 %v15434_v26  ;;  %5980 = vmatpush1.msra.mxu1 %v15451_v24 }
0x1632   :  { %5909 = vmatpush1.msra.mxu0 %v15446_v62  ;;  %5981 = vmatprep.subr.mxu1 %v15463_v21  ;;  %v15492_v21 = vld [vmem:[%s16779_s12] sm:$0xff] }
0x1633   :  { %5910 = vmatprep.subr.mxu0 %v15458_v29  ;;  %5982 = vmatpush1.msra.mxu1 %v15475_v38  ;;  %18001 = vst [vmem:[#allocation66_spill] sm:$0xff] %v15492_v21  ;;  %v15499_v38 = vld [vmem:[%s16779_s12 + $0x10] sm:$0xff]  ;;  %v18003_v29 = vld [vmem:[#allocation70_spill] sm:$0xff] }
0x1634   :  { %5911 = vmatpush1.msra.mxu0 %v15470_v46  ;;  %5983 = vmatprep.subr.mxu1 %v15487_v55  ;;  %18002 = vst [vmem:[#allocation56_spill] sm:$0xff] %v15499_v38 }
0x1635   :  { %5912 = vmatprep.subr.mxu0 %v15482_v18  ;;  %5984 = vmatpush1.msra.mxu1 %v15499_v38 }
0x1636   :  { %5913 = vmatpush1.msra.mxu0 %v15492_v21  ;;  %6128 = vmatprep.subr.mxu1 %v15127_v54 }
0x1637   :  { %6057 = vmatprep.subr.mxu0 %v15122_v19 }
0x169d   :  { %v5356_v46 = vpop.f32.mrf.mxu0  ;;  %v5427_v26 = vpop.f32.mrf.mxu1 }
0x169e   :  { %v5432_v24 = vadd.f32 %v5356_v46, %v18003_v29  ;;  %v5434_v38 = vadd.f32 %v5427_v26, %v18006_v49  ;;  %v18011_v26 = vld [vmem:[#allocation47_spill] sm:$0xff] }
0x169f   :  { %v5358_v62 = vpop.f32.mrf.mxu0  ;;  %v5429_v39 = vpop.f32.mrf.mxu1 }
0x16a0   :  { %v9169_v18 = vmul.f32 -1.442695, %v5432_v24  ;;  %v5433_v55 = vadd.f32 %v5358_v62, %v18004_v6  ;;  %v5435_v21 = vadd.f32 %v5429_v39, %v18005_v32 }
0x16a2   :  { %9825 = vpow2.f32 %v9169_v18  ;;  %v9170_v47 = vmul.f32 -1.442695, %v5433_v55  ;;  %v9171_v48 = vmul.f32 -1.442695, %v5435_v21  ;;  %v18012_v21 = vld [vmem:[#allocation8_spill] sm:$0xff] }
0x16a4   :  { %9827 = vpow2.f32 %v9170_v47 }
0x16a5   :  { %9829 = vtanh.f32 %v5434_v38  ;;  %v18013_v38 = vld [vmem:[#allocation49_spill] sm:$0xff] }
0x16a6   :  { %9831 = vpow2.f32 %v9171_v48  ;;  %v18010_v48 = vld [vmem:[#allocation46_spill] sm:$0xff] }
0x16af   :  { %v9826_v19 = vpop.eup %9825 }
0x16b0   :  { %v5439_v28 = vadd.f32 1.0, %v9826_v19 }
0x16b1   :  { %v9828_v54 = vpop.eup %9827 }
0x16b2   :  { %9833 = vrcp.f32 %v5439_v28  ;;  %v5445_v29 = vadd.f32 1.0, %v9828_v54  ;;  %v9830_v24 = vpop.eup %9829  ;;  %v18007_v54 = vld [vmem:[#allocation74_spill] sm:$0xff]  ;;  %v18009_v28 = vld [vmem:[#allocation37_spill] sm:$0xff] }
0x16b3   :  { %v9832_v6 = vpop.eup %9831 }
0x16b4   :  { %9835 = vrcp.f32 %v5445_v29  ;;  %v5452_v47 = vadd.f32 1.0, %v9832_v6  ;;  %v18014_v29 = vld [vmem:[#allocation9_spill] sm:$0xff]  ;;  %v18016_v6 = vld [vmem:[#allocation55_spill] sm:$0xff] }
0x16b6   :  { %9837 = vrcp.f32 %v5452_v47  ;;  %v18020_v47 = vld [vmem:[#allocation59_spill] sm:$0xff] }
0x16bf   :  { %v9834_v62 = vpop.eup %9833 }
0x16c0   :  { %v5456_v46 = vmul.f32 %v9834_v62, %v9830_v24  ;;  %v18015_v24 = vld [vmem:[#allocation36_spill] sm:$0xff] }
0x16c1   :  { %v9836_v18 = vpop.eup %9835  ;;  %v18017_v62 = vld [vmem:[#allocation32_spill] sm:$0xff] }
0x16c2   :  { %v5455_v55 = vmul.f32 %v9836_v18, %v14896_v17  ;;  %v18008_v17 = vld [vmem:[#allocation34_spill] sm:$0xff]  ;;  %v18019_v18 = vld [vmem:[#allocation57_spill] sm:$0xff] }
0x16c3   :  { %v9838_v49 = vpop.eup %9837 }
0x16c4   :  { %v5457_v32 = vadd.f32 %v5456_v46, %v5455_v55  ;;  %v18018_v46 = vld [vmem:[#allocation7_spill] sm:$0xff]  ;;  %v18021_v55 = vld [vmem:[#allocation13_spill] sm:$0xff] }
0x16c6   :  { %9839 = vtanh.f32 %v5457_v32  ;;  %v18022_v32 = vld [vmem:[#allocation14_spill] sm:$0xff] }
0x16d3   :  { %v9840_v39 = vpop.eup %9839 }
0x16d4   :  { %v5459_v19 = vmul.f32 %v9840_v39, %v9838_v49  ;;  %v18023_v49 = vld [vmem:[#allocation5_spill] sm:$0xff]  ;;  %v18024_v39 = vld [vmem:[#allocation66_spill] sm:$0xff] }
0x16d6   :  { %5663 = vmatmul.mubr.f32.gmra.mxu0 %v5459_v19  ;;  %5776 = vmatmul.mubr.f32.gmra.mxu1 %v5459_v19  ;;  %v18025_v19 = vld [vmem:[#allocation56_spill] sm:$0xff] }
0x16d7   :  { %5946 = vmatprep.mubr.f32.mxu0 %v17970_v15  ;;  %6017 = vmatprep.mubr.f32.mxu1 %v17970_v15 }
0x16da   :  { %5947 = vmatmul.mubr.f32.vlgmr.msra.gmra.mxu0 %v18007_v54  ;;  %6018 = vmatmul.mubr.f32.vlgmr.msra.gmra.mxu1 %v18007_v54  ;;  %v18026_v54 = vld [vmem:[#allocation45_spill] sm:$0xff] }
0x16db   :  { %6058 = vmatpush1.msra.mxu0 %v15134_v10  ;;  %6129 = vmatpush1.msra.mxu1 %v15139_v35 }
0x16dc   :  { %6059 = vmatprep.subr.mxu0 %v15146_v37  ;;  %6130 = vmatprep.subr.mxu1 %v15151_v40 }
0x16dd   :  { %6060 = vmatpush1.msra.mxu0 %v15158_v44  ;;  %6131 = vmatpush1.msra.mxu1 %v15163_v0 }
0x16de   :  { %6061 = vmatprep.subr.mxu0 %v15170_v14  ;;  %6132 = vmatprep.subr.mxu1 %v15175_v7 }
0x16df   :  { %6062 = vmatpush1.msra.mxu0 %v15182_v43  ;;  %6133 = vmatpush1.msra.mxu1 %v15187_v11 }
0x16e0   :  { %6063 = vmatprep.subr.mxu0 %v15194_v59  ;;  %6134 = vmatprep.subr.mxu1 %v15199_v41 }
0x16e1   :  { %6064 = vmatpush1.msra.mxu0 %v15206_v34  ;;  %6135 = vmatpush1.msra.mxu1 %v15211_v63 }
0x16e2   :  { %6065 = vmatprep.subr.mxu0 %v15218_v33  ;;  %6136 = vmatprep.subr.mxu1 %v15223_v56 }
0x16e3   :  { %6066 = vmatpush1.msra.mxu0 %v15230_v58  ;;  %6137 = vmatpush1.msra.mxu1 %v15235_v23 }
0x16e4   :  { %6067 = vmatprep.subr.mxu0 %v15242_v45  ;;  %6138 = vmatprep.subr.mxu1 %v15247_v42 }
0x16e5   :  { %6068 = vmatpush1.msra.mxu0 %v15254_v51  ;;  %6139 = vmatpush1.msra.mxu1 %v15259_v20 }
0x16e6   :  { %6069 = vmatprep.subr.mxu0 %v15266_v61  ;;  %6140 = vmatprep.subr.mxu1 %v15271_v25 }
0x16e7   :  { %6070 = vmatpush1.msra.mxu0 %v15278_v52  ;;  %6141 = vmatpush1.msra.mxu1 %v15283_v53 }
0x16e8   :  { %6071 = vmatprep.subr.mxu0 %v15290_v12  ;;  %6142 = vmatprep.subr.mxu1 %v15295_v22 }
0x16e9   :  { %6072 = vmatpush1.msra.mxu0 %v15302_v57  ;;  %6143 = vmatpush1.msra.mxu1 %v15307_v8 }
0x16ea   :  { %6073 = vmatprep.subr.mxu0 %v15314_v1  ;;  %6144 = vmatprep.subr.mxu1 %v15319_v36 }
0x16eb   :  { %6074 = vmatpush1.msra.mxu0 %v15326_v2  ;;  %6145 = vmatpush1.msra.mxu1 %v15331_v3 }
0x16ec   :  { %6075 = vmatprep.subr.mxu0 %v15338_v9  ;;  %6146 = vmatprep.subr.mxu1 %v15343_v4 }
0x16ed   :  { %6076 = vmatpush1.msra.mxu0 %v15350_v27  ;;  %6147 = vmatpush1.msra.mxu1 %v15355_v16 }
0x16ee   :  { %6077 = vmatprep.subr.mxu0 %v15362_v13  ;;  %6148 = vmatprep.subr.mxu1 %v15367_v60 }
0x16ef   :  { %6078 = vmatpush1.msra.mxu0 %v15374_v5  ;;  %6149 = vmatpush1.msra.mxu1 %v15379_v30 }
0x16f0   :  { %6079 = vmatprep.subr.mxu0 %v15386_v31  ;;  %6150 = vmatprep.subr.mxu1 %v15391_v50 }
0x16f1   :  { %6080 = vmatpush1.msra.mxu0 %v18008_v17  ;;  %6151 = vmatpush1.msra.mxu1 %v18009_v28 }
0x16f2   :  { %6081 = vmatprep.subr.mxu0 %v18010_v48  ;;  %6152 = vmatprep.subr.mxu1 %v18011_v26 }
0x16f3   :  { %6082 = vmatpush1.msra.mxu0 %v18012_v21  ;;  %6153 = vmatpush1.msra.mxu1 %v18013_v38 }
0x16f4   :  { %6083 = vmatprep.subr.mxu0 %v18014_v29  ;;  %6154 = vmatprep.subr.mxu1 %v18015_v24 }
0x16f5   :  { %6084 = vmatpush1.msra.mxu0 %v18016_v6  ;;  %6155 = vmatpush1.msra.mxu1 %v18017_v62 }
0x16f6   :  { %6085 = vmatprep.subr.mxu0 %v18018_v46  ;;  %6156 = vmatprep.subr.mxu1 %v18019_v18  ;;  %v18027_v46 = vld [vmem:[#allocation43_spill] sm:$0xff]  ;;  %v5622_v18 = vpop.f32.mrf.mxu0 }
0x16f7   :  { %6086 = vmatpush1.msra.mxu0 %v18020_v47  ;;  %6157 = vmatpush1.msra.mxu1 %v18021_v55  ;;  %v5735_v47 = vpop.f32.mrf.mxu1 }
0x16f8   :  { %6087 = vmatprep.subr.mxu0 %v18022_v32  ;;  %6158 = vmatprep.subr.mxu1 %v18023_v49  ;;  %v5624_v62 = vpop.f32.mrf.mxu0 }
0x16f9   :  { %6088 = vmatpush1.msra.mxu0 %v18024_v39  ;;  %6121 = vmatprep.mubr.f32.mxu0 %v17970_v15  ;;  %v5737_v55 = vpop.f32.mrf.mxu1 }
0x16fa   :  { %6159 = vmatpush1.msra.mxu1 %v18025_v19  ;;  %6192 = vmatprep.mubr.f32.mxu1 %v17970_v15  ;;  %v15580_v6 = vpop.f32.mrf.mxu0 }
0x16fb   :  { %6232 = vmatprep.subr.mxu0 %v18026_v54  ;;  %6303 = vmatprep.subr.mxu1 %v18027_v46  ;;  %18028 = vst [vmem:[#allocation63_spill] sm:$0xff] %v15580_v6  ;;  %v15582_v32 = vpop.f32.mrf.mxu1 }
0x16fc   :  { %18029 = vst [vmem:[#allocation62_spill] sm:$0xff] %v15582_v32  ;;  %v15584_v49 = vpop.f32.mrf.mxu0 }
0x16fd   :  { %18030 = vst [vmem:[#allocation50_spill] sm:$0xff] %v15584_v49  ;;  %v15586_v39 = vpop.f32.mrf.mxu1 }
0x16fe   :  { %18031 = vst [vmem:[#allocation6_spill] sm:$0xff] %v15586_v39  ;;  %v15588_v24 = vpop.f32.mrf.mxu0 }
0x16ff   :  { %18032 = vst [vmem:[#allocation16_spill] sm:$0xff] %v15588_v24  ;;  %v15590_v19 = vpop.f32.mrf.mxu1 }
0x1700   :  { %18033 = vst [vmem:[#allocation17_spill] sm:$0xff] %v15590_v19  ;;  %v15592_v15 = vpop.f32.mrf.mxu0 }
0x1701   :  { %18034 = vst [vmem:[#allocation53_spill] sm:$0xff] %v15592_v15  ;;  %v15594_v54 = vpop.f32.mrf.mxu1 }
0x1702   :  { %18035 = vst [vmem:[#allocation25_spill] sm:$0xff] %v15594_v54  ;;  %v15596_v46 = vpop.f32.mrf.mxu0 }
0x1703   :  { %18036 = vst [vmem:[#allocation23_spill] sm:$0xff] %v15596_v46  ;;  %v15598_v29 = vpop.f32.mrf.mxu1 }
0x1704   :  { %18037 = vst [vmem:[#allocation18_spill] sm:$0xff] %v15598_v29  ;;  %v15600_v38 = vpop.f32.mrf.mxu0 }
0x1705   :  { %18038 = vst [vmem:[#allocation21_spill] sm:$0xff] %v15600_v38  ;;  %v15602_v6 = vpop.f32.mrf.mxu1 }
0x1706   :  { %18039 = vst [vmem:[#allocation19_spill] sm:$0xff] %v15602_v6  ;;  %v15604_v32 = vpop.f32.mrf.mxu0 }
0x1707   :  { %18040 = vst [vmem:[#allocation20_spill] sm:$0xff] %v15604_v32  ;;  %v15606_v49 = vpop.f32.mrf.mxu1 }
0x1708   :  { %18041 = vst [vmem:[#allocation61_spill] sm:$0xff] %v15606_v49  ;;  %v15608_v39 = vpop.f32.mrf.mxu0  ;;  %v5534_v49 = vld [vmem:[%s16780_s13] sm:$0xf] }
0x1709   :  { %18042 = vst [vmem:[#allocation58_spill] sm:$0xff] %v15608_v39  ;;  %v15610_v24 = vpop.f32.mrf.mxu1  ;;  %v18051_v39 = vld [vmem:[#allocation28_spill] sm:$0xff] }
0x170a   :  { %18043 = vst [vmem:[#allocation51_spill] sm:$0xff] %v15610_v24  ;;  %v15612_v19 = vpop.f32.mrf.mxu0  ;;  %v15630_v24 = vrot.slane %v5534_v49, %v18051_v39 }
0x170b   :  { %18044 = vst [vmem:[#allocation41_spill] sm:$0xff] %v15612_v19  ;;  %v15614_v15 = vpop.f32.mrf.mxu1 }
0x170c   :  { %18045 = vst [vmem:[#allocation39_spill] sm:$0xff] %v15614_v15  ;;  %v15616_v54 = vpop.f32.mrf.mxu0  ;;  %18052 = vst [vmem:[#allocation12_spill] sm:$0xff] %v15630_v24 }
0x170d   :  { %18046 = vst [vmem:[#allocation30_spill] sm:$0xff] %v15616_v54  ;;  %v15618_v46 = vpop.f32.mrf.mxu1  ;;  %v18055_v54 = vld [vmem:[#allocation54_spill] sm:$0xff] }
0x170e   :  { %18047 = vst [vmem:[#allocation64_spill] sm:$0xff] %v15618_v46  ;;  %v15620_v29 = vpop.f32.mrf.mxu0  ;;  %v15637_v6 = vrot.slane %v5534_v49, %v18055_v54  ;;  %v18059_v54 = vld [vmem:[#allocation60_spill] sm:$0xff] }
0x170f   :  { %18048 = vst [vmem:[#allocation68_spill] sm:$0xff] %v15620_v29  ;;  %v15622_v38 = vpop.f32.mrf.mxu1  ;;  %v15648_v50 = vrot.slane %v5534_v49, %v18059_v54 }
0x1710   :  { %18049 = vst [vmem:[#allocation69_spill] sm:$0xff] %v15622_v38  ;;  %v15627_v32 = vpop.f32.mrf.mxu0  ;;  %v5623_v38 = vadd.f32 %v5622_v18, %v15630_v24  ;;  %v5625_v26 = vadd.f32 %v5624_v62, %v15637_v6  ;;  %v18061_v18 = vld [vmem:[#allocation29_spill] sm:$0xff] }
0x1711   :  { %18050 = vst [vmem:[#allocation22_spill] sm:$0xff] %v15627_v32  ;;  %v15632_v19 = vpop.f32.mrf.mxu1  ;;  %18060 = vst [vmem:[#allocation72_spill] sm:$0xff] %v15648_v50  ;;  %v15652_v24 = vrot.slane %v5534_v49, %v18061_v18  ;;  %v18062_v18 = vld [vmem:[#allocation65_spill] sm:$0xff] }
0x1712   :  { %18053 = vst [vmem:[#allocation67_spill] sm:$0xff] %v15632_v19 }
0x1796   :  { %v15634_v15 = vpop.f32.mrf.mxu0  ;;  %v15639_v46 = vpop.f32.mrf.mxu1 }
0x1797   :  { %18054 = vst [vmem:[#allocation52_spill] sm:$0xff] %v15634_v15  ;;  %18056 = vst [vmem:[#allocation44_spill] sm:$0xff] %v15639_v46 }
0x1798   :  { %v15641_v29 = vpop.f32.mrf.mxu0  ;;  %v15645_v32 = vpop.f32.mrf.mxu1 }
0x1799   :  { %18057 = vst [vmem:[#allocation42_spill] sm:$0xff] %v15641_v29  ;;  %18058 = vst [vmem:[#allocation70_spill] sm:$0xff] %v15645_v32  ;;  %v5738_v29 = vadd.f32 %v5737_v55, %v15648_v50  ;;  %v5736_v32 = vadd.f32 %v5735_v47, %v15652_v24 }
0x179a   :  { %v5948_v21 = vpop.f32.mrf.mxu0  ;;  %v6019_v15 = vpop.f32.mrf.mxu1 }
0x179b   :  { %v6024_v39 = vadd.f32 %v5948_v21, %v5623_v38 }
0x179c   :  { %v5950_v48 = vpop.f32.mrf.mxu0  ;;  %v6021_v46 = vpop.f32.mrf.mxu1 }
0x179d   :  { %v9172_v28 = vmul.f32 -1.442695, %v6024_v39  ;;  %v6025_v19 = vadd.f32 %v5950_v48, %v5625_v26  ;;  %v6027_v62 = vadd.f32 %v6021_v46, %v5738_v29  ;;  %v6026_v39 = vadd.f32 %v6019_v15, %v5736_v32 }
0x179f   :  { %9841 = vpow2.f32 %v9172_v28  ;;  %v9173_v17 = vmul.f32 -1.442695, %v6025_v19  ;;  %v9174_v21 = vmul.f32 -1.442695, %v6027_v62  ;;  %v18065_v62 = vld [vmem:[#allocation34_spill] sm:$0xff] }
0x17a1   :  { %9843 = vpow2.f32 %v9173_v17 }
0x17a2   :  { %9845 = vpow2.f32 %v9174_v21  ;;  %v18066_v21 = vld [vmem:[#allocation37_spill] sm:$0xff] }
0x17ac   :  { %v9842_v38 = vpop.eup %9841 }
0x17ad   :  { %v6031_v48 = vadd.f32 1.0, %v9842_v38  ;;  %v18067_v38 = vld [vmem:[#allocation46_spill] sm:$0xff] }
0x17ae   :  { %v9844_v28 = vpop.eup %9843 }
0x17af   :  { %9847 = vrcp.f32 %v6031_v48  ;;  %v6037_v26 = vadd.f32 1.0, %v9844_v28  ;;  %v9846_v17 = vpop.eup %9845  ;;  %v18069_v48 = vld [vmem:[#allocation8_spill] sm:$0xff]  ;;  %v18070_v28 = vld [vmem:[#allocation49_spill] sm:$0xff] }
0x17b0   :  { %9849 = vtanh.f32 %v6026_v39  ;;  %v6044_v50 = vadd.f32 1.0, %v9846_v17  ;;  %v18068_v39 = vld [vmem:[#allocation47_spill] sm:$0xff]  ;;  %v18072_v17 = vld [vmem:[#allocation36_spill] sm:$0xff] }
0x17b1   :  { %9851 = vrcp.f32 %v6037_v26  ;;  %v18071_v26 = vld [vmem:[#allocation9_spill] sm:$0xff] }
0x17b2   :  { %9853 = vrcp.f32 %v6044_v50  ;;  %v18064_v50 = vld [vmem:[#allocation48_spill] sm:$0xff] }
0x17bc   :  { %v9848_v19 = vpop.eup %9847 }
0x17bd   :  { %v9850_v54 = vpop.eup %9849 }
0x17be   :  { %v9852_v55 = vpop.eup %9851  ;;  %v6048_v49 = vmul.f32 %v9850_v54, %v9848_v19  ;;  %v18073_v19 = vld [vmem:[#allocation55_spill] sm:$0xff]  ;;  %v18074_v54 = vld [vmem:[#allocation32_spill] sm:$0xff] }
0x17bf   :  { %v6047_v29 = vmul.f32 %v9852_v55, %v18062_v18  ;;  %v9854_v15 = vpop.eup %9853  ;;  %v18075_v55 = vld [vmem:[#allocation7_spill] sm:$0xff] }
0x17c0   :  { %v18077_v18 = vld [vmem:[#allocation59_spill] sm:$0xff] }
0x17c1   :  { %v15656_v46 = vadd.f32 %v6048_v49, %v6047_v29  ;;  %v18076_v49 = vld [vmem:[#allocation57_spill] sm:$0xff] }
0x17c2   :  { %v18078_v29 = vld [vmem:[#allocation13_spill] sm:$0xff] }
0x17c3   :  { %9855 = vtanh.f32 %v15656_v46 }
0x17d0   :  { %v9856_v47 = vpop.eup %9855 }
0x17d1   :  { %v15659_v32 = vmul.f32 %v9856_v47, %v9854_v15  ;;  %v18079_v15 = vld [vmem:[#allocation14_spill] sm:$0xff]  ;;  %v18080_v47 = vld [vmem:[#allocation5_spill] sm:$0xff] }
0x17d3   :  { %18063 = vst [vmem:[#allocation73_spill] sm:$0xff] %v15659_v32  ;;  %6122 = vmatmul.mubr.f32.vlgmr.msra.gmra.mxu0 %v15659_v32  ;;  %6193 = vmatmul.mubr.f32.vlgmr.msra.gmra.mxu1 %v15659_v32  ;;  %v18081_v32 = vld [vmem:[#allocation66_spill] sm:$0xff] }
0x17d4   :  { %6233 = vmatpush1.msra.mxu0 %v15134_v10  ;;  %6304 = vmatpush1.msra.mxu1 %v15139_v35 }
0x17d5   :  { %6234 = vmatprep.subr.mxu0 %v15146_v37  ;;  %6305 = vmatprep.subr.mxu1 %v15151_v40 }
0x17d6   :  { %6235 = vmatpush1.msra.mxu0 %v15158_v44  ;;  %6306 = vmatpush1.msra.mxu1 %v15163_v0 }
0x17d7   :  { %6236 = vmatprep.subr.mxu0 %v15170_v14  ;;  %6307 = vmatprep.subr.mxu1 %v15175_v7 }
0x17d8   :  { %6237 = vmatpush1.msra.mxu0 %v15182_v43  ;;  %6308 = vmatpush1.msra.mxu1 %v15187_v11 }
0x17d9   :  { %6238 = vmatprep.subr.mxu0 %v15194_v59  ;;  %6309 = vmatprep.subr.mxu1 %v15199_v41 }
0x17da   :  { %6239 = vmatpush1.msra.mxu0 %v15206_v34  ;;  %6310 = vmatpush1.msra.mxu1 %v15211_v63 }
0x17db   :  { %6240 = vmatprep.subr.mxu0 %v15218_v33  ;;  %6311 = vmatprep.subr.mxu1 %v15223_v56 }
0x17dc   :  { %6241 = vmatpush1.msra.mxu0 %v15230_v58  ;;  %6312 = vmatpush1.msra.mxu1 %v15235_v23 }
0x17dd   :  { %6242 = vmatprep.subr.mxu0 %v15242_v45  ;;  %6313 = vmatprep.subr.mxu1 %v15247_v42 }
0x17de   :  { %6243 = vmatpush1.msra.mxu0 %v15254_v51  ;;  %6314 = vmatpush1.msra.mxu1 %v15259_v20 }
0x17df   :  { %6244 = vmatprep.subr.mxu0 %v15266_v61  ;;  %6315 = vmatprep.subr.mxu1 %v15271_v25 }
0x17e0   :  { %6245 = vmatpush1.msra.mxu0 %v15278_v52  ;;  %6316 = vmatpush1.msra.mxu1 %v15283_v53 }
0x17e1   :  { %6246 = vmatprep.subr.mxu0 %v15290_v12  ;;  %6317 = vmatprep.subr.mxu1 %v15295_v22 }
0x17e2   :  { %6247 = vmatpush1.msra.mxu0 %v15302_v57  ;;  %6318 = vmatpush1.msra.mxu1 %v15307_v8 }
0x17e3   :  { %6248 = vmatprep.subr.mxu0 %v15314_v1  ;;  %6319 = vmatprep.subr.mxu1 %v15319_v36 }
0x17e4   :  { %6249 = vmatpush1.msra.mxu0 %v15326_v2  ;;  %6320 = vmatpush1.msra.mxu1 %v15331_v3 }
0x17e5   :  { %6250 = vmatprep.subr.mxu0 %v15338_v9  ;;  %6321 = vmatprep.subr.mxu1 %v15343_v4 }
0x17e6   :  { %6251 = vmatpush1.msra.mxu0 %v15350_v27  ;;  %6322 = vmatpush1.msra.mxu1 %v15355_v16 }
0x17e7   :  { %6252 = vmatprep.subr.mxu0 %v15362_v13  ;;  %6323 = vmatprep.subr.mxu1 %v15367_v60 }
0x17e8   :  { %6253 = vmatpush1.msra.mxu0 %v15374_v5  ;;  %6324 = vmatpush1.msra.mxu1 %v15379_v30 }
0x17e9   :  { %6254 = vmatprep.subr.mxu0 %v15386_v31  ;;  %6325 = vmatprep.subr.mxu1 %v18064_v50  ;;  %v18091_v50 = vld [vmem:[#allocation62_spill] sm:$0xff] }
0x17ea   :  { %6255 = vmatpush1.msra.mxu0 %v18065_v62  ;;  %6326 = vmatpush1.msra.mxu1 %v18066_v21  ;;  %v18089_v21 = vld [vmem:[#allocation72_spill] sm:$0xff] }
0x17eb   :  { %6256 = vmatprep.subr.mxu0 %v18067_v38  ;;  %6327 = vmatprep.subr.mxu1 %v18068_v39 }
0x17ec   :  { %6257 = vmatpush1.msra.mxu0 %v18069_v48  ;;  %6328 = vmatpush1.msra.mxu1 %v18070_v28 }
0x17ed   :  { %6258 = vmatprep.subr.mxu0 %v18071_v26  ;;  %6329 = vmatprep.subr.mxu1 %v18072_v17  ;;  %v18082_v26 = vmov 0.0   ;;  %v18083_v17 = vld [vmem:[#allocation56_spill] sm:$0xff] }
0x17ee   :  { %6259 = vmatpush1.msra.mxu0 %v18073_v19  ;;  %6330 = vmatpush1.msra.mxu1 %v18074_v54  ;;  %v18084_v54 = vld [vmem:[#allocation45_spill] sm:$0xff] }
0x17ef   :  { %6260 = vmatprep.subr.mxu0 %v18075_v55  ;;  %6331 = vmatprep.subr.mxu1 %v18076_v49  ;;  %v18085_v55 = vld [vmem:[#allocation43_spill] sm:$0xff]  ;;  %v18086_v49 = vld [vmem:[#allocation12_spill] sm:$0xff] }
0x17f0   :  { %6261 = vmatpush1.msra.mxu0 %v18077_v18  ;;  %6332 = vmatpush1.msra.mxu1 %v18078_v29  ;;  %v18087_v18 = vld [vmem:[#allocation63_spill] sm:$0xff] }
0x17f1   :  { %6262 = vmatprep.subr.mxu0 %v18079_v15  ;;  %6333 = vmatprep.subr.mxu1 %v18080_v47  ;;  %v5629_v19 = vadd.f32 %v18087_v18, %v18086_v49  ;;  %v18088_v15 = vld [vmem:[#allocation50_spill] sm:$0xff]  ;;  %v5742_v18 = vadd.f32 %v18091_v50, %v15652_v24 }
0x17f2   :  { %6263 = vmatpush1.msra.mxu0 %v18081_v32  ;;  %6296 = vmatprep.mubr.f32.mxu0 %v18082_v26  ;;  %v5631_v28 = vadd.f32 %v18088_v15, %v15637_v6 }
0x17f3   :  { %6334 = vmatpush1.msra.mxu1 %v18083_v17  ;;  %6367 = vmatprep.mubr.f32.mxu1 %v18082_v26 }
0x17f4   :  { %6407 = vmatprep.subr.mxu0 %v18084_v54  ;;  %6478 = vmatprep.subr.mxu1 %v18085_v55  ;;  %v18090_v54 = vld [vmem:[#allocation6_spill] sm:$0xff] }
0x17f5   :  { %v5744_v62 = vadd.f32 %v18090_v54, %v18089_v21 }
0x1893   :  { %v6123_v29 = vpop.f32.mrf.mxu0  ;;  %v6194_v38 = vpop.f32.mrf.mxu1 }
0x1894   :  { %v6199_v47 = vadd.f32 %v6123_v29, %v5629_v19  ;;  %v6201_v49 = vadd.f32 %v6194_v38, %v5742_v18  ;;  %v18110_v18 = vld [vmem:[#allocation14_spill] sm:$0xff] }
0x1895   :  { %v6125_v48 = vpop.f32.mrf.mxu0  ;;  %v6196_v26 = vpop.f32.mrf.mxu1 }
0x1896   :  { %v9175_v32 = vmul.f32 -1.442695, %v6199_v47  ;;  %v6200_v39 = vadd.f32 %v6125_v48, %v5631_v28  ;;  %v6202_v55 = vadd.f32 %v6196_v26, %v5744_v62  ;;  %v18109_v47 = vld [vmem:[#allocation13_spill] sm:$0xff] }
0x1898   :  { %9857 = vpow2.f32 %v9175_v32  ;;  %v9176_v17 = vmul.f32 -1.442695, %v6200_v39  ;;  %v9177_v31 = vmul.f32 -1.442695, %v6202_v55  ;;  %v18107_v55 = vld [vmem:[#allocation57_spill] sm:$0xff] }
0x189a   :  { %9859 = vpow2.f32 %v9176_v17 }
0x189b   :  { %9861 = vtanh.f32 %v6201_v49  ;;  %v18108_v49 = vld [vmem:[#allocation59_spill] sm:$0xff] }
0x189c   :  { %9863 = vpow2.f32 %v9177_v31  ;;  %v18105_v31 = vld [vmem:[#allocation32_spill] sm:$0xff] }
0x18a5   :  { %v9858_v30 = vpop.eup %9857 }
0x18a6   :  { %v6206_v15 = vadd.f32 1.0, %v9858_v30 }
0x18a7   :  { %v9860_v19 = vpop.eup %9859 }
0x18a8   :  { %9865 = vrcp.f32 %v6206_v15  ;;  %v6212_v32 = vadd.f32 1.0, %v9860_v19  ;;  %v9862_v39 = vpop.eup %9861  ;;  %v18111_v15 = vld [vmem:[#allocation5_spill] sm:$0xff]  ;;  %v18112_v19 = vld [vmem:[#allocation66_spill] sm:$0xff] }
0x18a9   :  { %v9864_v48 = vpop.eup %9863 }
0x18aa   :  { %9867 = vrcp.f32 %v6212_v32  ;;  %v6219_v54 = vadd.f32 1.0, %v9864_v48  ;;  %v18113_v32 = vmov 0.0   ;;  %v18115_v48 = vld [vmem:[#allocation45_spill] sm:$0xff] }
0x18ac   :  { %9869 = vrcp.f32 %v6219_v54 }
0x18b5   :  { %v9866_v28 = vpop.eup %9865 }
0x18b6   :  { %v6223_v17 = vmul.f32 %v9866_v28, %v9862_v39  ;;  %v18114_v39 = vld [vmem:[#allocation56_spill] sm:$0xff]  ;;  %v18116_v28 = vld [vmem:[#allocation43_spill] sm:$0xff] }
0x18b7   :  { %v9868_v29 = vpop.eup %9867 }
0x18b8   :  { %v6222_v62 = vmul.f32 %v9868_v29, %v15656_v46  ;;  %v18106_v46 = vld [vmem:[#allocation7_spill] sm:$0xff]  ;;  %v18118_v29 = vld [vmem:[#allocation16_spill] sm:$0xff] }
0x18b9   :  { %v9870_v30 = vpop.eup %9869 }
0x18ba   :  { %v15738_v26 = vadd.f32 %v6223_v17, %v6222_v62  ;;  %v18117_v17 = vld [vmem:[#allocation12_spill] sm:$0xff] }
0x18bb   :  { %v5635_v54 = vadd.f32 %v18118_v29, %v18117_v17 }
0x18bc   :  { %9871 = vtanh.f32 %v15738_v26 }
0x18c9   :  { %v9872_v50 = vpop.eup %9871 }
0x18ca   :  { %v15741_v38 = vmul.f32 %v9872_v50, %v9870_v30  ;;  %v18119_v30 = vld [vmem:[#allocation53_spill] sm:$0xff] }
0x18cb   :  { %v5637_v50 = vadd.f32 %v18119_v30, %v15637_v6 }
0x18cc   :  { %18092 = vst [vmem:[#allocation71_spill] sm:$0xff] %v15741_v38  ;;  %6297 = vmatmul.mubr.f32.vlgmr.msra.gmra.mxu0 %v15741_v38  ;;  %6368 = vmatmul.mubr.f32.vlgmr.msra.gmra.mxu1 %v15741_v38 }
0x18cd   :  { %6408 = vmatpush1.msra.mxu0 %v15134_v10  ;;  %6479 = vmatpush1.msra.mxu1 %v15139_v35  ;;  %v18093_v10 = vld [vmem:[#allocation33_spill] sm:$0xff]  ;;  %v18094_v35 = vld [vmem:[#allocation31_spill] sm:$0xff] }
0x18ce   :  { %6409 = vmatprep.subr.mxu0 %v15146_v37  ;;  %6480 = vmatprep.subr.mxu1 %v15151_v40  ;;  %v18095_v37 = vld [vmem:[#allocation48_spill] sm:$0xff]  ;;  %v18096_v40 = vld [vmem:[#allocation34_spill] sm:$0xff] }
0x18cf   :  { %6410 = vmatpush1.msra.mxu0 %v15158_v44  ;;  %6481 = vmatpush1.msra.mxu1 %v15163_v0  ;;  %v18097_v44 = vld [vmem:[#allocation37_spill] sm:$0xff]  ;;  %v18098_v0 = vld [vmem:[#allocation46_spill] sm:$0xff] }
0x18d0   :  { %6411 = vmatprep.subr.mxu0 %v15170_v14  ;;  %6482 = vmatprep.subr.mxu1 %v15175_v7  ;;  %v18099_v14 = vld [vmem:[#allocation47_spill] sm:$0xff]  ;;  %v18100_v7 = vld [vmem:[#allocation8_spill] sm:$0xff] }
0x18d1   :  { %6412 = vmatpush1.msra.mxu0 %v15182_v43  ;;  %6483 = vmatpush1.msra.mxu1 %v15187_v11  ;;  %v18101_v43 = vld [vmem:[#allocation49_spill] sm:$0xff] }
0x18d2   :  { %6413 = vmatprep.subr.mxu0 %v15194_v59  ;;  %6484 = vmatprep.subr.mxu1 %v15199_v41  ;;  %v18102_v11 = vld [vmem:[#allocation9_spill] sm:$0xff]  ;;  %v18103_v59 = vld [vmem:[#allocation36_spill] sm:$0xff]  ;;  %v18104_v41 = vld [vmem:[#allocation55_spill] sm:$0xff] }
0x18d3   :  { %6414 = vmatpush1.msra.mxu0 %v15206_v34  ;;  %6485 = vmatpush1.msra.mxu1 %v15211_v63 }
0x18d4   :  { %6415 = vmatprep.subr.mxu0 %v15218_v33  ;;  %6486 = vmatprep.subr.mxu1 %v15223_v56 }
0x18d5   :  { %6416 = vmatpush1.msra.mxu0 %v15230_v58  ;;  %6487 = vmatpush1.msra.mxu1 %v15235_v23 }
0x18d6   :  { %6417 = vmatprep.subr.mxu0 %v15242_v45  ;;  %6488 = vmatprep.subr.mxu1 %v15247_v42 }
0x18d7   :  { %6418 = vmatpush1.msra.mxu0 %v15254_v51  ;;  %6489 = vmatpush1.msra.mxu1 %v15259_v20 }
0x18d8   :  { %6419 = vmatprep.subr.mxu0 %v15266_v61  ;;  %6490 = vmatprep.subr.mxu1 %v15271_v25 }
0x18d9   :  { %6420 = vmatpush1.msra.mxu0 %v15278_v52  ;;  %6491 = vmatpush1.msra.mxu1 %v15283_v53 }
0x18da   :  { %6421 = vmatprep.subr.mxu0 %v15290_v12  ;;  %6492 = vmatprep.subr.mxu1 %v15295_v22 }
0x18db   :  { %6422 = vmatpush1.msra.mxu0 %v15302_v57  ;;  %6493 = vmatpush1.msra.mxu1 %v15307_v8 }
0x18dc   :  { %6423 = vmatprep.subr.mxu0 %v15314_v1  ;;  %6494 = vmatprep.subr.mxu1 %v15319_v36 }
0x18dd   :  { %6424 = vmatpush1.msra.mxu0 %v15326_v2  ;;  %6495 = vmatpush1.msra.mxu1 %v15331_v3 }
0x18de   :  { %6425 = vmatprep.subr.mxu0 %v15338_v9  ;;  %6496 = vmatprep.subr.mxu1 %v15343_v4 }
0x18df   :  { %6426 = vmatpush1.msra.mxu0 %v15350_v27  ;;  %6497 = vmatpush1.msra.mxu1 %v15355_v16 }
0x18e0   :  { %6427 = vmatprep.subr.mxu0 %v15362_v13  ;;  %6498 = vmatprep.subr.mxu1 %v15367_v60 }
0x18e1   :  { %6428 = vmatpush1.msra.mxu0 %v15374_v5  ;;  %6499 = vmatpush1.msra.mxu1 %v18093_v10 }
0x18e2   :  { %6429 = vmatprep.subr.mxu0 %v18094_v35  ;;  %6500 = vmatprep.subr.mxu1 %v18095_v37 }
0x18e3   :  { %6430 = vmatpush1.msra.mxu0 %v18096_v40  ;;  %6501 = vmatpush1.msra.mxu1 %v18097_v44 }
0x18e4   :  { %6431 = vmatprep.subr.mxu0 %v18098_v0  ;;  %6502 = vmatprep.subr.mxu1 %v18099_v14 }
0x18e5   :  { %6432 = vmatpush1.msra.mxu0 %v18100_v7  ;;  %6503 = vmatpush1.msra.mxu1 %v18101_v43 }
0x18e6   :  { %6433 = vmatprep.subr.mxu0 %v18102_v11  ;;  %6504 = vmatprep.subr.mxu1 %v18103_v59 }
0x18e7   :  { %6434 = vmatpush1.msra.mxu0 %v18104_v41  ;;  %6505 = vmatpush1.msra.mxu1 %v18105_v31 }
0x18e8   :  { %6435 = vmatprep.subr.mxu0 %v18106_v46  ;;  %6506 = vmatprep.subr.mxu1 %v18107_v55  ;;  %v18121_v55 = vld [vmem:[#allocation17_spill] sm:$0xff] }
0x18e9   :  { %6436 = vmatpush1.msra.mxu0 %v18108_v49  ;;  %6507 = vmatpush1.msra.mxu1 %v18109_v47  ;;  %v5748_v29 = vadd.f32 %v18121_v55, %v15652_v24 }
0x18ea   :  { %6437 = vmatprep.subr.mxu0 %v18110_v18  ;;  %6508 = vmatprep.subr.mxu1 %v18111_v15 }
0x18eb   :  { %6438 = vmatpush1.msra.mxu0 %v18112_v19  ;;  %6471 = vmatprep.mubr.f32.mxu0 %v18113_v32 }
0x18ec   :  { %6509 = vmatpush1.msra.mxu1 %v18114_v39  ;;  %6542 = vmatprep.mubr.f32.mxu1 %v18113_v32 }
0x18ed   :  { %6582 = vmatprep.subr.mxu0 %v18115_v48  ;;  %6653 = vmatprep.subr.mxu1 %v18116_v28  ;;  %v18120_v48 = vld [vmem:[#allocation25_spill] sm:$0xff] }
0x18ee   :  { %v5750_v49 = vadd.f32 %v18120_v48, %v18089_v21  ;;  %v15848_v48 = vld [vmem:[%s16779_s12 + $0x1d8] sm:$0xff] }
0x198c   :  { %v6298_v62 = vpop.f32.mrf.mxu0  ;;  %v6369_v47 = vpop.f32.mrf.mxu1 }
0x198d   :  { %v6374_v38 = vadd.f32 %v6298_v62, %v5635_v54  ;;  %v6376_v17 = vadd.f32 %v6369_v47, %v5748_v29  ;;  %v15860_v29 = vld [vmem:[%s16779_s12 + $0x1d0] sm:$0xff] }
0x198e   :  { %v6300_v15 = vpop.f32.mrf.mxu0  ;;  %v6371_v32 = vpop.f32.mrf.mxu1 }
0x198f   :  { %v9178_v19 = vmul.f32 -1.442695, %v6374_v38  ;;  %v6375_v18 = vadd.f32 %v6300_v15, %v5637_v50  ;;  %v6377_v28 = vadd.f32 %v6371_v32, %v5750_v49 }
0x1991   :  { %9873 = vpow2.f32 %v9178_v19  ;;  %v9179_v39 = vmul.f32 -1.442695, %v6375_v18  ;;  %v9180_v46 = vmul.f32 -1.442695, %v6377_v28  ;;  %v15854_v28 = vld [vmem:[%s16779_s12 + $0x1c0] sm:$0xff] }
0x1993   :  { %9875 = vpow2.f32 %v9179_v39 }
0x1994   :  { %9877 = vtanh.f32 %v6376_v17  ;;  %v15842_v17 = vld [vmem:[%s16779_s12 + $0x1c8] sm:$0xff] }
0x1995   :  { %9879 = vpow2.f32 %v9180_v46  ;;  %v15830_v46 = vld [vmem:[%s16779_s12 + $0x1e0] sm:$0xff] }
0x199e   :  { %v9874_v31 = vpop.eup %9873 }
0x199f   :  { %v6381_v30 = vadd.f32 1.0, %v9874_v31 }
0x19a0   :  { %v9876_v54 = vpop.eup %9875 }
0x19a1   :  { %9881 = vrcp.f32 %v6381_v30  ;;  %v6387_v38 = vadd.f32 1.0, %v9876_v54  ;;  %v9878_v18 = vpop.eup %9877  ;;  %v15866_v30 = vld [vmem:[%s16779_s12 + $0x1a8] sm:$0xff]  ;;  %v15872_v54 = vld [vmem:[%s16779_s12 + $0x1b8] sm:$0xff] }
0x19a2   :  { %v9880_v15 = vpop.eup %9879 }
0x19a3   :  { %9883 = vrcp.f32 %v6387_v38  ;;  %v6394_v50 = vadd.f32 1.0, %v9880_v15  ;;  %v15878_v38 = vld [vmem:[%s16779_s12 + $0x1a0] sm:$0xff]  ;;  %v15890_v15 = vld [vmem:[%s16779_s12 + $0x188] sm:$0xff] }
0x19a5   :  { %9885 = vrcp.f32 %v6394_v50 }
0x19ae   :  { %v9882_v19 = vpop.eup %9881 }
0x19af   :  { %v6398_v39 = vmul.f32 %v9882_v19, %v9878_v18  ;;  %v15884_v18 = vld [vmem:[%s16779_s12 + $0x1b0] sm:$0xff]  ;;  %v15896_v19 = vld [vmem:[%s16779_s12 + $0x198] sm:$0xff] }
0x19b0   :  { %v9884_v62 = vpop.eup %9883 }
0x19b1   :  { %v6397_v49 = vmul.f32 %v9884_v62, %v15738_v26  ;;  %v15836_v26 = vld [vmem:[%s16779_s12 + $0x1f0] sm:$0xff] }
0x19b2   :  { %v9886_v31 = vpop.eup %9885 }
0x19b3   :  { %v15820_v32 = vadd.f32 %v6398_v39, %v6397_v49 }
0x19b5   :  { %9887 = vtanh.f32 %v15820_v32 }
0x19c2   :  { %v9888_v55 = vpop.eup %9887 }
0x19c3   :  { %v15823_v47 = vmul.f32 %v9888_v55, %v9886_v31  ;;  %v18139_v55 = vld [vmem:[#allocation73_spill] sm:$0xff] }
0x19c5   :  { %6472 = vmatmul.mubr.f32.vlgmr.msra.gmra.mxu0 %v15823_v47  ;;  %6543 = vmatmul.mubr.f32.vlgmr.msra.gmra.mxu1 %v15823_v47 }
0x19c6   :  { %6583 = vmatpush1.msra.mxu0 %v15830_v46  ;;  %6654 = vmatpush1.msra.mxu1 %v15836_v26 }
0x19c7   :  { %6584 = vmatprep.subr.mxu0 %v15842_v17  ;;  %6655 = vmatprep.subr.mxu1 %v15848_v48 }
0x19c8   :  { %6585 = vmatpush1.msra.mxu0 %v15854_v28  ;;  %6656 = vmatpush1.msra.mxu1 %v15860_v29 }
0x19c9   :  { %6586 = vmatprep.subr.mxu0 %v15866_v30  ;;  %6657 = vmatprep.subr.mxu1 %v15872_v54 }
0x19ca   :  { %6587 = vmatpush1.msra.mxu0 %v15878_v38  ;;  %6658 = vmatpush1.msra.mxu1 %v15884_v18 }
0x19cb   :  { %6588 = vmatprep.subr.mxu0 %v15890_v15  ;;  %6659 = vmatprep.subr.mxu1 %v15896_v19 }
0x19cc   :  { %6589 = vmatpush1.msra.mxu0 %v15206_v34  ;;  %6660 = vmatpush1.msra.mxu1 %v15211_v63  ;;  %v18122_v34 = vld [vmem:[#allocation32_spill] sm:$0xff]  ;;  %v18123_v63 = vld [vmem:[#allocation7_spill] sm:$0xff] }
0x19cd   :  { %6590 = vmatprep.subr.mxu0 %v15218_v33  ;;  %6661 = vmatprep.subr.mxu1 %v15223_v56  ;;  %v18124_v33 = vld [vmem:[#allocation57_spill] sm:$0xff]  ;;  %v18125_v56 = vld [vmem:[#allocation59_spill] sm:$0xff] }
0x19ce   :  { %6591 = vmatpush1.msra.mxu0 %v15230_v58  ;;  %6662 = vmatpush1.msra.mxu1 %v15235_v23  ;;  %v18126_v58 = vld [vmem:[#allocation13_spill] sm:$0xff]  ;;  %v18127_v23 = vld [vmem:[#allocation14_spill] sm:$0xff] }
0x19cf   :  { %6592 = vmatprep.subr.mxu0 %v15242_v45  ;;  %6663 = vmatprep.subr.mxu1 %v15247_v42  ;;  %v18128_v45 = vld [vmem:[#allocation5_spill] sm:$0xff]  ;;  %v18129_v42 = vld [vmem:[#allocation66_spill] sm:$0xff] }
0x19d0   :  { %6593 = vmatpush1.msra.mxu0 %v15254_v51  ;;  %6664 = vmatpush1.msra.mxu1 %v15259_v20  ;;  %v18130_v51 = vmov 0.0   ;;  %v18131_v20 = vld [vmem:[#allocation56_spill] sm:$0xff] }
0x19d1   :  { %6594 = vmatprep.subr.mxu0 %v15266_v61  ;;  %6665 = vmatprep.subr.mxu1 %v15271_v25  ;;  %v15954_v61 = vld [vmem:[%s16779_s12 + $0x1e8] sm:$0xff]  ;;  %v15960_v25 = vld [vmem:[%s16779_s12 + $0x1f8] sm:$0xff] }
0x19d2   :  { %6595 = vmatpush1.msra.mxu0 %v15278_v52  ;;  %6666 = vmatpush1.msra.mxu1 %v15283_v53  ;;  %18132 = vst [vmem:[#allocation74_spill] sm:$0xff] %v15954_v61  ;;  %18133 = vst [vmem:[#allocation28_spill] sm:$0xff] %v15960_v25  ;;  %v18134_v52 = vld [vmem:[#allocation12_spill] sm:$0xff]  ;;  %v18135_v53 = vld [vmem:[#allocation23_spill] sm:$0xff] }
0x19d3   :  { %6596 = vmatprep.subr.mxu0 %v15290_v12  ;;  %6667 = vmatprep.subr.mxu1 %v15295_v22  ;;  %v5641_v12 = vadd.f32 %v18135_v53, %v18134_v52  ;;  %v16244_v53 = vld [vmem:[%s16779_s12 + $0x48] sm:$0xff] }
0x19d4   :  { %6597 = vmatpush1.msra.mxu0 %v15302_v57  ;;  %6668 = vmatpush1.msra.mxu1 %v15307_v8  ;;  %v18136_v57 = vld [vmem:[#allocation21_spill] sm:$0xff]  ;;  %18155 = vst [vmem:[#allocation37_spill] sm:$0xff] %v16244_v53 }
0x19d5   :  { %6598 = vmatprep.subr.mxu0 %v15314_v1  ;;  %6669 = vmatprep.subr.mxu1 %v15319_v36  ;;  %v5643_v8 = vadd.f32 %v18136_v57, %v15637_v6  ;;  %v16226_v57 = vld [vmem:[%s16779_s12 + $0x78] sm:$0xff] }
0x19d6   :  { %6599 = vmatpush1.msra.mxu0 %v15326_v2  ;;  %6670 = vmatpush1.msra.mxu1 %v15331_v3  ;;  %18152 = vst [vmem:[#allocation31_spill] sm:$0xff] %v16226_v57 }
0x19d7   :  { %6600 = vmatprep.subr.mxu0 %v15338_v9  ;;  %6671 = vmatprep.subr.mxu1 %v15343_v4 }
0x19d8   :  { %6601 = vmatpush1.msra.mxu0 %v15350_v27  ;;  %6672 = vmatpush1.msra.mxu1 %v15355_v16  ;;  %v18137_v16 = vld [vmem:[#allocation19_spill] sm:$0xff] }
0x19d9   :  { %6602 = vmatprep.subr.mxu0 %v15362_v13  ;;  %6673 = vmatprep.subr.mxu1 %v15367_v60  ;;  %v5756_v13 = vadd.f32 %v18137_v16, %v18089_v21  ;;  %v16064_v16 = vld [vmem:[%s16779_s12 + $0x140] sm:$0xff] }
0x19da   :  { %6603 = vmatpush1.msra.mxu0 %v15374_v5  ;;  %6674 = vmatpush1.msra.mxu1 %v18093_v10  ;;  %v18138_v5 = vld [vmem:[#allocation18_spill] sm:$0xff] }
0x19db   :  { %6604 = vmatprep.subr.mxu0 %v18094_v35  ;;  %6675 = vmatprep.subr.mxu1 %v18095_v37  ;;  %v5754_v10 = vadd.f32 %v18138_v5, %v15652_v24  ;;  %v16082_v5 = vld [vmem:[%s16779_s12 + $0x138] sm:$0xff] }
0x19dc   :  { %6605 = vmatpush1.msra.mxu0 %v18096_v40  ;;  %6676 = vmatpush1.msra.mxu1 %v18097_v44 }
0x19dd   :  { %6606 = vmatprep.subr.mxu0 %v18098_v0  ;;  %6677 = vmatprep.subr.mxu1 %v18099_v14 }
0x19de   :  { %6607 = vmatpush1.msra.mxu0 %v18100_v7  ;;  %6678 = vmatpush1.msra.mxu1 %v18101_v43 }
0x19df   :  { %6608 = vmatprep.subr.mxu0 %v18102_v11  ;;  %6679 = vmatprep.subr.mxu1 %v18103_v59 }
0x19e0   :  { %6609 = vmatpush1.msra.mxu0 %v18104_v41  ;;  %6680 = vmatpush1.msra.mxu1 %v18122_v34  ;;  %v7286_v34 = vcombine.low %v18139_v55, %v15823_v47 }
0x19e1   :  { %6610 = vmatprep.subr.mxu0 %v18123_v63  ;;  %6681 = vmatprep.subr.mxu1 %v18124_v33  ;;  %v7287_v33 = vcombine.high %v18139_v55, %v15823_v47  ;;  %v16184_v55 = vld [vmem:[%s16779_s12 + $0xa0] sm:$0xff] }
0x19e2   :  { %6611 = vmatpush1.msra.mxu0 %v18125_v56  ;;  %6682 = vmatpush1.msra.mxu1 %v18126_v58  ;;  %v18140_v56 = vld [vmem:[#allocation71_spill] sm:$0xff] }
0x19e3   :  { %6612 = vmatprep.subr.mxu0 %v18127_v23  ;;  %6683 = vmatprep.subr.mxu1 %v18128_v45  ;;  %v18141_v23 = vld [vmem:[#allocation15_spill] sm:$0xff] }
0x19e4   :  { %6613 = vmatpush1.msra.mxu0 %v18129_v42  ;;  %6646 = vmatprep.mubr.f32.mxu0 %v18130_v51  ;;  %v15984_v45 = vrot.slane %v7286_v34, %v18141_v23  ;;  %v15992_v47 = vrot.slane %v7287_v33, %v18141_v23  ;;  %v16190_v34 = vld [vmem:[%s16779_s12 + $0xb0] sm:$0xff]  ;;  %v16202_v33 = vld [vmem:[%s16779_s12 + $0x98] sm:$0xff] }
0x19e5   :  { %6684 = vmatpush1.msra.mxu1 %v18131_v20  ;;  %6717 = vmatprep.mubr.f32.mxu1 %v18130_v51  ;;  %18146 = vst [vmem:[#allocation63_spill] sm:$0xff] %v16190_v34  ;;  %18148 = vst [vmem:[#allocation72_spill] sm:$0xff] %v16202_v33 }
0x19e6   :  { %6757 = vmatprep.subr.mxu0 %v15954_v61  ;;  %6828 = vmatprep.subr.mxu1 %v15960_v25  ;;  %18142 = vst [vmem:[#allocation54_spill] sm:$0xff] %v15984_v45  ;;  %18144 = vst [vmem:[#allocation29_spill] sm:$0xff] %v15992_v47  ;;  %v16256_v47 = vld [vmem:[%s16779_s12 + $0x40] sm:$0xff]  ;;  %v16268_v45 = vld [vmem:[%s16779_s12 + $0x28] sm:$0xff] }
0x19e7   :  { %18157 = vst [vmem:[#allocation47_spill] sm:$0xff] %v16256_v47  ;;  %18159 = vst [vmem:[#allocation49_spill] sm:$0xff] %v16268_v45 }
0x1a85   :  { %v6473_v22 = vpop.f32.mrf.mxu0  ;;  %v6544_v9 = vpop.f32.mrf.mxu1 }
0x1a86   :  { %v6549_v1 = vadd.f32 %v6473_v22, %v5641_v12  ;;  %v6551_v35 = vadd.f32 %v6544_v9, %v5754_v10  ;;  %v16046_v9 = vld [vmem:[%s16779_s12 + $0x170] sm:$0xff]  ;;  %v16088_v10 = vld [vmem:[%s16779_s12 + $0x120] sm:$0xff] }
0x1a87   :  { %v6475_v36 = vpop.f32.mrf.mxu0  ;;  %v6546_v27 = vpop.f32.mrf.mxu1  ;;  %v16232_v22 = vld [vmem:[%s16779_s12 + $0x60] sm:$0xff]  ;;  %v16238_v12 = vld [vmem:[%s16779_s12 + $0x70] sm:$0xff] }
0x1a88   :  { %v9181_v2 = vmul.f32 -1.442695, %v6549_v1  ;;  %v6550_v3 = vadd.f32 %v6475_v36, %v5643_v8  ;;  %v6552_v60 = vadd.f32 %v6546_v27, %v5756_v13  ;;  %v16016_v8 = vld [vmem:[%s16779_s12 + $0x180] sm:$0xff]  ;;  %v16022_v1 = vld [vmem:[%s16779_s12 + $0x190] sm:$0xff]  ;;  %v16028_v36 = vld [vmem:[%s16779_s12 + $0x168] sm:$0xff]  ;;  %18153 = vst [vmem:[#allocation48_spill] sm:$0xff] %v16232_v22 }
0x1a89   :  { %v16058_v27 = vld [vmem:[%s16779_s12 + $0x158] sm:$0xff]  ;;  %v16070_v13 = vld [vmem:[%s16779_s12 + $0x150] sm:$0xff]  ;;  %18154 = vst [vmem:[#allocation34_spill] sm:$0xff] %v16238_v12 }
0x1a8a   :  { %9889 = vpow2.f32 %v9181_v2  ;;  %v9182_v4 = vmul.f32 -1.442695, %v6550_v3  ;;  %v9183_v37 = vmul.f32 -1.442695, %v6552_v60  ;;  %v16034_v2 = vld [vmem:[%s16779_s12 + $0x178] sm:$0xff]  ;;  %v16040_v3 = vld [vmem:[%s16779_s12 + $0x160] sm:$0xff] }
0x1a8b   :  { %v16076_v60 = vld [vmem:[%s16779_s12 + $0x128] sm:$0xff] }
0x1a8c   :  { %9891 = vpow2.f32 %v9182_v4  ;;  %v16052_v4 = vld [vmem:[%s16779_s12 + $0x148] sm:$0xff] }
0x1a8d   :  { %9893 = vtanh.f32 %v6551_v35  ;;  %v16094_v35 = vld [vmem:[%s16779_s12 + $0x130] sm:$0xff] }
0x1a8e   :  { %9895 = vpow2.f32 %v9183_v37  ;;  %v16100_v37 = vld [vmem:[%s16779_s12 + $0x108] sm:$0xff] }
0x1a97   :  { %v9890_v40 = vpop.eup %9889 }
0x1a98   :  { %v6556_v44 = vadd.f32 1.0, %v9890_v40  ;;  %v16106_v40 = vld [vmem:[%s16779_s12 + $0x118] sm:$0xff] }
0x1a99   :  { %v9892_v0 = vpop.eup %9891 }
0x1a9a   :  { %9897 = vrcp.f32 %v6556_v44  ;;  %v6562_v14 = vadd.f32 1.0, %v9892_v0  ;;  %v9894_v7 = vpop.eup %9893  ;;  %v16112_v44 = vld [vmem:[%s16779_s12 + $0x100] sm:$0xff]  ;;  %v16118_v0 = vld [vmem:[%s16779_s12 + $0x110] sm:$0xff] }
0x1a9b   :  { %v9896_v43 = vpop.eup %9895 }
0x1a9c   :  { %9899 = vrcp.f32 %v6562_v14  ;;  %v6569_v39 = vadd.f32 1.0, %v9896_v43  ;;  %v16124_v14 = vld [vmem:[%s16779_s12 + $0xe8] sm:$0xff]  ;;  %v16136_v43 = vld [vmem:[%s16779_s12 + $0xe0] sm:$0xff] }
0x1a9e   :  { %9901 = vrcp.f32 %v6569_v39  ;;  %v16160_v39 = vld [vmem:[%s16779_s12 + $0xc0] sm:$0xff] }
0x1aa7   :  { %v9898_v11 = vpop.eup %9897 }
0x1aa8   :  { %v6573_v59 = vmul.f32 %v9898_v11, %v9894_v7  ;;  %v16130_v7 = vld [vmem:[%s16779_s12 + $0xf8] sm:$0xff]  ;;  %v16142_v11 = vld [vmem:[%s16779_s12 + $0xf0] sm:$0xff] }
0x1aa9   :  { %v9900_v41 = vpop.eup %9899 }
0x1aaa   :  { %v6572_v62 = vmul.f32 %v9900_v41, %v15820_v32  ;;  %v16154_v41 = vld [vmem:[%s16779_s12 + $0xd8] sm:$0xff] }
0x1aab   :  { %v9902_v49 = vpop.eup %9901 }
0x1aac   :  { %v15972_v50 = vadd.f32 %v6573_v59, %v6572_v62  ;;  %v16148_v59 = vld [vmem:[%s16779_s12 + $0xc8] sm:$0xff]  ;;  %v16166_v62 = vld [vmem:[%s16779_s12 + $0xd0] sm:$0xff] }
0x1aae   :  { %9903 = vtanh.f32 %v15972_v50 }
0x1abb   :  { %v9904_v31 = vpop.eup %9903 }
0x1abc   :  { %v6576_v63 = vmul.f32 %v9904_v31, %v9902_v49  ;;  %v16172_v49 = vld [vmem:[%s16779_s12 + $0xa8] sm:$0xff]  ;;  %v16178_v31 = vld [vmem:[%s16779_s12 + $0xb8] sm:$0xff] }
0x1abe   :  { %6647 = vmatmul.mubr.f32.vlgmr.msra.gmra.mxu0 %v6576_v63  ;;  %6718 = vmatmul.mubr.f32.vlgmr.msra.gmra.mxu1 %v6576_v63  ;;  %v7302_v58 = vcombine.low %v18140_v56, %v6576_v63  ;;  %v7303_v32 = vcombine.high %v18140_v56, %v6576_v63  ;;  %v16196_v63 = vld [vmem:[%s16779_s12 + $0x88] sm:$0xff]  ;;  %v16208_v56 = vld [vmem:[%s16779_s12 + $0x80] sm:$0xff] }
0x1abf   :  { %6758 = vmatpush1.msra.mxu0 %v15830_v46  ;;  %6829 = vmatpush1.msra.mxu1 %v15836_v26  ;;  %18147 = vst [vmem:[#allocation50_spill] sm:$0xff] %v16196_v63  ;;  %18149 = vst [vmem:[#allocation6_spill] sm:$0xff] %v16208_v56 }
0x1ac0   :  { %6759 = vmatprep.subr.mxu0 %v15842_v17  ;;  %6830 = vmatprep.subr.mxu1 %v15848_v48  ;;  %v15989_v42 = vrot.slane %v7302_v58, %v18141_v23  ;;  %v15995_v20 = vrot.slane %v7303_v32, %v18141_v23  ;;  %v16214_v58 = vld [vmem:[%s16779_s12 + $0x90] sm:$0xff]  ;;  %v16220_v32 = vld [vmem:[%s16779_s12 + $0x68] sm:$0xff]  ;;  %v16274_v23 = vld [vmem:[%s16779_s12 + $0x38] sm:$0xff] }
0x1ac1   :  { %6760 = vmatpush1.msra.mxu0 %v15854_v28  ;;  %6831 = vmatpush1.msra.mxu1 %v15860_v29  ;;  %18150 = vst [vmem:[#allocation62_spill] sm:$0xff] %v16214_v58  ;;  %18151 = vst [vmem:[#allocation33_spill] sm:$0xff] %v16220_v32 }
0x1ac2   :  { %18143 = vst [vmem:[#allocation60_spill] sm:$0xff] %v15989_v42  ;;  %18145 = vst [vmem:[#allocation65_spill] sm:$0xff] %v15995_v20  ;;  %6761 = vmatprep.subr.mxu0 %v15866_v30  ;;  %6832 = vmatprep.subr.mxu1 %v15872_v54  ;;  %v16250_v20 = vld [vmem:[%s16779_s12 + $0x58] sm:$0xff]  ;;  %v16262_v42 = vld [vmem:[%s16779_s12 + $0x50] sm:$0xff] }
0x1ac3   :  { %6762 = vmatpush1.msra.mxu0 %v15878_v38  ;;  %6833 = vmatpush1.msra.mxu1 %v15884_v18  ;;  %18156 = vst [vmem:[#allocation46_spill] sm:$0xff] %v16250_v20  ;;  %18158 = vst [vmem:[#allocation8_spill] sm:$0xff] %v16262_v42 }
0x1ac4   :  { %6763 = vmatprep.subr.mxu0 %v15890_v15  ;;  %6834 = vmatprep.subr.mxu1 %v15896_v19  ;;  %18160 = vst [vmem:[#allocation9_spill] sm:$0xff] %v16274_v23 }
0x1ac5   :  { %6764 = vmatpush1.msra.mxu0 %v16016_v8  ;;  %6835 = vmatpush1.msra.mxu1 %v16022_v1 }
0x1ac6   :  { %6765 = vmatprep.subr.mxu0 %v16028_v36  ;;  %6836 = vmatprep.subr.mxu1 %v16034_v2 }
0x1ac7   :  { %6766 = vmatpush1.msra.mxu0 %v16040_v3  ;;  %6837 = vmatpush1.msra.mxu1 %v16046_v9 }
0x1ac8   :  { %6767 = vmatprep.subr.mxu0 %v16052_v4  ;;  %6838 = vmatprep.subr.mxu1 %v16058_v27 }
0x1ac9   :  { %6768 = vmatpush1.msra.mxu0 %v16064_v16  ;;  %6839 = vmatpush1.msra.mxu1 %v16070_v13 }
0x1aca   :  { %6769 = vmatprep.subr.mxu0 %v16076_v60  ;;  %6840 = vmatprep.subr.mxu1 %v16082_v5 }
0x1acb   :  { %6770 = vmatpush1.msra.mxu0 %v16088_v10  ;;  %6841 = vmatpush1.msra.mxu1 %v16094_v35 }
0x1acc   :  { %6771 = vmatprep.subr.mxu0 %v16100_v37  ;;  %6842 = vmatprep.subr.mxu1 %v16106_v40 }
0x1acd   :  { %6772 = vmatpush1.msra.mxu0 %v16112_v44  ;;  %6843 = vmatpush1.msra.mxu1 %v16118_v0 }
0x1ace   :  { %6773 = vmatprep.subr.mxu0 %v16124_v14  ;;  %6844 = vmatprep.subr.mxu1 %v16130_v7 }
0x1acf   :  { %6774 = vmatpush1.msra.mxu0 %v16136_v43  ;;  %6845 = vmatpush1.msra.mxu1 %v16142_v11 }
0x1ad0   :  { %6775 = vmatprep.subr.mxu0 %v16148_v59  ;;  %6846 = vmatprep.subr.mxu1 %v16154_v41 }
0x1ad1   :  { %6776 = vmatpush1.msra.mxu0 %v16160_v39  ;;  %6847 = vmatpush1.msra.mxu1 %v16166_v62 }
0x1ad2   :  { %6777 = vmatprep.subr.mxu0 %v16172_v49  ;;  %6848 = vmatprep.subr.mxu1 %v16178_v31 }
0x1ad3   :  { %6778 = vmatpush1.msra.mxu0 %v16184_v55  ;;  %6849 = vmatpush1.msra.mxu1 %v16190_v34 }
0x1ad4   :  { %6779 = vmatprep.subr.mxu0 %v16196_v63  ;;  %6850 = vmatprep.subr.mxu1 %v16202_v33  ;;  %v18170_v33 = vld [vmem:[#allocation61_spill] sm:$0xff] }
0x1ad5   :  { %6780 = vmatpush1.msra.mxu0 %v16208_v56  ;;  %6851 = vmatpush1.msra.mxu1 %v16214_v58 }
0x1ad6   :  { %6781 = vmatprep.subr.mxu0 %v16220_v32  ;;  %6852 = vmatprep.subr.mxu1 %v16226_v57 }
0x1ad7   :  { %6782 = vmatpush1.msra.mxu0 %v16232_v22  ;;  %6853 = vmatpush1.msra.mxu1 %v16238_v12 }
0x1ad8   :  { %6783 = vmatprep.subr.mxu0 %v16244_v53  ;;  %6854 = vmatprep.subr.mxu1 %v16250_v20 }
0x1ad9   :  { %6784 = vmatpush1.msra.mxu0 %v16256_v47  ;;  %6855 = vmatpush1.msra.mxu1 %v16262_v42  ;;  %v16280_v47 = vld [vmem:[%s16779_s12 + $0x20] sm:$0xff]  ;;  %v16286_v42 = vld [vmem:[%s16779_s12 + $0x30] sm:$0xff] }
0x1ada   :  { %6785 = vmatprep.subr.mxu0 %v16268_v45  ;;  %6856 = vmatprep.subr.mxu1 %v16274_v23  ;;  %18161 = vst [vmem:[#allocation36_spill] sm:$0xff] %v16280_v47  ;;  %18162 = vst [vmem:[#allocation55_spill] sm:$0xff] %v16286_v42  ;;  %v16292_v45 = vld [vmem:[%s16779_s12 + $0x8] sm:$0xff]  ;;  %v16298_v23 = vld [vmem:[%s16779_s12 + $0x18] sm:$0xff] }
0x1adb   :  { %6786 = vmatpush1.msra.mxu0 %v16280_v47  ;;  %6857 = vmatpush1.msra.mxu1 %v16286_v42  ;;  %18163 = vst [vmem:[#allocation45_spill] sm:$0xff] %v16292_v45  ;;  %18164 = vst [vmem:[#allocation43_spill] sm:$0xff] %v16298_v23  ;;  %v16304_v47 = vld [vmem:[%s16779_s12] sm:$0xff] }
0x1adc   :  { %6787 = vmatprep.subr.mxu0 %v16292_v45  ;;  %6858 = vmatprep.subr.mxu1 %v16298_v23  ;;  %18165 = vst [vmem:[#allocation16_spill] sm:$0xff] %v16304_v47  ;;  %v16311_v45 = vld [vmem:[%s16779_s12 + $0x10] sm:$0xff]  ;;  %v18167_v23 = vld [vmem:[#allocation20_spill] sm:$0xff] }
0x1add   :  { %6788 = vmatpush1.msra.mxu0 %v16304_v47  ;;  %6821 = vmatprep.mubr.f32.mxu0 %v18130_v51  ;;  %18166 = vst [vmem:[#allocation53_spill] sm:$0xff] %v16311_v45  ;;  %v5647_v42 = vadd.f32 %v18167_v23, %v18134_v52  ;;  %v18168_v47 = vld [vmem:[#allocation58_spill] sm:$0xff]  ;;  %v5760_v23 = vadd.f32 %v18170_v33, %v15652_v24  ;;  %v18174_v33 = vld [vmem:[#allocation72_spill] sm:$0xff] }
0x1ade   :  { %6859 = vmatpush1.msra.mxu1 %v16311_v45  ;;  %6892 = vmatprep.mubr.f32.mxu1 %v18130_v51  ;;  %v5649_v53 = vadd.f32 %v18168_v47, %v15637_v6 }
0x1adf   :  { %6932 = vmatprep.subr.mxu0 %v15954_v61  ;;  %7003 = vmatprep.subr.mxu1 %v15960_v25  ;;  %v18169_v61 = vld [vmem:[#allocation51_spill] sm:$0xff] }
0x1ae0   :  { %v5762_v56 = vadd.f32 %v18169_v61, %v18089_v21 }
0x1b7e   :  { %v6648_v20 = vpop.f32.mrf.mxu0  ;;  %v6719_v58 = vpop.f32.mrf.mxu1 }
0x1b7f   :  { %v6724_v12 = vadd.f32 %v6648_v20, %v5647_v42  ;;  %v6726_v52 = vadd.f32 %v6719_v58, %v5760_v23  ;;  %v18175_v58 = vld [vmem:[#allocation6_spill] sm:$0xff]  ;;  %v18177_v23 = vld [vmem:[#allocation33_spill] sm:$0xff] }
0x1b80   :  { %v6650_v22 = vpop.f32.mrf.mxu0  ;;  %v6721_v51 = vpop.f32.mrf.mxu1 }
0x1b81   :  { %v9184_v57 = vmul.f32 -1.442695, %v6724_v12  ;;  %v6725_v32 = vadd.f32 %v6650_v22, %v5649_v53  ;;  %v6727_v25 = vadd.f32 %v6721_v51, %v5762_v56 }
0x1b83   :  { %9905 = vpow2.f32 %v9184_v57  ;;  %v9185_v45 = vmul.f32 -1.442695, %v6725_v32  ;;  %v9186_v63 = vmul.f32 -1.442695, %v6727_v25  ;;  %v18176_v32 = vld [vmem:[#allocation62_spill] sm:$0xff] }
0x1b85   :  { %9907 = vpow2.f32 %v9185_v45 }
0x1b86   :  { %9909 = vtanh.f32 %v6726_v52 }
0x1b87   :  { %9911 = vpow2.f32 %v9186_v63  ;;  %v18173_v63 = vld [vmem:[#allocation50_spill] sm:$0xff] }
0x1b90   :  { %v9906_v34 = vpop.eup %9905 }
0x1b91   :  { %v6731_v47 = vadd.f32 1.0, %v9906_v34 }
0x1b92   :  { %v9908_v42 = vpop.eup %9907 }
0x1b93   :  { %9913 = vrcp.f32 %v6731_v47  ;;  %v6737_v20 = vadd.f32 1.0, %v9908_v42  ;;  %v9910_v53 = vpop.eup %9909  ;;  %v18178_v47 = vld [vmem:[#allocation31_spill] sm:$0xff]  ;;  %v18179_v42 = vld [vmem:[#allocation48_spill] sm:$0xff] }
0x1b94   :  { %v9912_v45 = vpop.eup %9911 }
0x1b95   :  { %9915 = vrcp.f32 %v6737_v20  ;;  %v6744_v61 = vadd.f32 1.0, %v9912_v45  ;;  %v18180_v20 = vld [vmem:[#allocation34_spill] sm:$0xff] }
0x1b96   :  { %v18182_v45 = vld [vmem:[#allocation46_spill] sm:$0xff] }
0x1b97   :  { %9917 = vrcp.f32 %v6744_v61  ;;  %v18186_v61 = vld [vmem:[#allocation9_spill] sm:$0xff] }
0x1ba0   :  { %v9914_v12 = vpop.eup %9913 }
0x1ba1   :  { %v6748_v22 = vmul.f32 %v9914_v12, %v9910_v53  ;;  %v18181_v53 = vld [vmem:[#allocation37_spill] sm:$0xff]  ;;  %v18183_v12 = vld [vmem:[#allocation47_spill] sm:$0xff] }
0x1ba2   :  { %v9916_v57 = vpop.eup %9915 }
0x1ba3   :  { %v6747_v51 = vmul.f32 %v9916_v57, %v15972_v50  ;;  %v18172_v50 = vld [vmem:[#allocation63_spill] sm:$0xff]  ;;  %v18185_v57 = vld [vmem:[#allocation49_spill] sm:$0xff] }
0x1ba4   :  { %v9918_v25 = vpop.eup %9917 }
0x1ba5   :  { %v16326_v56 = vadd.f32 %v6748_v22, %v6747_v51  ;;  %v18184_v22 = vld [vmem:[#allocation8_spill] sm:$0xff] }
0x1ba6   :  { %v18187_v51 = vld [vmem:[#allocation36_spill] sm:$0xff] }
0x1ba7   :  { %9919 = vtanh.f32 %v16326_v56 }
0x1bb4   :  { %v9920_v52 = vpop.eup %9919 }
0x1bb5   :  { %v16329_v34 = vmul.f32 %v9920_v52, %v9918_v25  ;;  %v18188_v25 = vld [vmem:[#allocation55_spill] sm:$0xff]  ;;  %v18189_v52 = vld [vmem:[#allocation45_spill] sm:$0xff] }
0x1bb7   :  { %18171 = vst [vmem:[#allocation25_spill] sm:$0xff] %v16329_v34  ;;  %6822 = vmatmul.mubr.f32.vlgmr.msra.gmra.mxu0 %v16329_v34  ;;  %6893 = vmatmul.mubr.f32.vlgmr.msra.gmra.mxu1 %v16329_v34  ;;  %v18190_v34 = vld [vmem:[#allocation43_spill] sm:$0xff] }
0x1bb8   :  { %6933 = vmatpush1.msra.mxu0 %v15830_v46  ;;  %7004 = vmatpush1.msra.mxu1 %v15836_v26 }
0x1bb9   :  { %6934 = vmatprep.subr.mxu0 %v15842_v17  ;;  %7005 = vmatprep.subr.mxu1 %v15848_v48 }
0x1bba   :  { %6935 = vmatpush1.msra.mxu0 %v15854_v28  ;;  %7006 = vmatpush1.msra.mxu1 %v15860_v29 }
0x1bbb   :  { %6936 = vmatprep.subr.mxu0 %v15866_v30  ;;  %7007 = vmatprep.subr.mxu1 %v15872_v54 }
0x1bbc   :  { %6937 = vmatpush1.msra.mxu0 %v15878_v38  ;;  %7008 = vmatpush1.msra.mxu1 %v15884_v18 }
0x1bbd   :  { %6938 = vmatprep.subr.mxu0 %v15890_v15  ;;  %7009 = vmatprep.subr.mxu1 %v15896_v19 }
0x1bbe   :  { %6939 = vmatpush1.msra.mxu0 %v16016_v8  ;;  %7010 = vmatpush1.msra.mxu1 %v16022_v1 }
0x1bbf   :  { %6940 = vmatprep.subr.mxu0 %v16028_v36  ;;  %7011 = vmatprep.subr.mxu1 %v16034_v2 }
0x1bc0   :  { %6941 = vmatpush1.msra.mxu0 %v16040_v3  ;;  %7012 = vmatpush1.msra.mxu1 %v16046_v9 }
0x1bc1   :  { %6942 = vmatprep.subr.mxu0 %v16052_v4  ;;  %7013 = vmatprep.subr.mxu1 %v16058_v27 }
0x1bc2   :  { %6943 = vmatpush1.msra.mxu0 %v16064_v16  ;;  %7014 = vmatpush1.msra.mxu1 %v16070_v13 }
0x1bc3   :  { %6944 = vmatprep.subr.mxu0 %v16076_v60  ;;  %7015 = vmatprep.subr.mxu1 %v16082_v5 }
0x1bc4   :  { %6945 = vmatpush1.msra.mxu0 %v16088_v10  ;;  %7016 = vmatpush1.msra.mxu1 %v16094_v35 }
0x1bc5   :  { %6946 = vmatprep.subr.mxu0 %v16100_v37  ;;  %7017 = vmatprep.subr.mxu1 %v16106_v40 }
0x1bc6   :  { %6947 = vmatpush1.msra.mxu0 %v16112_v44  ;;  %7018 = vmatpush1.msra.mxu1 %v16118_v0 }
0x1bc7   :  { %6948 = vmatprep.subr.mxu0 %v16124_v14  ;;  %7019 = vmatprep.subr.mxu1 %v16130_v7 }
0x1bc8   :  { %6949 = vmatpush1.msra.mxu0 %v16136_v43  ;;  %7020 = vmatpush1.msra.mxu1 %v16142_v11 }
0x1bc9   :  { %6950 = vmatprep.subr.mxu0 %v16148_v59  ;;  %7021 = vmatprep.subr.mxu1 %v16154_v41 }
0x1bca   :  { %6951 = vmatpush1.msra.mxu0 %v16160_v39  ;;  %7022 = vmatpush1.msra.mxu1 %v16166_v62 }
0x1bcb   :  { %6952 = vmatprep.subr.mxu0 %v16172_v49  ;;  %7023 = vmatprep.subr.mxu1 %v16178_v31 }
0x1bcc   :  { %6953 = vmatpush1.msra.mxu0 %v16184_v55  ;;  %7024 = vmatpush1.msra.mxu1 %v18172_v50 }
0x1bcd   :  { %6954 = vmatprep.subr.mxu0 %v18173_v63  ;;  %7025 = vmatprep.subr.mxu1 %v18174_v33  ;;  %v18200_v33 = vld [vmem:[#allocation39_spill] sm:$0xff] }
0x1bce   :  { %6955 = vmatpush1.msra.mxu0 %v18175_v58  ;;  %7026 = vmatpush1.msra.mxu1 %v18176_v32 }
0x1bcf   :  { %6956 = vmatprep.subr.mxu0 %v18177_v23  ;;  %7027 = vmatprep.subr.mxu1 %v18178_v47 }
0x1bd0   :  { %6957 = vmatpush1.msra.mxu0 %v18179_v42  ;;  %7028 = vmatpush1.msra.mxu1 %v18180_v20  ;;  %v18191_v20 = vld [vmem:[#allocation16_spill] sm:$0xff] }
0x1bd1   :  { %6958 = vmatprep.subr.mxu0 %v18181_v53  ;;  %7029 = vmatprep.subr.mxu1 %v18182_v45  ;;  %v18192_v53 = vmov 0.0   ;;  %v18193_v45 = vld [vmem:[#allocation53_spill] sm:$0xff] }
0x1bd2   :  { %6959 = vmatpush1.msra.mxu0 %v18183_v12  ;;  %7030 = vmatpush1.msra.mxu1 %v18184_v22  ;;  %v18194_v22 = vld [vmem:[#allocation74_spill] sm:$0xff] }
0x1bd3   :  { %6960 = vmatprep.subr.mxu0 %v18185_v57  ;;  %7031 = vmatprep.subr.mxu1 %v18186_v61  ;;  %v18195_v57 = vld [vmem:[#allocation28_spill] sm:$0xff] }
0x1bd4   :  { %6961 = vmatpush1.msra.mxu0 %v18187_v51  ;;  %7032 = vmatpush1.msra.mxu1 %v18188_v25  ;;  %v18196_v61 = vld [vmem:[#allocation12_spill] sm:$0xff]  ;;  %v18197_v51 = vld [vmem:[#allocation41_spill] sm:$0xff] }
0x1bd5   :  { %6962 = vmatprep.subr.mxu0 %v18189_v52  ;;  %7033 = vmatprep.subr.mxu1 %v18190_v34  ;;  %v5653_v12 = vadd.f32 %v18197_v51, %v18196_v61  ;;  %v18198_v52 = vld [vmem:[#allocation30_spill] sm:$0xff]  ;;  %v5766_v51 = vadd.f32 %v18200_v33, %v15652_v24 }
0x1bd6   :  { %6963 = vmatpush1.msra.mxu0 %v18191_v20  ;;  %6996 = vmatprep.mubr.f32.mxu0 %v18192_v53  ;;  %v5655_v42 = vadd.f32 %v18198_v52, %v15637_v6 }
0x1bd7   :  { %7034 = vmatpush1.msra.mxu1 %v18193_v45  ;;  %7067 = vmatprep.mubr.f32.mxu1 %v18192_v53 }
0x1bd8   :  { %7107 = vmatprep.subr.mxu0 %v18194_v22  ;;  %7178 = vmatprep.subr.mxu1 %v18195_v57  ;;  %v18199_v22 = vld [vmem:[#allocation64_spill] sm:$0xff] }
0x1bd9   :  { %v5768_v58 = vadd.f32 %v18199_v22, %v18089_v21 }
0x1c77   :  { %v6823_v25 = vpop.f32.mrf.mxu0  ;;  %v6894_v32 = vpop.f32.mrf.mxu1 }
0x1c78   :  { %v6899_v34 = vadd.f32 %v6823_v25, %v5653_v12  ;;  %v6901_v61 = vadd.f32 %v6894_v32, %v5766_v51 }
0x1c79   :  { %v6825_v47 = vpop.f32.mrf.mxu0  ;;  %v6896_v53 = vpop.f32.mrf.mxu1 }
0x1c7a   :  { %v9187_v20 = vmul.f32 -1.442695, %v6899_v34  ;;  %v6900_v23 = vadd.f32 %v6825_v47, %v5655_v42  ;;  %v6902_v57 = vadd.f32 %v6896_v53, %v5768_v58 }
0x1c7c   :  { %9921 = vpow2.f32 %v9187_v20  ;;  %v9188_v45 = vmul.f32 -1.442695, %v6900_v23  ;;  %v9189_v63 = vmul.f32 -1.442695, %v6902_v57 }
0x1c7e   :  { %9923 = vpow2.f32 %v9188_v45 }
0x1c7f   :  { %9925 = vtanh.f32 %v6901_v61 }
0x1c80   :  { %9927 = vpow2.f32 %v9189_v63 }
0x1c89   :  { %v9922_v50 = vpop.eup %9921 }
0x1c8a   :  { %v6906_v52 = vadd.f32 1.0, %v9922_v50 }
0x1c8b   :  { %v9924_v12 = vpop.eup %9923 }
0x1c8c   :  { %9929 = vrcp.f32 %v6906_v52  ;;  %v6912_v34 = vadd.f32 1.0, %v9924_v12  ;;  %v9926_v23 = vpop.eup %9925 }
0x1c8d   :  { %v9928_v47 = vpop.eup %9927 }
0x1c8e   :  { %9931 = vrcp.f32 %v6912_v34  ;;  %v6919_v25 = vadd.f32 1.0, %v9928_v47 }
0x1c90   :  { %9933 = vrcp.f32 %v6919_v25 }
0x1c99   :  { %v9930_v42 = vpop.eup %9929 }
0x1c9a   :  { %v6923_v20 = vmul.f32 %v9930_v42, %v9926_v23 }
0x1c9b   :  { %v9932_v45 = vpop.eup %9931 }
0x1c9c   :  { %v6922_v58 = vmul.f32 %v9932_v45, %v16326_v56 }
0x1c9d   :  { %v9934_v50 = vpop.eup %9933 }
0x1c9e   :  { %v16408_v53 = vadd.f32 %v6923_v20, %v6922_v58 }
0x1ca0   :  { %9935 = vtanh.f32 %v16408_v53 }
0x1cad   :  { %v9936_v33 = vpop.eup %9935 }
0x1cae   :  { %v16411_v32 = vmul.f32 %v9936_v33, %v9934_v50  ;;  %v18228_v50 = vld [vmem:[#allocation10_spill] sm:$0xff]  ;;  %v18229_v33 = vld [vmem:[#allocation11_spill] sm:$0xff] }
0x1cb0   :  { %6997 = vmatmul.mubr.f32.vlgmr.msra.gmra.mxu0 %v16411_v32  ;;  %7068 = vmatmul.mubr.f32.vlgmr.msra.gmra.mxu1 %v16411_v32 }
0x1cb1   :  { %7108 = vmatpush1.msra.mxu0 %v15830_v46  ;;  %7179 = vmatpush1.msra.mxu1 %v15836_v26  ;;  %v18201_v46 = vld [vmem:[#allocation63_spill] sm:$0xff]  ;;  %v18202_v26 = vld [vmem:[#allocation50_spill] sm:$0xff] }
0x1cb2   :  { %7109 = vmatprep.subr.mxu0 %v15842_v17  ;;  %7180 = vmatprep.subr.mxu1 %v15848_v48  ;;  %v18203_v17 = vld [vmem:[#allocation72_spill] sm:$0xff]  ;;  %v18204_v48 = vld [vmem:[#allocation6_spill] sm:$0xff] }
0x1cb3   :  { %7110 = vmatpush1.msra.mxu0 %v15854_v28  ;;  %7181 = vmatpush1.msra.mxu1 %v15860_v29  ;;  %v18205_v28 = vld [vmem:[#allocation62_spill] sm:$0xff]  ;;  %v18206_v29 = vld [vmem:[#allocation33_spill] sm:$0xff] }
0x1cb4   :  { %7111 = vmatprep.subr.mxu0 %v15866_v30  ;;  %7182 = vmatprep.subr.mxu1 %v15872_v54  ;;  %v18207_v30 = vld [vmem:[#allocation31_spill] sm:$0xff]  ;;  %v18208_v54 = vld [vmem:[#allocation48_spill] sm:$0xff] }
0x1cb5   :  { %7112 = vmatpush1.msra.mxu0 %v15878_v38  ;;  %7183 = vmatpush1.msra.mxu1 %v15884_v18  ;;  %v18209_v38 = vld [vmem:[#allocation34_spill] sm:$0xff]  ;;  %v18210_v18 = vld [vmem:[#allocation37_spill] sm:$0xff] }
0x1cb6   :  { %7113 = vmatprep.subr.mxu0 %v15890_v15  ;;  %7184 = vmatprep.subr.mxu1 %v15896_v19  ;;  %v18211_v15 = vld [vmem:[#allocation46_spill] sm:$0xff]  ;;  %v18212_v19 = vld [vmem:[#allocation47_spill] sm:$0xff] }
0x1cb7   :  { %7114 = vmatpush1.msra.mxu0 %v16016_v8  ;;  %7185 = vmatpush1.msra.mxu1 %v16022_v1  ;;  %v18213_v8 = vld [vmem:[#allocation8_spill] sm:$0xff]  ;;  %v18214_v1 = vld [vmem:[#allocation49_spill] sm:$0xff] }
0x1cb8   :  { %7115 = vmatprep.subr.mxu0 %v16028_v36  ;;  %7186 = vmatprep.subr.mxu1 %v16034_v2  ;;  %v18215_v36 = vld [vmem:[#allocation9_spill] sm:$0xff]  ;;  %v18216_v2 = vld [vmem:[#allocation36_spill] sm:$0xff] }
0x1cb9   :  { %7116 = vmatpush1.msra.mxu0 %v16040_v3  ;;  %7187 = vmatpush1.msra.mxu1 %v16046_v9  ;;  %v18217_v3 = vld [vmem:[#allocation55_spill] sm:$0xff]  ;;  %v18218_v9 = vld [vmem:[#allocation45_spill] sm:$0xff] }
0x1cba   :  { %7117 = vmatprep.subr.mxu0 %v16052_v4  ;;  %7188 = vmatprep.subr.mxu1 %v16058_v27  ;;  %v18219_v4 = vld [vmem:[#allocation43_spill] sm:$0xff]  ;;  %v18220_v27 = vld [vmem:[#allocation16_spill] sm:$0xff] }
0x1cbb   :  { %7118 = vmatpush1.msra.mxu0 %v16064_v16  ;;  %7189 = vmatpush1.msra.mxu1 %v16070_v13  ;;  %v18221_v16 = vld [vmem:[#allocation53_spill] sm:$0xff]  ;;  %v18222_v13 = vmov 0.0  }
0x1cbc   :  { %7119 = vmatprep.subr.mxu0 %v16076_v60  ;;  %7190 = vmatprep.subr.mxu1 %v16082_v5  ;;  %v18223_v60 = vld [vmem:[#allocation12_spill] sm:$0xff] }
0x1cbd   :  { %7120 = vmatpush1.msra.mxu0 %v16088_v10  ;;  %7191 = vmatpush1.msra.mxu1 %v16094_v35  ;;  %v18224_v5 = vld [vmem:[#allocation68_spill] sm:$0xff] }
0x1cbe   :  { %7121 = vmatprep.subr.mxu0 %v16100_v37  ;;  %7192 = vmatprep.subr.mxu1 %v16106_v40  ;;  %v5659_v10 = vadd.f32 %v18224_v5, %v18223_v60  ;;  %v18225_v37 = vld [vmem:[#allocation22_spill] sm:$0xff] }
0x1cbf   :  { %7122 = vmatpush1.msra.mxu0 %v16112_v44  ;;  %7193 = vmatpush1.msra.mxu1 %v16118_v0  ;;  %v5661_v40 = vadd.f32 %v18225_v37, %v15637_v6 }
0x1cc0   :  { %7123 = vmatprep.subr.mxu0 %v16124_v14  ;;  %7194 = vmatprep.subr.mxu1 %v16130_v7 }
0x1cc1   :  { %7124 = vmatpush1.msra.mxu0 %v16136_v43  ;;  %7195 = vmatpush1.msra.mxu1 %v16142_v11 }
0x1cc2   :  { %7125 = vmatprep.subr.mxu0 %v16148_v59  ;;  %7196 = vmatprep.subr.mxu1 %v16154_v41  ;;  %v18226_v41 = vld [vmem:[#allocation67_spill] sm:$0xff] }
0x1cc3   :  { %7126 = vmatpush1.msra.mxu0 %v16160_v39  ;;  %7197 = vmatpush1.msra.mxu1 %v16166_v62  ;;  %v5774_v39 = vadd.f32 %v18226_v41, %v18089_v21 }
0x1cc4   :  { %7127 = vmatprep.subr.mxu0 %v16172_v49  ;;  %7198 = vmatprep.subr.mxu1 %v16178_v31  ;;  %v18227_v49 = vld [vmem:[#allocation69_spill] sm:$0xff] }
0x1cc5   :  { %7128 = vmatpush1.msra.mxu0 %v16184_v55  ;;  %7199 = vmatpush1.msra.mxu1 %v18201_v46  ;;  %v5772_v31 = vadd.f32 %v18227_v49, %v15652_v24 }
0x1cc6   :  { %7129 = vmatprep.subr.mxu0 %v18202_v26  ;;  %7200 = vmatprep.subr.mxu1 %v18203_v17  ;;  %v18231_v17 = vld [vmem:[#allocation42_spill] sm:$0xff] }
0x1cc7   :  { %7130 = vmatpush1.msra.mxu0 %v18204_v48  ;;  %7201 = vmatpush1.msra.mxu1 %v18205_v28  ;;  %v5667_v48 = vadd.f32 %v18231_v17, %v15637_v6 }
0x1cc8   :  { %7131 = vmatprep.subr.mxu0 %v18206_v29  ;;  %7202 = vmatprep.subr.mxu1 %v18207_v30 }
0x1cc9   :  { %7132 = vmatpush1.msra.mxu0 %v18208_v54  ;;  %7203 = vmatpush1.msra.mxu1 %v18209_v38 }
0x1cca   :  { %7133 = vmatprep.subr.mxu0 %v18210_v18  ;;  %7204 = vmatprep.subr.mxu1 %v18211_v15 }
0x1ccb   :  { %7134 = vmatpush1.msra.mxu0 %v18212_v19  ;;  %7205 = vmatpush1.msra.mxu1 %v18213_v8  ;;  %v18232_v19 = vld [vmem:[#allocation70_spill] sm:$0xff] }
0x1ccc   :  { %7135 = vmatprep.subr.mxu0 %v18214_v1  ;;  %7206 = vmatprep.subr.mxu1 %v18215_v36  ;;  %v5780_v8 = vadd.f32 %v18232_v19, %v18089_v21  ;;  %v18233_v36 = vld [vmem:[#allocation44_spill] sm:$0xff]  ;;  %v18245_v19 = vld [vmem:[#allocation27_spill] sm:$0xff] }
0x1ccd   :  { %7136 = vmatpush1.msra.mxu0 %v18216_v2  ;;  %7207 = vmatpush1.msra.mxu1 %v18217_v3  ;;  %v5778_v2 = vadd.f32 %v18233_v36, %v15652_v24  ;;  %v18248_v36 = vld [vmem:[#allocation40_spill] sm:$0xff] }
0x1cce   :  { %7137 = vmatprep.subr.mxu0 %v18218_v9  ;;  %7208 = vmatprep.subr.mxu1 %v18219_v4 }
0x1ccf   :  { %7138 = vmatpush1.msra.mxu0 %v18220_v27  ;;  %7209 = vmatpush1.msra.mxu1 %v18221_v16 }
0x1cd0   :  { %7171 = vmatprep.mubr.f32.mxu0 %v18222_v13  ;;  %7242 = vmatprep.mubr.f32.mxu1 %v18222_v13 }
0x1cd1   :  { %9285 = vmatprep.subr.mxu0 %v18222_v13  ;;  %9290 = vmatprep.subr.mxu1 %v18222_v13 }
0x1d70   :  { %v6998_v35 = vpop.f32.mrf.mxu0  ;;  %v7069_v43 = vpop.f32.mrf.mxu1 }
0x1d71   :  { %v7074_v44 = vadd.f32 %v6998_v35, %v5659_v10  ;;  %v7076_v55 = vadd.f32 %v7069_v43, %v5772_v31 }
0x1d72   :  { %v7000_v0 = vpop.f32.mrf.mxu0  ;;  %v7071_v59 = vpop.f32.mrf.mxu1 }
0x1d73   :  { %v9190_v14 = vmul.f32 -1.442695, %v7074_v44  ;;  %v7075_v7 = vadd.f32 %v7000_v0, %v5661_v40  ;;  %v7077_v62 = vadd.f32 %v7071_v59, %v5774_v39  ;;  %v18235_v39 = vld [vmem:[#allocation15_spill] sm:$0xff] }
0x1d75   :  { %9937 = vpow2.f32 %v9190_v14  ;;  %v9191_v11 = vmul.f32 -1.442695, %v7075_v7  ;;  %v9192_v56 = vmul.f32 -1.442695, %v7077_v62  ;;  %v18234_v7 = vld [vmem:[#allocation25_spill] sm:$0xff] }
0x1d77   :  { %9939 = vpow2.f32 %v9191_v11 }
0x1d78   :  { %9941 = vtanh.f32 %v7076_v55 }
0x1d79   :  { %9943 = vpow2.f32 %v9192_v56 }
0x1d82   :  { %v9938_v63 = vpop.eup %9937 }
0x1d83   :  { %v7081_v61 = vadd.f32 1.0, %v9938_v63 }
0x1d84   :  { %v9940_v22 = vpop.eup %9939 }
0x1d85   :  { %9945 = vrcp.f32 %v7081_v61  ;;  %v7087_v57 = vadd.f32 1.0, %v9940_v22  ;;  %v9942_v51 = vpop.eup %9941 }
0x1d86   :  { %v9944_v52 = vpop.eup %9943 }
0x1d87   :  { %9947 = vrcp.f32 %v7087_v57  ;;  %v7094_v47 = vadd.f32 1.0, %v9944_v52  ;;  %v18236_v57 = vld [vmem:[#allocation24_spill] sm:$0xff] }
0x1d88   :  { %v18238_v52 = vld [vmem:[#allocation60_spill] sm:$0xff] }
0x1d89   :  { %9949 = vrcp.f32 %v7094_v47 }
0x1d92   :  { %v9946_v12 = vpop.eup %9945 }
0x1d93   :  { %v7098_v34 = vmul.f32 %v9946_v12, %v9942_v51  ;;  %v18237_v51 = vld [vmem:[#allocation54_spill] sm:$0xff] }
0x1d94   :  { %v9948_v23 = vpop.eup %9947  ;;  %v18239_v12 = vcombine.low %v18237_v51, %v18238_v52 }
0x1d95   :  { %v7097_v42 = vmul.f32 %v9948_v23, %v16408_v53  ;;  %v18230_v53 = vld [vmem:[#allocation52_spill] sm:$0xff] }
0x1d96   :  { %v9950_v45 = vpop.eup %9949  ;;  %v5665_v46 = vadd.f32 %v18230_v53, %v18223_v60 }
0x1d97   :  { %v7099_v20 = vadd.f32 %v7098_v34, %v7097_v42  ;;  %v7358_v34 = vrot.slane %v18239_v12, %v18236_v57 }
0x1d99   :  { %9951 = vtanh.f32 %v7099_v20 }
0x1da6   :  { %v9952_v25 = vpop.eup %9951 }
0x1da7   :  { %v7101_v58 = vmul.f32 %v9952_v25, %v9950_v45  ;;  %v18241_v25 = vld [vmem:[#allocation29_spill] sm:$0xff] }
0x1da9   :  { %7172 = vmatmul.mubr.f32.vlgmr.msra.gmra.mxu0 %v7101_v58  ;;  %7243 = vmatmul.mubr.f32.vlgmr.msra.gmra.mxu1 %v7101_v58  ;;  %v7318_v43 = vcombine.low %v18234_v7, %v7101_v58  ;;  %v7319_v11 = vcombine.high %v18234_v7, %v7101_v58  ;;  %v18242_v58 = vld [vmem:[#allocation65_spill] sm:$0xff] }
0x1daa   :  { %9286 = vmatpush3.xpose.msra.mxu0 %v18228_v50  ;;  %9291 = vmatpush3.xpose.msra.mxu1 %v18229_v33  ;;  %v18243_v53 = vcombine.low %v18241_v25, %v18242_v58 }
0x1dab   :  { %9295 = vmatprep.subr.mxu0 %v18222_v13  ;;  %9300 = vmatprep.subr.mxu1 %v18222_v13  ;;  %v7326_v62 = vrot.slane %v7318_v43, %v18235_v39  ;;  %v7333_v31 = vrot.slane %v7319_v11, %v18235_v39 }
0x1dac   :  { %9287 = vmatprep.mubr.msk.f32.mxu0 %vm10260_vm1, %v18222_v13  ;;  %9292 = vmatprep.mubr.msk.f32.mxu1 %vm10260_vm1, %v18222_v13 }
0x1e69   :  { %v7173_v26 = vpop.f32.mrf.mxu0  ;;  %v7244_v38 = vpop.f32.mrf.mxu1 }
0x1e6a   :  { %v7249_v28 = vadd.f32 %v7173_v26, %v5665_v46  ;;  %v7251_v3 = vadd.f32 %v7244_v38, %v5778_v2  ;;  %v7374_v46 = vrot.slane %v18243_v53, %v18236_v57  ;;  %v18244_v26 = vcombine.high %v18241_v25, %v18242_v58  ;;  %v18249_v2 = vld [vmem:[#allocation38_spill] sm:$0xff] }
0x1e6b   :  { %v7175_v29 = vpop.f32.mrf.mxu0  ;;  %v7246_v15 = vpop.f32.mrf.mxu1 }
0x1e6c   :  { %v9193_v30 = vmul.f32 -1.442695, %v7249_v28  ;;  %v7250_v54 = vadd.f32 %v7175_v29, %v5667_v48  ;;  %v7252_v1 = vadd.f32 %v7246_v15, %v5780_v8  ;;  %v7381_v17 = vrot.slane %v18244_v26, %v18236_v57  ;;  %v18246_v8 = vld [vmem:[#allocation35_spill] sm:$0xff] }
0x1e6e   :  { %9953 = vpow2.f32 %v9193_v30  ;;  %v9194_v18 = vmul.f32 -1.442695, %v7250_v54  ;;  %v9195_v9 = vmul.f32 -1.442695, %v7252_v1  ;;  %v18247_v1 = vld [vmem:[#allocation26_spill] sm:$0xff] }
0x1e70   :  { %9955 = vpow2.f32 %v9194_v18 }
0x1e71   :  { %9957 = vtanh.f32 %v7251_v3  ;;  %v18250_v3 = vld [vmem:[#allocation75_spill] sm:$0xff] }
0x1e72   :  { %9959 = vpow2.f32 %v9195_v9 }
0x1e7b   :  { %v9954_v4 = vpop.eup %9953 }
0x1e7c   :  { %v7256_v6 = vadd.f32 1.0, %v9954_v4 }
0x1e7d   :  { %v9956_v27 = vpop.eup %9955 }
0x1e7e   :  { %9961 = vrcp.f32 %v7256_v6  ;;  %v7262_v16 = vadd.f32 1.0, %v9956_v27  ;;  %v9958_v60 = vpop.eup %9957 }
0x1e7f   :  { %v9960_v5 = vpop.eup %9959 }
0x1e80   :  { %9963 = vrcp.f32 %v7262_v16  ;;  %v7269_v21 = vadd.f32 1.0, %v9960_v5 }
0x1e82   :  { %9965 = vrcp.f32 %v7269_v21 }
0x1e8b   :  { %v9962_v10 = vpop.eup %9961 }
0x1e8c   :  { %v7273_v35 = vmul.f32 %v9962_v10, %v9958_v60 }
0x1e8d   :  { %v9964_v37 = vpop.eup %9963 }
0x1e8e   :  { %v7272_v40 = vmul.f32 %v9964_v37, %v7099_v20 }
0x1e8f   :  { %v9966_v24 = vpop.eup %9965 }
0x1e90   :  { %v7274_v44 = vadd.f32 %v7273_v35, %v7272_v40 }
0x1e92   :  { %9967 = vtanh.f32 %v7274_v44 }
0x1e9f   :  { %v9968_v0 = vpop.eup %9967 }
0x1ea0   :  { %v7276_v14 = vmul.f32 %v9968_v0, %v9966_v24 }
0x1ea2   :  { %v7334_v59 = vcombine.low %v16411_v32, %v7276_v14  ;;  %v7335_v41 = vcombine.high %v16411_v32, %v7276_v14  ;;  %v18240_v32 = vcombine.high %v18237_v51, %v18238_v52 }
0x1ea4   :  { %v7342_v49 = vrot.slane %v7334_v59, %v18235_v39  ;;  %v7349_v55 = vrot.slane %v7335_v41, %v18235_v39  ;;  %v7365_v23 = vrot.slane %v18240_v32, %v18236_v57 }
0x1ea6   :  { %v7382_v56 = vcombine.low %v7326_v62, %v7342_v49  ;;  %v7383_v63 = vcombine.high %v7326_v62, %v7342_v49  ;;  %v7398_v61 = vcombine.low %v7333_v31, %v7349_v55  ;;  %v7399_v22 = vcombine.high %v7333_v31, %v7349_v55 }
0x1ea8   :  { %v7390_v47 = vrot.slane %v7382_v56, %v18236_v57  ;;  %v7397_v42 = vrot.slane %v7383_v63, %v18236_v57  ;;  %v7406_v20 = vrot.slane %v7398_v61, %v18236_v57  ;;  %v7413_v45 = vrot.slane %v7399_v22, %v18236_v57 }
0x1eaa   :  { %v16534_v48 = vcombine.low %v7358_v34, %v7390_v47  ;;  %v16536_v28 = vcombine.high %v7358_v34, %v7390_v47  ;;  %v16538_v29 = vcombine.low %v7365_v23, %v7397_v42  ;;  %v16540_v30 = vcombine.high %v7365_v23, %v7397_v42 }
0x1eab   :  { %v16542_v54 = vcombine.low %v7374_v46, %v7406_v20  ;;  %v16544_v38 = vcombine.high %v7374_v46, %v7406_v20  ;;  %v16546_v18 = vcombine.low %v7381_v17, %v7413_v45  ;;  %v16548_v15 = vcombine.high %v7381_v17, %v7413_v45 }
0x1eac   :  { %9288 = vmatmul.mubr.f32.vlgmr.msra.gmra.mxu0 %v16534_v48  ;;  %9293 = vmatmul.mubr.f32.vlgmr.msra.gmra.mxu1 %v16536_v28 }
0x1ead   :  { %9296 = vmatpush3.xpose.msra.mxu0 %v18245_v19  ;;  %9301 = vmatpush3.xpose.msra.mxu1 %v18246_v8 }
0x1eae   :  { %9297 = vmatprep.mubr.msk.f32.mxu0 %vm10260_vm1, %v18222_v13  ;;  %9302 = vmatprep.mubr.msk.f32.mxu1 %vm10260_vm1, %v18222_v13 }
0x1eaf   :  { %9305 = vmatprep.subr.mxu0 %v18222_v13  ;;  %9310 = vmatprep.subr.mxu1 %v18222_v13 }
0x1eb0   :  { %9298 = vmatmul.mubr.f32.vlgmr.msra.gmra.mxu0 %v16538_v29  ;;  %9303 = vmatmul.mubr.f32.vlgmr.msra.gmra.mxu1 %v16540_v30 }
0x1eb1   :  { %9306 = vmatpush3.xpose.msra.mxu0 %v18247_v1  ;;  %9311 = vmatpush3.xpose.msra.mxu1 %v18248_v36 }
0x1eb2   :  { %9307 = vmatprep.mubr.msk.f32.mxu0 %vm10260_vm1, %v18222_v13  ;;  %9312 = vmatprep.mubr.msk.f32.mxu1 %vm10260_vm1, %v18222_v13 }
0x1eb3   :  { %9315 = vmatprep.subr.mxu0 %v18222_v13  ;;  %9320 = vmatprep.subr.mxu1 %v18222_v13 }
0x1eb4   :  { %9308 = vmatmul.mubr.f32.vlgmr.msra.gmra.mxu0 %v16542_v54  ;;  %9313 = vmatmul.mubr.f32.vlgmr.msra.gmra.mxu1 %v16544_v38 }
0x1eb5   :  { %9316 = vmatpush3.xpose.msra.mxu0 %v18249_v2  ;;  %9321 = vmatpush3.xpose.msra.mxu1 %v18250_v3 }
0x1eb6   :  { %9317 = vmatprep.mubr.msk.f32.mxu0 %vm10260_vm1, %v18222_v13  ;;  %9322 = vmatprep.mubr.msk.f32.mxu1 %vm10260_vm1, %v18222_v13 }
0x1eb7   :  { %9325 = vmatprep.subr.mxu0 %v18222_v13  ;;  %9330 = vmatprep.subr.mxu1 %v18222_v13 }
0x1eb8   :  { %9318 = vmatmul.mubr.f32.vlgmr.msra.gmra.mxu0 %v16546_v18  ;;  %9323 = vmatmul.mubr.f32.vlgmr.msra.gmra.mxu1 %v16548_v15 }
0x1eb9   :  { %9326 = vmatpush3.msra.mxu0 %v18228_v50  ;;  %9331 = vmatpush3.msra.mxu1 %v18229_v33 }
0x1eba   :  { %9327 = vmatprep.mubr.msk.f32.mxu0 %vm10260_vm1, %v18222_v13  ;;  %9335 = vmatprep.subr.mxu0 %v18222_v13 }
0x1ebb   :  { %9332 = vmatprep.mubr.msk.f32.mxu1 %vm10260_vm1, %v18222_v13  ;;  %9340 = vmatprep.subr.mxu1 %v18222_v13 }
0x1f6c   :  { %v7632_v9 = vpop.f32.mrf.mxu0  ;;  %v7702_v4 = vpop.f32.mrf.mxu1 }
0x1f6d   :  { %v8127_v6 = vsel %vm8126_vm2, %v7632_v9, -inf  ;;  %v8130_v60 = vsel %vm8126_vm2, %v7702_v4, -inf }
0x1f6e   :  { %v9294_v27 = vpop.f32.mrf.mxu1  ;;  %8128 = vmax.xlane.f32.xlu0 %v8127_v6  ;;  %v9289_v50 = vpop.f32.mrf.mxu0 }
0x1f70   :  { %v7772_v16 = vpop.f32.mrf.mxu0  ;;  %v7842_v33 = vpop.f32.mrf.mxu1 }
0x1f71   :  { %v8133_v5 = vsel %vm8126_vm2, %v7772_v16, -inf  ;;  %v8136_v40 = vsel %vm8126_vm2, %v7842_v33, -inf }
0x1f72   :  { %v9304_v10 = vpop.f32.mrf.mxu1  ;;  %8131 = vmax.xlane.f32.xlu0 %v8130_v60  ;;  %8134 = vmax.xlane.f32.xlu1 %v8133_v5  ;;  %v9299_v35 = vpop.f32.mrf.mxu0 }
0x1f74   :  { %v7912_v37 = vpop.f32.mrf.mxu0  ;;  %v7982_v21 = vpop.f32.mrf.mxu1 }
0x1f75   :  { %v8139_v44 = vsel %vm8126_vm2, %v7912_v37, -inf  ;;  %v8142_v43 = vsel %vm8126_vm2, %v7982_v21, -inf }
0x1f76   :  { %v9314_v24 = vpop.f32.mrf.mxu1  ;;  %8137 = vmax.xlane.f32.xlu1 %v8136_v40  ;;  %8140 = vmax.xlane.f32.xlu0 %v8139_v44  ;;  %v9309_v0 = vpop.f32.mrf.mxu0 }
0x1f78   :  { %v8052_v14 = vpop.f32.mrf.mxu0  ;;  %v8122_v7 = vpop.f32.mrf.mxu1 }
0x1f79   :  { %v8145_v11 = vsel %vm8126_vm2, %v8052_v14, -inf  ;;  %v8148_v39 = vsel %vm8126_vm2, %v8122_v7, -inf }
0x1f7a   :  { %v9324_v59 = vpop.f32.mrf.mxu1  ;;  %8143 = vmax.xlane.f32.xlu1 %v8142_v43  ;;  %8146 = vmax.xlane.f32.xlu0 %v8145_v11  ;;  %v9319_v41 = vpop.f32.mrf.mxu0 }
0x1f7e   :  { %8149 = vmax.xlane.f32.xlu1 %v8148_v39 }
0x1ff7   :  { %v8129_v62 = vpop.xlane.xlu0 %8128 }
0x1ff8   :  { %v8151_v49 = vsub.f32 %v7632_v9, %v8129_v62 }
0x1ffa   :  { %v8159_v31 = vmul.f32 1.442695, %v8151_v49 }
0x1ffb   :  { %v8132_v55 = vpop.xlane.xlu0 %8131  ;;  %v8135_v56 = vpop.xlane.xlu1 %8134 }
0x1ffc   :  { %9969 = vpow2.f32 %v8159_v31  ;;  %v8152_v63 = vsub.f32 %v7702_v4, %v8132_v55  ;;  %v8153_v61 = vsub.f32 %v7772_v16, %v8135_v56 }
0x1ffe   :  { %v8161_v22 = vmul.f32 1.442695, %v8152_v63  ;;  %v8163_v57 = vmul.f32 1.442695, %v8153_v61 }
0x1fff   :  { %v8138_v51 = vpop.xlane.xlu1 %8137  ;;  %v8141_v52 = vpop.xlane.xlu0 %8140 }
0x2000   :  { %9971 = vpow2.f32 %v8161_v22  ;;  %v8154_v12 = vsub.f32 %v7842_v33, %v8138_v51  ;;  %v8155_v34 = vsub.f32 %v7912_v37, %v8141_v52 }
0x2001   :  { %9973 = vpow2.f32 %v8163_v57 }
0x2002   :  { %v8165_v32 = vmul.f32 1.442695, %v8154_v12  ;;  %v8167_v23 = vmul.f32 1.442695, %v8155_v34  ;;  %v8828_v34 = vld [vmem:[%s16781_s15 + $0x68] sm:$0xff] }
0x2003   :  { %v8144_v47 = vpop.xlane.xlu1 %8143  ;;  %v8147_v42 = vpop.xlane.xlu0 %8146 }
0x2004   :  { %9975 = vpow2.f32 %v8165_v32  ;;  %v8156_v20 = vsub.f32 %v7982_v21, %v8144_v47  ;;  %v8157_v45 = vsub.f32 %v8052_v14, %v8147_v42  ;;  %v8814_v32 = vld [vmem:[%s16782_s14 + $0x78] sm:$0xff]  ;;  %v8825_v47 = vld [vmem:[%s16781_s15 + $0x50] sm:$0xff]  ;;  %v8811_v42 = vld [vmem:[%s16782_s14 + $0x60] sm:$0xff] }
0x2005   :  { %9977 = vpow2.f32 %v8167_v23  ;;  %v8826_v23 = vld [vmem:[%s16781_s15 + $0x58] sm:$0xff] }
0x2006   :  { %v8169_v25 = vmul.f32 1.442695, %v8156_v20  ;;  %v8171_v58 = vmul.f32 1.442695, %v8157_v45  ;;  %v8824_v20 = vld [vmem:[%s16781_s15 + $0x48] sm:$0xff]  ;;  %v8810_v45 = vld [vmem:[%s16782_s14 + $0x58] sm:$0xff] }
0x2007   :  { %v8150_v53 = vpop.xlane.xlu1 %8149 }
0x2008   :  { %9979 = vpow2.f32 %v8169_v25  ;;  %v8158_v46 = vsub.f32 %v8122_v7, %v8150_v53  ;;  %v8823_v25 = vld [vmem:[%s16781_s15 + $0x40] sm:$0xff]  ;;  %v8822_v53 = vld [vmem:[%s16781_s15 + $0x38] sm:$0xff] }
0x2009   :  { %v9970_v26 = vpop.eup %9969  ;;  %9981 = vpow2.f32 %v8171_v58  ;;  %v8809_v58 = vld [vmem:[%s16782_s14 + $0x50] sm:$0xff] }
0x200a   :  { %v8173_v17 = vmul.f32 1.442695, %v8158_v46  ;;  %v8175_v9 = vsel %vm8126_vm2, %v9970_v26, 0.0  ;;  %v8808_v46 = vld [vmem:[%s16782_s14 + $0x48] sm:$0xff] }
0x200b   :  { %8176 = vadd.xlane.f32.xlu0 %v8175_v9  ;;  %v8820_v9 = vld [vmem:[%s16781_s15 + $0x28] sm:$0xff] }
0x200c   :  { %9983 = vpow2.f32 %v8173_v17  ;;  %v8807_v17 = vld [vmem:[%s16782_s14 + $0x40] sm:$0xff] }
0x200d   :  { %v9972_v4 = vpop.eup %9971 }
0x200e   :  { %v9974_v6 = vpop.eup %9973  ;;  %v8178_v27 = vsel %vm8126_vm2, %v9972_v4, 0.0 }
0x200f   :  { %8179 = vadd.xlane.f32.xlu1 %v8178_v27  ;;  %v8181_v50 = vsel %vm8126_vm2, %v9974_v6, 0.0  ;;  %v8805_v27 = vld [vmem:[%s16782_s14 + $0x30] sm:$0xff] }
0x2010   :  { %8182 = vadd.xlane.f32.xlu0 %v8181_v50  ;;  %v8818_v50 = vld [vmem:[%s16781_s15 + $0x18] sm:$0xff] }
0x2011   :  { %v9976_v16 = vpop.eup %9975 }
0x2012   :  { %v9978_v33 = vpop.eup %9977  ;;  %v8184_v60 = vsel %vm8126_vm2, %v9976_v16, 0.0 }
0x2013   :  { %8185 = vadd.xlane.f32.xlu1 %v8184_v60  ;;  %v8187_v5 = vsel %vm8126_vm2, %v9978_v33, 0.0  ;;  %v8803_v60 = vld [vmem:[%s16782_s14 + $0x20] sm:$0xff] }
0x2014   :  { %8188 = vadd.xlane.f32.xlu0 %v8187_v5  ;;  %v8816_v5 = vld [vmem:[%s16781_s15 + $0x8] sm:$0xff] }
0x2015   :  { %v9980_v10 = vpop.eup %9979 }
0x2016   :  { %v9982_v35 = vpop.eup %9981  ;;  %v8190_v37 = vsel %vm8126_vm2, %v9980_v10, 0.0 }
0x2017   :  { %8191 = vadd.xlane.f32.xlu1 %v8190_v37  ;;  %v8193_v21 = vsel %vm8126_vm2, %v9982_v35, 0.0  ;;  %v8801_v37 = vld [vmem:[%s16782_s14 + $0x10] sm:$0xff] }
0x2018   :  { %8194 = vadd.xlane.f32.xlu0 %v8193_v21  ;;  %v8800_v21 = vld [vmem:[%s16782_s14 + $0x8] sm:$0xff] }
0x2019   :  { %v9984_v40 = vpop.eup %9983 }
0x201a   :  { %v8196_v44 = vsel %vm8126_vm2, %v9984_v40, 0.0 }
0x201b   :  { %8197 = vadd.xlane.f32.xlu1 %v8196_v44 }
0x2094   :  { %v8177_v24 = vpop.xlane.xlu0 %8176 }
0x2095   :  { %9985 = vrcp.f32 %v8177_v24 }
0x2098   :  { %v8180_v0 = vpop.xlane.xlu1 %8179 }
0x2099   :  { %9987 = vrcp.f32 %v8180_v0  ;;  %v8183_v14 = vpop.xlane.xlu0 %8182 }
0x209a   :  { %9989 = vrcp.f32 %v8183_v14 }
0x209c   :  { %v8186_v7 = vpop.xlane.xlu1 %8185 }
0x209d   :  { %9991 = vrcp.f32 %v8186_v7  ;;  %v8189_v43 = vpop.xlane.xlu0 %8188 }
0x209e   :  { %9993 = vrcp.f32 %v8189_v43 }
0x20a0   :  { %v8192_v11 = vpop.xlane.xlu1 %8191 }
0x20a1   :  { %9995 = vrcp.f32 %v8192_v11  ;;  %v8195_v59 = vpop.xlane.xlu0 %8194 }
0x20a2   :  { %v9986_v41 = vpop.eup %9985  ;;  %9997 = vrcp.f32 %v8195_v59 }
0x20a3   :  { %v8207_v39 = vmul.f32 %v9986_v41, %v9970_v26  ;;  %v8821_v26 = vld [vmem:[%s16781_s15 + $0x30] sm:$0xff] }
0x20a4   :  { %v8198_v62 = vpop.xlane.xlu1 %8197 }
0x20a5   :  { %9999 = vrcp.f32 %v8198_v62  ;;  %9328 = vmatmul.mubr.msk.f32.vlgmr.msra.gmra.mxu0 %vm8126_vm2, %v8207_v39 }
0x20a6   :  { %v9988_v49 = vpop.eup %9987  ;;  %9336 = vmatpush3.msra.mxu0 %v18245_v19  ;;  %9337 = vmatprep.mubr.msk.f32.mxu0 %vm10260_vm1, %v18222_v13 }
0x20a7   :  { %v9990_v31 = vpop.eup %9989  ;;  %v8208_v55 = vmul.f32 %v9988_v49, %v9972_v4  ;;  %9345 = vmatprep.subr.mxu0 %v18222_v13  ;;  %v8806_v4 = vld [vmem:[%s16782_s14 + $0x38] sm:$0xff] }
0x20a8   :  { %v8209_v56 = vmul.f32 %v9990_v31, %v9974_v6  ;;  %v8819_v6 = vld [vmem:[%s16781_s15 + $0x20] sm:$0xff] }
0x20a9   :  { %9333 = vmatmul.mubr.msk.f32.vlgmr.msra.gmra.mxu1 %vm8126_vm2, %v8208_v55 }
0x20aa   :  { %v9992_v63 = vpop.eup %9991  ;;  %9338 = vmatmul.mubr.msk.f32.vlgmr.msra.gmra.mxu0 %vm8126_vm2, %v8209_v56  ;;  %9341 = vmatpush3.msra.mxu1 %v18246_v8  ;;  %v8830_v8 = vld [vmem:[%s16781_s15 + $0x78] sm:$0xff]  ;;  %v9204_v56 = vld [vmem:[%s16783_s16] ss:$0 sm:$0xff] }
0x20ab   :  { %v9994_v61 = vpop.eup %9993  ;;  %v8210_v22 = vmul.f32 %v9992_v63, %v9976_v16  ;;  %9346 = vmatpush3.msra.mxu0 %v18247_v1  ;;  %9342 = vmatprep.mubr.msk.f32.mxu1 %vm10260_vm1, %v18222_v13  ;;  %v8804_v16 = vld [vmem:[%s16782_s14 + $0x28] sm:$0xff] }
0x20ac   :  { %v8211_v19 = vmul.f32 %v9994_v61, %v9978_v33  ;;  %9347 = vmatprep.mubr.msk.f32.mxu0 %vm10260_vm1, %v18222_v13  ;;  %9350 = vmatprep.subr.mxu1 %v18222_v13  ;;  %v8817_v33 = vld [vmem:[%s16781_s15 + $0x10] sm:$0xff] }
0x20ad   :  { %9355 = vmatprep.subr.mxu0 %v18222_v13  ;;  %9343 = vmatmul.mubr.msk.f32.vlgmr.msra.gmra.mxu1 %vm8126_vm2, %v8210_v22 }
0x20ae   :  { %v9996_v57 = vpop.eup %9995  ;;  %9348 = vmatmul.mubr.msk.f32.vlgmr.msra.gmra.mxu0 %vm8126_vm2, %v8211_v19  ;;  %9351 = vmatpush3.msra.mxu1 %v18248_v36  ;;  %v8829_v36 = vld [vmem:[%s16781_s15 + $0x70] sm:$0xff] }
0x20af   :  { %v9998_v1 = vpop.eup %9997  ;;  %v8212_v51 = vmul.f32 %v9996_v57, %v9980_v10  ;;  %9356 = vmatpush3.msra.mxu0 %v18249_v2  ;;  %9352 = vmatprep.mubr.msk.f32.mxu1 %vm10260_vm1, %v18222_v13  ;;  %v8802_v10 = vld [vmem:[%s16782_s14 + $0x18] sm:$0xff] }
0x20b0   :  { %v8213_v52 = vmul.f32 %v9998_v1, %v9982_v35  ;;  %9357 = vmatprep.mubr.msk.f32.mxu0 %vm10260_vm1, %v18222_v13  ;;  %9360 = vmatprep.subr.mxu1 %v18222_v13  ;;  %v8815_v35 = vld [vmem:[%s16781_s15] sm:$0xff] }
0x20b1   :  { %9365 = vmatprep.subr.mxu0 %v8830_v8  ;;  %9353 = vmatmul.mubr.msk.f32.vlgmr.msra.gmra.mxu1 %vm8126_vm2, %v8212_v51 }
0x20b2   :  { %v10000_v12 = vpop.eup %9999  ;;  %9358 = vmatmul.mubr.msk.f32.vlgmr.msra.gmra.mxu0 %vm8126_vm2, %v8213_v52  ;;  %9361 = vmatpush3.msra.mxu1 %v18250_v3  ;;  %v8827_v3 = vld [vmem:[%s16781_s15 + $0x60] sm:$0xff] }
0x20b3   :  { %v8214_v2 = vmul.f32 %v10000_v12, %v9984_v40  ;;  %9366 = vmatpush3.msra.mxu0 %v8830_v8  ;;  %9397 = vmatprep.mubr.f32.mxu0 %v16534_v48  ;;  %v8813_v48 = vld [vmem:[%s16782_s14 + $0x70] sm:$0xff] }
0x20b4   :  { %9367 = vmatprep.subr.mxu0 %v8829_v36  ;;  %9362 = vmatprep.mubr.msk.f32.mxu1 %vm10260_vm1, %v18222_v13  ;;  %v8812_v13 = vld [vmem:[%s16782_s14 + $0x68] sm:$0xff] }
0x20b5   :  { %9368 = vmatpush3.msra.mxu0 %v8829_v36  ;;  %9363 = vmatmul.mubr.msk.f32.vlgmr.msra.gmra.mxu1 %vm8126_vm2, %v8214_v2 }
0x20b6   :  { %9369 = vmatprep.subr.mxu0 %v8828_v34  ;;  %9409 = vmatprep.subr.mxu1 %v8814_v32 }
0x20b7   :  { %9370 = vmatpush3.msra.mxu0 %v8828_v34  ;;  %9410 = vmatpush3.msra.mxu1 %v8814_v32 }
0x20b8   :  { %9371 = vmatprep.subr.mxu0 %v8827_v3  ;;  %9411 = vmatprep.subr.mxu1 %v8813_v48 }
0x20b9   :  { %9372 = vmatpush3.msra.mxu0 %v8827_v3  ;;  %9412 = vmatpush3.msra.mxu1 %v8813_v48 }
0x20ba   :  { %9373 = vmatprep.subr.mxu0 %v8826_v23  ;;  %9413 = vmatprep.subr.mxu1 %v8812_v13 }
0x20bb   :  { %9374 = vmatpush3.msra.mxu0 %v8826_v23  ;;  %9414 = vmatpush3.msra.mxu1 %v8812_v13 }
0x20bc   :  { %9375 = vmatprep.subr.mxu0 %v8825_v47  ;;  %9415 = vmatprep.subr.mxu1 %v8811_v42 }
0x20bd   :  { %9376 = vmatpush3.msra.mxu0 %v8825_v47  ;;  %9416 = vmatpush3.msra.mxu1 %v8811_v42 }
0x20be   :  { %9377 = vmatprep.subr.mxu0 %v8824_v20  ;;  %9417 = vmatprep.subr.mxu1 %v8810_v45 }
0x20bf   :  { %9378 = vmatpush3.msra.mxu0 %v8824_v20  ;;  %9418 = vmatpush3.msra.mxu1 %v8810_v45 }
0x20c0   :  { %9379 = vmatprep.subr.mxu0 %v8823_v25  ;;  %9419 = vmatprep.subr.mxu1 %v8809_v58 }
0x20c1   :  { %9380 = vmatpush3.msra.mxu0 %v8823_v25  ;;  %9420 = vmatpush3.msra.mxu1 %v8809_v58 }
0x20c2   :  { %9381 = vmatprep.subr.mxu0 %v8822_v53  ;;  %9421 = vmatprep.subr.mxu1 %v8808_v46 }
0x20c3   :  { %9382 = vmatpush3.msra.mxu0 %v8822_v53  ;;  %9422 = vmatpush3.msra.mxu1 %v8808_v46 }
0x20c4   :  { %9383 = vmatprep.subr.mxu0 %v8821_v26  ;;  %9423 = vmatprep.subr.mxu1 %v8807_v17 }
0x20c5   :  { %9384 = vmatpush3.msra.mxu0 %v8821_v26  ;;  %9424 = vmatpush3.msra.mxu1 %v8807_v17 }
0x20c6   :  { %9385 = vmatprep.subr.mxu0 %v8820_v9  ;;  %9425 = vmatprep.subr.mxu1 %v8806_v4 }
0x20c7   :  { %9386 = vmatpush3.msra.mxu0 %v8820_v9  ;;  %9426 = vmatpush3.msra.mxu1 %v8806_v4 }
0x20c8   :  { %9387 = vmatprep.subr.mxu0 %v8819_v6  ;;  %9427 = vmatprep.subr.mxu1 %v8805_v27 }
0x20c9   :  { %9388 = vmatpush3.msra.mxu0 %v8819_v6  ;;  %9428 = vmatpush3.msra.mxu1 %v8805_v27 }
0x20ca   :  { %9389 = vmatprep.subr.mxu0 %v8818_v50  ;;  %9429 = vmatprep.subr.mxu1 %v8804_v16 }
0x20cb   :  { %9390 = vmatpush3.msra.mxu0 %v8818_v50  ;;  %9430 = vmatpush3.msra.mxu1 %v8804_v16 }
0x20cc   :  { %9391 = vmatprep.subr.mxu0 %v8817_v33  ;;  %9431 = vmatprep.subr.mxu1 %v8803_v60 }
0x20cd   :  { %9392 = vmatpush3.msra.mxu0 %v8817_v33  ;;  %9432 = vmatpush3.msra.mxu1 %v8803_v60 }
0x20ce   :  { %9393 = vmatprep.subr.mxu0 %v8816_v5  ;;  %9433 = vmatprep.subr.mxu1 %v8802_v10 }
0x20cf   :  { %9394 = vmatpush3.msra.mxu0 %v8816_v5  ;;  %9434 = vmatpush3.msra.mxu1 %v8802_v10 }
0x20d0   :  { %9395 = vmatprep.subr.mxu0 %v8815_v35  ;;  %9435 = vmatprep.subr.mxu1 %v8801_v37 }
0x20d1   :  { %9396 = vmatpush3.msra.mxu0 %v8815_v35  ;;  %9436 = vmatpush3.msra.mxu1 %v8801_v37 }
0x20d2   :  { %9398 = vmatmul.mubr.f32.vlgmr.msra.gmra.mxu0 %v16536_v28  ;;  %9437 = vmatprep.subr.mxu1 %v8800_v21  ;;  %v8799_v28 = vld [vmem:[%s16782_s14] sm:$0xff] }
0x20d3   :  { %9400 = vmatprep.mubr.f32.mxu0 %v16538_v29  ;;  %9438 = vmatpush3.msra.mxu1 %v8800_v21 }
0x20d4   :  { %9439 = vmatprep.subr.mxu1 %v8799_v28 }
0x20d5   :  { %9440 = vmatpush3.msra.mxu1 %v8799_v28 }
0x20d6   :  { %9401 = vmatmul.mubr.f32.gmra.mxu0 %v16540_v30 }
0x20d7   :  { %9403 = vmatprep.mubr.f32.mxu0 %v16542_v54 }
0x20da   :  { %9404 = vmatmul.mubr.f32.gmra.mxu0 %v16544_v38 }
0x20db   :  { %9406 = vmatprep.mubr.f32.mxu0 %v16546_v18 }
0x20de   :  { %9407 = vmatmul.mubr.f32.gmra.mxu0 %v16548_v15 }
0x2165   :  { %v8284_v29 = vpop.f32.mrf.mxu0 }
0x2166   :  { %9441 = vmatprep.mubr.f32.mxu1 %v8284_v29 }
0x2167   :  { %v9329_v30 = vpop.f32.mrf.mxu0 }
0x2169   :  { %v8357_v54 = vpop.f32.mrf.mxu1 }
0x216a   :  { %v8430_v38 = vpop.f32.mrf.mxu0  ;;  %9442 = vmatmul.mubr.f32.vlgmr.msra.gmra.mxu1 %v8357_v54 }
0x216b   :  { %v9334_v18 = vpop.f32.mrf.mxu1  ;;  %9444 = vmatprep.mubr.f32.mxu1 %v8430_v38 }
0x216c   :  { %v9339_v15 = vpop.f32.mrf.mxu0 }
0x216d   :  { %v8503_v40 = vpop.f32.mrf.mxu1 }
0x216e   :  { %v8576_v44 = vpop.f32.mrf.mxu0  ;;  %9445 = vmatmul.mubr.f32.gmra.mxu1 %v8503_v40 }
0x216f   :  { %v9344_v24 = vpop.f32.mrf.mxu1  ;;  %9447 = vmatprep.mubr.f32.mxu1 %v8576_v44 }
0x2170   :  { %v9349_v0 = vpop.f32.mrf.mxu0 }
0x2171   :  { %v8649_v14 = vpop.f32.mrf.mxu1 }
0x2172   :  { %v8722_v7 = vpop.f32.mrf.mxu0  ;;  %9448 = vmatmul.mubr.f32.gmra.mxu1 %v8649_v14 }
0x2173   :  { %v9354_v43 = vpop.f32.mrf.mxu1  ;;  %9450 = vmatprep.mubr.f32.mxu1 %v8722_v7 }
0x2174   :  { %v9359_v11 = vpop.f32.mrf.mxu0 }
0x2175   :  { %v8795_v59 = vpop.f32.mrf.mxu1 }
0x2176   :  { %9451 = vmatmul.mubr.f32.gmra.mxu1 %v8795_v59 }
0x2177   :  { %v9364_v41 = vpop.f32.mrf.mxu1 }
0x2192   :  { %v9399_v39 = vpop.f32.mrf.mxu0 }
0x2194   :  { %v8897_v62 = vpop.f32.mrf.mxu0 }
0x2196   :  { %v9402_v49 = vpop.f32.mrf.mxu0 }
0x2198   :  { %v8907_v31 = vpop.f32.mrf.mxu0 }
0x219a   :  { %v9405_v61 = vpop.f32.mrf.mxu0 }
0x219c   :  { %v8917_v52 = vpop.f32.mrf.mxu0 }
0x219e   :  { %v9408_v48 = vpop.f32.mrf.mxu0 }
0x21a0   :  { %v8927_v25 = vpop.f32.mrf.mxu0 }
0x222a   :  { %v9443_v55 = vpop.f32.mrf.mxu1 }
0x222b   :  { %v9008_v63 = vadd.f32 %v9443_v55, %v9399_v39 }
0x222c   :  { %v9002_v22 = vpop.f32.mrf.mxu1 }
0x222d   :  { %v9049_v19 = vadd.f32 %v9204_v56, %v9008_v63  ;;  %v9003_v57 = vadd.f32 %v9002_v22, %v8897_v62 }
0x222e   :  { %v9446_v8 = vpop.f32.mrf.mxu1 }
0x222f   :  { %9057 = vst [vmem:[%s16784_s17 + $0x8] sm:$0xff] %v9049_v19  ;;  %v9048_v1 = vadd.f32 %v9204_v56, %v9003_v57  ;;  %v9018_v51 = vadd.f32 %v9446_v8, %v9402_v49 }
0x2230   :  { %v9012_v36 = vpop.f32.mrf.mxu1 }
0x2231   :  { %9056 = vst [vmem:[%s16784_s17] sm:$0xff] %v9048_v1  ;;  %v9051_v12 = vadd.f32 %v9204_v56, %v9018_v51  ;;  %v9013_v2 = vadd.f32 %v9012_v36, %v8907_v31 }
0x2232   :  { %v9449_v34 = vpop.f32.mrf.mxu1 }
0x2233   :  { %9059 = vst [vmem:[%s16784_s17 + $0x18] sm:$0xff] %v9051_v12  ;;  %v9050_v32 = vadd.f32 %v9204_v56, %v9013_v2  ;;  %v9028_v3 = vadd.f32 %v9449_v34, %v9405_v61 }
0x2234   :  { %v9022_v23 = vpop.f32.mrf.mxu1 }
0x2235   :  { %9058 = vst [vmem:[%s16784_s17 + $0x10] sm:$0xff] %v9050_v32  ;;  %v9053_v13 = vadd.f32 %v9204_v56, %v9028_v3  ;;  %v9023_v47 = vadd.f32 %v9022_v23, %v8917_v52 }
0x2236   :  { %v9452_v42 = vpop.f32.mrf.mxu1 }
0x2237   :  { %9061 = vst [vmem:[%s16784_s17 + $0x28] sm:$0xff] %v9053_v13  ;;  %v9052_v20 = vadd.f32 %v9204_v56, %v9023_v47  ;;  %v9038_v45 = vadd.f32 %v9452_v42, %v9408_v48 }
0x2238   :  { %v9032_v58 = vpop.f32.mrf.mxu1 }
0x2239   :  { %9060 = vst [vmem:[%s16784_s17 + $0x20] sm:$0xff] %v9052_v20  ;;  %v9055_v53 = vadd.f32 %v9204_v56, %v9038_v45  ;;  %v9033_v46 = vadd.f32 %v9032_v58, %v8927_v25 }
0x223b   :  { %9063 = vst [vmem:[%s16784_s17 + $0x38] sm:$0xff] %v9055_v53  ;;  %v9054_v26 = vadd.f32 %v9204_v56, %v9033_v46 }
0x223d   :  { %9062 = vst [vmem:[%s16784_s17 + $0x30] sm:$0xff] %v9054_v26 }

</bundles_post_ra>
